<compile_context>
chip_gen: v5e
topology: v5e:2x2
jax: 0.10.0
libtpu: 0.0.40
codegen_flags: <defaults>
</compile_context>

<pallas_src>
import functools
import math
import numpy as np
import jax
import jax.numpy as jnp
from jax import lax
from jax.experimental import pallas as pl
from jax.experimental.pallas import tpu as pltpu

NEG_SLOPE = 0.01   # nn.LeakyReLU default negative_slope
GROUPS = 16        # groups=16 in both featureCap convs
K1 = 4             # conv1 kernel == stride
K2 = 2             # conv2 kernel == stride
S2 = K2 * K2       # conv2 kernel positions folded into the slab columns


# ----------------------------- Pallas kernel ------------------------------

def _fused_kernel(x_ref, w1_ref, b1_ref, w2_ref, b2_ref, w3_ref, b3_ref,
                  pbig_ref, o_ref):
    # x_ref : (1, B*M, Kin)  bf16 im2col slab for B_TILE images
    # w1_ref: (Kin, S2*d0)   bf16 conv1 dense (block-diag over groups & conv2 pos)
    # w2_ref: (S2*d0, d1)    bf16 conv2 dense (block-diag over groups)
    # w3_ref: (d1, C)        bf16 1x1 conv
    # pbig  : (B*P2, B*M)    f32  block-diag adaptive-avg-pool matrix (I_B ⊗ P)
    # o_ref : (1, B*P2, C)   f32
    x = x_ref[0]
    y = jnp.dot(x, w1_ref[...], preferred_element_type=jnp.float32) + b1_ref[...]
    y = jnp.where(y > 0, y, NEG_SLOPE * y)            # (B*M, S2*d0) == conv2 im2col
    y = jnp.dot(y.astype(w2_ref.dtype), w2_ref[...],
                preferred_element_type=jnp.float32) + b2_ref[...]
    y = jnp.where(y > 0, y, NEG_SLOPE * y)            # (B*M, d1)
    y = jnp.dot(y.astype(w3_ref.dtype), w3_ref[...],
                preferred_element_type=jnp.float32) + b3_ref[...]   # (B*M, C)
    o_ref[0] = jnp.dot(pbig_ref[...], y,
                       preferred_element_type=jnp.float32).astype(o_ref.dtype)


def fused_forward_call(x3, w1big, b1big, w2full, b2, w3, b3, pbig):
    n_steps, BM, Kin = x3.shape
    BP = pbig.shape[0]
    C = w3.shape[1]
    d0s, d1 = w2full.shape

    flops = 2 * n_steps * BM * (Kin * d0s + d0s * d1 + d1 * C) \
        + 2 * n_steps * BP * BM * C
    bytes_accessed = sum(int(a.size) * a.dtype.itemsize
                         for a in (x3, w1big, b1big, w2full, b2, w3, b3, pbig))
    bytes_accessed += n_steps * BP * C * 4   # output

    return pl.pallas_call(
        _fused_kernel,
        out_shape=jax.ShapeDtypeStruct((n_steps, BP, C), jnp.float32),
        grid=(n_steps,),
        in_specs=[
            pl.BlockSpec((1, BM, Kin), lambda n: (n, 0, 0)),
            pl.BlockSpec(w1big.shape, lambda n: (0, 0)),
            pl.BlockSpec(b1big.shape, lambda n: (0, 0)),
            pl.BlockSpec(w2full.shape, lambda n: (0, 0)),
            pl.BlockSpec(b2.shape, lambda n: (0, 0)),
            pl.BlockSpec(w3.shape, lambda n: (0, 0)),
            pl.BlockSpec(b3.shape, lambda n: (0, 0)),
            pl.BlockSpec(pbig.shape, lambda n: (0, 0)),
        ],
        out_specs=pl.BlockSpec((1, BP, C), lambda n: (n, 0, 0)),
        compiler_params=pltpu.CompilerParams(
            dimension_semantics=("parallel",),
            vmem_limit_bytes=32 * 1024 * 1024,
            # let XLA fuse the im2col transpose/cast into the slab operand
            allow_input_fusion=[True, False, False, False, False, False, False, False],
        ),
        cost_estimate=pl.CostEstimate(flops=int(flops), transcendentals=0,
                                      bytes_accessed=int(bytes_accessed)),
    )(x3, w1big, b1big, w2full, b2, w3, b3, pbig)


# ------------------------------- JAX glue ---------------------------------

def _im2col_fused(image, dtype=jnp.bfloat16):
    """(N, C, H, W) -> (N, M, K2*K2*C*K1*K1) in `dtype`.
    Rows ordered (h2, w2) [conv2 output pixels]; columns ordered
    (kh2, kw2, c, kh1, kw1).  One XLA transpose of the raw input."""
    N, C, H, W = image.shape
    h2, w2 = H // (K1 * K2), W // (K1 * K2)
    x = image.astype(dtype).reshape(N, C, h2, K2, K1, w2, K2, K1)
    x = jnp.transpose(x, (0, 2, 5, 3, 6, 1, 4, 7))   # (N, h2, w2, kh2, kw2, c, kh1, kw1)
    return x.reshape(N, h2 * w2, S2 * C * K1 * K1), (h2, w2)


def _dense_grouped_weight_cikk(w, groups):
    """PyTorch grouped-conv weight (Cout, Cin//G, kh, kw) -> dense (Cin*kh*kw, Cout)
    with explicit zeros off the group blocks; rows ordered (cin_global, kh, kw)."""
    Cout, cpg, kh, kw = w.shape
    cg = Cout // groups
    blocks = jnp.transpose(w.reshape(groups, cg, cpg * kh * kw), (0, 2, 1))   # (g, K, cg)
    eye = jnp.eye(groups, dtype=w.dtype)
    return jnp.einsum('gkc,gh->gkhc', blocks, eye).reshape(groups * cpg * kh * kw, Cout)


def _dense_grouped_weight_kkci(w, groups):
    """Same, but rows ordered (kh, kw, cin_global) -> (kh*kw*Cin, Cout)."""
    Cout, cpg, kh, kw = w.shape
    cg = Cout // groups
    wr = w.reshape(groups, cg, cpg, kh * kw)                                  # (g, o, i, s)
    eye = jnp.eye(groups, dtype=w.dtype)
    return jnp.einsum('gois,gh->sgiho', wr, eye).reshape(kh * kw * groups * cpg, Cout)


def adaptive_pool_matrix(in_size, out_size):
    """Row-stochastic matrix reproducing torch.nn.AdaptiveAvgPool (1-D factor)."""
    m = np.zeros((out_size, in_size), dtype=np.float32)
    for i in range(out_size):
        s = (i * in_size) // out_size
        e = math.ceil((i + 1) * in_size / out_size)
        m[i, s:e] = 1.0 / (e - s)
    return m


def _choose_b_tile(n, max_tile=8):
    """Largest divisor of n that is <= max_tile and keeps >= 2 grid steps."""
    best = 1
    for t in range(1, min(max_tile, n) + 1):
        if n % t == 0 and n // t >= 2:
            best = t
    return best


def prepare_params(params, image_hw, batch, pool_size=7, b_tile=None,
                   weight_dtype=jnp.bfloat16):
    """Precompute (once per model) the dense block-diagonal weights, biases and
    pooling matrix used by the fused kernel."""
    H, W = image_hw
    h2, w2 = H // (K1 * K2), W // (K1 * K2)
    M = h2 * w2
    d0 = params["w1"].shape[0]
    d1 = params["w2"].shape[0]
    C = params["w3"].shape[0]
    if b_tile is None:
        b_tile = _choose_b_tile(batch)
    assert batch % b_tile == 0

    w1_dense = _dense_grouped_weight_cikk(params["w1"], GROUPS)              # (Cin*16, d0)
    eye_s = jnp.eye(S2, dtype=w1_dense.dtype)
    w1big = jnp.einsum('st,kc->sktc', eye_s, w1_dense).reshape(
        S2 * w1_dense.shape[0], S2 * d0)                                      # (4*Cin*16, 4*d0)
    w2full = _dense_grouped_weight_kkci(params["w2"], GROUPS)                 # (4*d0, d1)

    p2d = np.kron(adaptive_pool_matrix(h2, pool_size),
                  adaptive_pool_matrix(w2, pool_size))                        # (P2, M)
    pbig = np.kron(np.eye(b_tile, dtype=np.float32), p2d)                     # (B*P2, B*M)

    return {
        "w1big": jnp.asarray(w1big, weight_dtype),
        "b1big": jnp.tile(params["b1"], S2).reshape(1, S2 * d0).astype(jnp.float32),
        "w2full": jnp.asarray(w2full, weight_dtype),
        "b2": params["b2"].reshape(1, d1).astype(jnp.float32),
        "w3": jnp.asarray(params["w3"].reshape(C, d1).T, weight_dtype),
        "b3": params["b3"].reshape(1, C).astype(jnp.float32),
        "pbig": jnp.asarray(pbig, jnp.float32),
        "w3_squeezed": params["w3"].reshape(C, d1),      # second forward() output
        "b_tile": b_tile,
        "pool_size": pool_size,
        "slab_dtype": weight_dtype,
    }


def att_map_generator_forward(image, prep):
    N = image.shape[0]
    b_tile = prep["b_tile"]
    P = prep["pool_size"]
    C = prep["w3"].shape[1]
    assert N % b_tile == 0

    # Single im2col slab (bf16); rows = conv2 output pixels, conv2 kernel
    # positions folded into the columns.
    x_slab, _ = _im2col_fused(image, prep["slab_dtype"])        # (N, M, Kin)
    M, Kin = x_slab.shape[1], x_slab.shape[2]
    n_steps = N // b_tile
    x3 = x_slab.reshape(n_steps, b_tile * M, Kin)               # free reshape

    pooled = fused_forward_call(x3, prep["w1big"], prep["b1big"], prep["w2full"],
                                prep["b2"], prep["w3"], prep["b3"], prep["pbig"])
    out = pooled.reshape(N, P * P, C)
    out = jnp.transpose(out, (0, 2, 1)).reshape(N, C, P, P)
    # return (pooled maps, self.weight.weight.squeeze());
    # Dropout layers are identity in eval mode.
    return out, prep["w3_squeezed"]


# ------------------------- pure-JAX reference check ------------------------

def reference_forward(image, params, pool_size=7):
    dn = ("NCHW", "OIHW", "NCHW")
    y = lax.conv_general_dilated(image, params["w1"], (4, 4), "VALID",
                                 feature_group_count=GROUPS, dimension_numbers=dn)
    y = y + params["b1"][None, :, None, None]
    y = jnp.where(y > 0, y, NEG_SLOPE * y)
    y = lax.conv_general_dilated(y, params["w2"], (2, 2), "VALID",
                                 feature_group_count=GROUPS, dimension_numbers=dn)
    y = y + params["b2"][None, :, None, None]
    y = jnp.where(y > 0, y, NEG_SLOPE * y)
    y = lax.conv_general_dilated(y, params["w3"], (1, 1), "VALID", dimension_numbers=dn)
    y = y + params["b3"][None, :, None, None]
    Ph = adaptive_pool_matrix(y.shape[2], pool_size)
    Pw = adaptive_pool_matrix(y.shape[3], pool_size)
    y = jnp.einsum("nchw,ph,qw->ncpq", y, Ph, Pw)
    return y, params["w3"].reshape(params["w3"].shape[0], -1)


if __name__ == "__main__":
    key = jax.random.PRNGKey(0)
    N, Cin, H, W = 4, 16, 112, 112       # in_channel must be a multiple of groups=16
    class_num = 10
    dims = [64, 128]
    pool_size = 7

    keys = jax.random.split(key, 7)
    image = jax.random.normal(keys[0], (N, Cin, H, W), jnp.float32)
    # deterministic synthetic parameters (shapes from the module __init__)
    params = {
        "w1": jax.random.normal(keys[1], (dims[0], Cin // GROUPS, 4, 4), jnp.float32) * 0.1,
        "b1": jax.random.normal(keys[2], (dims[0],), jnp.float32) * 0.1,
        "w2": jax.random.normal(keys[3], (dims[1], dims[0] // GROUPS, 2, 2), jnp.float32) * 0.1,
        "b2": jax.random.normal(keys[4], (dims[1],), jnp.float32) * 0.1,
        "w3": jax.random.normal(keys[5], (class_num, dims[1], 1, 1), jnp.float32) * 0.1,
        "b3": jax.random.normal(keys[6], (class_num,), jnp.float32) * 0.1,
    }

    # Precompute/cache the kernel-side weights ONCE per model (outside the jit).
    prep = prepare_params(params, (H, W), N, pool_size=pool_size)
    fwd = jax.jit(functools.partial(att_map_generator_forward, prep=prep))

    out, w_sq = fwd(image)
    jax.block_until_ready((out, w_sq))

    ref_out, ref_w = reference_forward(image, params, pool_size)
    # bf16 slab/weights with f32 accumulation: loosened tolerance vs. f32 run.
    np.testing.assert_allclose(np.asarray(out), np.asarray(ref_out), rtol=3e-2, atol=3e-2)
    np.testing.assert_allclose(np.asarray(w_sq), np.asarray(ref_w))
    assert out.shape == (N, class_num, pool_size, pool_size)
    assert w_sq.shape == (class_num, dims[1])
    print("KERNEL_OK")
</pallas_src>

<mosaic_0001>
module attributes {stable_mosaic.version = 11 : i64} {
  func.func @_fused_kernel(%arg0: i32, %arg1: memref<1x392x1024xbf16, #tpu.memory_space<vmem>>, %arg2: memref<1024x256xbf16, #tpu.memory_space<vmem>>, %arg3: memref<1x256xf32, #tpu.memory_space<vmem>>, %arg4: memref<256x128xbf16, #tpu.memory_space<vmem>>, %arg5: memref<1x128xf32, #tpu.memory_space<vmem>>, %arg6: memref<128x10xbf16, #tpu.memory_space<vmem>>, %arg7: memref<1x10xf32, #tpu.memory_space<vmem>>, %arg8: memref<98x392xf32, #tpu.memory_space<vmem>>, %arg9: memref<1x98x10xf32, #tpu.memory_space<vmem>>) attributes {dimension_semantics = [#tpu.dimension_semantics<parallel>], iteration_bounds = array<i64: 2>, scalar_prefetch = 0 : i64, scratch_operands = 0 : i64, tpu.core_type = #tpu.core_type<tc>, window_params = [{transform_indices = @transform_0, window_bounds = array<i64: 1, 392, 1024>}, {pipeline_mode = #tpu.pipeline_mode<synchronous>, transform_indices = @transform_1, window_bounds = array<i64: 1024, 256>}, {pipeline_mode = #tpu.pipeline_mode<synchronous>, transform_indices = @transform_2, window_bounds = array<i64: 1, 256>}, {pipeline_mode = #tpu.pipeline_mode<synchronous>, transform_indices = @transform_3, window_bounds = array<i64: 256, 128>}, {pipeline_mode = #tpu.pipeline_mode<synchronous>, transform_indices = @transform_4, window_bounds = array<i64: 1, 128>}, {pipeline_mode = #tpu.pipeline_mode<synchronous>, transform_indices = @transform_5, window_bounds = array<i64: 128, 10>}, {pipeline_mode = #tpu.pipeline_mode<synchronous>, transform_indices = @transform_6, window_bounds = array<i64: 1, 10>}, {pipeline_mode = #tpu.pipeline_mode<synchronous>, transform_indices = @transform_7, window_bounds = array<i64: 98, 392>}, {transform_indices = @transform_8, window_bounds = array<i64: 1, 98, 10>}]} {
    %c0 = arith.constant 0 : index
    %c0_0 = arith.constant 0 : index
    %c0_1 = arith.constant 0 : index
    %0 = vector.load %arg1[%c0, %c0_0, %c0_1] : memref<1x392x1024xbf16, #tpu.memory_space<vmem>>, vector<1x392x1024xbf16>
    %1 = vector.shape_cast %0 : vector<1x392x1024xbf16> to vector<392x1024xbf16>
    %c0_2 = arith.constant 0 : index
    %c0_3 = arith.constant 0 : index
    %2 = vector.load %arg2[%c0_2, %c0_3] : memref<1024x256xbf16, #tpu.memory_space<vmem>>, vector<1024x256xbf16>
    %cst = arith.constant dense<0.000000e+00> : vector<392x256xf32>
    %3 = tpu.matmul %1, %2, %cst {dimension_numbers = #tpu.dot_dimension_numbers<[1], [0], [0], [1], [0, 0, 1, 1], [], []>} : vector<392x1024xbf16>, vector<1024x256xbf16>, vector<392x256xf32> -> vector<392x256xf32>
    %c0_4 = arith.constant 0 : index
    %c0_5 = arith.constant 0 : index
    %4 = vector.load %arg3[%c0_4, %c0_5] : memref<1x256xf32, #tpu.memory_space<vmem>>, vector<1x256xf32>
    %5 = vector.broadcast %4 : vector<1x256xf32> to vector<392x256xf32>
    %6 = arith.addf %3, %5 : vector<392x256xf32>
    %cst_6 = arith.constant 0.000000e+00 : f32
    %7 = vector.broadcast %cst_6 : f32 to vector<392x256xf32>
    %8 = arith.cmpf ogt, %6, %7 : vector<392x256xf32>
    %cst_7 = arith.constant 0.00999999977 : f32
    %9 = vector.broadcast %cst_7 : f32 to vector<392x256xf32>
    %10 = arith.mulf %9, %6 : vector<392x256xf32>
    %11 = arith.select %8, %6, %10 : vector<392x256xi1>, vector<392x256xf32>
    %12 = arith.truncf %11 : vector<392x256xf32> to vector<392x256xbf16>
    %c0_8 = arith.constant 0 : index
    %c0_9 = arith.constant 0 : index
    %13 = vector.load %arg4[%c0_8, %c0_9] : memref<256x128xbf16, #tpu.memory_space<vmem>>, vector<256x128xbf16>
    %cst_10 = arith.constant dense<0.000000e+00> : vector<392x128xf32>
    %14 = tpu.matmul %12, %13, %cst_10 {dimension_numbers = #tpu.dot_dimension_numbers<[1], [0], [0], [1], [0, 0, 1, 1], [], []>} : vector<392x256xbf16>, vector<256x128xbf16>, vector<392x128xf32> -> vector<392x128xf32>
    %c0_11 = arith.constant 0 : index
    %c0_12 = arith.constant 0 : index
    %15 = vector.load %arg5[%c0_11, %c0_12] : memref<1x128xf32, #tpu.memory_space<vmem>>, vector<1x128xf32>
    %16 = vector.broadcast %15 : vector<1x128xf32> to vector<392x128xf32>
    %17 = arith.addf %14, %16 : vector<392x128xf32>
    %cst_13 = arith.constant 0.000000e+00 : f32
    %18 = vector.broadcast %cst_13 : f32 to vector<392x128xf32>
    %19 = arith.cmpf ogt, %17, %18 : vector<392x128xf32>
    %cst_14 = arith.constant 0.00999999977 : f32
    %20 = vector.broadcast %cst_14 : f32 to vector<392x128xf32>
    %21 = arith.mulf %20, %17 : vector<392x128xf32>
    %22 = arith.select %19, %17, %21 : vector<392x128xi1>, vector<392x128xf32>
    %23 = arith.truncf %22 : vector<392x128xf32> to vector<392x128xbf16>
    %c0_15 = arith.constant 0 : index
    %c0_16 = arith.constant 0 : index
    %24 = vector.load %arg6[%c0_15, %c0_16] : memref<128x10xbf16, #tpu.memory_space<vmem>>, vector<128x10xbf16>
    %cst_17 = arith.constant dense<0.000000e+00> : vector<392x10xf32>
    %25 = tpu.matmul %23, %24, %cst_17 {dimension_numbers = #tpu.dot_dimension_numbers<[1], [0], [0], [1], [0, 0, 1, 1], [], []>} : vector<392x128xbf16>, vector<128x10xbf16>, vector<392x10xf32> -> vector<392x10xf32>
    %c0_18 = arith.constant 0 : index
    %c0_19 = arith.constant 0 : index
    %26 = vector.load %arg7[%c0_18, %c0_19] : memref<1x10xf32, #tpu.memory_space<vmem>>, vector<1x10xf32>
    %27 = vector.broadcast %26 : vector<1x10xf32> to vector<392x10xf32>
    %28 = arith.addf %25, %27 : vector<392x10xf32>
    %c0_20 = arith.constant 0 : index
    %c0_21 = arith.constant 0 : index
    %29 = vector.load %arg8[%c0_20, %c0_21] : memref<98x392xf32, #tpu.memory_space<vmem>>, vector<98x392xf32>
    %cst_22 = arith.constant dense<0.000000e+00> : vector<98x10xf32>
    %30 = tpu.matmul %29, %28, %cst_22 {dimension_numbers = #tpu.dot_dimension_numbers<[1], [0], [0], [1], [0, 0, 1, 1], [], []>} : vector<98x392xf32>, vector<392x10xf32>, vector<98x10xf32> -> vector<98x10xf32>
    %c0_23 = arith.constant 0 : index
    %c0_24 = arith.constant 0 : index
    %c0_25 = arith.constant 0 : index
    %31 = vector.load %arg9[%c0_23, %c0_24, %c0_25] : memref<1x98x10xf32, #tpu.memory_space<vmem>>, vector<1x98x10xf32>
    %32 = vector.shape_cast %31 : vector<1x98x10xf32> to vector<98x10xf32>
    %33 = vector.shape_cast %30 : vector<98x10xf32> to vector<1x98x10xf32>
    tpu.vector_store %arg9[%c0_23, %c0_24, %c0_25], %33 {strides = array<i32>} : memref<1x98x10xf32, #tpu.memory_space<vmem>>, vector<1x98x10xf32>,
    return
  }
  func.func @transform_0(%arg0: i32) -> (i32, i32, i32) {
    %c0_i32 = arith.constant 0 : i32
    %c0_i32_0 = arith.constant 0 : i32
    %c0_i32_1 = arith.constant 0 : i32
    return %arg0, %c0_i32, %c0_i32_0 : i32, i32, i32
  }
  func.func @transform_1(%arg0: i32) -> (i32, i32) {
    %c0_i32 = arith.constant 0 : i32
    %c0_i32_0 = arith.constant 0 : i32
    %c0_i32_1 = arith.constant 0 : i32
    return %c0_i32, %c0_i32_0 : i32, i32
  }
  func.func @transform_2(%arg0: i32) -> (i32, i32) {
    %c0_i32 = arith.constant 0 : i32
    %c0_i32_0 = arith.constant 0 : i32
    %c0_i32_1 = arith.constant 0 : i32
    return %c0_i32, %c0_i32_0 : i32, i32
  }
  func.func @transform_3(%arg0: i32) -> (i32, i32) {
    %c0_i32 = arith.constant 0 : i32
    %c0_i32_0 = arith.constant 0 : i32
    %c0_i32_1 = arith.constant 0 : i32
    return %c0_i32, %c0_i32_0 : i32, i32
  }
  func.func @transform_4(%arg0: i32) -> (i32, i32) {
    %c0_i32 = arith.constant 0 : i32
    %c0_i32_0 = arith.constant 0 : i32
    %c0_i32_1 = arith.constant 0 : i32
    return %c0_i32, %c0_i32_0 : i32, i32
  }
  func.func @transform_5(%arg0: i32) -> (i32, i32) {
    %c0_i32 = arith.constant 0 : i32
    %c0_i32_0 = arith.constant 0 : i32
    %c0_i32_1 = arith.constant 0 : i32
    return %c0_i32, %c0_i32_0 : i32, i32
  }
  func.func @transform_6(%arg0: i32) -> (i32, i32) {
    %c0_i32 = arith.constant 0 : i32
    %c0_i32_0 = arith.constant 0 : i32
    %c0_i32_1 = arith.constant 0 : i32
    return %c0_i32, %c0_i32_0 : i32, i32
  }
  func.func @transform_7(%arg0: i32) -> (i32, i32) {
    %c0_i32 = arith.constant 0 : i32
    %c0_i32_0 = arith.constant 0 : i32
    %c0_i32_1 = arith.constant 0 : i32
    return %c0_i32, %c0_i32_0 : i32, i32
  }
  func.func @transform_8(%arg0: i32) -> (i32, i32, i32) {
    %c0_i32 = arith.constant 0 : i32
    %c0_i32_0 = arith.constant 0 : i32
    %c0_i32_1 = arith.constant 0 : i32
    return %arg0, %c0_i32, %c0_i32_0 : i32, i32, i32
  }
}

</mosaic_0001>

<bundles_post_ra>
// kernel: att_map_generator_forward.1
= control target key start
LH: loop header
LB: loop body
LE: loop exit
PB: predicated region body
PF: predicated region fallthrough
CT: control target
= control target key end

     0   :  { %s7718_s27 = smov 0   ;;  %s11103_s0 = inlined_call_operand.vmem [shape: bf16[2,392,1024], index: 0, kind: input, shape index: {}]   ;;  %s11104_s1 = inlined_call_operand.vmem [shape: bf16[1024,256], index: 1, kind: input, shape index: {}]   ;;  %s11105_s2 = inlined_call_operand.vmem [shape: f32[1,256], index: 2, kind: input, shape index: {}]   ;;  %s11106_s3 = inlined_call_operand.vmem [shape: bf16[256,128], index: 3, kind: input, shape index: {}]   ;;  %s11107_s4 = inlined_call_operand.vmem [shape: f32[1,128], index: 4, kind: input, shape index: {}]   ;;  %s11108_s5 = inlined_call_operand.vmem [shape: bf16[128,10], index: 5, kind: input, shape index: {}]   ;;  %s11109_s6 = inlined_call_operand.vmem [shape: f32[1,10], index: 6, kind: input, shape index: {}]   ;;  %s11110_s7 = inlined_call_operand.vmem [shape: f32[98,392], index: 7, kind: input, shape index: {}]   ;;  %s11111_s8 = inlined_call_operand.vmem [shape: f32[2,98,10], index: 8, kind: output, shape index: {}]  }
   0x1 LB: > { %s5893_s28 = sadd.s32 4294967295, %s7671_s27   ;;  %p5897_p0 = scmp.ge.s32.totalorder %s7671_s27, 1  ;;  %s7671_s27 = sphi %s7718_s27, %s18_s27  }
   0x2   : > { %p262_p1 = scmp.lt.s32.totalorder %s7671_s27, 3 }
   0x4   : > { %p263_p2 = pnand %p5897_p0, %p262_p1 }
   0x6   : > { %266 = sbr.rel (%p263_p2) target bundleno = 2664 (0xa68), region = 52 }
   0xb   : > { %v6726_v0 = vld [vmem:[%s11104_s1 + $0x70] sm:$0xf]  ;;  %v7498_v1 = vld [vmem:[%s11104_s1 + $0x74] sm:$0xf0]  ;;  %v6718_v11 = vld [vmem:[%s11104_s1 + $0x60] sm:$0xf] }
   0xc   : > { %v6790_v2 = vld [vmem:[%s11104_s1 + $0xf0] sm:$0xf]  ;;  %v6727_v3 = vor.u32 %v7498_v1, %v6726_v0  ;;  %v7514_v4 = vld [vmem:[%s11104_s1 + $0xf4] sm:$0xf0]  ;;  %v7496_v13 = vld [vmem:[%s11104_s1 + $0x64] sm:$0xf0] }
   0xd   : > { %v6854_v5 = vld [vmem:[%s11104_s1 + $0x170] sm:$0xf]  ;;  %v7530_v6 = vld [vmem:[%s11104_s1 + $0x174] sm:$0xf0]  ;;  %v6791_v7 = vor.u32 %v7514_v4, %v6790_v2  ;;  %v6782_v14 = vld [vmem:[%s11104_s1 + $0xe0] sm:$0xf]  ;;  %v6719_v16 = vor.u32 %v7496_v13, %v6718_v11 }
   0xe   : > { %v6855_v8 = vor.u32 %v7530_v6, %v6854_v5  ;;  %v6918_v9 = vld [vmem:[%s11104_s1 + $0x1f0] sm:$0xf]  ;;  %v7546_v10 = vld [vmem:[%s11104_s1 + $0x1f4] sm:$0xf0]  ;;  %2264 = vmatpush.bf16.msra.mxu0 %v6727_v3  ;;  %v7512_v15 = vld [vmem:[%s11104_s1 + $0xe4] sm:$0xf0] }
   0xf   : > { %v6919_v12 = vor.u32 %v7546_v10, %v6918_v9  ;;  %2397 = vmatpush.bf16.msra.mxu1 %v6791_v7  ;;  %v6783_v17 = vor.u32 %v7512_v15, %v6782_v14  ;;  %v6846_v18 = vld [vmem:[%s11104_s1 + $0x160] sm:$0xf]  ;;  %v7528_v19 = vld [vmem:[%s11104_s1 + $0x164] sm:$0xf0]  ;;  %v6710_v23 = vld [vmem:[%s11104_s1 + $0x50] sm:$0xf] }
  0x10   : > { %2530 = vmatpush.bf16.msra.mxu2 %v6855_v8  ;;  %v6910_v20 = vld [vmem:[%s11104_s1 + $0x1e0] sm:$0xf]  ;;  %v6847_v21 = vor.u32 %v7528_v19, %v6846_v18  ;;  %v7544_v22 = vld [vmem:[%s11104_s1 + $0x1e4] sm:$0xf0]  ;;  %v7494_v24 = vld [vmem:[%s11104_s1 + $0x54] sm:$0xf0] }
  0x11   : > { %2663 = vmatpush.bf16.msra.mxu3 %v6919_v12  ;;  %v6911_v25 = vor.u32 %v7544_v22, %v6910_v20  ;;  %v6774_v26 = vld [vmem:[%s11104_s1 + $0xd0] sm:$0xf]  ;;  %v7510_v27 = vld [vmem:[%s11104_s1 + $0xd4] sm:$0xf0]  ;;  %v6711_v29 = vor.u32 %v7494_v24, %v6710_v23  ;;  %v6702_v35 = vld [vmem:[%s11104_s1 + $0x40] sm:$0xf] }
  0x12   : > { %v6838_v28 = vld [vmem:[%s11104_s1 + $0x150] sm:$0xf]  ;;  %2265 = vmatpush.bf16.msra.mxu0 %v6719_v16  ;;  %v7526_v30 = vld [vmem:[%s11104_s1 + $0x154] sm:$0xf0]  ;;  %v6775_v33 = vor.u32 %v7510_v27, %v6774_v26  ;;  %v7492_v36 = vld [vmem:[%s11104_s1 + $0x44] sm:$0xf0] }
  0x13   : > { %v6902_v31 = vld [vmem:[%s11104_s1 + $0x1d0] sm:$0xf]  ;;  %v7542_v32 = vld [vmem:[%s11104_s1 + $0x1d4] sm:$0xf0]  ;;  %2398 = vmatpush.bf16.msra.mxu1 %v6783_v17  ;;  %v6839_v34 = vor.u32 %v7526_v30, %v6838_v28  ;;  %v6766_v37 = vld [vmem:[%s11104_s1 + $0xc0] sm:$0xf]  ;;  %v6703_v44 = vor.u32 %v7492_v36, %v6702_v35 }
  0x14   : > { %2531 = vmatpush.bf16.msra.mxu2 %v6847_v21  ;;  %v6903_v38 = vor.u32 %v7542_v32, %v6902_v31  ;;  %v7508_v39 = vld [vmem:[%s11104_s1 + $0xc4] sm:$0xf0]  ;;  %v6830_v40 = vld [vmem:[%s11104_s1 + $0x140] sm:$0xf]  ;;  %v6694_v47 = vld [vmem:[%s11104_s1 + $0x30] sm:$0xf] }
  0x15   : > { %2664 = vmatpush.bf16.msra.mxu3 %v6911_v25  ;;  %v7524_v41 = vld [vmem:[%s11104_s1 + $0x144] sm:$0xf0]  ;;  %v6894_v42 = vld [vmem:[%s11104_s1 + $0x1c0] sm:$0xf]  ;;  %v6767_v45 = vor.u32 %v7508_v39, %v6766_v37  ;;  %v7490_v48 = vld [vmem:[%s11104_s1 + $0x34] sm:$0xf0] }
  0x16   : > { %v7540_v43 = vld [vmem:[%s11104_s1 + $0x1c4] sm:$0xf0]  ;;  %2266 = vmatpush.bf16.msra.mxu0 %v6711_v29  ;;  %v6831_v46 = vor.u32 %v7524_v41, %v6830_v40  ;;  %v6758_v49 = vld [vmem:[%s11104_s1 + $0xb0] sm:$0xf]  ;;  %v7506_v51 = vld [vmem:[%s11104_s1 + $0xb4] sm:$0xf0]  ;;  %v6695_v56 = vor.u32 %v7490_v48, %v6694_v47 }
  0x17   : > { %2399 = vmatpush.bf16.msra.mxu1 %v6775_v33  ;;  %v6895_v50 = vor.u32 %v7540_v43, %v6894_v42  ;;  %v6822_v52 = vld [vmem:[%s11104_s1 + $0x130] sm:$0xf]  ;;  %v7522_v53 = vld [vmem:[%s11104_s1 + $0x134] sm:$0xf0]  ;;  %v6759_v57 = vor.u32 %v7506_v51, %v6758_v49  ;;  %v6686_v59 = vld [vmem:[%s11104_s1 + $0x20] sm:$0xf] }
  0x18   : > { %2532 = vmatpush.bf16.msra.mxu2 %v6839_v34  ;;  %v6886_v54 = vld [vmem:[%s11104_s1 + $0x1b0] sm:$0xf]  ;;  %v7538_v55 = vld [vmem:[%s11104_s1 + $0x1b4] sm:$0xf0]  ;;  %v6823_v58 = vor.u32 %v7522_v53, %v6822_v52  ;;  %v7488_v60 = vld [vmem:[%s11104_s1 + $0x24] sm:$0xf0] }
  0x19   : > { %2665 = vmatpush.bf16.msra.mxu3 %v6903_v38  ;;  %v6750_v61 = vld [vmem:[%s11104_s1 + $0xa0] sm:$0xf]  ;;  %v6887_v62 = vor.u32 %v7538_v55, %v6886_v54  ;;  %v7504_v63 = vld [vmem:[%s11104_s1 + $0xa4] sm:$0xf0]  ;;  %v6687_v4 = vor.u32 %v7488_v60, %v6686_v59  ;;  %v6678_v5 = vld [vmem:[%s11104_s1 + $0x10] sm:$0xf] }
  0x1a   : > { %2267 = vmatpush.bf16.msra.mxu0 %v6703_v44  ;;  %v6814_v0 = vld [vmem:[%s11104_s1 + $0x120] sm:$0xf]  ;;  %v7520_v1 = vld [vmem:[%s11104_s1 + $0x124] sm:$0xf0]  ;;  %v7486_v6 = vld [vmem:[%s11104_s1 + $0x14] sm:$0xf0]  ;;  %v6751_v7 = vor.u32 %v7504_v63, %v6750_v61 }
  0x1b   : > { %2400 = vmatpush.bf16.msra.mxu1 %v6767_v45  ;;  %v6878_v2 = vld [vmem:[%s11104_s1 + $0x1a0] sm:$0xf]  ;;  %v7536_v3 = vld [vmem:[%s11104_s1 + $0x1a4] sm:$0xf0]  ;;  %v6815_v8 = vor.u32 %v7520_v1, %v6814_v0  ;;  %v6742_v9 = vld [vmem:[%s11104_s1 + $0x90] sm:$0xf]  ;;  %v6679_v16 = vor.u32 %v7486_v6, %v6678_v5 }
  0x1c   : > { %2533 = vmatpush.bf16.msra.mxu2 %v6831_v46  ;;  %v7502_v10 = vld [vmem:[%s11104_s1 + $0x94] sm:$0xf0]  ;;  %v6806_v11 = vld [vmem:[%s11104_s1 + $0x110] sm:$0xf]  ;;  %v6879_v12 = vor.u32 %v7536_v3, %v6878_v2  ;;  %p296_p3 = scmp.lt.s32.totalorder %s5893_s28, 1 }
  0x1d   : > { %2666 = vmatpush.bf16.msra.mxu3 %v6895_v50  ;;  %v7518_v13 = vld [vmem:[%s11104_s1 + $0x114] sm:$0xf0]  ;;  %v6870_v14 = vld [vmem:[%s11104_s1 + $0x190] sm:$0xf]  ;;  %v6670_v17 = vld [vmem:[%s11104_s1] sm:$0xf]  ;;  %v6743_v18 = vor.u32 %v7502_v10, %v6742_v9 }
  0x1e   : > { %2268 = vmatpush.bf16.msra.mxu0 %v6695_v56  ;;  %v7534_v15 = vld [vmem:[%s11104_s1 + $0x194] sm:$0xf0]  ;;  %s11882_s28 = smov (!%p296_p3, %s5893_s28), 1  ;;  %v6807_v19 = vor.u32 %v7518_v13, %v6806_v11  ;;  %v7484_v20 = vld [vmem:[%s11104_s1 + $0x4] sm:$0xf0] }
  0x1f   : > { %2401 = vmatpush.bf16.msra.mxu1 %v6759_v57  ;;  %v6734_v21 = vld [vmem:[%s11104_s1 + $0x80] sm:$0xf]  ;;  %v7500_v22 = vld [vmem:[%s11104_s1 + $0x84] sm:$0xf0]  ;;  %v6871_v23 = vor.u32 %v7534_v15, %v6870_v14  ;;  %s7651_s11 = smul.u32 1568, %s11882_s28  ;;  %v6671_v28 = vor.u32 %v7484_v20, %v6670_v17 }
  0x20   : > { %2534 = vmatpush.bf16.msra.mxu2 %v6823_v58  ;;  %v6798_v24 = vld [vmem:[%s11104_s1 + $0x100] sm:$0xf]  ;;  %v7516_v25 = vld [vmem:[%s11104_s1 + $0x104] sm:$0xf0]  ;;  %v6735_v29 = vor.u32 %v7500_v22, %v6734_v21  ;;  %s7652_s17 = smul.u32 104, %s11882_s28 }
  0x21   : > { %2667 = vmatpush.bf16.msra.mxu3 %v6887_v62  ;;  %v6862_v26 = vld [vmem:[%s11104_s1 + $0x180] sm:$0xf]  ;;  %v7532_v27 = vld [vmem:[%s11104_s1 + $0x184] sm:$0xf0]  ;;  %s7928_s18 = scalar_lea.vmem %s11103_s0, %s7651_s11  ;;  %v6799_v30 = vor.u32 %v7516_v25, %v6798_v24 }
  0x22   : > { %2269 = vmatpush.bf16.msra.mxu0 %v6687_v4  ;;  %v5902_v31 = vld [vmem:[%s7928_s18] sm:$0xf]  ;;  %v7291_v33 = vld [vmem:[%s7928_s18 + $0x4] sm:$0xf]  ;;  %v6863_v34 = vor.u32 %v7532_v27, %v6862_v26  ;;  %v5910_v36 = vld [vmem:[%s7928_s18 + $0x8] sm:$0xf]  ;;  %s11048_s21 = scalar_lea.vmem %s11111_s8, %s7652_s17 }
  0x23   : > { %2402 = vmatpush.bf16.msra.mxu1 %v6751_v7  ;;  %v7295_v32 = vld [vmem:[%s7928_s18 + $0x1c] sm:$0xf0]  ;;  %v5904_v35 = vld [vmem:[%s7928_s18 + $0x20] sm:$0xf0]  ;;  %v7296_v37 = vld [vmem:[%s7928_s18 + $0x24] sm:$0xf0] }
  0x24   : > { %2535 = vmatpush.bf16.msra.mxu2 %v6815_v8  ;;  %v7936_v38 = vor.u32 %v7295_v32, %v5902_v31  ;;  %v7292_v39 = vld [vmem:[%s7928_s18 + $0xc] sm:$0xf]  ;;  %v7940_v41 = vor.u32 %v7291_v33, %v5904_v35  ;;  %v7942_v42 = vor.u32 %v7296_v37, %v5910_v36  ;;  %v5934_v44 = vld [vmem:[%s7928_s18 + $0x40] sm:$0xf]  ;;  %v7299_v46 = vld [vmem:[%s7928_s18 + $0x44] sm:$0xf] }
  0x25   : > { %2668 = vmatpush.bf16.msra.mxu3 %v6879_v12  ;;  %v5912_v40 = vld [vmem:[%s7928_s18 + $0x28] sm:$0xf0]  ;;  %v7303_v45 = vld [vmem:[%s7928_s18 + $0x5c] sm:$0xf0]  ;;  %v5936_v47 = vld [vmem:[%s7928_s18 + $0x60] sm:$0xf0] }
  0x26   : > { %2270 = vmatpush.bf16.msra.mxu0 %v6679_v16  ;;  %v7944_v43 = vor.u32 %v7292_v39, %v5912_v40  ;;  %v5942_v48 = vld [vmem:[%s7928_s18 + $0x48] sm:$0xf]  ;;  %v7300_v50 = vld [vmem:[%s7928_s18 + $0x4c] sm:$0xf]  ;;  %v7958_v52 = vor.u32 %v7303_v45, %v5934_v44  ;;  %v7960_v53 = vor.u32 %v7299_v46, %v5936_v47  ;;  %v5966_v56 = vld [vmem:[%s7928_s18 + $0x80] sm:$0xf] }
  0x27   : > { %2403 = vmatpush.bf16.msra.mxu1 %v6743_v18  ;;  %v7304_v49 = vld [vmem:[%s7928_s18 + $0x64] sm:$0xf0]  ;;  %v5944_v51 = vld [vmem:[%s7928_s18 + $0x68] sm:$0xf0]  ;;  %v7311_v57 = vld [vmem:[%s7928_s18 + $0x9c] sm:$0xf0] }
  0x28   : > { %2536 = vmatpush.bf16.msra.mxu2 %v6807_v19  ;;  %11336 = vst [vmem:[#allocation2_spill] sm:$0xff] %v7960_v53  ;;  %v7962_v54 = vor.u32 %v7304_v49, %v5942_v48  ;;  %v7964_v55 = vor.u32 %v7300_v50, %v5944_v51  ;;  %v7307_v58 = vld [vmem:[%s7928_s18 + $0x84] sm:$0xf]  ;;  %v5974_v60 = vld [vmem:[%s7928_s18 + $0x88] sm:$0xf]  ;;  %v7978_v0 = vor.u32 %v7311_v57, %v5966_v56 }
  0x29   : > { %2669 = vmatpush.bf16.msra.mxu3 %v6871_v23  ;;  %v5968_v59 = vld [vmem:[%s7928_s18 + $0xa0] sm:$0xf0]  ;;  %v7312_v61 = vld [vmem:[%s7928_s18 + $0xa4] sm:$0xf0]  ;;  %v7308_v62 = vld [vmem:[%s7928_s18 + $0x8c] sm:$0xf] }
  0x2a   : > { %2271 = vmatpush.bf16.msra.mxu0 %v6671_v28  ;;  %11337 = vst [vmem:[#allocation3_spill] sm:$0xff] %v7962_v54  ;;  %v5976_v63 = vld [vmem:[%s7928_s18 + $0xa8] sm:$0xf0]  ;;  %v7980_v1 = vor.u32 %v7307_v58, %v5968_v59  ;;  %v7982_v2 = vor.u32 %v7312_v61, %v5974_v60  ;;  %v5998_v4 = vld [vmem:[%s7928_s18 + $0xc0] sm:$0xf] }
  0x2b   : > { %2404 = vmatpush.bf16.msra.mxu1 %v6735_v29  ;;  %11338 = vst [vmem:[#allocation4_spill] sm:$0xff] %v7964_v55  ;;  %v7984_v3 = vor.u32 %v7308_v62, %v5976_v63  ;;  %v7319_v5 = vld [vmem:[%s7928_s18 + $0xdc] sm:$0xf0]  ;;  %v7315_v6 = vld [vmem:[%s7928_s18 + $0xc4] sm:$0xf] }
  0x2c   : > { %2537 = vmatpush.bf16.msra.mxu2 %v6799_v30  ;;  %11339 = vst [vmem:[#allocation5_spill] sm:$0xff] %v7978_v0  ;;  %v6000_v7 = vld [vmem:[%s7928_s18 + $0xe0] sm:$0xf0]  ;;  %v6006_v8 = vld [vmem:[%s7928_s18 + $0xc8] sm:$0xf]  ;;  %v7998_v12 = vor.u32 %v7319_v5, %v5998_v4 }
  0x2d   : > { %2670 = vmatpush.bf16.msra.mxu3 %v6863_v34  ;;  %2272 = vmatmul.bf16.vlgmr.msra.gmra.mxu0 %v7936_v38  ;;  %11340 = vst [vmem:[#allocation6_spill] sm:$0xff] %v7980_v1  ;;  %v7320_v9 = vld [vmem:[%s7928_s18 + $0xe4] sm:$0xf0]  ;;  %v7316_v10 = vld [vmem:[%s7928_s18 + $0xcc] sm:$0xf]  ;;  %v8000_v13 = vor.u32 %v7315_v6, %v6000_v7 }
  0x2e   : > { %2405 = vmatmul.bf16.vlgmr.msra.gmra.mxu1 %v7940_v41  ;;  %11341 = vst [vmem:[#allocation7_spill] sm:$0xff] %v7982_v2  ;;  %v6008_v11 = vld [vmem:[%s7928_s18 + $0xe8] sm:$0xf0]  ;;  %v8002_v14 = vor.u32 %v7320_v9, %v6006_v8  ;;  %v6030_v16 = vld [vmem:[%s7928_s18 + $0x100] sm:$0xf] }
  0x2f   : > { %2538 = vmatmul.bf16.vlgmr.msra.gmra.mxu2 %v7942_v42  ;;  %11342 = vst [vmem:[#allocation8_spill] sm:$0xff] %v7984_v3  ;;  %v8004_v15 = vor.u32 %v7316_v10, %v6008_v11  ;;  %v7327_v17 = vld [vmem:[%s7928_s18 + $0x11c] sm:$0xf0]  ;;  %v7323_v18 = vld [vmem:[%s7928_s18 + $0x104] sm:$0xf] }
  0x30   : > { %2671 = vmatmul.bf16.vlgmr.msra.gmra.mxu3 %v7944_v43  ;;  %11343 = vst [vmem:[#allocation9_spill] sm:$0xff] %v7998_v12  ;;  %v6032_v19 = vld [vmem:[%s7928_s18 + $0x120] sm:$0xf0]  ;;  %v6038_v20 = vld [vmem:[%s7928_s18 + $0x108] sm:$0xf]  ;;  %v8018_v24 = vor.u32 %v7327_v17, %v6030_v16 }
  0x31   : > { %11344 = vst [vmem:[#allocation10_spill] sm:$0xff] %v8000_v13  ;;  %v7328_v21 = vld [vmem:[%s7928_s18 + $0x124] sm:$0xf0]  ;;  %v7324_v22 = vld [vmem:[%s7928_s18 + $0x10c] sm:$0xf]  ;;  %v8020_v25 = vor.u32 %v7323_v18, %v6032_v19 }
  0x32   : > { %11345 = vst [vmem:[#allocation11_spill] sm:$0xff] %v8002_v14  ;;  %v6040_v23 = vld [vmem:[%s7928_s18 + $0x128] sm:$0xf0]  ;;  %v8022_v26 = vor.u32 %v7328_v21, %v6038_v20  ;;  %v6062_v28 = vld [vmem:[%s7928_s18 + $0x140] sm:$0xf] }
  0x33   : > { %11346 = vst [vmem:[#allocation12_spill] sm:$0xff] %v8004_v15  ;;  %v8024_v27 = vor.u32 %v7324_v22, %v6040_v23  ;;  %v7335_v29 = vld [vmem:[%s7928_s18 + $0x15c] sm:$0xf0]  ;;  %v7331_v30 = vld [vmem:[%s7928_s18 + $0x144] sm:$0xf] }
  0x34   : > { %11347 = vst [vmem:[#allocation13_spill] sm:$0xff] %v8018_v24  ;;  %v6064_v31 = vld [vmem:[%s7928_s18 + $0x160] sm:$0xf0]  ;;  %v6070_v32 = vld [vmem:[%s7928_s18 + $0x148] sm:$0xf]  ;;  %v8038_v36 = vor.u32 %v7335_v29, %v6062_v28 }
  0x35   : > { %11348 = vst [vmem:[#allocation14_spill] sm:$0xff] %v8020_v25  ;;  %v7336_v33 = vld [vmem:[%s7928_s18 + $0x164] sm:$0xf0]  ;;  %v7332_v34 = vld [vmem:[%s7928_s18 + $0x14c] sm:$0xf]  ;;  %v8040_v37 = vor.u32 %v7331_v30, %v6064_v31 }
  0x36   : > { %11349 = vst [vmem:[#allocation15_spill] sm:$0xff] %v8022_v26  ;;  %v6072_v35 = vld [vmem:[%s7928_s18 + $0x168] sm:$0xf0]  ;;  %v8042_v39 = vor.u32 %v7336_v33, %v6070_v32  ;;  %v6094_v44 = vld [vmem:[%s7928_s18 + $0x180] sm:$0xf] }
  0x37   : > { %11350 = vst [vmem:[#allocation16_spill] sm:$0xff] %v8024_v27  ;;  %v8044_v40 = vor.u32 %v7332_v34, %v6072_v35  ;;  %v7343_v45 = vld [vmem:[%s7928_s18 + $0x19c] sm:$0xf0]  ;;  %v7339_v46 = vld [vmem:[%s7928_s18 + $0x184] sm:$0xf] }
  0x38   : > { %11351 = vst [vmem:[#allocation17_spill] sm:$0xff] %v8038_v36  ;;  %v6096_v47 = vld [vmem:[%s7928_s18 + $0x1a0] sm:$0xf0]  ;;  %v6102_v48 = vld [vmem:[%s7928_s18 + $0x188] sm:$0xf]  ;;  %v8058_v56 = vor.u32 %v7343_v45, %v6094_v44 }
  0x39   : > { %11352 = vst [vmem:[#allocation18_spill] sm:$0xff] %v8040_v37  ;;  %v7344_v49 = vld [vmem:[%s7928_s18 + $0x1a4] sm:$0xf0]  ;;  %v7340_v50 = vld [vmem:[%s7928_s18 + $0x18c] sm:$0xf]  ;;  %v8060_v57 = vor.u32 %v7339_v46, %v6096_v47 }
  0x3a   : > { %11353 = vst [vmem:[#allocation19_spill] sm:$0xff] %v8042_v39  ;;  %v6104_v51 = vld [vmem:[%s7928_s18 + $0x1a8] sm:$0xf0]  ;;  %v8062_v58 = vor.u32 %v7344_v49, %v6102_v48  ;;  %v6126_v60 = vld [vmem:[%s7928_s18 + $0x1c0] sm:$0xf] }
  0x3b   : > { %11354 = vst [vmem:[#allocation20_spill] sm:$0xff] %v8044_v40  ;;  %v8064_v59 = vor.u32 %v7340_v50, %v6104_v51  ;;  %v7351_v61 = vld [vmem:[%s7928_s18 + $0x1dc] sm:$0xf0]  ;;  %v7347_v62 = vld [vmem:[%s7928_s18 + $0x1c4] sm:$0xf] }
  0x3c   : > { %11355 = vst [vmem:[#allocation21_spill] sm:$0xff] %v8058_v56  ;;  %v6128_v63 = vld [vmem:[%s7928_s18 + $0x1e0] sm:$0xf0]  ;;  %v6134_v4 = vld [vmem:[%s7928_s18 + $0x1c8] sm:$0xf]  ;;  %v8078_v8 = vor.u32 %v7351_v61, %v6126_v60 }
  0x3d   : > { %2277 = vmatmul.bf16.gmra.mxu0 %v7958_v52  ;;  %11356 = vst [vmem:[#allocation22_spill] sm:$0xff] %v8060_v57  ;;  %v7352_v5 = vld [vmem:[%s7928_s18 + $0x1e4] sm:$0xf0]  ;;  %v7348_v6 = vld [vmem:[%s7928_s18 + $0x1cc] sm:$0xf]  ;;  %v8080_v9 = vor.u32 %v7347_v62, %v6128_v63 }
  0x3e   : > { %2410 = vmatmul.bf16.gmra.mxu1 %v7960_v53  ;;  %11357 = vst [vmem:[#allocation23_spill] sm:$0xff] %v8062_v58  ;;  %v6136_v7 = vld [vmem:[%s7928_s18 + $0x1e8] sm:$0xf0]  ;;  %v8082_v10 = vor.u32 %v7352_v5, %v6134_v4  ;;  %v630_v16 = vld [vmem:[%s11105_s2] sm:$0x3] }
  0x3f   : > { %2543 = vmatmul.bf16.gmra.mxu2 %v7962_v54  ;;  %11358 = vst [vmem:[#allocation24_spill] sm:$0xff] %v8064_v59  ;;  %v8084_v11 = vor.u32 %v7348_v6, %v6136_v7  ;;  %v8093_v17 = vperm.slane %v630_v16, 0  ;;  %v6158_v18 = vld [vmem:[%s7928_s18 + $0x200] sm:$0xf]  ;;  %v7355_v20 = vld [vmem:[%s7928_s18 + $0x204] sm:$0xf] }
  0x40   : > { %2676 = vmatmul.bf16.gmra.mxu3 %v7964_v55  ;;  %11359 = vst [vmem:[#allocation25_spill] sm:$0xff] %v8078_v8  ;;  %v7359_v19 = vld [vmem:[%s7928_s18 + $0x21c] sm:$0xf0]  ;;  %v6160_v21 = vld [vmem:[%s7928_s18 + $0x220] sm:$0xf0] }
  0x41   : > { %11360 = vst [vmem:[#allocation26_spill] sm:$0xff] %v8080_v9  ;;  %v6166_v22 = vld [vmem:[%s7928_s18 + $0x208] sm:$0xf]  ;;  %v7356_v28 = vld [vmem:[%s7928_s18 + $0x20c] sm:$0xf]  ;;  %v8103_v30 = vor.u32 %v7359_v19, %v6158_v18  ;;  %v8105_v32 = vor.u32 %v7355_v20, %v6160_v21 }
  0x42   : > { %11361 = vst [vmem:[#allocation27_spill] sm:$0xff] %v8082_v10  ;;  %v7360_v23 = vld [vmem:[%s7928_s18 + $0x224] sm:$0xf0]  ;;  %v6168_v29 = vld [vmem:[%s7928_s18 + $0x228] sm:$0xf0] }
  0x43   : > { %11362 = vst [vmem:[#allocation28_spill] sm:$0xff] %v8084_v11  ;;  %v8107_v33 = vor.u32 %v7360_v23, %v6166_v22  ;;  %v8110_v44 = vor.u32 %v7356_v28, %v6168_v29  ;;  %v6190_v62 = vld [vmem:[%s7928_s18 + $0x240] sm:$0xf]  ;;  %v7363_v4 = vld [vmem:[%s7928_s18 + $0x244] sm:$0xf] }
  0x44   : > { %11363 = vst [vmem:[#allocation29_spill] sm:$0xff] %v8103_v30  ;;  %v7367_v63 = vld [vmem:[%s7928_s18 + $0x25c] sm:$0xf0]  ;;  %v6192_v5 = vld [vmem:[%s7928_s18 + $0x260] sm:$0xf0] }
  0x45   : > { %11364 = vst [vmem:[#allocation30_spill] sm:$0xff] %v8105_v32  ;;  %v6198_v6 = vld [vmem:[%s7928_s18 + $0x248] sm:$0xf]  ;;  %v7364_v16 = vld [vmem:[%s7928_s18 + $0x24c] sm:$0xf]  ;;  %v8127_v20 = vor.u32 %v7367_v63, %v6190_v62  ;;  %v8129_v28 = vor.u32 %v7363_v4, %v6192_v5 }
  0x46   : > { %11365 = vst [vmem:[#allocation31_spill] sm:$0xff] %v8107_v33  ;;  %v7368_v7 = vld [vmem:[%s7928_s18 + $0x264] sm:$0xf0]  ;;  %v6200_v18 = vld [vmem:[%s7928_s18 + $0x268] sm:$0xf0] }
  0x47   : > { %11366 = vst [vmem:[#allocation32_spill] sm:$0xff] %v8110_v44  ;;  %v8131_v29 = vor.u32 %v7368_v7, %v6198_v6  ;;  %v6222_v4 = vld [vmem:[%s7928_s18 + $0x280] sm:$0xf]  ;;  %v7371_v6 = vld [vmem:[%s7928_s18 + $0x284] sm:$0xf] }
  0x48   : > { %11367 = vst [vmem:[#allocation33_spill] sm:$0xff] %v8127_v20  ;;  %v7375_v5 = vld [vmem:[%s7928_s18 + $0x29c] sm:$0xf0]  ;;  %v6224_v7 = vld [vmem:[%s7928_s18 + $0x2a0] sm:$0xf0] }
  0x49   : > { %11368 = vst [vmem:[#allocation34_spill] sm:$0xff] %v8129_v28 }
  0x4a   : > { %11369 = vst [vmem:[#allocation35_spill] sm:$0xff] %v8131_v29 }
  0x4d   : > { %2282 = vmatmul.bf16.gmra.mxu0 %v7978_v0 }
  0x4e   : > { %2415 = vmatmul.bf16.gmra.mxu1 %v7980_v1 }
  0x4f   : > { %2548 = vmatmul.bf16.gmra.mxu2 %v7982_v2 }
  0x50   : > { %2681 = vmatmul.bf16.gmra.mxu3 %v7984_v3 }
  0x5d   : > { %2287 = vmatmul.bf16.gmra.mxu0 %v7998_v12 }
  0x5e   : > { %2420 = vmatmul.bf16.gmra.mxu1 %v8000_v13 }
  0x5f   : > { %2553 = vmatmul.bf16.gmra.mxu2 %v8002_v14 }
  0x60   : > { %2686 = vmatmul.bf16.gmra.mxu3 %v8004_v15 }
  0x6d   : > { %2292 = vmatmul.bf16.gmra.mxu0 %v8018_v24 }
  0x6e   : > { %2425 = vmatmul.bf16.gmra.mxu1 %v8020_v25 }
  0x6f   : > { %2558 = vmatmul.bf16.gmra.mxu2 %v8022_v26 }
  0x70   : > { %2691 = vmatmul.bf16.gmra.mxu3 %v8024_v27 }
  0x7d   : > { %2297 = vmatmul.bf16.gmra.mxu0 %v8038_v36 }
  0x7e   : > { %2430 = vmatmul.bf16.gmra.mxu1 %v8040_v37 }
  0x7f   : > { %2563 = vmatmul.bf16.gmra.mxu2 %v8042_v39 }
  0x80   : > { %2696 = vmatmul.bf16.gmra.mxu3 %v8044_v40 }
  0x8d   : > { %2302 = vmatmul.bf16.gmra.mxu0 %v8058_v56 }
  0x8e   : > { %2435 = vmatmul.bf16.gmra.mxu1 %v8060_v57 }
  0x8f   : > { %2568 = vmatmul.bf16.gmra.mxu2 %v8062_v58 }
  0x90   : > { %2701 = vmatmul.bf16.gmra.mxu3 %v8064_v59 }
  0x9d   : > { %2307 = vmatmul.bf16.gmra.mxu0 %v8078_v8 }
  0x9e   : > { %2440 = vmatmul.bf16.gmra.mxu1 %v8080_v9 }
  0x9f   : > { %2573 = vmatmul.bf16.gmra.mxu2 %v8082_v10 }
  0xa0   : > { %2706 = vmatmul.bf16.gmra.mxu3 %v8084_v11 }
  0xaa   : > { %v2273_v31 = vpop.f32.mrf.mxu0 }
  0xab   : > { %v2274_v34 = vadd.f32 %v2273_v31, %v8093_v17  ;;  %v2406_v35 = vpop.f32.mrf.mxu1 }
  0xad   : > { %v2407_v45 = vadd.f32 %v2406_v35, %v2274_v34  ;;  %2312 = vmatmul.bf16.gmra.mxu0 %v8103_v30  ;;  %v8134_v35 = vor.u32 %v7364_v16, %v6200_v18  ;;  %v6230_v16 = vld [vmem:[%s7928_s18 + $0x288] sm:$0xf] }
  0xae   : > { %2445 = vmatmul.bf16.gmra.mxu1 %v8105_v32  ;;  %v7376_v18 = vld [vmem:[%s7928_s18 + $0x2a4] sm:$0xf0] }
  0xaf   : > { %2578 = vmatmul.bf16.gmra.mxu2 %v8107_v33  ;;  %11370 = vst [vmem:[#allocation36_spill] sm:$0xff] %v8134_v35 }
  0xb0   : > { %2711 = vmatmul.bf16.gmra.mxu3 %v8110_v44 }
  0xb2   : > { %v2539_v46 = vpop.f32.mrf.mxu2  ;;  %v2275_v48 = vpop.f32.mrf.mxu0 }
  0xb3   : > { %v2540_v47 = vadd.f32 %v2539_v46, %v2407_v45  ;;  %v2672_v49 = vpop.f32.mrf.mxu3  ;;  %v2276_v50 = vadd.f32 %v2275_v48, %v8093_v17  ;;  %v2408_v51 = vpop.f32.mrf.mxu1 }
  0xb5   : > { %v8117_v60 = vadd.f32 %v2672_v49, %v2540_v47  ;;  %v2409_v61 = vadd.f32 %v2408_v51, %v2276_v50 }
  0xba   : > { %v2541_v19 = vpop.f32.mrf.mxu2  ;;  %v2278_v22 = vpop.f32.mrf.mxu0 }
  0xbb   : > { %v2542_v21 = vadd.f32 %v2541_v19, %v2409_v61  ;;  %v2674_v23 = vpop.f32.mrf.mxu3  ;;  %v2279_v31 = vadd.f32 %v2278_v22, %v8093_v17  ;;  %v2411_v34 = vpop.f32.mrf.mxu1  ;;  %v7372_v19 = vld [vmem:[%s7928_s18 + $0x28c] sm:$0xf] }
  0xbd   : > { %v8136_v45 = vadd.f32 %v2674_v23, %v2542_v21  ;;  %v2412_v46 = vadd.f32 %v2411_v34, %v2279_v31  ;;  %2317 = vmatmul.bf16.gmra.mxu0 %v8127_v20  ;;  %v6232_v21 = vld [vmem:[%s7928_s18 + $0x2a8] sm:$0xf0]  ;;  %v8153_v23 = vor.u32 %v7375_v5, %v6222_v4 }
  0xbe   : > { %2450 = vmatmul.bf16.gmra.mxu1 %v8129_v28 }
  0xbf   : > { %2583 = vmatmul.bf16.gmra.mxu2 %v8131_v29  ;;  %11371 = vst [vmem:[#allocation37_spill] sm:$0xff] %v8153_v23 }
  0xc0   : > { %2716 = vmatmul.bf16.gmra.mxu3 %v8134_v35 }
  0xc2   : > { %v2544_v47 = vpop.f32.mrf.mxu2  ;;  %v2280_v49 = vpop.f32.mrf.mxu0 }
  0xc3   : > { %v2545_v48 = vadd.f32 %v2544_v47, %v2412_v46  ;;  %v2677_v50 = vpop.f32.mrf.mxu3  ;;  %v2281_v51 = vadd.f32 %v2280_v49, %v8093_v17  ;;  %v2413_v61 = vpop.f32.mrf.mxu1  ;;  %v8155_v47 = vor.u32 %v7371_v6, %v6224_v7  ;;  %v8157_v49 = vor.u32 %v7376_v18, %v6230_v16 }
  0xc5   : > { %v8143_v62 = vadd.f32 %v2677_v50, %v2545_v48  ;;  %v2414_v63 = vadd.f32 %v2413_v61, %v2281_v51  ;;  %11372 = vst [vmem:[#allocation38_spill] sm:$0xff] %v8155_v47  ;;  %v8160_v51 = vor.u32 %v7372_v19, %v6232_v21  ;;  %v6254_v21 = vld [vmem:[%s7928_s18 + $0x2c0] sm:$0xf] }
  0xc6   : > { %11373 = vst [vmem:[#allocation39_spill] sm:$0xff] %v8157_v49 }
  0xc7   : > { %11374 = vst [vmem:[#allocation40_spill] sm:$0xff] %v8160_v51 }
  0xca   : > { %v2546_v22 = vpop.f32.mrf.mxu2  ;;  %v2283_v34 = vpop.f32.mrf.mxu0 }
  0xcb   : > { %v2547_v31 = vadd.f32 %v2546_v22, %v2414_v63  ;;  %v2679_v46 = vpop.f32.mrf.mxu3  ;;  %v2284_v48 = vadd.f32 %v2283_v34, %v8093_v17  ;;  %v2416_v50 = vpop.f32.mrf.mxu1  ;;  %v7383_v22 = vld [vmem:[%s7928_s18 + $0x2dc] sm:$0xf0]  ;;  %v6256_v34 = vld [vmem:[%s7928_s18 + $0x2e0] sm:$0xf0] }
  0xcd   : > { %v8162_v61 = vadd.f32 %v2679_v46, %v2547_v31  ;;  %v2417_v35 = vadd.f32 %v2416_v50, %v2284_v48  ;;  %2322 = vmatmul.bf16.gmra.mxu0 %v8153_v23  ;;  %v7379_v31 = vld [vmem:[%s7928_s18 + $0x2c4] sm:$0xf]  ;;  %v6262_v46 = vld [vmem:[%s7928_s18 + $0x2c8] sm:$0xf]  ;;  %v7380_v50 = vld [vmem:[%s7928_s18 + $0x2cc] sm:$0xf] }
  0xce   : > { %2455 = vmatmul.bf16.gmra.mxu1 %v8155_v47  ;;  %v7384_v48 = vld [vmem:[%s7928_s18 + $0x2e4] sm:$0xf0]  ;;  %v8179_v47 = vor.u32 %v7383_v22, %v6254_v21  ;;  %v8181_v29 = vor.u32 %v7379_v31, %v6256_v34 }
  0xcf   : > { %2588 = vmatmul.bf16.gmra.mxu2 %v8157_v49  ;;  %v6264_v49 = vld [vmem:[%s7928_s18 + $0x2e8] sm:$0xf0] }
  0xd0   : > { %2721 = vmatmul.bf16.gmra.mxu3 %v8160_v51  ;;  %11375 = vst [vmem:[#allocation41_spill] sm:$0xff] %v8179_v47 }
  0xd1   : > { %11376 = vst [vmem:[#allocation42_spill] sm:$0xff] %v8181_v29 }
  0xd2   : > { %v2549_v63 = vpop.f32.mrf.mxu2  ;;  %v2285_v5 = vpop.f32.mrf.mxu0 }
  0xd3   : > { %v2550_v4 = vadd.f32 %v2549_v63, %v2417_v35  ;;  %v2682_v6 = vpop.f32.mrf.mxu3  ;;  %v2286_v7 = vadd.f32 %v2285_v5, %v8093_v17  ;;  %v2418_v16 = vpop.f32.mrf.mxu1  ;;  %v8183_v5 = vor.u32 %v7384_v48, %v6262_v46  ;;  %v6286_v46 = vld [vmem:[%s7928_s18 + $0x300] sm:$0xf] }
  0xd4   : > { %v7391_v48 = vld [vmem:[%s7928_s18 + $0x31c] sm:$0xf0] }
  0xd5   : > { %v8169_v18 = vadd.f32 %v2682_v6, %v2550_v4  ;;  %v2419_v19 = vadd.f32 %v2418_v16, %v2286_v7  ;;  %11377 = vst [vmem:[#allocation43_spill] sm:$0xff] %v8183_v5  ;;  %v8186_v7 = vor.u32 %v7380_v50, %v6264_v49  ;;  %v7387_v50 = vld [vmem:[%s7928_s18 + $0x304] sm:$0xf] }
  0xd7   : > { %11378 = vst [vmem:[#allocation44_spill] sm:$0xff] %v8186_v7 }
  0xda   : > { %v2551_v51 = vpop.f32.mrf.mxu2  ;;  %v2288_v63 = vpop.f32.mrf.mxu0 }
  0xdb   : > { %v2552_v35 = vadd.f32 %v2551_v51, %v2419_v19  ;;  %v2684_v23 = vpop.f32.mrf.mxu3  ;;  %v2289_v4 = vadd.f32 %v2288_v63, %v8093_v17  ;;  %v2421_v6 = vpop.f32.mrf.mxu1  ;;  %v6294_v63 = vld [vmem:[%s7928_s18 + $0x308] sm:$0xf] }
  0xdd   : > { %v8188_v16 = vadd.f32 %v2684_v23, %v2552_v35  ;;  %v2422_v28 = vadd.f32 %v2421_v6, %v2289_v4  ;;  %2327 = vmatmul.bf16.gmra.mxu0 %v8179_v47  ;;  %v6288_v35 = vld [vmem:[%s7928_s18 + $0x320] sm:$0xf0]  ;;  %v7392_v4 = vld [vmem:[%s7928_s18 + $0x324] sm:$0xf0]  ;;  %v7388_v6 = vld [vmem:[%s7928_s18 + $0x30c] sm:$0xf] }
  0xde   : > { %2460 = vmatmul.bf16.gmra.mxu1 %v8181_v29  ;;  %v8205_v29 = vor.u32 %v7391_v48, %v6286_v46  ;;  %v8207_v20 = vor.u32 %v7387_v50, %v6288_v35 }
  0xdf   : > { %2593 = vmatmul.bf16.gmra.mxu2 %v8183_v5  ;;  %v6296_v5 = vld [vmem:[%s7928_s18 + $0x328] sm:$0xf0] }
  0xe0   : > { %2726 = vmatmul.bf16.gmra.mxu3 %v8186_v7  ;;  %11379 = vst [vmem:[#allocation45_spill] sm:$0xff] %v8205_v29 }
  0xe1   : > { %11380 = vst [vmem:[#allocation46_spill] sm:$0xff] %v8207_v20 }
  0xe2   : > { %v2554_v49 = vpop.f32.mrf.mxu2  ;;  %v2290_v19 = vpop.f32.mrf.mxu0 }
  0xe3   : > { %v2555_v51 = vadd.f32 %v2554_v49, %v2422_v28  ;;  %v2687_v23 = vpop.f32.mrf.mxu3  ;;  %v2291_v21 = vadd.f32 %v2290_v19, %v8093_v17  ;;  %v2423_v22 = vpop.f32.mrf.mxu1  ;;  %v8209_v19 = vor.u32 %v7392_v4, %v6294_v63  ;;  %v6318_v63 = vld [vmem:[%s7928_s18 + $0x340] sm:$0xf] }
  0xe4   : > { %v7399_v4 = vld [vmem:[%s7928_s18 + $0x35c] sm:$0xf0] }
  0xe5   : > { %v8195_v31 = vadd.f32 %v2687_v23, %v2555_v51  ;;  %v2424_v34 = vadd.f32 %v2423_v22, %v2291_v21  ;;  %11381 = vst [vmem:[#allocation47_spill] sm:$0xff] %v8209_v19  ;;  %v8212_v21 = vor.u32 %v7388_v6, %v6296_v5  ;;  %v7395_v6 = vld [vmem:[%s7928_s18 + $0x344] sm:$0xf] }
  0xe7   : > { %11382 = vst [vmem:[#allocation48_spill] sm:$0xff] %v8212_v21 }
  0xea   : > { %v2556_v7 = vpop.f32.mrf.mxu2  ;;  %v2293_v49 = vpop.f32.mrf.mxu0 }
  0xeb   : > { %v2557_v28 = vadd.f32 %v2556_v7, %v2424_v34  ;;  %v2689_v47 = vpop.f32.mrf.mxu3  ;;  %v2294_v51 = vadd.f32 %v2293_v49, %v8093_v17  ;;  %v2426_v23 = vpop.f32.mrf.mxu1  ;;  %v6326_v49 = vld [vmem:[%s7928_s18 + $0x348] sm:$0xf] }
  0xed   : > { %v8214_v22 = vadd.f32 %v2689_v47, %v2557_v28  ;;  %v2427_v44 = vadd.f32 %v2426_v23, %v2294_v51  ;;  %2332 = vmatmul.bf16.gmra.mxu0 %v8205_v29  ;;  %v6320_v28 = vld [vmem:[%s7928_s18 + $0x360] sm:$0xf0]  ;;  %v7400_v51 = vld [vmem:[%s7928_s18 + $0x364] sm:$0xf0]  ;;  %v7396_v23 = vld [vmem:[%s7928_s18 + $0x34c] sm:$0xf] }
  0xee   : > { %2465 = vmatmul.bf16.gmra.mxu1 %v8207_v20  ;;  %v8231_v20 = vor.u32 %v7399_v4, %v6318_v63  ;;  %v8233_v33 = vor.u32 %v7395_v6, %v6320_v28 }
  0xef   : > { %2598 = vmatmul.bf16.gmra.mxu2 %v8209_v19  ;;  %v6328_v19 = vld [vmem:[%s7928_s18 + $0x368] sm:$0xf0] }
  0xf0   : > { %2731 = vmatmul.bf16.gmra.mxu3 %v8212_v21  ;;  %11383 = vst [vmem:[#allocation49_spill] sm:$0xff] %v8231_v20 }
  0xf1   : > { %11384 = vst [vmem:[#allocation50_spill] sm:$0xff] %v8233_v33 }
  0xf2   : > { %v2559_v5 = vpop.f32.mrf.mxu2  ;;  %v2295_v34 = vpop.f32.mrf.mxu0 }
  0xf3   : > { %v2560_v7 = vadd.f32 %v2559_v5, %v2427_v44  ;;  %v2692_v47 = vpop.f32.mrf.mxu3  ;;  %v2296_v46 = vadd.f32 %v2295_v34, %v8093_v17  ;;  %v2428_v48 = vpop.f32.mrf.mxu1  ;;  %v8235_v34 = vor.u32 %v7400_v51, %v6326_v49  ;;  %v6350_v49 = vld [vmem:[%s7928_s18 + $0x380] sm:$0xf] }
  0xf4   : > { %v7407_v51 = vld [vmem:[%s7928_s18 + $0x39c] sm:$0xf0] }
  0xf5   : > { %v8221_v50 = vadd.f32 %v2692_v47, %v2560_v7  ;;  %v2429_v35 = vadd.f32 %v2428_v48, %v2296_v46  ;;  %11385 = vst [vmem:[#allocation51_spill] sm:$0xff] %v8235_v34  ;;  %v8238_v46 = vor.u32 %v7396_v23, %v6328_v19  ;;  %v7403_v23 = vld [vmem:[%s7928_s18 + $0x384] sm:$0xf] }
  0xf7   : > { %11386 = vst [vmem:[#allocation52_spill] sm:$0xff] %v8238_v46 }
  0xfa   : > { %v2561_v21 = vpop.f32.mrf.mxu2  ;;  %v2298_v5 = vpop.f32.mrf.mxu0 }
  0xfb   : > { %v2562_v44 = vadd.f32 %v2561_v21, %v2429_v35  ;;  %v2694_v29 = vpop.f32.mrf.mxu3  ;;  %v2299_v7 = vadd.f32 %v2298_v5, %v8093_v17  ;;  %v2431_v47 = vpop.f32.mrf.mxu1  ;;  %v6358_v5 = vld [vmem:[%s7928_s18 + $0x388] sm:$0xf] }
  0xfd   : > { %v8240_v48 = vadd.f32 %v2694_v29, %v2562_v44  ;;  %v2432_v32 = vadd.f32 %v2431_v47, %v2299_v7  ;;  %2337 = vmatmul.bf16.gmra.mxu0 %v8231_v20  ;;  %v6352_v44 = vld [vmem:[%s7928_s18 + $0x3a0] sm:$0xf0]  ;;  %v7408_v7 = vld [vmem:[%s7928_s18 + $0x3a4] sm:$0xf0]  ;;  %v7404_v47 = vld [vmem:[%s7928_s18 + $0x38c] sm:$0xf] }
  0xfe   : > { %2470 = vmatmul.bf16.gmra.mxu1 %v8233_v33  ;;  %v8257_v33 = vor.u32 %v7407_v51, %v6350_v49  ;;  %v8259_v30 = vor.u32 %v7403_v23, %v6352_v44 }
  0xff   : > { %2603 = vmatmul.bf16.gmra.mxu2 %v8235_v34  ;;  %v6360_v34 = vld [vmem:[%s7928_s18 + $0x3a8] sm:$0xf0] }
 0x100   : > { %2736 = vmatmul.bf16.gmra.mxu3 %v8238_v46  ;;  %11387 = vst [vmem:[#allocation53_spill] sm:$0xff] %v8257_v33 }
 0x101   : > { %11388 = vst [vmem:[#allocation54_spill] sm:$0xff] %v8259_v30 }
 0x102   : > { %v2564_v19 = vpop.f32.mrf.mxu2  ;;  %v2300_v35 = vpop.f32.mrf.mxu0 }
 0x103   : > { %v2565_v21 = vadd.f32 %v2564_v19, %v2432_v32  ;;  %v2697_v29 = vpop.f32.mrf.mxu3  ;;  %v2301_v63 = vadd.f32 %v2300_v35, %v8093_v17  ;;  %v2433_v4 = vpop.f32.mrf.mxu1  ;;  %v8261_v35 = vor.u32 %v7408_v7, %v6358_v5  ;;  %v6382_v5 = vld [vmem:[%s7928_s18 + $0x3c0] sm:$0xf] }
 0x104   : > { %v7415_v7 = vld [vmem:[%s7928_s18 + $0x3dc] sm:$0xf0] }
 0x105   : > { %v8247_v6 = vadd.f32 %v2697_v29, %v2565_v21  ;;  %v2434_v28 = vadd.f32 %v2433_v4, %v2301_v63  ;;  %11389 = vst [vmem:[#allocation55_spill] sm:$0xff] %v8261_v35  ;;  %v8264_v63 = vor.u32 %v7404_v47, %v6360_v34  ;;  %v7411_v47 = vld [vmem:[%s7928_s18 + $0x3c4] sm:$0xf] }
 0x107   : > { %11390 = vst [vmem:[#allocation56_spill] sm:$0xff] %v8264_v63 }
 0x10a   : > { %v2566_v46 = vpop.f32.mrf.mxu2  ;;  %v2303_v19 = vpop.f32.mrf.mxu0 }
 0x10b   : > { %v2567_v32 = vadd.f32 %v2566_v46, %v2434_v28  ;;  %v2699_v20 = vpop.f32.mrf.mxu3  ;;  %v2304_v21 = vadd.f32 %v2303_v19, %v8093_v17  ;;  %v2436_v29 = vpop.f32.mrf.mxu1  ;;  %v6390_v19 = vld [vmem:[%s7928_s18 + $0x3c8] sm:$0xf] }
 0x10d   : > { %v8266_v4 = vadd.f32 %v2699_v20, %v2567_v32  ;;  %v2437_v11 = vadd.f32 %v2436_v29, %v2304_v21  ;;  %2342 = vmatmul.bf16.gmra.mxu0 %v8257_v33  ;;  %v6384_v32 = vld [vmem:[%s7928_s18 + $0x3e0] sm:$0xf0]  ;;  %v7416_v21 = vld [vmem:[%s7928_s18 + $0x3e4] sm:$0xf0]  ;;  %v7412_v29 = vld [vmem:[%s7928_s18 + $0x3cc] sm:$0xf] }
 0x10e   : > { %2475 = vmatmul.bf16.gmra.mxu1 %v8259_v30  ;;  %v8283_v30 = vor.u32 %v7415_v7, %v6382_v5  ;;  %v8285_v10 = vor.u32 %v7411_v47, %v6384_v32 }
 0x10f   : > { %2608 = vmatmul.bf16.gmra.mxu2 %v8261_v35  ;;  %v6392_v35 = vld [vmem:[%s7928_s18 + $0x3e8] sm:$0xf0] }
 0x110   : > { %2741 = vmatmul.bf16.gmra.mxu3 %v8264_v63  ;;  %11391 = vst [vmem:[#allocation57_spill] sm:$0xff] %v8283_v30 }
 0x111   : > { %11392 = vst [vmem:[#allocation58_spill] sm:$0xff] %v8285_v10 }
 0x112   : > { %v2569_v34 = vpop.f32.mrf.mxu2  ;;  %v2305_v28 = vpop.f32.mrf.mxu0 }
 0x113   : > { %v2570_v46 = vadd.f32 %v2569_v34, %v2437_v11  ;;  %v2702_v20 = vpop.f32.mrf.mxu3  ;;  %v2306_v49 = vadd.f32 %v2305_v28, %v8093_v17  ;;  %v2438_v51 = vpop.f32.mrf.mxu1  ;;  %v8287_v28 = vor.u32 %v7416_v21, %v6390_v19  ;;  %v6414_v19 = vld [vmem:[%s7928_s18 + $0x400] sm:$0xf] }
 0x114   : > { %v7423_v21 = vld [vmem:[%s7928_s18 + $0x41c] sm:$0xf0] }
 0x115   : > { %v8273_v23 = vadd.f32 %v2702_v20, %v2570_v46  ;;  %v2439_v44 = vadd.f32 %v2438_v51, %v2306_v49  ;;  %11393 = vst [vmem:[#allocation59_spill] sm:$0xff] %v8287_v28  ;;  %v8290_v49 = vor.u32 %v7412_v29, %v6392_v35  ;;  %v7419_v29 = vld [vmem:[%s7928_s18 + $0x404] sm:$0xf] }
 0x117   : > { %11394 = vst [vmem:[#allocation60_spill] sm:$0xff] %v8290_v49 }
 0x11a   : > { %v2571_v63 = vpop.f32.mrf.mxu2  ;;  %v2308_v34 = vpop.f32.mrf.mxu0 }
 0x11b   : > { %v2572_v11 = vadd.f32 %v2571_v63, %v2439_v44  ;;  %v2704_v33 = vpop.f32.mrf.mxu3  ;;  %v2309_v46 = vadd.f32 %v2308_v34, %v8093_v17  ;;  %v2441_v20 = vpop.f32.mrf.mxu1  ;;  %v6422_v34 = vld [vmem:[%s7928_s18 + $0x408] sm:$0xf] }
 0x11d   : > { %v8292_v51 = vadd.f32 %v2704_v33, %v2572_v11  ;;  %v2442_v9 = vadd.f32 %v2441_v20, %v2309_v46  ;;  %2347 = vmatmul.bf16.gmra.mxu0 %v8283_v30  ;;  %v6416_v11 = vld [vmem:[%s7928_s18 + $0x420] sm:$0xf0]  ;;  %v7424_v46 = vld [vmem:[%s7928_s18 + $0x424] sm:$0xf0]  ;;  %v7420_v20 = vld [vmem:[%s7928_s18 + $0x40c] sm:$0xf] }
 0x11e   : > { %2480 = vmatmul.bf16.gmra.mxu1 %v8285_v10  ;;  %v8309_v10 = vor.u32 %v7423_v21, %v6414_v19  ;;  %v8311_v8 = vor.u32 %v7419_v29, %v6416_v11 }
 0x11f   : > { %2613 = vmatmul.bf16.gmra.mxu2 %v8287_v28  ;;  %v6424_v28 = vld [vmem:[%s7928_s18 + $0x428] sm:$0xf0] }
 0x120   : > { %2746 = vmatmul.bf16.gmra.mxu3 %v8290_v49  ;;  %11395 = vst [vmem:[#allocation61_spill] sm:$0xff] %v8309_v10 }
 0x121   : > { %11396 = vst [vmem:[#allocation62_spill] sm:$0xff] %v8311_v8 }
 0x122   : > { %v2574_v35 = vpop.f32.mrf.mxu2  ;;  %v2310_v44 = vpop.f32.mrf.mxu0 }
 0x123   : > { %v2575_v63 = vadd.f32 %v2574_v35, %v2442_v9  ;;  %v2707_v33 = vpop.f32.mrf.mxu3  ;;  %v2311_v5 = vadd.f32 %v2310_v44, %v8093_v17  ;;  %v2443_v7 = vpop.f32.mrf.mxu1  ;;  %v8313_v44 = vor.u32 %v7424_v46, %v6422_v34  ;;  %v6446_v34 = vld [vmem:[%s7928_s18 + $0x440] sm:$0xf] }
 0x124   : > { %v7431_v46 = vld [vmem:[%s7928_s18 + $0x45c] sm:$0xf0] }
 0x125   : > { %v8299_v47 = vadd.f32 %v2707_v33, %v2575_v63  ;;  %v2444_v32 = vadd.f32 %v2443_v7, %v2311_v5  ;;  %11397 = vst [vmem:[#allocation63_spill] sm:$0xff] %v8313_v44  ;;  %v8316_v5 = vor.u32 %v7420_v20, %v6424_v28  ;;  %v7427_v20 = vld [vmem:[%s7928_s18 + $0x444] sm:$0xf] }
 0x127   : > { %11398 = vst [vmem:[#allocation64_spill] sm:$0xff] %v8316_v5 }
 0x12a   : > { %v2576_v49 = vpop.f32.mrf.mxu2  ;;  %v2313_v35 = vpop.f32.mrf.mxu0 }
 0x12b   : > { %v2577_v9 = vadd.f32 %v2576_v49, %v2444_v32  ;;  %v2709_v30 = vpop.f32.mrf.mxu3  ;;  %v2314_v63 = vadd.f32 %v2313_v35, %v8093_v17  ;;  %v2446_v33 = vpop.f32.mrf.mxu1  ;;  %v6454_v35 = vld [vmem:[%s7928_s18 + $0x448] sm:$0xf] }
 0x12d   : > { %v8318_v7 = vadd.f32 %v2709_v30, %v2577_v9  ;;  %v2447_v59 = vadd.f32 %v2446_v33, %v2314_v63  ;;  %2352 = vmatmul.bf16.gmra.mxu0 %v8309_v10  ;;  %v6448_v9 = vld [vmem:[%s7928_s18 + $0x460] sm:$0xf0]  ;;  %v7432_v63 = vld [vmem:[%s7928_s18 + $0x464] sm:$0xf0]  ;;  %v7428_v33 = vld [vmem:[%s7928_s18 + $0x44c] sm:$0xf] }
 0x12e   : > { %2485 = vmatmul.bf16.gmra.mxu1 %v8311_v8  ;;  %v8335_v8 = vor.u32 %v7431_v46, %v6446_v34  ;;  %v8337_v58 = vor.u32 %v7427_v20, %v6448_v9 }
 0x12f   : > { %2618 = vmatmul.bf16.gmra.mxu2 %v8313_v44  ;;  %v6456_v44 = vld [vmem:[%s7928_s18 + $0x468] sm:$0xf0] }
 0x130   : > { %2751 = vmatmul.bf16.gmra.mxu3 %v8316_v5  ;;  %11399 = vst [vmem:[#allocation65_spill] sm:$0xff] %v8335_v8 }
 0x131   : > { %11400 = vst [vmem:[#allocation66_spill] sm:$0xff] %v8337_v58 }
 0x132   : > { %v2579_v28 = vpop.f32.mrf.mxu2  ;;  %v2315_v32 = vpop.f32.mrf.mxu0 }
 0x133   : > { %v2580_v49 = vadd.f32 %v2579_v28, %v2447_v59  ;;  %v2712_v30 = vpop.f32.mrf.mxu3  ;;  %v2316_v19 = vadd.f32 %v2315_v32, %v8093_v17  ;;  %v2448_v21 = vpop.f32.mrf.mxu1  ;;  %v8339_v32 = vor.u32 %v7432_v63, %v6454_v35  ;;  %v6982_v35 = vld [vmem:[%s11104_s1 + $0x270] sm:$0xf]  ;;  %v7562_v63 = vld [vmem:[%s11104_s1 + $0x274] sm:$0xf0] }
 0x135   : > { %v8325_v29 = vadd.f32 %v2712_v30, %v2580_v49  ;;  %v2449_v11 = vadd.f32 %v2448_v21, %v2316_v19  ;;  %11401 = vst [vmem:[#allocation67_spill] sm:$0xff] %v8339_v32  ;;  %v8342_v19 = vor.u32 %v7428_v33, %v6456_v44  ;;  %v6478_v33 = vld [vmem:[%s7928_s18 + $0x480] sm:$0xf] }
 0x137   : > { %11402 = vst [vmem:[#allocation68_spill] sm:$0xff] %v8342_v19 }
 0x13a   : > { %v2581_v5 = vpop.f32.mrf.mxu2  ;;  %v2318_v28 = vpop.f32.mrf.mxu0 }
 0x13b   : > { %v2582_v59 = vadd.f32 %v2581_v5, %v2449_v11  ;;  %v2714_v10 = vpop.f32.mrf.mxu3  ;;  %v2319_v49 = vadd.f32 %v2318_v28, %v8093_v17  ;;  %v2451_v30 = vpop.f32.mrf.mxu1  ;;  %v6983_v28 = vor.u32 %v7562_v63, %v6982_v35  ;;  %v7046_v35 = vld [vmem:[%s11104_s1 + $0x2f0] sm:$0xf]  ;;  %v7578_v63 = vld [vmem:[%s11104_s1 + $0x2f4] sm:$0xf0] }
 0x13d   : > { %v8344_v21 = vadd.f32 %v2714_v10, %v2582_v59  ;;  %v2452_v57 = vadd.f32 %v2451_v30, %v2319_v49  ;;  %2357 = vmatmul.bf16.gmra.mxu0 %v8335_v8  ;;  %v7435_v59 = vld [vmem:[%s7928_s18 + $0x484] sm:$0xf]  ;;  %v6486_v30 = vld [vmem:[%s7928_s18 + $0x488] sm:$0xf] }
 0x13e   : > { %2490 = vmatmul.bf16.gmra.mxu1 %v8337_v58  ;;  %v6480_v49 = vld [vmem:[%s7928_s18 + $0x4a0] sm:$0xf0]  ;;  %2796 = vmatpush.bf16.msrb.mxu0 %v6983_v28 }
 0x13f   : > { %2623 = vmatmul.bf16.gmra.mxu2 %v8339_v32  ;;  %v8369_v58 = vor.u32 %v7435_v59, %v6480_v49 }
 0x140   : > { %2756 = vmatmul.bf16.gmra.mxu3 %v8342_v19  ;;  %v6488_v19 = vld [vmem:[%s7928_s18 + $0x4a8] sm:$0xf0] }
 0x141   : > { %11404 = vst [vmem:[#allocation70_spill] sm:$0xff] %v8369_v58 }
 0x142   : > { %v2584_v5 = vpop.f32.mrf.mxu2  ;;  %v2320_v10 = vpop.f32.mrf.mxu0 }
 0x143   : > { %v2585_v44 = vadd.f32 %v2584_v5, %v2452_v57  ;;  %v2717_v11 = vpop.f32.mrf.mxu3  ;;  %v2321_v34 = vadd.f32 %v2320_v10, %v8093_v17  ;;  %v2453_v46 = vpop.f32.mrf.mxu1  ;;  %v7439_v57 = vld [vmem:[%s7928_s18 + $0x49c] sm:$0xf0]  ;;  %v7440_v5 = vld [vmem:[%s7928_s18 + $0x4a4] sm:$0xf0]  ;;  %v7436_v10 = vld [vmem:[%s7928_s18 + $0x48c] sm:$0xf] }
 0x144   : > { %v8371_v8 = vor.u32 %v7440_v5, %v6486_v30 }
 0x145   : > { %v8351_v20 = vadd.f32 %v2717_v11, %v2585_v44  ;;  %v2454_v9 = vadd.f32 %v2453_v46, %v2321_v34  ;;  %v8367_v11 = vor.u32 %v7439_v57, %v6478_v33  ;;  %v8380_v33 = vor.u32 %v7436_v10, %v6488_v19 }
 0x146   : > { %11405 = vst [vmem:[#allocation71_spill] sm:$0xff] %v8371_v8 }
 0x147   : > { %11403 = vst [vmem:[#allocation69_spill] sm:$0xff] %v8367_v11 }
 0x148   : > { %11406 = vst [vmem:[#allocation72_spill] sm:$0xff] %v8380_v33 }
 0x14a   : > { %v2586_v44 = vpop.f32.mrf.mxu2  ;;  %v2323_v46 = vpop.f32.mrf.mxu0 }
 0x14b   : > { %v2587_v34 = vadd.f32 %v2586_v44, %v2454_v9  ;;  %v2719_v32 = vpop.f32.mrf.mxu3  ;;  %v2324_v28 = vadd.f32 %v2323_v46, %v8093_v17  ;;  %v2456_v56 = vpop.f32.mrf.mxu1  ;;  %v7047_v9 = vor.u32 %v7578_v63, %v7046_v35  ;;  %v7447_v46 = vld [vmem:[%s7928_s18 + $0x4dc] sm:$0xf0]  ;;  %v7443_v35 = vld [vmem:[%s7928_s18 + $0x4c4] sm:$0xf] }
 0x14c   : > { %v6512_v63 = vld [vmem:[%s7928_s18 + $0x4e0] sm:$0xf0] }
 0x14d   : > { %v8382_v57 = vadd.f32 %v2719_v32, %v2587_v34  ;;  %v2457_v59 = vadd.f32 %v2456_v56, %v2324_v28  ;;  %2362 = vmatmul.bf16.gmra.mxu0 %v8367_v11  ;;  %2929 = vmatpush.bf16.msrb.mxu1 %v7047_v9  ;;  %v6510_v34 = vld [vmem:[%s7928_s18 + $0x4c0] sm:$0xf]  ;;  %v6518_v28 = vld [vmem:[%s7928_s18 + $0x4c8] sm:$0xf]  ;;  %v8401_v39 = vor.u32 %v7443_v35, %v6512_v63 }
 0x14e   : > { %2495 = vmatmul.bf16.gmra.mxu1 %v8369_v58  ;;  %v7448_v9 = vld [vmem:[%s7928_s18 + $0x4e4] sm:$0xf0]  ;;  %v6520_v58 = vld [vmem:[%s7928_s18 + $0x4e8] sm:$0xf0]  ;;  %v8399_v11 = vor.u32 %v7447_v46, %v6510_v34  ;;  %v6542_v63 = vld [vmem:[%s7928_s18 + $0x500] sm:$0xf] }
 0x14f   : > { %2628 = vmatmul.bf16.gmra.mxu2 %v8371_v8  ;;  %v7444_v8 = vld [vmem:[%s7928_s18 + $0x4cc] sm:$0xf]  ;;  %11408 = vst [vmem:[#allocation74_spill] sm:$0xff] %v8401_v39 }
 0x150   : > { %2761 = vmatmul.bf16.gmra.mxu3 %v8380_v33  ;;  %11407 = vst [vmem:[#allocation73_spill] sm:$0xff] %v8399_v11 }
 0x152   : > { %v2589_v19 = vpop.f32.mrf.mxu2  ;;  %v2325_v49 = vpop.f32.mrf.mxu0 }
 0x153   : > { %v2590_v32 = vadd.f32 %v2589_v19, %v2457_v59  ;;  %v2722_v30 = vpop.f32.mrf.mxu3  ;;  %v2326_v56 = vadd.f32 %v2325_v49, %v8093_v17  ;;  %v2458_v5 = vpop.f32.mrf.mxu1  ;;  %v8403_v49 = vor.u32 %v7448_v9, %v6518_v28  ;;  %v7455_v28 = vld [vmem:[%s7928_s18 + $0x51c] sm:$0xf0]  ;;  %v7451_v9 = vld [vmem:[%s7928_s18 + $0x504] sm:$0xf] }
 0x155   : > { %v8389_v10 = vadd.f32 %v2722_v30, %v2590_v32  ;;  %v2459_v44 = vadd.f32 %v2458_v5, %v2326_v56  ;;  %11409 = vst [vmem:[#allocation75_spill] sm:$0xff] %v8403_v49  ;;  %v8406_v56 = vor.u32 %v7444_v8, %v6520_v58 }
 0x157   : > { %11410 = vst [vmem:[#allocation76_spill] sm:$0xff] %v8406_v56 }
 0x15a   : > { %v2591_v33 = vpop.f32.mrf.mxu2  ;;  %v2328_v19 = vpop.f32.mrf.mxu0 }
 0x15b   : > { %v2592_v59 = vadd.f32 %v2591_v33, %v2459_v44  ;;  %v2724_v40 = vpop.f32.mrf.mxu3  ;;  %v2329_v32 = vadd.f32 %v2328_v19, %v8093_v17  ;;  %v2461_v30 = vpop.f32.mrf.mxu1  ;;  %v6550_v19 = vld [vmem:[%s7928_s18 + $0x508] sm:$0xf] }
 0x15d   : > { %v8408_v5 = vadd.f32 %v2724_v40, %v2592_v59  ;;  %v2462_v37 = vadd.f32 %v2461_v30, %v2329_v32  ;;  %2367 = vmatmul.bf16.gmra.mxu0 %v8399_v11  ;;  %v6544_v59 = vld [vmem:[%s7928_s18 + $0x520] sm:$0xf0]  ;;  %v7456_v32 = vld [vmem:[%s7928_s18 + $0x524] sm:$0xf0]  ;;  %v7452_v30 = vld [vmem:[%s7928_s18 + $0x50c] sm:$0xf] }
 0x15e   : > { %2500 = vmatmul.bf16.gmra.mxu1 %v8401_v39  ;;  %v8425_v39 = vor.u32 %v7455_v28, %v6542_v63  ;;  %v8427_v36 = vor.u32 %v7451_v9, %v6544_v59 }
 0x15f   : > { %2633 = vmatmul.bf16.gmra.mxu2 %v8403_v49  ;;  %v6552_v49 = vld [vmem:[%s7928_s18 + $0x528] sm:$0xf0] }
 0x160   : > { %2766 = vmatmul.bf16.gmra.mxu3 %v8406_v56  ;;  %11411 = vst [vmem:[#allocation77_spill] sm:$0xff] %v8425_v39 }
 0x161   : > { %11412 = vst [vmem:[#allocation78_spill] sm:$0xff] %v8427_v36 }
 0x162   : > { %v2594_v58 = vpop.f32.mrf.mxu2  ;;  %v2330_v33 = vpop.f32.mrf.mxu0 }
 0x163   : > { %v2595_v8 = vadd.f32 %v2594_v58, %v2462_v37  ;;  %v2727_v40 = vpop.f32.mrf.mxu3  ;;  %v2331_v44 = vadd.f32 %v2330_v33, %v8093_v17  ;;  %v2463_v34 = vpop.f32.mrf.mxu1  ;;  %v8429_v33 = vor.u32 %v7456_v32, %v6550_v19  ;;  %v6574_v19 = vld [vmem:[%s7928_s18 + $0x540] sm:$0xf] }
 0x164   : > { %v7463_v32 = vld [vmem:[%s7928_s18 + $0x55c] sm:$0xf0] }
 0x165   : > { %v8415_v46 = vadd.f32 %v2727_v40, %v2595_v8  ;;  %v2464_v35 = vadd.f32 %v2463_v34, %v2331_v44  ;;  %11413 = vst [vmem:[#allocation79_spill] sm:$0xff] %v8429_v33  ;;  %v8432_v44 = vor.u32 %v7452_v30, %v6552_v49  ;;  %v7459_v30 = vld [vmem:[%s7928_s18 + $0x544] sm:$0xf] }
 0x167   : > { %11414 = vst [vmem:[#allocation80_spill] sm:$0xff] %v8432_v44 }
 0x16a   : > { %v2596_v56 = vpop.f32.mrf.mxu2  ;;  %v2333_v58 = vpop.f32.mrf.mxu0 }
 0x16b   : > { %v2597_v37 = vadd.f32 %v2596_v56, %v2464_v35  ;;  %v2729_v11 = vpop.f32.mrf.mxu3  ;;  %v2334_v8 = vadd.f32 %v2333_v58, %v8093_v17  ;;  %v2466_v40 = vpop.f32.mrf.mxu1  ;;  %v6582_v58 = vld [vmem:[%s7928_s18 + $0x548] sm:$0xf] }
 0x16d   : > { %v8434_v34 = vadd.f32 %v2729_v11, %v2597_v37  ;;  %v2467_v27 = vadd.f32 %v2466_v40, %v2334_v8  ;;  %2372 = vmatmul.bf16.gmra.mxu0 %v8425_v39  ;;  %v6576_v37 = vld [vmem:[%s7928_s18 + $0x560] sm:$0xf0]  ;;  %v7464_v8 = vld [vmem:[%s7928_s18 + $0x564] sm:$0xf0]  ;;  %v7460_v40 = vld [vmem:[%s7928_s18 + $0x54c] sm:$0xf] }
 0x16e   : > { %2505 = vmatmul.bf16.gmra.mxu1 %v8427_v36  ;;  %v8451_v36 = vor.u32 %v7463_v32, %v6574_v19  ;;  %v8453_v26 = vor.u32 %v7459_v30, %v6576_v37  ;;  %v7038_v30 = vld [vmem:[%s11104_s1 + $0x2e0] sm:$0xf]  ;;  %v7576_v37 = vld [vmem:[%s11104_s1 + $0x2e4] sm:$0xf0] }
 0x16f   : > { %2638 = vmatmul.bf16.gmra.mxu2 %v8429_v33  ;;  %v6584_v33 = vld [vmem:[%s7928_s18 + $0x568] sm:$0xf0] }
 0x170   : > { %2771 = vmatmul.bf16.gmra.mxu3 %v8432_v44  ;;  %11415 = vst [vmem:[#allocation81_spill] sm:$0xff] %v8451_v36  ;;  %v8464_v19 = vor.u32 %v7460_v40, %v6584_v33  ;;  %v7594_v33 = vld [vmem:[%s11104_s1 + $0x374] sm:$0xf0]  ;;  %v7174_v40 = vld [vmem:[%s11104_s1 + $0x3f0] sm:$0xf] }
 0x171   : > { %11416 = vst [vmem:[#allocation82_spill] sm:$0xff] %v8453_v26 }
 0x172   : > { %v2599_v49 = vpop.f32.mrf.mxu2  ;;  %v2335_v35 = vpop.f32.mrf.mxu0  ;;  %11418 = vst [vmem:[#allocation84_spill] sm:$0xff] %v8464_v19 }
 0x173   : > { %v2600_v56 = vadd.f32 %v2599_v49, %v2467_v27  ;;  %v2732_v11 = vpop.f32.mrf.mxu3  ;;  %v2336_v63 = vadd.f32 %v2335_v35, %v8093_v17  ;;  %v2468_v28 = vpop.f32.mrf.mxu1  ;;  %v8455_v35 = vor.u32 %v7464_v8, %v6582_v58  ;;  %v7110_v58 = vld [vmem:[%s11104_s1 + $0x370] sm:$0xf] }
 0x174   : > { %v7111_v8 = vor.u32 %v7594_v33, %v7110_v58  ;;  %v7166_v58 = vld [vmem:[%s11104_s1 + $0x3e0] sm:$0xf] }
 0x175   : > { %v8441_v9 = vadd.f32 %v2732_v11, %v2600_v56  ;;  %v2469_v59 = vadd.f32 %v2468_v28, %v2336_v63  ;;  %11417 = vst [vmem:[#allocation83_spill] sm:$0xff] %v8455_v35  ;;  %v6974_v56 = vld [vmem:[%s11104_s1 + $0x260] sm:$0xf]  ;;  %v7560_v11 = vld [vmem:[%s11104_s1 + $0x264] sm:$0xf0] }
 0x176   : > { %3062 = vmatpush.bf16.msrb.mxu2 %v7111_v8  ;;  %v6606_v8 = vld [vmem:[%s7928_s18 + $0x580] sm:$0xf] }
 0x17a   : > { %v2601_v44 = vpop.f32.mrf.mxu2  ;;  %v2338_v49 = vpop.f32.mrf.mxu0 }
 0x17b   : > { %v2602_v27 = vadd.f32 %v2601_v44, %v2469_v59  ;;  %v2734_v39 = vpop.f32.mrf.mxu3  ;;  %v2339_v63 = vadd.f32 %v2338_v49, %v8093_v17  ;;  %v2471_v28 = vpop.f32.mrf.mxu1  ;;  %v6975_v44 = vor.u32 %v7560_v11, %v6974_v56  ;;  %v7102_v56 = vld [vmem:[%s11104_s1 + $0x360] sm:$0xf]  ;;  %v7592_v11 = vld [vmem:[%s11104_s1 + $0x364] sm:$0xf0] }
 0x17d   : > { %v8466_v59 = vadd.f32 %v2734_v39, %v2602_v27  ;;  %v2472_v32 = vadd.f32 %v2471_v28, %v2339_v63  ;;  %2377 = vmatmul.bf16.gmra.mxu0 %v8451_v36  ;;  %v7039_v39 = vor.u32 %v7576_v37, %v7038_v30  ;;  %v7610_v27 = vld [vmem:[%s11104_s1 + $0x3f4] sm:$0xf0]  ;;  %v7103_v28 = vor.u32 %v7592_v11, %v7102_v56  ;;  %v7467_v56 = vld [vmem:[%s7928_s18 + $0x584] sm:$0xf] }
 0x17e   : > { %2510 = vmatmul.bf16.gmra.mxu1 %v8453_v26  ;;  %2797 = vmatpush.bf16.msrb.mxu0 %v6975_v44  ;;  %v7175_v49 = vor.u32 %v7610_v27, %v7174_v40  ;;  %v6608_v11 = vld [vmem:[%s7928_s18 + $0x5a0] sm:$0xf0]  ;;  %v6614_v26 = vld [vmem:[%s7928_s18 + $0x588] sm:$0xf] }
 0x17f   : > { %2643 = vmatmul.bf16.gmra.mxu2 %v8455_v35  ;;  %2930 = vmatpush.bf16.msrb.mxu1 %v7039_v39  ;;  %v7608_v39 = vld [vmem:[%s11104_s1 + $0x3e4] sm:$0xf0]  ;;  %v7590_v35 = vld [vmem:[%s11104_s1 + $0x354] sm:$0xf0]  ;;  %v8548_v15 = vor.u32 %v7467_v56, %v6608_v11  ;;  %v7150_v11 = vld [vmem:[%s11104_s1 + $0x3c0] sm:$0xf] }
 0x180   : > { %2776 = vmatmul.bf16.gmra.mxu3 %v8464_v19  ;;  %v7167_v27 = vor.u32 %v7608_v39, %v7166_v58  ;;  %3063 = vmatpush.bf16.msrb.mxu2 %v7103_v28  ;;  %v7574_v58 = vld [vmem:[%s11104_s1 + $0x2d4] sm:$0xf0]  ;;  %v7094_v39 = vld [vmem:[%s11104_s1 + $0x350] sm:$0xf] }
 0x181   : > { %3195 = vmatpush.bf16.msrb.mxu3 %v7175_v49  ;;  %v6966_v49 = vld [vmem:[%s11104_s1 + $0x250] sm:$0xf]  ;;  %v7095_v25 = vor.u32 %v7590_v35, %v7094_v39  ;;  %v7556_v35 = vld [vmem:[%s11104_s1 + $0x244] sm:$0xf0]  ;;  %11420 = vst [vmem:[#allocation86_spill] sm:$0xff] %v8548_v15 }
 0x182   : > { %v2604_v63 = vpop.f32.mrf.mxu2  ;;  %v2340_v30 = vpop.f32.mrf.mxu0  ;;  %v7158_v28 = vld [vmem:[%s11104_s1 + $0x3d0] sm:$0xf] }
 0x183   : > { %v2605_v44 = vadd.f32 %v2604_v63, %v2472_v32  ;;  %v2737_v37 = vpop.f32.mrf.mxu3  ;;  %v2341_v33 = vadd.f32 %v2340_v30, %v8093_v17  ;;  %v2473_v40 = vpop.f32.mrf.mxu1  ;;  %v7471_v32 = vld [vmem:[%s7928_s18 + $0x59c] sm:$0xf0]  ;;  %v7558_v63 = vld [vmem:[%s11104_s1 + $0x254] sm:$0xf0] }
 0x184   : > { %v8546_v39 = vor.u32 %v7471_v32, %v6606_v8  ;;  %3064 = vmatpush.bf16.msrb.mxu2 %v7095_v25 }
 0x185   : > { %v8503_v19 = vadd.f32 %v2737_v37, %v2605_v44  ;;  %v7030_v44 = vld [vmem:[%s11104_s1 + $0x2d0] sm:$0xf]  ;;  %v2474_v30 = vadd.f32 %v2473_v40, %v2341_v33  ;;  %v6967_v37 = vor.u32 %v7558_v63, %v6966_v49  ;;  %3196 = vmatpush.bf16.msrb.mxu3 %v7167_v27  ;;  %v7606_v33 = vld [vmem:[%s11104_s1 + $0x3d4] sm:$0xf0]  ;;  %v7472_v40 = vld [vmem:[%s7928_s18 + $0x5a4] sm:$0xf0] }
 0x186   : > { %v7031_v36 = vor.u32 %v7574_v58, %v7030_v44  ;;  %v7468_v49 = vld [vmem:[%s7928_s18 + $0x58c] sm:$0xf]  ;;  %v7159_v24 = vor.u32 %v7606_v33, %v7158_v28  ;;  %v6958_v27 = vld [vmem:[%s11104_s1 + $0x240] sm:$0xf]  ;;  %11419 = vst [vmem:[#allocation85_spill] sm:$0xff] %v8546_v39  ;;  %v8559_v32 = vor.u32 %v7472_v40, %v6614_v26 }
 0x187   : > { %v6616_v63 = vld [vmem:[%s7928_s18 + $0x5a8] sm:$0xf0]  ;;  %2798 = vmatpush.bf16.msrb.mxu0 %v6967_v37  ;;  %v7022_v44 = vld [vmem:[%s11104_s1 + $0x2c0] sm:$0xf]  ;;  %v6959_v37 = vor.u32 %v7556_v35, %v6958_v27  ;;  %v7588_v33 = vld [vmem:[%s11104_s1 + $0x344] sm:$0xf0] }
 0x188   : > { %2931 = vmatpush.bf16.msrb.mxu1 %v7031_v36  ;;  %v7572_v36 = vld [vmem:[%s11104_s1 + $0x2c4] sm:$0xf0]  ;;  %v7086_v28 = vld [vmem:[%s11104_s1 + $0x340] sm:$0xf]  ;;  %11421 = vst [vmem:[#allocation87_spill] sm:$0xff] %v8559_v32  ;;  %v8568_v3 = vor.u32 %v7468_v49, %v6616_v63 }
 0x189   : > { %3197 = vmatpush.bf16.msrb.mxu3 %v7159_v24  ;;  %v7023_v25 = vor.u32 %v7572_v36, %v7022_v44  ;;  %v7087_v56 = vor.u32 %v7588_v33, %v7086_v28  ;;  %v7604_v27 = vld [vmem:[%s11104_s1 + $0x3c4] sm:$0xf0]  ;;  %v6950_v26 = vld [vmem:[%s11104_s1 + $0x230] sm:$0xf]  ;;  %v7554_v40 = vld [vmem:[%s11104_s1 + $0x234] sm:$0xf0] }
 0x18a   : > { %v2606_v58 = vpop.f32.mrf.mxu2  ;;  %v2343_v13 = vpop.f32.mrf.mxu0  ;;  %11422 = vst [vmem:[#allocation88_spill] sm:$0xff] %v8568_v3  ;;  %v7151_v24 = vor.u32 %v7604_v27, %v7150_v11  ;;  %v7078_v49 = vld [vmem:[%s11104_s1 + $0x330] sm:$0xf]  ;;  %v7586_v63 = vld [vmem:[%s11104_s1 + $0x334] sm:$0xf0] }
 0x18b   : > { %v2607_v14 = vadd.f32 %v2606_v58, %v2474_v30  ;;  %v2739_v8 = vpop.f32.mrf.mxu3  ;;  %v2344_v35 = vadd.f32 %v2343_v13, %v8093_v17  ;;  %v2476_v12 = vpop.f32.mrf.mxu1  ;;  %2799 = vmatpush.bf16.msrb.mxu0 %v6959_v37  ;;  %v7014_v13 = vld [vmem:[%s11104_s1 + $0x2b0] sm:$0xf]  ;;  %3065 = vmatpush.bf16.msrb.mxu2 %v7087_v56  ;;  %v7602_v36 = vld [vmem:[%s11104_s1 + $0x3b4] sm:$0xf0]  ;;  %v7079_v28 = vor.u32 %v7586_v63, %v7078_v49  ;;  %v7006_v56 = vld [vmem:[%s11104_s1 + $0x2a0] sm:$0xf] }
 0x18c   : > { %2932 = vmatpush.bf16.msrb.mxu1 %v7023_v25  ;;  %v7142_v37 = vld [vmem:[%s11104_s1 + $0x3b0] sm:$0xf]  ;;  %v7552_v25 = vld [vmem:[%s11104_s1 + $0x224] sm:$0xf0] }
 0x18d   : > { %v8570_v30 = vadd.f32 %v2739_v8, %v2607_v14  ;;  %v2477_v44 = vadd.f32 %v2476_v12, %v2344_v35  ;;  %2382 = vmatmul.bf16.gmra.mxu0 %v8546_v39  ;;  %v7570_v14 = vld [vmem:[%s11104_s1 + $0x2b4] sm:$0xf0]  ;;  %v6951_v12 = vor.u32 %v7554_v40, %v6950_v26  ;;  %3198 = vmatpush.bf16.msrb.mxu3 %v7151_v24  ;;  %v6942_v8 = vld [vmem:[%s11104_s1 + $0x220] sm:$0xf]  ;;  %v7568_v35 = vld [vmem:[%s11104_s1 + $0x2a4] sm:$0xf0] }
 0x18e   : > { %2515 = vmatmul.bf16.gmra.mxu1 %v8548_v15  ;;  %v7015_v58 = vor.u32 %v7570_v14, %v7014_v13  ;;  %v7143_v33 = vor.u32 %v7602_v36, %v7142_v37  ;;  %v6943_v27 = vor.u32 %v7552_v25, %v6942_v8  ;;  %v7070_v24 = vld [vmem:[%s11104_s1 + $0x320] sm:$0xf]  ;;  %v7584_v26 = vld [vmem:[%s11104_s1 + $0x324] sm:$0xf0]  ;;  %v7007_v49 = vor.u32 %v7568_v35, %v7006_v56  ;;  %v6934_v56 = vld [vmem:[%s11104_s1 + $0x210] sm:$0xf] }
 0x18f   : > { %2648 = vmatmul.bf16.gmra.mxu2 %v8559_v32  ;;  %2800 = vmatpush.bf16.msrb.mxu0 %v6951_v12  ;;  %v7071_v63 = vor.u32 %v7584_v26, %v7070_v24  ;;  %v7134_v12 = vld [vmem:[%s11104_s1 + $0x3a0] sm:$0xf]  ;;  %v6998_v35 = vld [vmem:[%s11104_s1 + $0x290] sm:$0xf]  ;;  %v7475_v26 = vld [vmem:[%s7928_s18 + $0x5c4] sm:$0xf] }
 0x190   : > { %2781 = vmatmul.bf16.gmra.mxu3 %v8568_v3  ;;  %2933 = vmatpush.bf16.msrb.mxu1 %v7015_v58  ;;  %v7600_v58 = vld [vmem:[%s11104_s1 + $0x3a4] sm:$0xf0]  ;;  %v7479_v8 = vld [vmem:[%s7928_s18 + $0x5dc] sm:$0xf0] }
 0x191   : > { %3066 = vmatpush.bf16.msrb.mxu2 %v7079_v28  ;;  %3199 = vmatpush.bf16.msrb.mxu3 %v7143_v33  ;;  %v7135_v25 = vor.u32 %v7600_v58, %v7134_v12  ;;  %v6640_v33 = vld [vmem:[%s7928_s18 + $0x5e0] sm:$0xf0]  ;;  %v6646_v12 = vld [vmem:[%s7928_s18 + $0x5c8] sm:$0xf]  ;;  %v6926_v32 = vld [vmem:[%s11104_s1 + $0x200] sm:$0xf] }
 0x192   : > { %v2609_v11 = vpop.f32.mrf.mxu2  ;;  %v2345_v13 = vpop.f32.mrf.mxu0 }
 0x193   : > { %v2610_v40 = vadd.f32 %v2609_v11, %v2477_v44  ;;  %v2742_v14 = vpop.f32.mrf.mxu3  ;;  %v2346_v37 = vadd.f32 %v2345_v13, %v8093_v17  ;;  %v2478_v36 = vpop.f32.mrf.mxu1  ;;  %v6638_v44 = vld [vmem:[%s7928_s18 + $0x5c0] sm:$0xf]  ;;  %2801 = vmatpush.bf16.msrb.mxu0 %v6943_v27  ;;  %v7550_v11 = vld [vmem:[%s11104_s1 + $0x214] sm:$0xf0]  ;;  %v7062_v13 = vld [vmem:[%s11104_s1 + $0x310] sm:$0xf] }
 0x194   : > { %2934 = vmatpush.bf16.msrb.mxu1 %v7007_v49  ;;  %v6935_v27 = vor.u32 %v7550_v11, %v6934_v56  ;;  %v7126_v49 = vld [vmem:[%s11104_s1 + $0x390] sm:$0xf]  ;;  %v7476_v56 = vld [vmem:[%s7928_s18 + $0x5cc] sm:$0xf] }
 0x195   : > { %v8625_v28 = vadd.f32 %v2742_v14, %v2610_v40  ;;  %v2479_v24 = vadd.f32 %v2478_v36, %v2346_v37  ;;  %3067 = vmatpush.bf16.msrb.mxu2 %v7071_v63  ;;  %v7566_v40 = vld [vmem:[%s11104_s1 + $0x294] sm:$0xf0]  ;;  %v7480_v36 = vld [vmem:[%s7928_s18 + $0x5e4] sm:$0xf0]  ;;  %v6648_v11 = vld [vmem:[%s7928_s18 + $0x5e8] sm:$0xf0]  ;;  %3200 = vmatpush.bf16.msrb.mxu3 %v7135_v25 }
 0x196   : > { %v7582_v14 = vld [vmem:[%s11104_s1 + $0x314] sm:$0xf0]  ;;  %v6999_v58 = vor.u32 %v7566_v40, %v6998_v35  ;;  %v7548_v35 = vld [vmem:[%s11104_s1 + $0x204] sm:$0xf0]  ;;  %v6990_v40 = vld [vmem:[%s11104_s1 + $0x280] sm:$0xf]  ;;  %v8690_v0 = vor.u32 %v7476_v56, %v6648_v11 }
 0x197   : > { %v7063_v37 = vor.u32 %v7582_v14, %v7062_v13  ;;  %v7598_v63 = vld [vmem:[%s11104_s1 + $0x394] sm:$0xf0]  ;;  %2802 = vmatpush.bf16.msrb.mxu0 %v6935_v27  ;;  %v8668_v14 = vor.u32 %v7479_v8, %v6638_v44  ;;  %v6927_v25 = vor.u32 %v7548_v35, %v6926_v32  ;;  %v7564_v27 = vld [vmem:[%s11104_s1 + $0x284] sm:$0xf0]  ;;  %v8679_v44 = vor.u32 %v7475_v26, %v6640_v33 }
 0x198   : > { %v7127_v3 = vor.u32 %v7598_v63, %v7126_v49  ;;  %2935 = vmatpush.bf16.msrb.mxu1 %v6999_v58  ;;  %v7054_v49 = vld [vmem:[%s11104_s1 + $0x300] sm:$0xf]  ;;  %v7580_v63 = vld [vmem:[%s11104_s1 + $0x304] sm:$0xf0]  ;;  %v8681_v8 = vor.u32 %v7480_v36, %v6646_v12  ;;  %v6991_v32 = vor.u32 %v7564_v27, %v6990_v40  ;;  %11426 = vst [vmem:[#allocation92_spill] sm:$0xff] %v8690_v0 }
 0x199   : > { %11423 = vst [vmem:[#allocation89_spill] sm:$0xff] %v8668_v14  ;;  %3068 = vmatpush.bf16.msrb.mxu2 %v7063_v37  ;;  %v7118_v58 = vld [vmem:[%s11104_s1 + $0x380] sm:$0xf]  ;;  %v7596_v37 = vld [vmem:[%s11104_s1 + $0x384] sm:$0xf0] }
 0x19a   : > { %v2611_v13 = vpop.f32.mrf.mxu2  ;;  %v2348_v39 = vpop.f32.mrf.mxu0  ;;  %11424 = vst [vmem:[#allocation90_spill] sm:$0xff] %v8679_v44  ;;  %3201 = vmatpush.bf16.msrb.mxu3 %v7127_v3  ;;  %v7119_v26 = vor.u32 %v7596_v37, %v7118_v58  ;;  %v498_v3 = vld [vmem:[%s7928_s18 + $0x600] sm:$0xff] }
 0x19b   : > { %v2612_v15 = vadd.f32 %v2611_v13, %v2479_v24  ;;  %v2744_v2 = vpop.f32.mrf.mxu3  ;;  %11425 = vst [vmem:[#allocation91_spill] sm:$0xff] %v8681_v8  ;;  %v2349_v35 = vadd.f32 %v2348_v39, %v8093_v17  ;;  %v2481_v1 = vpop.f32.mrf.mxu1  ;;  %v7055_v24 = vor.u32 %v7580_v63, %v7054_v49  ;;  %2803 = vmatpush.bf16.msrb.mxu0 %v6927_v25  ;;  %v1216_v25 = vunpack.c.l.b16 %v498_v3 }
 0x19c   : > { %2936 = vmatpush.bf16.msrb.mxu1 %v6991_v32  ;;  %v1217_v27 = vunpack.c.h.b16 %v498_v3 }
 0x19d   : > { %v8692_v13 = vadd.f32 %v2744_v2, %v2612_v15  ;;  %v2482_v33 = vadd.f32 %v2481_v1, %v2349_v35  ;;  %2387 = vmatmul.bf16.gmra.mxu0 %v8668_v14  ;;  %3069 = vmatpush.bf16.msrb.mxu2 %v7055_v24  ;;  %v499_v1 = vld [vmem:[%s7928_s18 + $0x608] sm:$0xff]  ;;  %v8703_v58 = vpack.c.b16 %v1216_v25, %v1216_v25 }
 0x19e   : > { %2520 = vmatmul.bf16.gmra.mxu1 %v8679_v44  ;;  %3202 = vmatpush.bf16.msrb.mxu3 %v7119_v26  ;;  %v1218_v49 = vunpack.c.l.b16 %v499_v1  ;;  %v1219_v63 = vunpack.c.h.b16 %v499_v1  ;;  %v8705_v26 = vpack.c.b16 %v1217_v27, %v1217_v27 }
 0x19f   : > { %2653 = vmatmul.bf16.gmra.mxu2 %v8681_v8  ;;  %11427 = vst [vmem:[#allocation93_spill] sm:$0xff] %v8703_v58 }
 0x1a0   : > { %2786 = vmatmul.bf16.gmra.mxu3 %v8690_v0  ;;  %11428 = vst [vmem:[#allocation94_spill] sm:$0xff] %v8705_v26 }
 0x1a2   : > { %v2614_v39 = vpop.f32.mrf.mxu2  ;;  %v2350_v15 = vpop.f32.mrf.mxu0 }
 0x1a3   : > { %v2615_v2 = vadd.f32 %v2614_v39, %v2482_v33  ;;  %v2747_v12 = vpop.f32.mrf.mxu3  ;;  %v2351_v36 = vadd.f32 %v2350_v15, %v8093_v17  ;;  %v2483_v56 = vpop.f32.mrf.mxu1  ;;  %v8707_v33 = vpack.c.b16 %v1218_v49, %v1218_v49 }
 0x1a5   : > { %v8701_v11 = vadd.f32 %v2747_v12, %v2615_v2  ;;  %v2484_v40 = vadd.f32 %v2483_v56, %v2351_v36  ;;  %11429 = vst [vmem:[#allocation95_spill] sm:$0xff] %v8707_v33  ;;  %v8710_v2 = vpack.c.b16 %v1219_v63, %v1219_v63 }
 0x1a7   : > { %11430 = vst [vmem:[#allocation96_spill] sm:$0xff] %v8710_v2 }
 0x1aa   : > { %v2616_v32 = vpop.f32.mrf.mxu2  ;;  %v2353_v35 = vpop.f32.mrf.mxu0 }
 0x1ab   : > { %v2617_v37 = vadd.f32 %v2616_v32, %v2484_v40  ;;  %v2749_v24 = vpop.f32.mrf.mxu3  ;;  %v2354_v39 = vadd.f32 %v2353_v35, %v8093_v17  ;;  %v2486_v15 = vpop.f32.mrf.mxu1  ;;  %v5918_v32 = vld [vmem:[%s7928_s18 + $0x10] sm:$0xf]  ;;  %v7293_v35 = vld [vmem:[%s7928_s18 + $0x14] sm:$0xf] }
 0x1ad   : > { %v8712_v12 = vadd.f32 %v2749_v24, %v2617_v37  ;;  %v2487_v3 = vadd.f32 %v2486_v15, %v2354_v39  ;;  %2392 = vmatmul.bf16.gmra.mxu0 %v8703_v58  ;;  %v7297_v37 = vld [vmem:[%s7928_s18 + $0x2c] sm:$0xf0]  ;;  %v5920_v24 = vld [vmem:[%s7928_s18 + $0x30] sm:$0xf0]  ;;  %v5926_v39 = vld [vmem:[%s7928_s18 + $0x18] sm:$0xf] }
 0x1ae   : > { %2525 = vmatmul.bf16.gmra.mxu1 %v8705_v26  ;;  %v7298_v15 = vld [vmem:[%s7928_s18 + $0x34] sm:$0xf0]  ;;  %v5928_v26 = vld [vmem:[%s7928_s18 + $0x38] sm:$0xf0]  ;;  %v8729_v58 = vor.u32 %v7297_v37, %v5918_v32  ;;  %v8731_v8 = vor.u32 %v7293_v35, %v5920_v24  ;;  %v5950_v24 = vld [vmem:[%s7928_s18 + $0x50] sm:$0xf] }
 0x1af   : > { %2658 = vmatmul.bf16.gmra.mxu2 %v8707_v33  ;;  %v7294_v33 = vld [vmem:[%s7928_s18 + $0x1c] sm:$0xf] }
 0x1b0   : > { %2791 = vmatmul.bf16.gmra.mxu3 %v8710_v2  ;;  %11431 = vst [vmem:[#allocation97_spill] sm:$0xff] %v8729_v58 }
 0x1b1   : > { %11432 = vst [vmem:[#allocation98_spill] sm:$0xff] %v8731_v8 }
 0x1b2   : > { %v2619_v36 = vpop.f32.mrf.mxu2  ;;  %v2355_v1 = vpop.f32.mrf.mxu0 }
 0x1b3   : > { %v2620_v56 = vadd.f32 %v2619_v36, %v2487_v3  ;;  %v2752_v40 = vpop.f32.mrf.mxu3  ;;  %v2356_v25 = vadd.f32 %v2355_v1, %v8093_v17  ;;  %v2488_v27 = vpop.f32.mrf.mxu1  ;;  %v8733_v1 = vor.u32 %v7298_v15, %v5926_v39  ;;  %v7305_v39 = vld [vmem:[%s7928_s18 + $0x6c] sm:$0xf0]  ;;  %v7301_v15 = vld [vmem:[%s7928_s18 + $0x54] sm:$0xf] }
 0x1b5   : > { %v8719_v49 = vadd.f32 %v2752_v40, %v2620_v56  ;;  %v2489_v63 = vadd.f32 %v2488_v27, %v2356_v25  ;;  %11433 = vst [vmem:[#allocation99_spill] sm:$0xff] %v8733_v1  ;;  %v8736_v25 = vor.u32 %v7294_v33, %v5928_v26 }
 0x1b7   : > { %11434 = vst [vmem:[#allocation100_spill] sm:$0xff] %v8736_v25 }
 0x1ba   : > { %v2621_v2 = vpop.f32.mrf.mxu2  ;;  %v2358_v36 = vpop.f32.mrf.mxu0 }
 0x1bb   : > { %v2622_v3 = vadd.f32 %v2621_v2, %v2489_v63  ;;  %v2754_v0 = vpop.f32.mrf.mxu3  ;;  %v2359_v56 = vadd.f32 %v2358_v36, %v8093_v17  ;;  %v2491_v40 = vpop.f32.mrf.mxu1  ;;  %v5958_v36 = vld [vmem:[%s7928_s18 + $0x58] sm:$0xf] }
 0x1bd   : > { %v8738_v27 = vadd.f32 %v2754_v0, %v2622_v3  ;;  %v2492_v44 = vadd.f32 %v2491_v40, %v2359_v56  ;;  %2804 = vmatmul.bf16.vlgmr.msrb.gmra.mxu0 %v8729_v58  ;;  %v5952_v3 = vld [vmem:[%s7928_s18 + $0x70] sm:$0xf0]  ;;  %v7306_v56 = vld [vmem:[%s7928_s18 + $0x74] sm:$0xf0]  ;;  %v7302_v40 = vld [vmem:[%s7928_s18 + $0x5c] sm:$0xf] }
 0x1be   : > { %2937 = vmatmul.bf16.vlgmr.msrb.gmra.mxu1 %v8731_v8  ;;  %v8755_v8 = vor.u32 %v7305_v39, %v5950_v24  ;;  %v8757_v14 = vor.u32 %v7301_v15, %v5952_v3 }
 0x1bf   : > { %3070 = vmatmul.bf16.vlgmr.msrb.gmra.mxu2 %v8733_v1  ;;  %v5960_v1 = vld [vmem:[%s7928_s18 + $0x78] sm:$0xf0] }
 0x1c0   : > { %3203 = vmatmul.bf16.vlgmr.msrb.gmra.mxu3 %v8736_v25  ;;  %11435 = vst [vmem:[#allocation101_spill] sm:$0xff] %v8755_v8 }
 0x1c1   : > { %11436 = vst [vmem:[#allocation102_spill] sm:$0xff] %v8757_v14 }
 0x1c2   : > { %v2624_v26 = vpop.f32.mrf.mxu2  ;;  %v2360_v2 = vpop.f32.mrf.mxu0 }
 0x1c3   : > { %v2625_v33 = vadd.f32 %v2624_v26, %v2492_v44  ;;  %v2757_v0 = vpop.f32.mrf.mxu3  ;;  %v2361_v63 = vadd.f32 %v2360_v2, %v8093_v17  ;;  %v2493_v32 = vpop.f32.mrf.mxu1  ;;  %v8759_v2 = vor.u32 %v7306_v56, %v5958_v36  ;;  %v5982_v36 = vld [vmem:[%s7928_s18 + $0x90] sm:$0xf] }
 0x1c4   : > { %v7313_v56 = vld [vmem:[%s7928_s18 + $0xac] sm:$0xf0] }
 0x1c5   : > { %v8745_v37 = vadd.f32 %v2757_v0, %v2625_v33  ;;  %v2494_v35 = vadd.f32 %v2493_v32, %v2361_v63  ;;  %11437 = vst [vmem:[#allocation103_spill] sm:$0xff] %v8759_v2  ;;  %v8762_v63 = vor.u32 %v7302_v40, %v5960_v1  ;;  %v7309_v40 = vld [vmem:[%s7928_s18 + $0x94] sm:$0xf] }
 0x1c7   : > { %11438 = vst [vmem:[#allocation104_spill] sm:$0xff] %v8762_v63 }
 0x1ca   : > { %v2626_v25 = vpop.f32.mrf.mxu2  ;;  %v2363_v26 = vpop.f32.mrf.mxu0 }
 0x1cb   : > { %v2627_v44 = vadd.f32 %v2626_v25, %v2494_v35  ;;  %v2759_v58 = vpop.f32.mrf.mxu3  ;;  %v2364_v33 = vadd.f32 %v2363_v26, %v8093_v17  ;;  %v2496_v0 = vpop.f32.mrf.mxu1  ;;  %v5990_v26 = vld [vmem:[%s7928_s18 + $0x98] sm:$0xf] }
 0x1cd   : > { %v8764_v32 = vadd.f32 %v2759_v58, %v2627_v44  ;;  %v2497_v55 = vadd.f32 %v2496_v0, %v2364_v33  ;;  %2809 = vmatmul.bf16.gmra.mxu0 %v8755_v8  ;;  %v5984_v44 = vld [vmem:[%s7928_s18 + $0xb0] sm:$0xf0]  ;;  %v7314_v33 = vld [vmem:[%s7928_s18 + $0xb4] sm:$0xf0]  ;;  %v7310_v0 = vld [vmem:[%s7928_s18 + $0x9c] sm:$0xf] }
 0x1ce   : > { %2942 = vmatmul.bf16.gmra.mxu1 %v8757_v14  ;;  %v8781_v14 = vor.u32 %v7313_v56, %v5982_v36  ;;  %v8783_v54 = vor.u32 %v7309_v40, %v5984_v44 }
 0x1cf   : > { %3075 = vmatmul.bf16.gmra.mxu2 %v8759_v2  ;;  %v5992_v2 = vld [vmem:[%s7928_s18 + $0xb8] sm:$0xf0] }
 0x1d0   : > { %3208 = vmatmul.bf16.gmra.mxu3 %v8762_v63  ;;  %11439 = vst [vmem:[#allocation105_spill] sm:$0xff] %v8781_v14 }
 0x1d1   : > { %11440 = vst [vmem:[#allocation106_spill] sm:$0xff] %v8783_v54 }
 0x1d2   : > { %v2629_v1 = vpop.f32.mrf.mxu2  ;;  %v2365_v35 = vpop.f32.mrf.mxu0 }
 0x1d3   : > { %v2630_v25 = vadd.f32 %v2629_v1, %v2497_v55  ;;  %v2762_v58 = vpop.f32.mrf.mxu3  ;;  %v2366_v24 = vadd.f32 %v2365_v35, %v8093_v17  ;;  %v2498_v39 = vpop.f32.mrf.mxu1  ;;  %v8785_v35 = vor.u32 %v7314_v33, %v5990_v26  ;;  %v6014_v26 = vld [vmem:[%s7928_s18 + $0xd0] sm:$0xf] }
 0x1d4   : > { %v7321_v33 = vld [vmem:[%s7928_s18 + $0xec] sm:$0xf0] }
 0x1d5   : > { %v8771_v15 = vadd.f32 %v2762_v58, %v2630_v25  ;;  %v2499_v3 = vadd.f32 %v2498_v39, %v2366_v24  ;;  %11441 = vst [vmem:[#allocation107_spill] sm:$0xff] %v8785_v35  ;;  %v8788_v24 = vor.u32 %v7310_v0, %v5992_v2  ;;  %v7317_v0 = vld [vmem:[%s7928_s18 + $0xd4] sm:$0xf] }
 0x1d7   : > { %11442 = vst [vmem:[#allocation108_spill] sm:$0xff] %v8788_v24 }
 0x1da   : > { %v2631_v63 = vpop.f32.mrf.mxu2  ;;  %v2368_v1 = vpop.f32.mrf.mxu0 }
 0x1db   : > { %v2632_v55 = vadd.f32 %v2631_v63, %v2499_v3  ;;  %v2764_v8 = vpop.f32.mrf.mxu3  ;;  %v2369_v25 = vadd.f32 %v2368_v1, %v8093_v17  ;;  %v2501_v58 = vpop.f32.mrf.mxu1  ;;  %v6022_v1 = vld [vmem:[%s7928_s18 + $0xd8] sm:$0xf] }
 0x1dd   : > { %v8790_v39 = vadd.f32 %v2764_v8, %v2632_v55  ;;  %v2502_v53 = vadd.f32 %v2501_v58, %v2369_v25  ;;  %2814 = vmatmul.bf16.gmra.mxu0 %v8781_v14  ;;  %v6016_v55 = vld [vmem:[%s7928_s18 + $0xf0] sm:$0xf0]  ;;  %v7322_v25 = vld [vmem:[%s7928_s18 + $0xf4] sm:$0xf0]  ;;  %v7318_v58 = vld [vmem:[%s7928_s18 + $0xdc] sm:$0xf] }
 0x1de   : > { %2947 = vmatmul.bf16.gmra.mxu1 %v8783_v54  ;;  %v8807_v54 = vor.u32 %v7321_v33, %v6014_v26 }
 0x1df   : > { %11443 = vst [vmem:[#allocation109_spill] sm:$0xff] %v8790_v39  ;;  %3080 = vmatmul.bf16.gmra.mxu2 %v8785_v35  ;;  %v6024_v35 = vld [vmem:[%s7928_s18 + $0xf8] sm:$0xf0]  ;;  %v8809_v39 = vor.u32 %v7317_v0, %v6016_v55 }
 0x1e0   : > { %3213 = vmatmul.bf16.gmra.mxu3 %v8788_v24  ;;  %11445 = vst [vmem:[#allocation111_spill] sm:$0xff] %v8807_v54 }
 0x1e1   : > { %11446 = vst [vmem:[#allocation112_spill] sm:$0xff] %v8809_v39 }
 0x1e2   : > { %v2634_v2 = vpop.f32.mrf.mxu2  ;;  %v2370_v3 = vpop.f32.mrf.mxu0 }
 0x1e3   : > { %v2635_v63 = vadd.f32 %v2634_v2, %v2502_v53  ;;  %v2767_v8 = vpop.f32.mrf.mxu3  ;;  %v2371_v36 = vadd.f32 %v2370_v3, %v8093_v17  ;;  %v2503_v56 = vpop.f32.mrf.mxu1  ;;  %v8811_v3 = vor.u32 %v7322_v25, %v6022_v1  ;;  %v6046_v1 = vld [vmem:[%s7928_s18 + $0x110] sm:$0xf] }
 0x1e4   : > { %v7329_v25 = vld [vmem:[%s7928_s18 + $0x12c] sm:$0xf0] }
 0x1e5   : > { %v8797_v40 = vadd.f32 %v2767_v8, %v2635_v63  ;;  %v2504_v44 = vadd.f32 %v2503_v56, %v2371_v36  ;;  %11447 = vst [vmem:[#allocation113_spill] sm:$0xff] %v8811_v3  ;;  %v8814_v36 = vor.u32 %v7318_v58, %v6024_v35  ;;  %v7325_v58 = vld [vmem:[%s7928_s18 + $0x114] sm:$0xf] }
 0x1e7   : > { %11444 = vst [vmem:[#allocation110_spill] sm:$0xff] %v8797_v40 }
 0x1e8   : > { %11448 = vst [vmem:[#allocation114_spill] sm:$0xff] %v8814_v36 }
 0x1ea   : > { %v2636_v24 = vpop.f32.mrf.mxu2  ;;  %v2373_v2 = vpop.f32.mrf.mxu0 }
 0x1eb   : > { %v2637_v53 = vadd.f32 %v2636_v24, %v2504_v44  ;;  %v2769_v14 = vpop.f32.mrf.mxu3  ;;  %v2374_v63 = vadd.f32 %v2373_v2, %v8093_v17  ;;  %v2506_v8 = vpop.f32.mrf.mxu1  ;;  %v6054_v2 = vld [vmem:[%s7928_s18 + $0x118] sm:$0xf] }
 0x1ed   : > { %v8816_v56 = vadd.f32 %v2769_v14, %v2637_v53  ;;  %v2507_v40 = vadd.f32 %v2506_v8, %v2374_v63  ;;  %2819 = vmatmul.bf16.gmra.mxu0 %v8807_v54  ;;  %v6048_v53 = vld [vmem:[%s7928_s18 + $0x130] sm:$0xf0]  ;;  %v7330_v63 = vld [vmem:[%s7928_s18 + $0x134] sm:$0xf0]  ;;  %v7326_v8 = vld [vmem:[%s7928_s18 + $0x11c] sm:$0xf] }
 0x1ee   : > { %2952 = vmatmul.bf16.gmra.mxu1 %v8809_v39  ;;  %v8833_v39 = vor.u32 %v7329_v25, %v6046_v1 }
 0x1ef   : > { %11449 = vst [vmem:[#allocation115_spill] sm:$0xff] %v8816_v56  ;;  %3085 = vmatmul.bf16.gmra.mxu2 %v8811_v3  ;;  %v6056_v3 = vld [vmem:[%s7928_s18 + $0x138] sm:$0xf0]  ;;  %v8835_v56 = vor.u32 %v7325_v58, %v6048_v53 }
 0x1f0   : > { %3218 = vmatmul.bf16.gmra.mxu3 %v8814_v36  ;;  %11451 = vst [vmem:[#allocation117_spill] sm:$0xff] %v8833_v39 }
 0x1f1   : > { %11452 = vst [vmem:[#allocation118_spill] sm:$0xff] %v8835_v56 }
 0x1f2   : > { %v2639_v35 = vpop.f32.mrf.mxu2  ;;  %v2375_v44 = vpop.f32.mrf.mxu0 }
 0x1f3   : > { %v2640_v24 = vadd.f32 %v2639_v35, %v2507_v40  ;;  %v2772_v14 = vpop.f32.mrf.mxu3  ;;  %v2376_v26 = vadd.f32 %v2375_v44, %v8093_v17  ;;  %v2508_v33 = vpop.f32.mrf.mxu1  ;;  %v8837_v44 = vor.u32 %v7330_v63, %v6054_v2  ;;  %v6078_v2 = vld [vmem:[%s7928_s18 + $0x150] sm:$0xf] }
 0x1f4   : > { %v7337_v63 = vld [vmem:[%s7928_s18 + $0x16c] sm:$0xf0] }
 0x1f5   : > { %v8823_v0 = vadd.f32 %v2772_v14, %v2640_v24  ;;  %v2509_v55 = vadd.f32 %v2508_v33, %v2376_v26  ;;  %11453 = vst [vmem:[#allocation119_spill] sm:$0xff] %v8837_v44  ;;  %v8840_v26 = vor.u32 %v7326_v8, %v6056_v3  ;;  %v7333_v8 = vld [vmem:[%s7928_s18 + $0x154] sm:$0xf] }
 0x1f7   : > { %11450 = vst [vmem:[#allocation116_spill] sm:$0xff] %v8823_v0 }
 0x1f8   : > { %11454 = vst [vmem:[#allocation120_spill] sm:$0xff] %v8840_v26 }
 0x1fa   : > { %v2641_v36 = vpop.f32.mrf.mxu2  ;;  %v2378_v35 = vpop.f32.mrf.mxu0 }
 0x1fb   : > { %v2642_v40 = vadd.f32 %v2641_v36, %v2509_v55  ;;  %v2774_v54 = vpop.f32.mrf.mxu3  ;;  %v2379_v24 = vadd.f32 %v2378_v35, %v8093_v17  ;;  %v2511_v14 = vpop.f32.mrf.mxu1  ;;  %v6086_v35 = vld [vmem:[%s7928_s18 + $0x158] sm:$0xf] }
 0x1fd   : > { %v8842_v33 = vadd.f32 %v2774_v54, %v2642_v40  ;;  %v2512_v0 = vadd.f32 %v2511_v14, %v2379_v24  ;;  %2824 = vmatmul.bf16.gmra.mxu0 %v8833_v39  ;;  %v6080_v40 = vld [vmem:[%s7928_s18 + $0x170] sm:$0xf0]  ;;  %v7338_v24 = vld [vmem:[%s7928_s18 + $0x174] sm:$0xf0]  ;;  %v7334_v14 = vld [vmem:[%s7928_s18 + $0x15c] sm:$0xf] }
 0x1fe   : > { %2957 = vmatmul.bf16.gmra.mxu1 %v8835_v56  ;;  %v8859_v56 = vor.u32 %v7337_v63, %v6078_v2 }
 0x1ff   : > { %11455 = vst [vmem:[#allocation121_spill] sm:$0xff] %v8842_v33  ;;  %3090 = vmatmul.bf16.gmra.mxu2 %v8837_v44  ;;  %v6088_v44 = vld [vmem:[%s7928_s18 + $0x178] sm:$0xf0]  ;;  %v8861_v33 = vor.u32 %v7333_v8, %v6080_v40 }
 0x200   : > { %3223 = vmatmul.bf16.gmra.mxu3 %v8840_v26  ;;  %11457 = vst [vmem:[#allocation123_spill] sm:$0xff] %v8859_v56 }
 0x201   : > { %11458 = vst [vmem:[#allocation124_spill] sm:$0xff] %v8861_v33 }
 0x202   : > { %v2644_v3 = vpop.f32.mrf.mxu2  ;;  %v2380_v55 = vpop.f32.mrf.mxu0 }
 0x203   : > { %v2645_v36 = vadd.f32 %v2644_v3, %v2512_v0  ;;  %v2777_v54 = vpop.f32.mrf.mxu3  ;;  %v2381_v1 = vadd.f32 %v2380_v55, %v8093_v17  ;;  %v2513_v25 = vpop.f32.mrf.mxu1  ;;  %v8863_v55 = vor.u32 %v7338_v24, %v6086_v35  ;;  %v6110_v35 = vld [vmem:[%s7928_s18 + $0x190] sm:$0xf] }
 0x204   : > { %v7345_v24 = vld [vmem:[%s7928_s18 + $0x1ac] sm:$0xf0] }
 0x205   : > { %v8849_v58 = vadd.f32 %v2777_v54, %v2645_v36  ;;  %v2514_v53 = vadd.f32 %v2513_v25, %v2381_v1  ;;  %11459 = vst [vmem:[#allocation125_spill] sm:$0xff] %v8863_v55  ;;  %v8866_v1 = vor.u32 %v7334_v14, %v6088_v44  ;;  %v7341_v14 = vld [vmem:[%s7928_s18 + $0x194] sm:$0xf] }
 0x207   : > { %11456 = vst [vmem:[#allocation122_spill] sm:$0xff] %v8849_v58 }
 0x208   : > { %11460 = vst [vmem:[#allocation126_spill] sm:$0xff] %v8866_v1 }
 0x20a   : > { %v2646_v26 = vpop.f32.mrf.mxu2  ;;  %v2383_v3 = vpop.f32.mrf.mxu0 }
 0x20b   : > { %v2647_v0 = vadd.f32 %v2646_v26, %v2514_v53  ;;  %v2779_v39 = vpop.f32.mrf.mxu3  ;;  %v2384_v36 = vadd.f32 %v2383_v3, %v8093_v17  ;;  %v2516_v54 = vpop.f32.mrf.mxu1  ;;  %v6118_v3 = vld [vmem:[%s7928_s18 + $0x198] sm:$0xf] }
 0x20d   : > { %v8868_v25 = vadd.f32 %v2779_v39, %v2647_v0  ;;  %v2517_v58 = vadd.f32 %v2516_v54, %v2384_v36  ;;  %2829 = vmatmul.bf16.gmra.mxu0 %v8859_v56  ;;  %v6112_v0 = vld [vmem:[%s7928_s18 + $0x1b0] sm:$0xf0]  ;;  %v7346_v36 = vld [vmem:[%s7928_s18 + $0x1b4] sm:$0xf0]  ;;  %v7342_v54 = vld [vmem:[%s7928_s18 + $0x19c] sm:$0xf] }
 0x20e   : > { %2962 = vmatmul.bf16.gmra.mxu1 %v8861_v33  ;;  %v8885_v33 = vor.u32 %v7345_v24, %v6110_v35 }
 0x20f   : > { %11461 = vst [vmem:[#allocation127_spill] sm:$0xff] %v8868_v25  ;;  %3095 = vmatmul.bf16.gmra.mxu2 %v8863_v55  ;;  %v6120_v55 = vld [vmem:[%s7928_s18 + $0x1b8] sm:$0xf0]  ;;  %v8887_v25 = vor.u32 %v7341_v14, %v6112_v0 }
 0x210   : > { %3228 = vmatmul.bf16.gmra.mxu3 %v8866_v1  ;;  %11463 = vst [vmem:[#allocation129_spill] sm:$0xff] %v8885_v33 }
 0x211   : > { %11464 = vst [vmem:[#allocation130_spill] sm:$0xff] %v8887_v25 }
 0x212   : > { %v2649_v44 = vpop.f32.mrf.mxu2  ;;  %v2385_v53 = vpop.f32.mrf.mxu0 }
 0x213   : > { %v2650_v26 = vadd.f32 %v2649_v44, %v2517_v58  ;;  %v2782_v39 = vpop.f32.mrf.mxu3  ;;  %v2386_v2 = vadd.f32 %v2385_v53, %v8093_v17  ;;  %v2518_v63 = vpop.f32.mrf.mxu1  ;;  %v8889_v53 = vor.u32 %v7346_v36, %v6118_v3  ;;  %v6142_v3 = vld [vmem:[%s7928_s18 + $0x1d0] sm:$0xf] }
 0x214   : > { %v7353_v36 = vld [vmem:[%s7928_s18 + $0x1ec] sm:$0xf0] }
 0x215   : > { %v8875_v8 = vadd.f32 %v2782_v39, %v2650_v26  ;;  %v2519_v40 = vadd.f32 %v2518_v63, %v2386_v2  ;;  %11465 = vst [vmem:[#allocation131_spill] sm:$0xff] %v8889_v53  ;;  %v8892_v2 = vor.u32 %v7342_v54, %v6120_v55  ;;  %v7349_v54 = vld [vmem:[%s7928_s18 + $0x1d4] sm:$0xf] }
 0x217   : > { %11462 = vst [vmem:[#allocation128_spill] sm:$0xff] %v8875_v8 }
 0x218   : > { %11466 = vst [vmem:[#allocation132_spill] sm:$0xff] %v8892_v2 }
 0x21a   : > { %v2651_v1 = vpop.f32.mrf.mxu2  ;;  %v2388_v44 = vpop.f32.mrf.mxu0 }
 0x21b   : > { %v2652_v58 = vadd.f32 %v2651_v1, %v2519_v40  ;;  %v2784_v56 = vpop.f32.mrf.mxu3  ;;  %v2389_v26 = vadd.f32 %v2388_v44, %v8093_v17  ;;  %v2521_v39 = vpop.f32.mrf.mxu1  ;;  %v6150_v44 = vld [vmem:[%s7928_s18 + $0x1d8] sm:$0xf] }
 0x21d   : > { %v8894_v63 = vadd.f32 %v2784_v56, %v2652_v58  ;;  %v2522_v8 = vadd.f32 %v2521_v39, %v2389_v26  ;;  %2834 = vmatmul.bf16.gmra.mxu0 %v8885_v33  ;;  %v6144_v58 = vld [vmem:[%s7928_s18 + $0x1f0] sm:$0xf0]  ;;  %v7354_v26 = vld [vmem:[%s7928_s18 + $0x1f4] sm:$0xf0]  ;;  %v7350_v39 = vld [vmem:[%s7928_s18 + $0x1dc] sm:$0xf] }
 0x21e   : > { %2967 = vmatmul.bf16.gmra.mxu1 %v8887_v25  ;;  %v8911_v25 = vor.u32 %v7353_v36, %v6142_v3 }
 0x21f   : > { %11467 = vst [vmem:[#allocation133_spill] sm:$0xff] %v8894_v63  ;;  %3100 = vmatmul.bf16.gmra.mxu2 %v8889_v53  ;;  %v6152_v53 = vld [vmem:[%s7928_s18 + $0x1f8] sm:$0xf0]  ;;  %v8913_v63 = vor.u32 %v7349_v54, %v6144_v58  ;;  %v6174_v54 = vld [vmem:[%s7928_s18 + $0x210] sm:$0xf] }
 0x220   : > { %3233 = vmatmul.bf16.gmra.mxu3 %v8892_v2  ;;  %11468 = vst [vmem:[#allocation134_spill] sm:$0xff] %v8911_v25  ;;  %v7361_v58 = vld [vmem:[%s7928_s18 + $0x22c] sm:$0xf0] }
 0x221   : > { %11469 = vst [vmem:[#allocation135_spill] sm:$0xff] %v8913_v63 }
 0x222   : > { %v2654_v55 = vpop.f32.mrf.mxu2  ;;  %v2390_v40 = vpop.f32.mrf.mxu0 }
 0x223   : > { %v2655_v1 = vadd.f32 %v2654_v55, %v2522_v8  ;;  %v2787_v56 = vpop.f32.mrf.mxu3  ;;  %v2391_v35 = vadd.f32 %v2390_v40, %v8093_v17  ;;  %v2523_v24 = vpop.f32.mrf.mxu1  ;;  %v8915_v40 = vor.u32 %v7354_v26, %v6150_v44  ;;  %v7357_v44 = vld [vmem:[%s7928_s18 + $0x214] sm:$0xf] }
 0x224   : > { %v6176_v26 = vld [vmem:[%s7928_s18 + $0x230] sm:$0xf0] }
 0x225   : > { %v8901_v14 = vadd.f32 %v2787_v56, %v2655_v1  ;;  %v2524_v0 = vadd.f32 %v2523_v24, %v2391_v35  ;;  %11470 = vst [vmem:[#allocation136_spill] sm:$0xff] %v8915_v40  ;;  %v8918_v35 = vor.u32 %v7350_v39, %v6152_v53  ;;  %v6182_v39 = vld [vmem:[%s7928_s18 + $0x218] sm:$0xf] }
 0x227   : > { %11471 = vst [vmem:[#allocation137_spill] sm:$0xff] %v8918_v35 }
 0x22a   : > { %v2656_v2 = vpop.f32.mrf.mxu2  ;;  %v2393_v55 = vpop.f32.mrf.mxu0 }
 0x22b   : > { %v2657_v8 = vadd.f32 %v2656_v2, %v2524_v0  ;;  %v2789_v33 = vpop.f32.mrf.mxu3  ;;  %v2394_v1 = vadd.f32 %v2393_v55, %v8093_v17  ;;  %v2526_v56 = vpop.f32.mrf.mxu1  ;;  %v7358_v55 = vld [vmem:[%s7928_s18 + $0x21c] sm:$0xf] }
 0x22d   : > { %v8920_v24 = vadd.f32 %v2789_v33, %v2657_v8  ;;  %v2527_v3 = vadd.f32 %v2526_v56, %v2394_v1  ;;  %2839 = vmatmul.bf16.gmra.mxu0 %v8911_v25  ;;  %v7362_v8 = vld [vmem:[%s7928_s18 + $0x234] sm:$0xf0]  ;;  %v6184_v1 = vld [vmem:[%s7928_s18 + $0x238] sm:$0xf0]  ;;  %v8938_v25 = vor.u32 %v7357_v44, %v6176_v26 }
 0x22e   : > { %2972 = vmatmul.bf16.gmra.mxu1 %v8913_v63  ;;  %v8936_v63 = vor.u32 %v7361_v58, %v6174_v54 }
 0x22f   : > { %11472 = vst [vmem:[#allocation138_spill] sm:$0xff] %v8920_v24  ;;  %3105 = vmatmul.bf16.gmra.mxu2 %v8915_v40 }
 0x230   : > { %3238 = vmatmul.bf16.gmra.mxu3 %v8918_v35  ;;  %11474 = vst [vmem:[#allocation140_spill] sm:$0xff] %v8936_v63 }
 0x231   : > { %11475 = vst [vmem:[#allocation141_spill] sm:$0xff] %v8938_v25 }
 0x232   : > { %v2659_v17 = vpop.f32.mrf.mxu2  ;;  %v2395_v53 = vpop.f32.mrf.mxu0 }
 0x233   : > { %v2660_v2 = vadd.f32 %v2659_v17, %v2527_v3  ;;  %v2792_v0 = vpop.f32.mrf.mxu3  ;;  %v2528_v36 = vpop.f32.mrf.mxu1  ;;  %v8940_v3 = vor.u32 %v7362_v8, %v6182_v39  ;;  %v8943_v53 = vor.u32 %v7358_v55, %v6184_v1  ;;  %v6206_v39 = vld [vmem:[%s7928_s18 + $0x250] sm:$0xf]  ;;  %v7365_v55 = vld [vmem:[%s7928_s18 + $0x254] sm:$0xf] }
 0x234   : > { %v7369_v8 = vld [vmem:[%s7928_s18 + $0x26c] sm:$0xf0]  ;;  %v6208_v1 = vld [vmem:[%s7928_s18 + $0x270] sm:$0xf0] }
 0x235   : > { %v8926_v33 = vadd.f32 %v2792_v0, %v2660_v2  ;;  %11476 = vst [vmem:[#allocation142_spill] sm:$0xff] %v8940_v3 }
 0x236   : > { %11477 = vst [vmem:[#allocation143_spill] sm:$0xff] %v8943_v53 }
 0x237   : > { %11473 = vst [vmem:[#allocation139_spill] sm:$0xff] %v8926_v33  ;;  %v8960_v33 = vor.u32 %v7365_v55, %v6208_v1 }
 0x23a   : > { %v2661_v56 = vpop.f32.mrf.mxu2  ;;  %v2805_v35 = vpop.f32.mrf.mxu0 }
 0x23b   : > { %v2794_v40 = vpop.f32.mrf.mxu3  ;;  %v2806_v17 = vadd.f32 %v2805_v35, %v8117_v60  ;;  %v2938_v2 = vpop.f32.mrf.mxu1  ;;  %v6214_v56 = vld [vmem:[%s7928_s18 + $0x258] sm:$0xf] }
 0x23d   : > { %v2939_v0 = vadd.f32 %v2938_v2, %v2806_v17  ;;  %2844 = vmatmul.bf16.gmra.mxu0 %v8936_v63  ;;  %v7370_v17 = vld [vmem:[%s7928_s18 + $0x274] sm:$0xf0]  ;;  %v7366_v2 = vld [vmem:[%s7928_s18 + $0x25c] sm:$0xf] }
 0x23e   : > { %2977 = vmatmul.bf16.gmra.mxu1 %v8938_v25 }
 0x23f   : > { %3110 = vmatmul.bf16.gmra.mxu2 %v8940_v3  ;;  %v6216_v3 = vld [vmem:[%s7928_s18 + $0x278] sm:$0xf0] }
 0x240   : > { %3243 = vmatmul.bf16.gmra.mxu3 %v8943_v53  ;;  %v8958_v53 = vor.u32 %v7369_v8, %v6206_v39 }
 0x242   : > { %v3071_v60 = vpop.f32.mrf.mxu2  ;;  %v2807_v35 = vpop.f32.mrf.mxu0 }
 0x243   : > { %v3072_v40 = vadd.f32 %v3071_v60, %v2939_v0  ;;  %v3204_v36 = vpop.f32.mrf.mxu3  ;;  %v2808_v54 = vadd.f32 %v2807_v35, %v8136_v45  ;;  %v2940_v58 = vpop.f32.mrf.mxu1  ;;  %v8962_v45 = vor.u32 %v7370_v17, %v6214_v56 }
 0x245   : > { %v3205_v44 = vadd.f32 %v3204_v36, %v3072_v40  ;;  %v2941_v26 = vadd.f32 %v2940_v58, %v2808_v54  ;;  %11478 = vst [vmem:[#allocation144_spill] sm:$0xff] %v8962_v45  ;;  %v8965_v36 = vor.u32 %v7366_v2, %v6216_v3 }
 0x247   : > { %11479 = vst [vmem:[#allocation145_spill] sm:$0xff] %v8965_v36  ;;  %v4490_v54 = vmul.f32 0.01, %v3205_v44  ;;  %vm4392_vm0 = vcmp.gt.f32.partialorder %v3205_v44, 0.0 }
 0x24a   : > { %v3073_v25 = vpop.f32.mrf.mxu2  ;;  %v2810_v0 = vpop.f32.mrf.mxu0 }
 0x24b   : > { %v3074_v63 = vadd.f32 %v3073_v25, %v2941_v26  ;;  %v3206_v60 = vpop.f32.mrf.mxu3  ;;  %v2811_v40 = vadd.f32 %v2810_v0, %v8143_v62  ;;  %v2943_v35 = vpop.f32.mrf.mxu1  ;;  %v8971_v62 = vsel %vm4392_vm0, %v3205_v44, %v4490_v54  ;;  %v6238_v0 = vld [vmem:[%s7928_s18 + $0x290] sm:$0xf]  ;;  %v7378_v54 = vld [vmem:[%s7928_s18 + $0x2b4] sm:$0xf0] }
 0x24c   : > { %11480 = vst [vmem:[#allocation146_spill] sm:$0xff] %v8971_v62  ;;  %v7377_v44 = vld [vmem:[%s7928_s18 + $0x2ac] sm:$0xf0] }
 0x24d   : > { %v3207_v58 = vadd.f32 %v3206_v60, %v3074_v63  ;;  %v2944_v24 = vadd.f32 %v2943_v35, %v2811_v40  ;;  %2849 = vmatmul.bf16.gmra.mxu0 %v8958_v53  ;;  %v7373_v60 = vld [vmem:[%s7928_s18 + $0x294] sm:$0xf]  ;;  %v6246_v35 = vld [vmem:[%s7928_s18 + $0x298] sm:$0xf]  ;;  %v8986_v3 = vor.u32 %v7377_v44, %v6238_v0 }
 0x24e   : > { %2982 = vmatmul.bf16.gmra.mxu1 %v8960_v33  ;;  %v6240_v40 = vld [vmem:[%s7928_s18 + $0x2b0] sm:$0xf0] }
 0x24f   : > { %vm4394_vm1 = vcmp.gt.f32.partialorder %v3207_v58, 0.0  ;;  %v4492_v25 = vmul.f32 0.01, %v3207_v58  ;;  %3115 = vmatmul.bf16.gmra.mxu2 %v8962_v45 }
 0x250   : > { %3248 = vmatmul.bf16.gmra.mxu3 %v8965_v36 }
 0x251   : > { %v8973_v63 = vsel %vm4394_vm1, %v3207_v58, %v4492_v25  ;;  %v7374_v58 = vld [vmem:[%s7928_s18 + $0x29c] sm:$0xf] }
 0x252   : > { %11481 = vst [vmem:[#allocation147_spill] sm:$0xff] %v8973_v63  ;;  %v3076_v26 = vpop.f32.mrf.mxu2  ;;  %v2812_v8 = vpop.f32.mrf.mxu0  ;;  %v6248_v25 = vld [vmem:[%s7928_s18 + $0x2b8] sm:$0xf0]  ;;  %v8988_v63 = vor.u32 %v7373_v60, %v6240_v40 }
 0x253   : > { %v3077_v39 = vadd.f32 %v3076_v26, %v2944_v24  ;;  %v3209_v55 = vpop.f32.mrf.mxu3  ;;  %v2813_v1 = vadd.f32 %v2812_v8, %v8162_v61  ;;  %v2945_v56 = vpop.f32.mrf.mxu1  ;;  %v8990_v61 = vor.u32 %v7378_v54, %v6246_v35 }
 0x255   : > { %v3210_v17 = vadd.f32 %v3209_v55, %v3077_v39  ;;  %v2946_v2 = vadd.f32 %v2945_v56, %v2813_v1  ;;  %11482 = vst [vmem:[#allocation148_spill] sm:$0xff] %v8990_v61  ;;  %v8993_v55 = vor.u32 %v7374_v58, %v6248_v25 }
 0x257   : > { %11483 = vst [vmem:[#allocation149_spill] sm:$0xff] %v8993_v55  ;;  %v4494_v1 = vmul.f32 0.01, %v3210_v17  ;;  %vm4396_vm2 = vcmp.gt.f32.partialorder %v3210_v17, 0.0 }
 0x25a   : > { %v3078_v36 = vpop.f32.mrf.mxu2  ;;  %v2815_v24 = vpop.f32.mrf.mxu0 }
 0x25b   : > { %v3079_v62 = vadd.f32 %v3078_v36, %v2946_v2  ;;  %v3211_v26 = vpop.f32.mrf.mxu3  ;;  %v2816_v39 = vadd.f32 %v2815_v24, %v8169_v18  ;;  %v2948_v8 = vpop.f32.mrf.mxu1  ;;  %v8999_v18 = vsel %vm4396_vm2, %v3210_v17, %v4494_v1  ;;  %v6270_v24 = vld [vmem:[%s7928_s18 + $0x2d0] sm:$0xf]  ;;  %v7386_v1 = vld [vmem:[%s7928_s18 + $0x2f4] sm:$0xf0] }
 0x25c   : > { %11484 = vst [vmem:[#allocation150_spill] sm:$0xff] %v8999_v18  ;;  %v7385_v17 = vld [vmem:[%s7928_s18 + $0x2ec] sm:$0xf0] }
 0x25d   : > { %v3212_v56 = vadd.f32 %v3211_v26, %v3079_v62  ;;  %v2949_v45 = vadd.f32 %v2948_v8, %v2816_v39  ;;  %2854 = vmatmul.bf16.gmra.mxu0 %v8986_v3  ;;  %v7381_v26 = vld [vmem:[%s7928_s18 + $0x2d4] sm:$0xf]  ;;  %v6278_v8 = vld [vmem:[%s7928_s18 + $0x2d8] sm:$0xf] }
 0x25e   : > { %2987 = vmatmul.bf16.gmra.mxu1 %v8988_v63  ;;  %v6272_v39 = vld [vmem:[%s7928_s18 + $0x2f0] sm:$0xf0] }
 0x25f   : > { %vm4398_vm3 = vcmp.gt.f32.partialorder %v3212_v56, 0.0  ;;  %v4496_v36 = vmul.f32 0.01, %v3212_v56  ;;  %3120 = vmatmul.bf16.gmra.mxu2 %v8990_v61  ;;  %v9014_v61 = vor.u32 %v7385_v17, %v6270_v24  ;;  %v9016_v18 = vor.u32 %v7381_v26, %v6272_v39 }
 0x260   : > { %3253 = vmatmul.bf16.gmra.mxu3 %v8993_v55 }
 0x261   : > { %v9001_v62 = vsel %vm4398_vm3, %v3212_v56, %v4496_v36  ;;  %v7382_v56 = vld [vmem:[%s7928_s18 + $0x2dc] sm:$0xf] }
 0x262   : > { %11485 = vst [vmem:[#allocation151_spill] sm:$0xff] %v9001_v62  ;;  %v3081_v2 = vpop.f32.mrf.mxu2  ;;  %v2817_v60 = vpop.f32.mrf.mxu0  ;;  %v6280_v36 = vld [vmem:[%s7928_s18 + $0x2f8] sm:$0xf0] }
 0x263   : > { %v3082_v44 = vadd.f32 %v3081_v2, %v2949_v45  ;;  %v3214_v40 = vpop.f32.mrf.mxu3  ;;  %v2818_v35 = vadd.f32 %v2817_v60, %v8188_v16  ;;  %v2950_v54 = vpop.f32.mrf.mxu1  ;;  %v9018_v16 = vor.u32 %v7386_v1, %v6278_v8 }
 0x265   : > { %v3215_v58 = vadd.f32 %v3214_v40, %v3082_v44  ;;  %v2951_v25 = vadd.f32 %v2950_v54, %v2818_v35  ;;  %11486 = vst [vmem:[#allocation152_spill] sm:$0xff] %v9018_v16  ;;  %v9021_v40 = vor.u32 %v7382_v56, %v6280_v36 }
 0x267   : > { %11487 = vst [vmem:[#allocation153_spill] sm:$0xff] %v9021_v40  ;;  %v4498_v35 = vmul.f32 0.01, %v3215_v58  ;;  %vm4400_vm4 = vcmp.gt.f32.partialorder %v3215_v58, 0.0 }
 0x26a   : > { %v3083_v55 = vpop.f32.mrf.mxu2  ;;  %v2820_v45 = vpop.f32.mrf.mxu0 }
 0x26b   : > { %v3084_v0 = vadd.f32 %v3083_v55, %v2951_v25  ;;  %v3216_v2 = vpop.f32.mrf.mxu3  ;;  %v2821_v44 = vadd.f32 %v2820_v45, %v8195_v31  ;;  %v2953_v60 = vpop.f32.mrf.mxu1  ;;  %v9027_v31 = vsel %vm4400_vm4, %v3215_v58, %v4498_v35  ;;  %v6302_v45 = vld [vmem:[%s7928_s18 + $0x310] sm:$0xf]  ;;  %v7394_v35 = vld [vmem:[%s7928_s18 + $0x334] sm:$0xf0] }
 0x26c   : > { %11488 = vst [vmem:[#allocation154_spill] sm:$0xff] %v9027_v31  ;;  %v7393_v58 = vld [vmem:[%s7928_s18 + $0x32c] sm:$0xf0] }
 0x26d   : > { %v3217_v54 = vadd.f32 %v3216_v2, %v3084_v0  ;;  %v2954_v62 = vadd.f32 %v2953_v60, %v2821_v44  ;;  %2859 = vmatmul.bf16.gmra.mxu0 %v9014_v61  ;;  %v7389_v2 = vld [vmem:[%s7928_s18 + $0x314] sm:$0xf]  ;;  %v6310_v60 = vld [vmem:[%s7928_s18 + $0x318] sm:$0xf] }
 0x26e   : > { %2992 = vmatmul.bf16.gmra.mxu1 %v9016_v18  ;;  %v6304_v44 = vld [vmem:[%s7928_s18 + $0x330] sm:$0xf0] }
 0x26f   : > { %vm4402_vm5 = vcmp.gt.f32.partialorder %v3217_v54, 0.0  ;;  %v4500_v55 = vmul.f32 0.01, %v3217_v54  ;;  %3125 = vmatmul.bf16.gmra.mxu2 %v9018_v16  ;;  %v9042_v16 = vor.u32 %v7393_v58, %v6302_v45  ;;  %v9044_v31 = vor.u32 %v7389_v2, %v6304_v44 }
 0x270   : > { %3258 = vmatmul.bf16.gmra.mxu3 %v9021_v40 }
 0x271   : > { %v9029_v0 = vsel %vm4402_vm5, %v3217_v54, %v4500_v55  ;;  %v7390_v54 = vld [vmem:[%s7928_s18 + $0x31c] sm:$0xf] }
 0x272   : > { %11489 = vst [vmem:[#allocation155_spill] sm:$0xff] %v9029_v0  ;;  %v3086_v25 = vpop.f32.mrf.mxu2  ;;  %v2822_v26 = vpop.f32.mrf.mxu0  ;;  %v6312_v55 = vld [vmem:[%s7928_s18 + $0x338] sm:$0xf0] }
 0x273   : > { %v3087_v17 = vadd.f32 %v3086_v25, %v2954_v62  ;;  %v3219_v39 = vpop.f32.mrf.mxu3  ;;  %v2823_v8 = vadd.f32 %v2822_v26, %v8214_v22  ;;  %v2955_v1 = vpop.f32.mrf.mxu1  ;;  %v9046_v22 = vor.u32 %v7394_v35, %v6310_v60 }
 0x275   : > { %v3220_v56 = vadd.f32 %v3219_v39, %v3087_v17  ;;  %v2956_v36 = vadd.f32 %v2955_v1, %v2823_v8  ;;  %11490 = vst [vmem:[#allocation156_spill] sm:$0xff] %v9046_v22  ;;  %v9049_v39 = vor.u32 %v7390_v54, %v6312_v55 }
 0x277   : > { %11491 = vst [vmem:[#allocation157_spill] sm:$0xff] %v9049_v39  ;;  %v4502_v8 = vmul.f32 0.01, %v3220_v56  ;;  %vm4404_vm6 = vcmp.gt.f32.partialorder %v3220_v56, 0.0 }
 0x27a   : > { %v3088_v40 = vpop.f32.mrf.mxu2  ;;  %v2825_v62 = vpop.f32.mrf.mxu0 }
 0x27b   : > { %v3089_v24 = vadd.f32 %v3088_v40, %v2956_v36  ;;  %v3221_v25 = vpop.f32.mrf.mxu3  ;;  %v2826_v17 = vadd.f32 %v2825_v62, %v8221_v50  ;;  %v2958_v26 = vpop.f32.mrf.mxu1  ;;  %v9055_v50 = vsel %vm4404_vm6, %v3220_v56, %v4502_v8  ;;  %v6334_v62 = vld [vmem:[%s7928_s18 + $0x350] sm:$0xf]  ;;  %v7402_v8 = vld [vmem:[%s7928_s18 + $0x374] sm:$0xf0] }
 0x27c   : > { %11492 = vst [vmem:[#allocation158_spill] sm:$0xff] %v9055_v50  ;;  %v7401_v56 = vld [vmem:[%s7928_s18 + $0x36c] sm:$0xf0] }
 0x27d   : > { %v3222_v1 = vadd.f32 %v3221_v25, %v3089_v24  ;;  %v2959_v0 = vadd.f32 %v2958_v26, %v2826_v17  ;;  %2864 = vmatmul.bf16.gmra.mxu0 %v9042_v16  ;;  %v7397_v25 = vld [vmem:[%s7928_s18 + $0x354] sm:$0xf]  ;;  %v6342_v26 = vld [vmem:[%s7928_s18 + $0x358] sm:$0xf] }
 0x27e   : > { %2997 = vmatmul.bf16.gmra.mxu1 %v9044_v31  ;;  %v6336_v17 = vld [vmem:[%s7928_s18 + $0x370] sm:$0xf0] }
 0x27f   : > { %vm4406_vm7 = vcmp.gt.f32.partialorder %v3222_v1, 0.0  ;;  %v4504_v40 = vmul.f32 0.01, %v3222_v1  ;;  %3130 = vmatmul.bf16.gmra.mxu2 %v9046_v22  ;;  %v9070_v22 = vor.u32 %v7401_v56, %v6334_v62  ;;  %v9072_v50 = vor.u32 %v7397_v25, %v6336_v17 }
 0x280   : > { %3263 = vmatmul.bf16.gmra.mxu3 %v9049_v39 }
 0x281   : > { %v9057_v24 = vsel %vm4406_vm7, %v3222_v1, %v4504_v40  ;;  %v7398_v1 = vld [vmem:[%s7928_s18 + $0x35c] sm:$0xf] }
 0x282   : > { %11493 = vst [vmem:[#allocation159_spill] sm:$0xff] %v9057_v24  ;;  %v3091_v36 = vpop.f32.mrf.mxu2  ;;  %v2827_v2 = vpop.f32.mrf.mxu0  ;;  %v6344_v40 = vld [vmem:[%s7928_s18 + $0x378] sm:$0xf0] }
 0x283   : > { %v3092_v58 = vadd.f32 %v3091_v36, %v2959_v0  ;;  %v3224_v44 = vpop.f32.mrf.mxu3  ;;  %v2828_v60 = vadd.f32 %v2827_v2, %v8240_v48  ;;  %v2960_v35 = vpop.f32.mrf.mxu1  ;;  %v9074_v48 = vor.u32 %v7402_v8, %v6342_v26 }
 0x285   : > { %v3225_v54 = vadd.f32 %v3224_v44, %v3092_v58  ;;  %v2961_v55 = vadd.f32 %v2960_v35, %v2828_v60  ;;  %11494 = vst [vmem:[#allocation160_spill] sm:$0xff] %v9074_v48  ;;  %v9077_v44 = vor.u32 %v7398_v1, %v6344_v40 }
 0x287   : > { %11495 = vst [vmem:[#allocation161_spill] sm:$0xff] %v9077_v44  ;;  %v4506_v60 = vmul.f32 0.01, %v3225_v54  ;;  %vm4408_vm8 = vcmp.gt.f32.partialorder %v3225_v54, 0.0 }
 0x28a   : > { %v3093_v39 = vpop.f32.mrf.mxu2  ;;  %v2830_v0 = vpop.f32.mrf.mxu0 }
 0x28b   : > { %v3094_v45 = vadd.f32 %v3093_v39, %v2961_v55  ;;  %v3226_v36 = vpop.f32.mrf.mxu3  ;;  %v2831_v58 = vadd.f32 %v2830_v0, %v8247_v6  ;;  %v2963_v2 = vpop.f32.mrf.mxu1  ;;  %v9083_v6 = vsel %vm4408_vm8, %v3225_v54, %v4506_v60  ;;  %v6366_v0 = vld [vmem:[%s7928_s18 + $0x390] sm:$0xf]  ;;  %v7410_v60 = vld [vmem:[%s7928_s18 + $0x3b4] sm:$0xf0] }
 0x28c   : > { %11496 = vst [vmem:[#allocation162_spill] sm:$0xff] %v9083_v6  ;;  %v7409_v54 = vld [vmem:[%s7928_s18 + $0x3ac] sm:$0xf0] }
 0x28d   : > { %v3227_v35 = vadd.f32 %v3226_v36, %v3094_v45  ;;  %v2964_v24 = vadd.f32 %v2963_v2, %v2831_v58  ;;  %2869 = vmatmul.bf16.gmra.mxu0 %v9070_v22  ;;  %v7405_v36 = vld [vmem:[%s7928_s18 + $0x394] sm:$0xf]  ;;  %v6374_v2 = vld [vmem:[%s7928_s18 + $0x398] sm:$0xf] }
 0x28e   : > { %3002 = vmatmul.bf16.gmra.mxu1 %v9072_v50  ;;  %v6368_v58 = vld [vmem:[%s7928_s18 + $0x3b0] sm:$0xf0] }
 0x28f   : > { %vm4410_vm9 = vcmp.gt.f32.partialorder %v3227_v35, 0.0  ;;  %v4508_v39 = vmul.f32 0.01, %v3227_v35  ;;  %3135 = vmatmul.bf16.gmra.mxu2 %v9074_v48  ;;  %v9098_v48 = vor.u32 %v7409_v54, %v6366_v0  ;;  %v9100_v6 = vor.u32 %v7405_v36, %v6368_v58 }
 0x290   : > { %3268 = vmatmul.bf16.gmra.mxu3 %v9077_v44 }
 0x291   : > { %v9085_v45 = vsel %vm4410_vm9, %v3227_v35, %v4508_v39  ;;  %v7406_v35 = vld [vmem:[%s7928_s18 + $0x39c] sm:$0xf] }
 0x292   : > { %11497 = vst [vmem:[#allocation163_spill] sm:$0xff] %v9085_v45  ;;  %v3096_v55 = vpop.f32.mrf.mxu2  ;;  %v2832_v25 = vpop.f32.mrf.mxu0  ;;  %v6376_v39 = vld [vmem:[%s7928_s18 + $0x3b8] sm:$0xf0] }
 0x293   : > { %v3097_v56 = vadd.f32 %v3096_v55, %v2964_v24  ;;  %v3229_v17 = vpop.f32.mrf.mxu3  ;;  %v2833_v26 = vadd.f32 %v2832_v25, %v8266_v4  ;;  %v2965_v8 = vpop.f32.mrf.mxu1  ;;  %v9102_v4 = vor.u32 %v7410_v60, %v6374_v2 }
 0x295   : > { %v3230_v1 = vadd.f32 %v3229_v17, %v3097_v56  ;;  %v2966_v40 = vadd.f32 %v2965_v8, %v2833_v26  ;;  %11498 = vst [vmem:[#allocation164_spill] sm:$0xff] %v9102_v4  ;;  %v9105_v17 = vor.u32 %v7406_v35, %v6376_v39 }
 0x297   : > { %11499 = vst [vmem:[#allocation165_spill] sm:$0xff] %v9105_v17  ;;  %v4510_v26 = vmul.f32 0.01, %v3230_v1  ;;  %vm4412_vm10 = vcmp.gt.f32.partialorder %v3230_v1, 0.0 }
 0x29a   : > { %v3098_v44 = vpop.f32.mrf.mxu2  ;;  %v2835_v24 = vpop.f32.mrf.mxu0 }
 0x29b   : > { %v3099_v62 = vadd.f32 %v3098_v44, %v2966_v40  ;;  %v3231_v55 = vpop.f32.mrf.mxu3  ;;  %v2836_v56 = vadd.f32 %v2835_v24, %v8273_v23  ;;  %v2968_v25 = vpop.f32.mrf.mxu1  ;;  %v9111_v23 = vsel %vm4412_vm10, %v3230_v1, %v4510_v26  ;;  %v6398_v24 = vld [vmem:[%s7928_s18 + $0x3d0] sm:$0xf]  ;;  %v7418_v26 = vld [vmem:[%s7928_s18 + $0x3f4] sm:$0xf0] }
 0x29c   : > { %11500 = vst [vmem:[#allocation166_spill] sm:$0xff] %v9111_v23  ;;  %v7417_v1 = vld [vmem:[%s7928_s18 + $0x3ec] sm:$0xf0] }
 0x29d   : > { %v3232_v8 = vadd.f32 %v3231_v55, %v3099_v62  ;;  %v2969_v45 = vadd.f32 %v2968_v25, %v2836_v56  ;;  %2874 = vmatmul.bf16.gmra.mxu0 %v9098_v48  ;;  %v7413_v55 = vld [vmem:[%s7928_s18 + $0x3d4] sm:$0xf]  ;;  %v6406_v25 = vld [vmem:[%s7928_s18 + $0x3d8] sm:$0xf] }
 0x29e   : > { %3007 = vmatmul.bf16.gmra.mxu1 %v9100_v6  ;;  %v6400_v56 = vld [vmem:[%s7928_s18 + $0x3f0] sm:$0xf0] }
 0x29f   : > { %vm4414_vm11 = vcmp.gt.f32.partialorder %v3232_v8, 0.0  ;;  %v4512_v44 = vmul.f32 0.01, %v3232_v8  ;;  %3140 = vmatmul.bf16.gmra.mxu2 %v9102_v4  ;;  %v9126_v4 = vor.u32 %v7417_v1, %v6398_v24  ;;  %v9128_v23 = vor.u32 %v7413_v55, %v6400_v56 }
 0x2a0   : > { %3273 = vmatmul.bf16.gmra.mxu3 %v9105_v17 }
 0x2a1   : > { %v9113_v62 = vsel %vm4414_vm11, %v3232_v8, %v4512_v44  ;;  %v7414_v8 = vld [vmem:[%s7928_s18 + $0x3dc] sm:$0xf] }
 0x2a2   : > { %11501 = vst [vmem:[#allocation167_spill] sm:$0xff] %v9113_v62  ;;  %v3101_v40 = vpop.f32.mrf.mxu2  ;;  %v2837_v36 = vpop.f32.mrf.mxu0  ;;  %v6408_v44 = vld [vmem:[%s7928_s18 + $0x3f8] sm:$0xf0] }
 0x2a3   : > { %v3102_v54 = vadd.f32 %v3101_v40, %v2969_v45  ;;  %v3234_v58 = vpop.f32.mrf.mxu3  ;;  %v2838_v2 = vadd.f32 %v2837_v36, %v8292_v51  ;;  %v2970_v60 = vpop.f32.mrf.mxu1  ;;  %v9130_v51 = vor.u32 %v7418_v26, %v6406_v25 }
 0x2a5   : > { %v3235_v35 = vadd.f32 %v3234_v58, %v3102_v54  ;;  %v2971_v39 = vadd.f32 %v2970_v60, %v2838_v2  ;;  %11502 = vst [vmem:[#allocation168_spill] sm:$0xff] %v9130_v51  ;;  %v9133_v58 = vor.u32 %v7414_v8, %v6408_v44 }
 0x2a7   : > { %11503 = vst [vmem:[#allocation169_spill] sm:$0xff] %v9133_v58  ;;  %v4514_v2 = vmul.f32 0.01, %v3235_v35  ;;  %vm4416_vm12 = vcmp.gt.f32.partialorder %v3235_v35, 0.0 }
 0x2aa   : > { %v3103_v17 = vpop.f32.mrf.mxu2  ;;  %v2840_v45 = vpop.f32.mrf.mxu0 }
 0x2ab   : > { %v3104_v0 = vadd.f32 %v3103_v17, %v2971_v39  ;;  %v3236_v40 = vpop.f32.mrf.mxu3  ;;  %v2841_v54 = vadd.f32 %v2840_v45, %v8299_v47  ;;  %v2973_v36 = vpop.f32.mrf.mxu1  ;;  %v9139_v47 = vsel %vm4416_vm12, %v3235_v35, %v4514_v2  ;;  %v6430_v45 = vld [vmem:[%s7928_s18 + $0x410] sm:$0xf]  ;;  %v7426_v2 = vld [vmem:[%s7928_s18 + $0x434] sm:$0xf0] }
 0x2ac   : > { %11504 = vst [vmem:[#allocation170_spill] sm:$0xff] %v9139_v47  ;;  %v7425_v35 = vld [vmem:[%s7928_s18 + $0x42c] sm:$0xf0] }
 0x2ad   : > { %v3237_v60 = vadd.f32 %v3236_v40, %v3104_v0  ;;  %v2974_v62 = vadd.f32 %v2973_v36, %v2841_v54  ;;  %2879 = vmatmul.bf16.gmra.mxu0 %v9126_v4  ;;  %v7421_v40 = vld [vmem:[%s7928_s18 + $0x414] sm:$0xf]  ;;  %v6438_v36 = vld [vmem:[%s7928_s18 + $0x418] sm:$0xf] }
 0x2ae   : > { %3012 = vmatmul.bf16.gmra.mxu1 %v9128_v23  ;;  %v6432_v54 = vld [vmem:[%s7928_s18 + $0x430] sm:$0xf0] }
 0x2af   : > { %vm4418_vm13 = vcmp.gt.f32.partialorder %v3237_v60, 0.0  ;;  %v4516_v17 = vmul.f32 0.01, %v3237_v60  ;;  %3145 = vmatmul.bf16.gmra.mxu2 %v9130_v51  ;;  %v9154_v51 = vor.u32 %v7425_v35, %v6430_v45  ;;  %v9156_v47 = vor.u32 %v7421_v40, %v6432_v54 }
 0x2b0   : > { %3278 = vmatmul.bf16.gmra.mxu3 %v9133_v58 }
 0x2b1   : > { %v9141_v0 = vsel %vm4418_vm13, %v3237_v60, %v4516_v17  ;;  %v7422_v60 = vld [vmem:[%s7928_s18 + $0x41c] sm:$0xf] }
 0x2b2   : > { %11505 = vst [vmem:[#allocation171_spill] sm:$0xff] %v9141_v0  ;;  %v3106_v39 = vpop.f32.mrf.mxu2  ;;  %v2842_v55 = vpop.f32.mrf.mxu0  ;;  %v6440_v17 = vld [vmem:[%s7928_s18 + $0x438] sm:$0xf0] }
 0x2b3   : > { %v3107_v1 = vadd.f32 %v3106_v39, %v2974_v62  ;;  %v3239_v56 = vpop.f32.mrf.mxu3  ;;  %v2843_v25 = vadd.f32 %v2842_v55, %v8318_v7  ;;  %v2975_v26 = vpop.f32.mrf.mxu1  ;;  %v9158_v7 = vor.u32 %v7426_v2, %v6438_v36 }
 0x2b5   : > { %v3240_v8 = vadd.f32 %v3239_v56, %v3107_v1  ;;  %v2976_v44 = vadd.f32 %v2975_v26, %v2843_v25  ;;  %11506 = vst [vmem:[#allocation172_spill] sm:$0xff] %v9158_v7  ;;  %v9161_v56 = vor.u32 %v7422_v60, %v6440_v17 }
 0x2b7   : > { %11507 = vst [vmem:[#allocation173_spill] sm:$0xff] %v9161_v56  ;;  %v4518_v25 = vmul.f32 0.01, %v3240_v8  ;;  %vm4420_vm14 = vcmp.gt.f32.partialorder %v3240_v8, 0.0 }
 0x2ba   : > { %v3108_v58 = vpop.f32.mrf.mxu2  ;;  %v2845_v62 = vpop.f32.mrf.mxu0 }
 0x2bb   : > { %v3109_v24 = vadd.f32 %v3108_v58, %v2976_v44  ;;  %v3241_v39 = vpop.f32.mrf.mxu3  ;;  %v2846_v1 = vadd.f32 %v2845_v62, %v8325_v29  ;;  %v2978_v55 = vpop.f32.mrf.mxu1  ;;  %v9167_v29 = vsel %vm4420_vm14, %v3240_v8, %v4518_v25  ;;  %v6462_v62 = vld [vmem:[%s7928_s18 + $0x450] sm:$0xf]  ;;  %v7434_v25 = vld [vmem:[%s7928_s18 + $0x474] sm:$0xf0] }
 0x2bc   : > { %11508 = vst [vmem:[#allocation174_spill] sm:$0xff] %v9167_v29  ;;  %v7433_v8 = vld [vmem:[%s7928_s18 + $0x46c] sm:$0xf0] }
 0x2bd   : > { %v3242_v26 = vadd.f32 %v3241_v39, %v3109_v24  ;;  %v2979_v0 = vadd.f32 %v2978_v55, %v2846_v1  ;;  %2884 = vmatmul.bf16.gmra.mxu0 %v9154_v51  ;;  %v7429_v39 = vld [vmem:[%s7928_s18 + $0x454] sm:$0xf]  ;;  %v6470_v55 = vld [vmem:[%s7928_s18 + $0x458] sm:$0xf] }
 0x2be   : > { %3017 = vmatmul.bf16.gmra.mxu1 %v9156_v47  ;;  %v6464_v1 = vld [vmem:[%s7928_s18 + $0x470] sm:$0xf0] }
 0x2bf   : > { %vm4422_vm15 = vcmp.gt.f32.partialorder %v3242_v26, 0.0  ;;  %v4520_v58 = vmul.f32 0.01, %v3242_v26  ;;  %3150 = vmatmul.bf16.gmra.mxu2 %v9158_v7  ;;  %v9182_v7 = vor.u32 %v7433_v8, %v6462_v62  ;;  %v9184_v29 = vor.u32 %v7429_v39, %v6464_v1 }
 0x2c0   : > { %3283 = vmatmul.bf16.gmra.mxu3 %v9161_v56 }
 0x2c1   : > { %v9169_v24 = vsel %vm4422_vm15, %v3242_v26, %v4520_v58  ;;  %v7430_v26 = vld [vmem:[%s7928_s18 + $0x45c] sm:$0xf] }
 0x2c2   : > { %11509 = vst [vmem:[#allocation175_spill] sm:$0xff] %v9169_v24  ;;  %v3111_v44 = vpop.f32.mrf.mxu2  ;;  %v2847_v40 = vpop.f32.mrf.mxu0  ;;  %v6472_v58 = vld [vmem:[%s7928_s18 + $0x478] sm:$0xf0] }
 0x2c3   : > { %v3112_v35 = vadd.f32 %v3111_v44, %v2979_v0  ;;  %v3244_v54 = vpop.f32.mrf.mxu3  ;;  %v2848_v36 = vadd.f32 %v2847_v40, %v8344_v21  ;;  %v2980_v2 = vpop.f32.mrf.mxu1  ;;  %v9186_v21 = vor.u32 %v7434_v25, %v6470_v55 }
 0x2c5   : > { %v3245_v60 = vadd.f32 %v3244_v54, %v3112_v35  ;;  %v2981_v17 = vadd.f32 %v2980_v2, %v2848_v36  ;;  %v9189_v54 = vor.u32 %v7430_v26, %v6472_v58 }
 0x2c7   : > { %11510 = vst [vmem:[#allocation176_spill] sm:$0xff] %v9189_v54  ;;  %v4522_v36 = vmul.f32 0.01, %v3245_v60  ;;  %vm4424_vm0 = vcmp.gt.f32.partialorder %v3245_v60, 0.0 }
 0x2ca   : > { %v3113_v56 = vpop.f32.mrf.mxu2  ;;  %v2850_v0 = vpop.f32.mrf.mxu0 }
 0x2cb   : > { %v3114_v45 = vadd.f32 %v3113_v56, %v2981_v17  ;;  %v3246_v44 = vpop.f32.mrf.mxu3  ;;  %v2851_v35 = vadd.f32 %v2850_v0, %v8351_v20  ;;  %v2983_v40 = vpop.f32.mrf.mxu1  ;;  %v9195_v20 = vsel %vm4424_vm0, %v3245_v60, %v4522_v36  ;;  %v6494_v60 = vld [vmem:[%s7928_s18 + $0x490] sm:$0xf]  ;;  %v6502_v36 = vld [vmem:[%s7928_s18 + $0x498] sm:$0xf] }
 0x2cc   : > { %11511 = vst [vmem:[#allocation177_spill] sm:$0xff] %v9195_v20  ;;  %v7441_v0 = vld [vmem:[%s7928_s18 + $0x4ac] sm:$0xf0] }
 0x2cd   : > { %v3247_v2 = vadd.f32 %v3246_v44, %v3114_v45  ;;  %v2984_v24 = vadd.f32 %v2983_v40, %v2851_v35  ;;  %2889 = vmatmul.bf16.gmra.mxu0 %v9182_v7  ;;  %v7437_v44 = vld [vmem:[%s7928_s18 + $0x494] sm:$0xf] }
 0x2ce   : > { %3022 = vmatmul.bf16.gmra.mxu1 %v9184_v29  ;;  %v6496_v35 = vld [vmem:[%s7928_s18 + $0x4b0] sm:$0xf0] }
 0x2cf   : > { %vm4426_vm1 = vcmp.gt.f32.partialorder %v3247_v2, 0.0  ;;  %v4524_v56 = vmul.f32 0.01, %v3247_v2  ;;  %3155 = vmatmul.bf16.gmra.mxu2 %v9186_v21  ;;  %v7497_v40 = vld [vmem:[%s11104_s1 + $0x74] sm:$0xf]  ;;  %v9218_v62 = vor.u32 %v7437_v44, %v6496_v35 }
 0x2d0   : > { %3288 = vmatmul.bf16.gmra.mxu3 %v9189_v54  ;;  %v6792_v54 = vld [vmem:[%s11104_s1 + $0xf8] sm:$0xf0] }
 0x2d1   : > { %v9197_v45 = vsel %vm4426_vm1, %v3247_v2, %v4524_v56  ;;  %v7442_v2 = vld [vmem:[%s7928_s18 + $0x4b4] sm:$0xf0]  ;;  %v7438_v56 = vld [vmem:[%s7928_s18 + $0x49c] sm:$0xf]  ;;  %11513 = vst [vmem:[#allocation179_spill] sm:$0xff] %v9218_v62 }
 0x2d2   : > { %11512 = vst [vmem:[#allocation178_spill] sm:$0xff] %v9197_v45  ;;  %v3116_v17 = vpop.f32.mrf.mxu2  ;;  %v2852_v39 = vpop.f32.mrf.mxu0  ;;  %v9220_v20 = vor.u32 %v7442_v2, %v6502_v36  ;;  %v7513_v45 = vld [vmem:[%s11104_s1 + $0xf4] sm:$0xf] }
 0x2d3   : > { %v3117_v8 = vadd.f32 %v3116_v17, %v2984_v24  ;;  %v3249_v1 = vpop.f32.mrf.mxu3  ;;  %v2853_v55 = vadd.f32 %v2852_v39, %v8382_v57  ;;  %v2985_v25 = vpop.f32.mrf.mxu1  ;;  %v6728_v24 = vld [vmem:[%s11104_s1 + $0x78] sm:$0xf0] }
 0x2d4   : > { %v6504_v17 = vld [vmem:[%s7928_s18 + $0x4b8] sm:$0xf0]  ;;  %v6731_v57 = vor.u32 %v7497_v40, %v6728_v24  ;;  %11514 = vst [vmem:[#allocation180_spill] sm:$0xff] %v9220_v20 }
 0x2d5   : > { %v3250_v26 = vadd.f32 %v3249_v1, %v3117_v8  ;;  %v2986_v58 = vadd.f32 %v2985_v25, %v2853_v55  ;;  %v9216_v8 = vor.u32 %v7441_v0, %v6494_v60  ;;  %v9229_v0 = vor.u32 %v7438_v56, %v6504_v17 }
 0x2d6   : > { %3328 = vmatpush.bf16.msra.mxu0 %v6731_v57 }
 0x2d7   : > { %11515 = vst [vmem:[#allocation181_spill] sm:$0xff] %v9229_v0  ;;  %v4526_v24 = vmul.f32 0.01, %v3250_v26  ;;  %vm4428_vm2 = vcmp.gt.f32.partialorder %v3250_v26, 0.0 }
 0x2da   : > { %v3118_v39 = vpop.f32.mrf.mxu2  ;;  %v2855_v55 = vpop.f32.mrf.mxu0 }
 0x2db   : > { %v3119_v1 = vadd.f32 %v3118_v39, %v2986_v58  ;;  %v3251_v25 = vpop.f32.mrf.mxu3  ;;  %v2856_v40 = vadd.f32 %v2855_v55, %v8389_v10  ;;  %v2988_v60 = vpop.f32.mrf.mxu1  ;;  %v6795_v58 = vor.u32 %v7513_v45, %v6792_v54  ;;  %v9235_v10 = vsel %vm4428_vm2, %v3250_v26, %v4526_v24  ;;  %v7449_v26 = vld [vmem:[%s7928_s18 + $0x4ec] sm:$0xf0]  ;;  %v6534_v24 = vld [vmem:[%s7928_s18 + $0x4d8] sm:$0xf] }
 0x2dc   : > { %11516 = vst [vmem:[#allocation182_spill] sm:$0xff] %v9235_v10 }
 0x2dd   : > { %v3252_v44 = vadd.f32 %v3251_v25, %v3119_v1  ;;  %v2989_v35 = vadd.f32 %v2988_v60, %v2856_v40  ;;  %2894 = vmatmul.bf16.gmra.mxu0 %v9216_v8  ;;  %3461 = vmatpush.bf16.msra.mxu1 %v6795_v58  ;;  %v6526_v40 = vld [vmem:[%s7928_s18 + $0x4d0] sm:$0xf]  ;;  %v7445_v60 = vld [vmem:[%s7928_s18 + $0x4d4] sm:$0xf] }
 0x2de   : > { %3027 = vmatmul.bf16.gmra.mxu1 %v9218_v62  ;;  %v6528_v58 = vld [vmem:[%s7928_s18 + $0x4f0] sm:$0xf0]  ;;  %v9250_v62 = vor.u32 %v7449_v26, %v6526_v40 }
 0x2df   : > { %vm4430_vm3 = vcmp.gt.f32.partialorder %v3252_v44, 0.0  ;;  %v4528_v36 = vmul.f32 0.01, %v3252_v44  ;;  %3160 = vmatmul.bf16.gmra.mxu2 %v9220_v20  ;;  %v9252_v10 = vor.u32 %v7445_v60, %v6528_v58 }
 0x2e0   : > { %3293 = vmatmul.bf16.gmra.mxu3 %v9229_v0  ;;  %v6536_v0 = vld [vmem:[%s7928_s18 + $0x4f8] sm:$0xf0]  ;;  %11518 = vst [vmem:[#allocation184_spill] sm:$0xff] %v9250_v62 }
 0x2e1   : > { %v9237_v54 = vsel %vm4430_vm3, %v3252_v44, %v4528_v36  ;;  %v7450_v44 = vld [vmem:[%s7928_s18 + $0x4f4] sm:$0xf0]  ;;  %v7446_v36 = vld [vmem:[%s7928_s18 + $0x4dc] sm:$0xf]  ;;  %11519 = vst [vmem:[#allocation185_spill] sm:$0xff] %v9252_v10 }
 0x2e2   : > { %11517 = vst [vmem:[#allocation183_spill] sm:$0xff] %v9237_v54  ;;  %v3121_v45 = vpop.f32.mrf.mxu2  ;;  %v2857_v17 = vpop.f32.mrf.mxu0 }
 0x2e3   : > { %v3122_v56 = vadd.f32 %v3121_v45, %v2989_v35  ;;  %v3254_v57 = vpop.f32.mrf.mxu3  ;;  %v2858_v39 = vadd.f32 %v2857_v17, %v8408_v5  ;;  %v2990_v1 = vpop.f32.mrf.mxu1  ;;  %v9254_v5 = vor.u32 %v7450_v44, %v6534_v24 }
 0x2e5   : > { %v3255_v55 = vadd.f32 %v3254_v57, %v3122_v56  ;;  %v2991_v25 = vadd.f32 %v2990_v1, %v2858_v39  ;;  %11520 = vst [vmem:[#allocation186_spill] sm:$0xff] %v9254_v5  ;;  %v9257_v57 = vor.u32 %v7446_v36, %v6536_v0 }
 0x2e7   : > { %11521 = vst [vmem:[#allocation187_spill] sm:$0xff] %v9257_v57  ;;  %v4530_v39 = vmul.f32 0.01, %v3255_v55  ;;  %vm4432_vm4 = vcmp.gt.f32.partialorder %v3255_v55, 0.0 }
 0x2ea   : > { %v3123_v20 = vpop.f32.mrf.mxu2  ;;  %v2860_v35 = vpop.f32.mrf.mxu0 }
 0x2eb   : > { %v3124_v2 = vadd.f32 %v3123_v20, %v2991_v25  ;;  %v3256_v45 = vpop.f32.mrf.mxu3  ;;  %v2861_v56 = vadd.f32 %v2860_v35, %v8415_v46  ;;  %v2993_v17 = vpop.f32.mrf.mxu1  ;;  %v9263_v46 = vsel %vm4432_vm4, %v3255_v55, %v4530_v39  ;;  %v6558_v35 = vld [vmem:[%s7928_s18 + $0x510] sm:$0xf]  ;;  %v7458_v39 = vld [vmem:[%s7928_s18 + $0x534] sm:$0xf0] }
 0x2ec   : > { %11522 = vst [vmem:[#allocation188_spill] sm:$0xff] %v9263_v46  ;;  %v7457_v55 = vld [vmem:[%s7928_s18 + $0x52c] sm:$0xf0] }
 0x2ed   : > { %v3257_v1 = vadd.f32 %v3256_v45, %v3124_v2  ;;  %v2994_v54 = vadd.f32 %v2993_v17, %v2861_v56  ;;  %2899 = vmatmul.bf16.gmra.mxu0 %v9250_v62  ;;  %v7453_v45 = vld [vmem:[%s7928_s18 + $0x514] sm:$0xf]  ;;  %v6566_v17 = vld [vmem:[%s7928_s18 + $0x518] sm:$0xf] }
 0x2ee   : > { %3032 = vmatmul.bf16.gmra.mxu1 %v9252_v10  ;;  %v6560_v56 = vld [vmem:[%s7928_s18 + $0x530] sm:$0xf0] }
 0x2ef   : > { %vm4434_vm5 = vcmp.gt.f32.partialorder %v3257_v1, 0.0  ;;  %v4532_v20 = vmul.f32 0.01, %v3257_v1  ;;  %3165 = vmatmul.bf16.gmra.mxu2 %v9254_v5  ;;  %v9278_v5 = vor.u32 %v7457_v55, %v6558_v35  ;;  %v9280_v46 = vor.u32 %v7453_v45, %v6560_v56 }
 0x2f0   : > { %3298 = vmatmul.bf16.gmra.mxu3 %v9257_v57 }
 0x2f1   : > { %v9265_v0 = vsel %vm4434_vm5, %v3257_v1, %v4532_v20  ;;  %v7454_v1 = vld [vmem:[%s7928_s18 + $0x51c] sm:$0xf]  ;;  %11524 = vst [vmem:[#allocation190_spill] sm:$0xff] %v9278_v5 }
 0x2f2   : > { %11523 = vst [vmem:[#allocation189_spill] sm:$0xff] %v9265_v0  ;;  %v3126_v2 = vpop.f32.mrf.mxu2  ;;  %v2862_v26 = vpop.f32.mrf.mxu0  ;;  %v6568_v20 = vld [vmem:[%s7928_s18 + $0x538] sm:$0xf0] }
 0x2f3   : > { %v3127_v40 = vadd.f32 %v3126_v2, %v2994_v54  ;;  %v3259_v60 = vpop.f32.mrf.mxu3  ;;  %v2863_v58 = vadd.f32 %v2862_v26, %v8434_v34  ;;  %v2995_v24 = vpop.f32.mrf.mxu1  ;;  %11525 = vst [vmem:[#allocation191_spill] sm:$0xff] %v9280_v46  ;;  %v9282_v34 = vor.u32 %v7458_v39, %v6566_v17 }
 0x2f5   : > { %v3260_v44 = vadd.f32 %v3259_v60, %v3127_v40  ;;  %v2996_v36 = vadd.f32 %v2995_v24, %v2863_v58  ;;  %11526 = vst [vmem:[#allocation192_spill] sm:$0xff] %v9282_v34  ;;  %v9285_v60 = vor.u32 %v7454_v1, %v6568_v20 }
 0x2f7   : > { %11527 = vst [vmem:[#allocation193_spill] sm:$0xff] %v9285_v60  ;;  %v4534_v58 = vmul.f32 0.01, %v3260_v44  ;;  %vm4436_vm6 = vcmp.gt.f32.partialorder %v3260_v44, 0.0 }
 0x2fa   : > { %v3128_v57 = vpop.f32.mrf.mxu2  ;;  %v2865_v54 = vpop.f32.mrf.mxu0 }
 0x2fb   : > { %v3129_v25 = vadd.f32 %v3128_v57, %v2996_v36  ;;  %v3261_v2 = vpop.f32.mrf.mxu3  ;;  %v2866_v40 = vadd.f32 %v2865_v54, %v8441_v9  ;;  %v2998_v26 = vpop.f32.mrf.mxu1  ;;  %v9291_v9 = vsel %vm4436_vm6, %v3260_v44, %v4534_v58  ;;  %v6590_v54 = vld [vmem:[%s7928_s18 + $0x550] sm:$0xf]  ;;  %v7466_v58 = vld [vmem:[%s7928_s18 + $0x574] sm:$0xf0] }
 0x2fc   : > { %11528 = vst [vmem:[#allocation194_spill] sm:$0xff] %v9291_v9  ;;  %v7465_v44 = vld [vmem:[%s7928_s18 + $0x56c] sm:$0xf0] }
 0x2fd   : > { %v3262_v24 = vadd.f32 %v3261_v2, %v3129_v25  ;;  %v2999_v0 = vadd.f32 %v2998_v26, %v2866_v40  ;;  %2904 = vmatmul.bf16.gmra.mxu0 %v9278_v5  ;;  %v7461_v2 = vld [vmem:[%s7928_s18 + $0x554] sm:$0xf]  ;;  %v6598_v26 = vld [vmem:[%s7928_s18 + $0x558] sm:$0xf] }
 0x2fe   : > { %3037 = vmatmul.bf16.gmra.mxu1 %v9280_v46  ;;  %v6592_v40 = vld [vmem:[%s7928_s18 + $0x570] sm:$0xf0]  ;;  %v11658_v46 = vld [vmem:[#allocation77_spill] sm:$0xff] }
 0x2ff   : > { %vm4438_vm7 = vcmp.gt.f32.partialorder %v3262_v24, 0.0  ;;  %v4536_v57 = vmul.f32 0.01, %v3262_v24  ;;  %3170 = vmatmul.bf16.gmra.mxu2 %v9282_v34  ;;  %v9306_v34 = vor.u32 %v7465_v44, %v6590_v54  ;;  %v9308_v9 = vor.u32 %v7461_v2, %v6592_v40  ;;  %v7529_v2 = vld [vmem:[%s11104_s1 + $0x174] sm:$0xf] }
 0x300   : > { %3303 = vmatmul.bf16.gmra.mxu3 %v9285_v60  ;;  %v6856_v40 = vld [vmem:[%s11104_s1 + $0x178] sm:$0xf0] }
 0x301   : > { %v9293_v25 = vsel %vm4438_vm7, %v3262_v24, %v4536_v57  ;;  %v7462_v24 = vld [vmem:[%s7928_s18 + $0x55c] sm:$0xf]  ;;  %11530 = vst [vmem:[#allocation196_spill] sm:$0xff] %v9306_v34 }
 0x302   : > { %11529 = vst [vmem:[#allocation195_spill] sm:$0xff] %v9293_v25  ;;  %v3131_v36 = vpop.f32.mrf.mxu2  ;;  %v2867_v45 = vpop.f32.mrf.mxu0  ;;  %v6600_v57 = vld [vmem:[%s7928_s18 + $0x578] sm:$0xf0] }
 0x303   : > { %v3132_v55 = vadd.f32 %v3131_v36, %v2999_v0  ;;  %v3264_v56 = vpop.f32.mrf.mxu3  ;;  %v2868_v17 = vadd.f32 %v2867_v45, %v8466_v59  ;;  %v3000_v39 = vpop.f32.mrf.mxu1  ;;  %11531 = vst [vmem:[#allocation197_spill] sm:$0xff] %v9308_v9  ;;  %v9310_v59 = vor.u32 %v7466_v58, %v6598_v26  ;;  %v6720_v45 = vld [vmem:[%s11104_s1 + $0x68] sm:$0xf0]  ;;  %v6859_v26 = vor.u32 %v7529_v2, %v6856_v40  ;;  %v7474_v40 = vld [vmem:[%s7928_s18 + $0x5b4] sm:$0xf0] }
 0x304   : > { %v6784_v58 = vld [vmem:[%s11104_s1 + $0xe8] sm:$0xf0] }
 0x305   : > { %v3265_v1 = vadd.f32 %v3264_v56, %v3132_v55  ;;  %v3001_v20 = vadd.f32 %v3000_v39, %v2868_v17  ;;  %11532 = vst [vmem:[#allocation198_spill] sm:$0xff] %v9310_v59  ;;  %v7495_v55 = vld [vmem:[%s11104_s1 + $0x64] sm:$0xf]  ;;  %v9319_v39 = vor.u32 %v7462_v24, %v6600_v57  ;;  %v7545_v24 = vld [vmem:[%s11104_s1 + $0x1f4] sm:$0xf]  ;;  %3594 = vmatpush.bf16.msra.mxu2 %v6859_v26 }
 0x307   : > { %11533 = vst [vmem:[#allocation199_spill] sm:$0xff] %v9319_v39  ;;  %vm4440_vm8 = vcmp.gt.f32.partialorder %v3265_v1, 0.0 }
 0x30a   : > { %v3133_v60 = vpop.f32.mrf.mxu2  ;;  %v2870_v0 = vpop.f32.mrf.mxu0 }
 0x30b   : > { %v3134_v35 = vadd.f32 %v3133_v60, %v3001_v20  ;;  %v3266_v36 = vpop.f32.mrf.mxu3  ;;  %v2871_v56 = vadd.f32 %v2870_v0, %v8503_v19  ;;  %v3003_v17 = vpop.f32.mrf.mxu1  ;;  %v6723_v60 = vor.u32 %v7495_v55, %v6720_v45  ;;  %v4538_v20 = vmul.f32 0.01, %v3265_v1  ;;  %v6920_v0 = vld [vmem:[%s11104_s1 + $0x1f8] sm:$0xf0]  ;;  %v6848_v55 = vld [vmem:[%s11104_s1 + $0x168] sm:$0xf0] }
 0x30d   : > { %v3267_v54 = vadd.f32 %v3266_v36, %v3134_v35  ;;  %v3004_v44 = vadd.f32 %v3003_v17, %v2871_v56  ;;  %2909 = vmatmul.bf16.gmra.mxu0 %v9306_v34  ;;  %v7511_v35 = vld [vmem:[%s11104_s1 + $0xe4] sm:$0xf]  ;;  %v9350_v45 = vsel %vm4440_vm8, %v3265_v1, %v4538_v20  ;;  %v6912_v20 = vld [vmem:[%s11104_s1 + $0x1e8] sm:$0xf0] }
 0x30e   : > { %3042 = vmatmul.bf16.gmra.mxu1 %v9308_v9  ;;  %3329 = vmatpush.bf16.msra.mxu0 %v6723_v60  ;;  %v6787_v57 = vor.u32 %v7511_v35, %v6784_v58  ;;  %v7527_v36 = vld [vmem:[%s11104_s1 + $0x164] sm:$0xf]  ;;  %11534 = vst [vmem:[#allocation200_spill] sm:$0xff] %v9350_v45  ;;  %v6923_v60 = vor.u32 %v7545_v24, %v6920_v0 }
 0x30f   : > { %vm4442_vm9 = vcmp.gt.f32.partialorder %v3267_v54, 0.0  ;;  %v4540_v19 = vmul.f32 0.01, %v3267_v54  ;;  %3175 = vmatmul.bf16.gmra.mxu2 %v9310_v59  ;;  %v6851_v2 = vor.u32 %v7527_v36, %v6848_v55  ;;  %v7543_v1 = vld [vmem:[%s11104_s1 + $0x1e4] sm:$0xf] }
 0x310   : > { %3308 = vmatmul.bf16.gmra.mxu3 %v9319_v39  ;;  %3462 = vmatpush.bf16.msra.mxu1 %v6787_v57  ;;  %v6915_v24 = vor.u32 %v7543_v1, %v6912_v20  ;;  %v7473_v36 = vld [vmem:[%s7928_s18 + $0x5ac] sm:$0xf0]  ;;  %v7469_v57 = vld [vmem:[%s7928_s18 + $0x594] sm:$0xf]  ;;  %v6840_v1 = vld [vmem:[%s11104_s1 + $0x158] sm:$0xf0] }
 0x311   : > { %v9353_v56 = vsel %vm4442_vm9, %v3267_v54, %v4540_v19  ;;  %3727 = vmatpush.bf16.msra.mxu3 %v6923_v60  ;;  %v6624_v55 = vld [vmem:[%s7928_s18 + $0x5b0] sm:$0xf0]  ;;  %3595 = vmatpush.bf16.msra.mxu2 %v6851_v2  ;;  %v6630_v20 = vld [vmem:[%s7928_s18 + $0x598] sm:$0xf] }
 0x312   : > { %11535 = vst [vmem:[#allocation201_spill] sm:$0xff] %v9353_v56  ;;  %v3136_v17 = vpop.f32.mrf.mxu2  ;;  %v2872_v26 = vpop.f32.mrf.mxu0  ;;  %v7509_v60 = vld [vmem:[%s11104_s1 + $0xd4] sm:$0xf] }
 0x313   : > { %v3137_v35 = vadd.f32 %v3136_v17, %v3004_v44  ;;  %v3269_v58 = vpop.f32.mrf.mxu3  ;;  %v2873_v54 = vadd.f32 %v2872_v26, %v8570_v30  ;;  %v3005_v19 = vpop.f32.mrf.mxu1  ;;  %v6622_v44 = vld [vmem:[%s7928_s18 + $0x590] sm:$0xf]  ;;  %v7493_v17 = vld [vmem:[%s11104_s1 + $0x54] sm:$0xf]  ;;  %v6712_v30 = vld [vmem:[%s11104_s1 + $0x58] sm:$0xf0] }
 0x314   : > { %v6715_v26 = vor.u32 %v7493_v17, %v6712_v30  ;;  %v7525_v2 = vld [vmem:[%s11104_s1 + $0x154] sm:$0xf]  ;;  %v6632_v17 = vld [vmem:[%s7928_s18 + $0x5b8] sm:$0xf0] }
 0x315   : > { %v9364_v0 = vadd.f32 %v3269_v58, %v3137_v35  ;;  %v3006_v35 = vadd.f32 %v3005_v19, %v2873_v54  ;;  %v6776_v58 = vld [vmem:[%s11104_s1 + $0xd8] sm:$0xf0]  ;;  %v6843_v56 = vor.u32 %v7525_v2, %v6840_v1  ;;  %v7541_v54 = vld [vmem:[%s11104_s1 + $0x1d4] sm:$0xf]  ;;  %3728 = vmatpush.bf16.msra.mxu3 %v6915_v24  ;;  %v7507_v24 = vld [vmem:[%s11104_s1 + $0xc4] sm:$0xf]  ;;  %v9407_v2 = vor.u32 %v7473_v36, %v6622_v44 }
 0x316   : > { %v6779_v45 = vor.u32 %v7509_v60, %v6776_v58  ;;  %v7470_v19 = vld [vmem:[%s7928_s18 + $0x59c] sm:$0xf]  ;;  %3330 = vmatpush.bf16.msra.mxu0 %v6715_v26  ;;  %v7491_v60 = vld [vmem:[%s11104_s1 + $0x44] sm:$0xf]  ;;  %v6704_v58 = vld [vmem:[%s11104_s1 + $0x48] sm:$0xf0]  ;;  %v9409_v1 = vor.u32 %v7469_v57, %v6624_v55  ;;  %v9420_v44 = vor.u32 %v7474_v40, %v6630_v20 }
 0x317   : > { %v6904_v30 = vld [vmem:[%s11104_s1 + $0x1d8] sm:$0xf0]  ;;  %3596 = vmatpush.bf16.msra.mxu2 %v6843_v56  ;;  %11536 = vst [vmem:[#allocation202_spill] sm:$0xff] %v9407_v2  ;;  %v6768_v56 = vld [vmem:[%s11104_s1 + $0xc8] sm:$0xf0]  ;;  %vm4444_vm10 = vcmp.gt.f32.partialorder %v9364_v0, 0.0  ;;  %v9431_v34 = vor.u32 %v7470_v19, %v6632_v17 }
 0x318   : > { %3463 = vmatpush.bf16.msra.mxu1 %v6779_v45  ;;  %v6907_v25 = vor.u32 %v7541_v54, %v6904_v30  ;;  %11537 = vst [vmem:[#allocation203_spill] sm:$0xff] %v9409_v1  ;;  %v6707_v45 = vor.u32 %v7491_v60, %v6704_v58  ;;  %v7523_v54 = vld [vmem:[%s11104_s1 + $0x144] sm:$0xf]  ;;  %v6832_v30 = vld [vmem:[%s11104_s1 + $0x148] sm:$0xf0]  ;;  %v6771_v36 = vor.u32 %v7507_v24, %v6768_v56 }
 0x319   : > { %11538 = vst [vmem:[#allocation204_spill] sm:$0xff] %v9420_v44  ;;  %v6835_v57 = vor.u32 %v7523_v54, %v6832_v30  ;;  %v7539_v55 = vld [vmem:[%s11104_s1 + $0x1c4] sm:$0xf]  ;;  %v6896_v60 = vld [vmem:[%s11104_s1 + $0x1c8] sm:$0xf0] }
 0x31a   : > { %v3138_v26 = vpop.f32.mrf.mxu2  ;;  %v2875_v59 = vpop.f32.mrf.mxu0  ;;  %v4542_v58 = vmul.f32 0.01, %v9364_v0  ;;  %11539 = vst [vmem:[#allocation205_spill] sm:$0xff] %v9431_v34  ;;  %3729 = vmatpush.bf16.msra.mxu3 %v6907_v25  ;;  %3331 = vmatpush.bf16.msra.mxu0 %v6707_v45  ;;  %v6899_v20 = vor.u32 %v7539_v55, %v6896_v60  ;;  %v7489_v24 = vld [vmem:[%s11104_s1 + $0x34] sm:$0xf] }
 0x31b   : > { %v3139_v39 = vadd.f32 %v3138_v26, %v3006_v35  ;;  %v3271_v9 = vpop.f32.mrf.mxu3  ;;  %v2876_v35 = vadd.f32 %v2875_v59, %v8625_v28  ;;  %v3008_v26 = vpop.f32.mrf.mxu1  ;;  %3597 = vmatpush.bf16.msra.mxu2 %v6835_v57  ;;  %v6696_v56 = vld [vmem:[%s11104_s1 + $0x38] sm:$0xf0]  ;;  %v7505_v28 = vld [vmem:[%s11104_s1 + $0xb4] sm:$0xf]  ;;  %v7487_v55 = vld [vmem:[%s11104_s1 + $0x24] sm:$0xf] }
 0x31c   : > { %3464 = vmatpush.bf16.msra.mxu1 %v6771_v36  ;;  %v6699_v25 = vor.u32 %v7489_v24, %v6696_v56  ;;  %v6824_v19 = vld [vmem:[%s11104_s1 + $0x138] sm:$0xf0]  ;;  %v7537_v54 = vld [vmem:[%s11104_s1 + $0x1b4] sm:$0xf]  ;;  %v6688_v60 = vld [vmem:[%s11104_s1 + $0x28] sm:$0xf0] }
 0x31d   : > { %v3272_v40 = vadd.f32 %v3271_v9, %v3139_v39  ;;  %v3009_v59 = vadd.f32 %v3008_v26, %v2876_v35  ;;  %2914 = vmatmul.bf16.gmra.mxu0 %v9407_v2  ;;  %v6760_v9 = vld [vmem:[%s11104_s1 + $0xb8] sm:$0xf0]  ;;  %v7521_v39 = vld [vmem:[%s11104_s1 + $0x134] sm:$0xf]  ;;  %v7503_v35 = vld [vmem:[%s11104_s1 + $0xa4] sm:$0xf]  ;;  %v9473_v26 = vsel %vm4444_vm10, %v9364_v0, %v4542_v58  ;;  %v6691_v56 = vor.u32 %v7487_v55, %v6688_v60 }
 0x31e   : > { %3047 = vmatmul.bf16.gmra.mxu1 %v9409_v1  ;;  %v6763_v45 = vor.u32 %v7505_v28, %v6760_v9  ;;  %3332 = vmatpush.bf16.msra.mxu0 %v6699_v25  ;;  %v6827_v30 = vor.u32 %v7521_v39, %v6824_v19  ;;  %v6888_v36 = vld [vmem:[%s11104_s1 + $0x1b8] sm:$0xf0]  ;;  %11540 = vst [vmem:[#allocation206_spill] sm:$0xff] %v9473_v26  ;;  %v6752_v28 = vld [vmem:[%s11104_s1 + $0xa8] sm:$0xf0] }
 0x31f   : > { %vm4446_vm11 = vcmp.gt.f32.partialorder %v3272_v40, 0.0  ;;  %v4544_v17 = vmul.f32 0.01, %v3272_v40  ;;  %3180 = vmatmul.bf16.gmra.mxu2 %v9420_v44  ;;  %3730 = vmatpush.bf16.msra.mxu3 %v6899_v20  ;;  %v6891_v57 = vor.u32 %v7537_v54, %v6888_v36  ;;  %v7519_v25 = vld [vmem:[%s11104_s1 + $0x124] sm:$0xf]  ;;  %v6755_v19 = vor.u32 %v7503_v35, %v6752_v28 }
 0x320   : > { %3313 = vmatmul.bf16.gmra.mxu3 %v9431_v34  ;;  %3465 = vmatpush.bf16.msra.mxu1 %v6763_v45  ;;  %v6816_v0 = vld [vmem:[%s11104_s1 + $0x128] sm:$0xf0]  ;;  %v7535_v45 = vld [vmem:[%s11104_s1 + $0x1a4] sm:$0xf]  ;;  %v6654_v60 = vld [vmem:[%s7928_s18 + $0x5d0] sm:$0xf] }
 0x321   : > { %v9476_v20 = vsel %vm4446_vm11, %v3272_v40, %v4544_v17  ;;  %3598 = vmatpush.bf16.msra.mxu2 %v6827_v30  ;;  %v6819_v17 = vor.u32 %v7519_v25, %v6816_v0  ;;  %v6880_v54 = vld [vmem:[%s11104_s1 + $0x1a8] sm:$0xf0]  ;;  %v7477_v35 = vld [vmem:[%s7928_s18 + $0x5d4] sm:$0xf]  ;;  %v7483_v26 = vld [vmem:[%s11104_s1 + $0x4] sm:$0xf] }
 0x322   : > { %11541 = vst [vmem:[#allocation207_spill] sm:$0xff] %v9476_v20  ;;  %v3141_v24 = vpop.f32.mrf.mxu2  ;;  %v2877_v9 = vpop.f32.mrf.mxu0  ;;  %3333 = vmatpush.bf16.msra.mxu0 %v6691_v56  ;;  %v6883_v28 = vor.u32 %v7535_v45, %v6880_v54  ;;  %v7485_v25 = vld [vmem:[%s11104_s1 + $0x14] sm:$0xf]  ;;  %v7482_v45 = vld [vmem:[%s7928_s18 + $0x5f4] sm:$0xf0] }
 0x323   : > { %v3142_v40 = vadd.f32 %v3141_v24, %v3009_v59  ;;  %v3274_v39 = vpop.f32.mrf.mxu3  ;;  %v2878_v30 = vadd.f32 %v2877_v9, %v8692_v13  ;;  %v3010_v36 = vpop.f32.mrf.mxu1  ;;  %v7481_v59 = vld [vmem:[%s7928_s18 + $0x5ec] sm:$0xf0]  ;;  %v6656_v24 = vld [vmem:[%s7928_s18 + $0x5f0] sm:$0xf0]  ;;  %3731 = vmatpush.bf16.msra.mxu3 %v6891_v57  ;;  %v6680_v13 = vld [vmem:[%s11104_s1 + $0x18] sm:$0xf0] }
 0x324   : > { %3466 = vmatpush.bf16.msra.mxu1 %v6755_v19  ;;  %v7501_v56 = vld [vmem:[%s11104_s1 + $0x94] sm:$0xf]  ;;  %v6744_v57 = vld [vmem:[%s11104_s1 + $0x98] sm:$0xf0]  ;;  %v6662_v19 = vld [vmem:[%s7928_s18 + $0x5d8] sm:$0xf] }
 0x325   : > { %v9496_v55 = vadd.f32 %v3274_v39, %v3142_v40  ;;  %v3011_v0 = vadd.f32 %v3010_v36, %v2878_v30  ;;  %3599 = vmatpush.bf16.msra.mxu2 %v6819_v17  ;;  %v6683_v40 = vor.u32 %v7485_v25, %v6680_v13  ;;  %v7517_v9 = vld [vmem:[%s11104_s1 + $0x114] sm:$0xf]  ;;  %v6808_v39 = vld [vmem:[%s11104_s1 + $0x118] sm:$0xf0]  ;;  %v6747_v54 = vor.u32 %v7501_v56, %v6744_v57  ;;  %v6672_v56 = vld [vmem:[%s11104_s1 + $0x8] sm:$0xf0] }
 0x326   : > { %v6811_v58 = vor.u32 %v7517_v9, %v6808_v39  ;;  %v7533_v17 = vld [vmem:[%s11104_s1 + $0x194] sm:$0xf]  ;;  %v7478_v30 = vld [vmem:[%s7928_s18 + $0x5dc] sm:$0xf]  ;;  %v7499_v57 = vld [vmem:[%s11104_s1 + $0x84] sm:$0xf]  ;;  %v9539_v9 = vor.u32 %v7481_v59, %v6654_v60  ;;  %v9541_v39 = vor.u32 %v7477_v35, %v6656_v24  ;;  %v9552_v59 = vor.u32 %v7482_v45, %v6662_v19 }
 0x327   : > { %v6664_v36 = vld [vmem:[%s7928_s18 + $0x5f8] sm:$0xf0]  ;;  %3334 = vmatpush.bf16.msra.mxu0 %v6683_v40  ;;  %3732 = vmatpush.bf16.msra.mxu3 %v6883_v28  ;;  %v6675_v28 = vor.u32 %v7483_v26, %v6672_v56  ;;  %v7531_v26 = vld [vmem:[%s11104_s1 + $0x184] sm:$0xf]  ;;  %v6864_v24 = vld [vmem:[%s11104_s1 + $0x188] sm:$0xf0] }
 0x328   : > { %v6872_v25 = vld [vmem:[%s11104_s1 + $0x198] sm:$0xf0]  ;;  %3467 = vmatpush.bf16.msra.mxu1 %v6747_v54  ;;  %11542 = vst [vmem:[#allocation208_spill] sm:$0xff] %v9539_v9  ;;  %v6736_v54 = vld [vmem:[%s11104_s1 + $0x88] sm:$0xf0]  ;;  %v9561_v1 = vor.u32 %v7478_v30, %v6664_v36  ;;  %v6867_v45 = vor.u32 %v7531_v26, %v6864_v24  ;;  %vm4448_vm12 = vcmp.gt.f32.partialorder %v9496_v55, 0.0 }
 0x329   : > { %v6875_v13 = vor.u32 %v7533_v17, %v6872_v25  ;;  %11543 = vst [vmem:[#allocation209_spill] sm:$0xff] %v9541_v39  ;;  %3600 = vmatpush.bf16.msra.mxu2 %v6811_v58  ;;  %v7515_v17 = vld [vmem:[%s11104_s1 + $0x104] sm:$0xf]  ;;  %v6800_v25 = vld [vmem:[%s11104_s1 + $0x108] sm:$0xf0]  ;;  %v6739_v35 = vor.u32 %v7499_v57, %v6736_v54 }
 0x32a   : > { %v3143_v40 = vpop.f32.mrf.mxu2  ;;  %v2880_v34 = vpop.f32.mrf.mxu0  ;;  %11544 = vst [vmem:[#allocation210_spill] sm:$0xff] %v9552_v59  ;;  %v6803_v58 = vor.u32 %v7515_v17, %v6800_v25  ;;  %v501_v25 = vld [vmem:[%s7928_s18 + $0x618] sm:$0xff] }
 0x32b   : > { %v3144_v20 = vadd.f32 %v3143_v40, %v3011_v0  ;;  %v3276_v60 = vpop.f32.mrf.mxu3  ;;  %v2881_v56 = vadd.f32 %v2880_v34, %v8701_v11  ;;  %v3013_v44 = vpop.f32.mrf.mxu1  ;;  %11545 = vst [vmem:[#allocation211_spill] sm:$0xff] %v9561_v1  ;;  %3335 = vmatpush.bf16.msra.mxu0 %v6675_v28  ;;  %v4546_v0 = vmul.f32 0.01, %v9496_v55  ;;  %3733 = vmatpush.bf16.msra.mxu3 %v6875_v13  ;;  %v500_v28 = vld [vmem:[%s7928_s18 + $0x610] sm:$0xff]  ;;  %v1223_v24 = vunpack.c.h.b16 %v501_v25 }
 0x32c   : > { %3468 = vmatpush.bf16.msra.mxu1 %v6739_v35  ;;  %v1221_v26 = vunpack.c.h.b16 %v500_v28 }
 0x32d   : > { %v3277_v19 = vadd.f32 %v3276_v60, %v3144_v20  ;;  %v3014_v57 = vadd.f32 %v3013_v44, %v2881_v56  ;;  %2919 = vmatmul.bf16.gmra.mxu0 %v9539_v9  ;;  %3601 = vmatpush.bf16.msra.mxu2 %v6803_v58  ;;  %v9570_v34 = vsel %vm4448_vm12, %v9496_v55, %v4546_v0  ;;  %v1220_v58 = vunpack.c.l.b16 %v500_v28 }
 0x32e   : > { %3052 = vmatmul.bf16.gmra.mxu1 %v9541_v39  ;;  %11546 = vst [vmem:[#allocation212_spill] sm:$0xff] %v9570_v34  ;;  %v1222_v55 = vunpack.c.l.b16 %v501_v25  ;;  %v9586_v30 = vpack.c.b16 %v1223_v24, %v1223_v24 }
 0x32f   : > { %vm4450_vm13 = vcmp.gt.f32.partialorder %v3277_v19, 0.0  ;;  %v4548_v11 = vmul.f32 0.01, %v3277_v19  ;;  %3185 = vmatmul.bf16.gmra.mxu2 %v9552_v59  ;;  %3734 = vmatpush.bf16.msra.mxu3 %v6867_v45  ;;  %v9579_v0 = vpack.c.b16 %v1220_v58, %v1220_v58 }
 0x330   : > { %3318 = vmatmul.bf16.gmra.mxu3 %v9561_v1  ;;  %11551 = vst [vmem:[#allocation217_spill] sm:$0xff] %v9586_v30 }
 0x331   : > { %v9572_v20 = vsel %vm4450_vm13, %v3277_v19, %v4548_v11  ;;  %11548 = vst [vmem:[#allocation214_spill] sm:$0xff] %v9579_v0 }
 0x332   : > { %11547 = vst [vmem:[#allocation213_spill] sm:$0xff] %v9572_v20  ;;  %v3146_v44 = vpop.f32.mrf.mxu2  ;;  %v2882_v13 = vpop.f32.mrf.mxu0 }
 0x333   : > { %v3147_v36 = vadd.f32 %v3146_v44, %v3014_v57  ;;  %v3279_v40 = vpop.f32.mrf.mxu3  ;;  %v2883_v54 = vadd.f32 %v2882_v13, %v8712_v12  ;;  %v3015_v17 = vpop.f32.mrf.mxu1  ;;  %v9581_v57 = vpack.c.b16 %v1221_v26, %v1221_v26  ;;  %v9583_v44 = vpack.c.b16 %v1222_v55, %v1222_v55 }
 0x335   : > { %v3280_v60 = vadd.f32 %v3279_v40, %v3147_v36  ;;  %v3016_v35 = vadd.f32 %v3015_v17, %v2883_v54  ;;  %11549 = vst [vmem:[#allocation215_spill] sm:$0xff] %v9581_v57 }
 0x336   : > { %11550 = vst [vmem:[#allocation216_spill] sm:$0xff] %v9583_v44 }
 0x337   : > { %v4550_v36 = vmul.f32 0.01, %v3280_v60  ;;  %vm4452_vm14 = vcmp.gt.f32.partialorder %v3280_v60, 0.0 }
 0x339   : > { %v9592_v17 = vsel %vm4452_vm14, %v3280_v60, %v4550_v36 }
 0x33a   : > { %v3148_v56 = vpop.f32.mrf.mxu2  ;;  %v2885_v45 = vpop.f32.mrf.mxu0  ;;  %11552 = vst [vmem:[#allocation218_spill] sm:$0xff] %v9592_v17 }
 0x33b   : > { %v3149_v19 = vadd.f32 %v3148_v56, %v3016_v35  ;;  %v3281_v11 = vpop.f32.mrf.mxu3  ;;  %v2886_v12 = vadd.f32 %v2885_v45, %v8719_v49  ;;  %v3018_v13 = vpop.f32.mrf.mxu1 }
 0x33d   : > { %v3282_v40 = vadd.f32 %v3281_v11, %v3149_v19  ;;  %v3019_v28 = vadd.f32 %v3018_v13, %v2886_v12  ;;  %2924 = vmatmul.bf16.gmra.mxu0 %v9579_v0  ;;  %v11645_v0 = vld [vmem:[#allocation65_spill] sm:$0xff] }
 0x33e   : > { %3057 = vmatmul.bf16.gmra.mxu1 %v9581_v57 }
 0x33f   : > { %vm4454_vm15 = vcmp.gt.f32.partialorder %v3282_v40, 0.0  ;;  %v4552_v54 = vmul.f32 0.01, %v3282_v40  ;;  %3190 = vmatmul.bf16.gmra.mxu2 %v9583_v44  ;;  %v11641_v44 = vld [vmem:[#allocation61_spill] sm:$0xff] }
 0x340   : > { %3323 = vmatmul.bf16.gmra.mxu3 %v9586_v30 }
 0x341   : > { %v9594_v49 = vsel %vm4454_vm15, %v3282_v40, %v4552_v54 }
 0x342   : > { %11553 = vst [vmem:[#allocation219_spill] sm:$0xff] %v9594_v49  ;;  %v3151_v25 = vpop.f32.mrf.mxu2  ;;  %v2887_v26 = vpop.f32.mrf.mxu0  ;;  %v11637_v49 = vld [vmem:[#allocation57_spill] sm:$0xff] }
 0x343   : > { %v3152_v58 = vadd.f32 %v3151_v25, %v3019_v28  ;;  %v3284_v55 = vpop.f32.mrf.mxu3  ;;  %v2888_v24 = vadd.f32 %v2887_v26, %v8738_v27  ;;  %v3020_v56 = vpop.f32.mrf.mxu1 }
 0x345   : > { %v3285_v19 = vadd.f32 %v3284_v55, %v3152_v58  ;;  %v3021_v45 = vadd.f32 %v3020_v56, %v2888_v24 }
 0x347   : > { %v4554_v40 = vmul.f32 0.01, %v3285_v19  ;;  %vm4456_vm0 = vcmp.gt.f32.partialorder %v3285_v19, 0.0 }
 0x349   : > { %v9604_v27 = vsel %vm4456_vm0, %v3285_v19, %v4554_v40  ;;  %v11556_v40 = vld [vmem:[#allocation2_spill] sm:$0xff] }
 0x34a   : > { %v3153_v11 = vpop.f32.mrf.mxu2  ;;  %v2890_v13 = vpop.f32.mrf.mxu0  ;;  %11554 = vst [vmem:[#allocation220_spill] sm:$0xff] %v9604_v27 }
 0x34b   : > { %v3154_v12 = vadd.f32 %v3153_v11, %v3021_v45  ;;  %v3286_v34 = vpop.f32.mrf.mxu3  ;;  %v2891_v60 = vadd.f32 %v2890_v13, %v8745_v37  ;;  %v3023_v36 = vpop.f32.mrf.mxu1 }
 0x34d   : > { %v3287_v54 = vadd.f32 %v3286_v34, %v3154_v12  ;;  %v3024_v20 = vadd.f32 %v3023_v36, %v2891_v60  ;;  %3336 = vmatmul.bf16.vlgmr.msra.gmra.mxu0 %v7936_v38 }
 0x34e   : > { %3469 = vmatmul.bf16.vlgmr.msra.gmra.mxu1 %v7940_v41 }
 0x34f   : > { %vm4458_vm1 = vcmp.gt.f32.partialorder %v3287_v54, 0.0  ;;  %v4556_v28 = vmul.f32 0.01, %v3287_v54  ;;  %3602 = vmatmul.bf16.vlgmr.msra.gmra.mxu2 %v7942_v42 }
 0x350   : > { %3735 = vmatmul.bf16.vlgmr.msra.gmra.mxu3 %v7944_v43 }
 0x351   : > { %v9606_v25 = vsel %vm4458_vm1, %v3287_v54, %v4556_v28  ;;  %v11558_v54 = vld [vmem:[#allocation4_spill] sm:$0xff] }
 0x352   : > { %11555 = vst [vmem:[#allocation221_spill] sm:$0xff] %v9606_v25  ;;  %v3156_v37 = vpop.f32.mrf.mxu2  ;;  %v2892_v26 = vpop.f32.mrf.mxu0  ;;  %v11633_v25 = vld [vmem:[#allocation53_spill] sm:$0xff] }
 0x353   : > { %v3157_v58 = vadd.f32 %v3156_v37, %v3024_v20  ;;  %v3289_v55 = vpop.f32.mrf.mxu3  ;;  %v2893_v38 = vadd.f32 %v2892_v26, %v8764_v32  ;;  %v3025_v24 = vpop.f32.mrf.mxu1  ;;  %v11557_v32 = vld [vmem:[#allocation3_spill] sm:$0xff] }
 0x355   : > { %v3290_v56 = vadd.f32 %v3289_v55, %v3157_v58  ;;  %v3026_v41 = vadd.f32 %v3025_v24, %v2893_v38 }
 0x357   : > { %v4558_v13 = vmul.f32 0.01, %v3290_v56  ;;  %vm4460_vm2 = vcmp.gt.f32.partialorder %v3290_v56, 0.0 }
 0x359   : > { %v9616_v28 = vsel %vm4460_vm2, %v3290_v56, %v4558_v13  ;;  %v11562_v56 = vld [vmem:[#allocation110_spill] sm:$0xff] }
 0x35a   : > { %v3158_v45 = vpop.f32.mrf.mxu2  ;;  %v2895_v11 = vpop.f32.mrf.mxu0  ;;  %11559 = vst [vmem:[#allocation2_spill] sm:$0xff] %v9616_v28 }
 0x35b   : > { %v3159_v42 = vadd.f32 %v3158_v45, %v3026_v41  ;;  %v3291_v43 = vpop.f32.mrf.mxu3  ;;  %v2896_v19 = vadd.f32 %v2895_v11, %v8771_v15  ;;  %v3028_v12 = vpop.f32.mrf.mxu1 }
 0x35d   : > { %v3292_v60 = vadd.f32 %v3291_v43, %v3159_v42  ;;  %v3029_v36 = vadd.f32 %v3028_v12, %v2896_v19  ;;  %3341 = vmatmul.bf16.gmra.mxu0 %v7958_v52  ;;  %v11561_v52 = vld [vmem:[#allocation109_spill] sm:$0xff] }
 0x35e   : > { %3474 = vmatmul.bf16.gmra.mxu1 %v11556_v40 }
 0x35f   : > { %vm4462_vm3 = vcmp.gt.f32.partialorder %v3292_v60, 0.0  ;;  %v4560_v20 = vmul.f32 0.01, %v3292_v60  ;;  %3607 = vmatmul.bf16.gmra.mxu2 %v11557_v32 }
 0x360   : > { %3740 = vmatmul.bf16.gmra.mxu3 %v11558_v54  ;;  %v11563_v54 = vld [vmem:[#allocation5_spill] sm:$0xff] }
 0x361   : > { %v9618_v37 = vsel %vm4462_vm3, %v3292_v60, %v4560_v20 }
 0x362   : > { %11560 = vst [vmem:[#allocation3_spill] sm:$0xff] %v9618_v37  ;;  %v3161_v15 = vpop.f32.mrf.mxu2  ;;  %v2897_v55 = vpop.f32.mrf.mxu0  ;;  %v11629_v37 = vld [vmem:[#allocation49_spill] sm:$0xff] }
 0x363   : > { %v3162_v26 = vadd.f32 %v3161_v15, %v3029_v36  ;;  %v3294_v38 = vpop.f32.mrf.mxu3  ;;  %v2898_v24 = vadd.f32 %v2897_v55, %v11561_v52  ;;  %v3030_v41 = vpop.f32.mrf.mxu1  ;;  %v11564_v15 = vld [vmem:[#allocation6_spill] sm:$0xff]  ;;  %v11565_v55 = vld [vmem:[#allocation7_spill] sm:$0xff] }
 0x365   : > { %v3295_v45 = vadd.f32 %v3294_v38, %v3162_v26  ;;  %v3031_v42 = vadd.f32 %v3030_v41, %v2898_v24  ;;  %v11566_v26 = vld [vmem:[#allocation8_spill] sm:$0xff]  ;;  %v11571_v41 = vld [vmem:[#allocation9_spill] sm:$0xff] }
 0x367   : > { %v4562_v20 = vmul.f32 0.01, %v3295_v45  ;;  %vm4464_vm4 = vcmp.gt.f32.partialorder %v3295_v45, 0.0 }
 0x369   : > { %v9628_v38 = vsel %vm4464_vm4, %v3295_v45, %v4562_v20  ;;  %v11570_v45 = vld [vmem:[#allocation116_spill] sm:$0xff] }
 0x36a   : > { %v3163_v11 = vpop.f32.mrf.mxu2  ;;  %v2900_v19 = vpop.f32.mrf.mxu0  ;;  %11567 = vst [vmem:[#allocation4_spill] sm:$0xff] %v9628_v38 }
 0x36b   : > { %v3164_v43 = vadd.f32 %v3163_v11, %v3031_v42  ;;  %v3296_v12 = vpop.f32.mrf.mxu3  ;;  %v2901_v13 = vadd.f32 %v2900_v19, %v11562_v56  ;;  %v3033_v60 = vpop.f32.mrf.mxu1  ;;  %v11569_v19 = vld [vmem:[#allocation115_spill] sm:$0xff] }
 0x36d   : > { %v3297_v40 = vadd.f32 %v3296_v12, %v3164_v43  ;;  %v3034_v32 = vadd.f32 %v3033_v60, %v2901_v13  ;;  %3346 = vmatmul.bf16.gmra.mxu0 %v11563_v54 }
 0x36e   : > { %3479 = vmatmul.bf16.gmra.mxu1 %v11564_v15 }
 0x36f   : > { %vm4466_vm5 = vcmp.gt.f32.partialorder %v3297_v40, 0.0  ;;  %v4564_v36 = vmul.f32 0.01, %v3297_v40  ;;  %3612 = vmatmul.bf16.gmra.mxu2 %v11565_v55 }
 0x370   : > { %3745 = vmatmul.bf16.gmra.mxu3 %v11566_v26 }
 0x371   : > { %v9630_v52 = vsel %vm4466_vm5, %v3297_v40, %v4564_v36 }
 0x372   : > { %11568 = vst [vmem:[#allocation109_spill] sm:$0xff] %v9630_v52  ;;  %v3166_v24 = vpop.f32.mrf.mxu2  ;;  %v2902_v11 = vpop.f32.mrf.mxu0  ;;  %v11625_v52 = vld [vmem:[#allocation45_spill] sm:$0xff] }
 0x373   : > { %v3167_v42 = vadd.f32 %v3166_v24, %v3034_v32  ;;  %v3299_v43 = vpop.f32.mrf.mxu3  ;;  %v2903_v12 = vadd.f32 %v2902_v11, %v11569_v19  ;;  %v3035_v56 = vpop.f32.mrf.mxu1  ;;  %v11572_v24 = vld [vmem:[#allocation10_spill] sm:$0xff]  ;;  %v11573_v11 = vld [vmem:[#allocation11_spill] sm:$0xff] }
 0x375   : > { %v3300_v13 = vadd.f32 %v3299_v43, %v3167_v42  ;;  %v3036_v60 = vadd.f32 %v3035_v56, %v2903_v12  ;;  %v11574_v42 = vld [vmem:[#allocation12_spill] sm:$0xff]  ;;  %v11579_v56 = vld [vmem:[#allocation13_spill] sm:$0xff] }
 0x377   : > { %v4566_v36 = vmul.f32 0.01, %v3300_v13  ;;  %vm4468_vm6 = vcmp.gt.f32.partialorder %v3300_v13, 0.0 }
 0x379   : > { %v9640_v43 = vsel %vm4468_vm6, %v3300_v13, %v4566_v36  ;;  %v11578_v13 = vld [vmem:[#allocation122_spill] sm:$0xff] }
 0x37a   : > { %v3168_v54 = vpop.f32.mrf.mxu2  ;;  %v2905_v55 = vpop.f32.mrf.mxu0  ;;  %11575 = vst [vmem:[#allocation110_spill] sm:$0xff] %v9640_v43 }
 0x37b   : > { %v3169_v15 = vadd.f32 %v3168_v54, %v3036_v60  ;;  %v3301_v26 = vpop.f32.mrf.mxu3  ;;  %v2906_v20 = vadd.f32 %v2905_v55, %v11570_v45  ;;  %v3038_v40 = vpop.f32.mrf.mxu1 }
 0x37d   : > { %v3302_v58 = vadd.f32 %v3301_v26, %v3169_v15  ;;  %v3039_v34 = vadd.f32 %v3038_v40, %v2906_v20  ;;  %3351 = vmatmul.bf16.gmra.mxu0 %v11571_v41  ;;  %v11577_v41 = vld [vmem:[#allocation121_spill] sm:$0xff] }
 0x37e   : > { %3484 = vmatmul.bf16.gmra.mxu1 %v11572_v24 }
 0x37f   : > { %vm4470_vm7 = vcmp.gt.f32.partialorder %v3302_v58, 0.0  ;;  %v4568_v32 = vmul.f32 0.01, %v3302_v58  ;;  %3617 = vmatmul.bf16.gmra.mxu2 %v11573_v11 }
 0x380   : > { %3750 = vmatmul.bf16.gmra.mxu3 %v11574_v42 }
 0x381   : > { %v9642_v19 = vsel %vm4470_vm7, %v3302_v58, %v4568_v32 }
 0x382   : > { %11576 = vst [vmem:[#allocation5_spill] sm:$0xff] %v9642_v19  ;;  %v3171_v12 = vpop.f32.mrf.mxu2  ;;  %v2907_v54 = vpop.f32.mrf.mxu0 }
 0x383   : > { %v3172_v60 = vadd.f32 %v3171_v12, %v3039_v34  ;;  %v3304_v15 = vpop.f32.mrf.mxu3  ;;  %v2908_v55 = vadd.f32 %v2907_v54, %v11577_v41  ;;  %v3040_v26 = vpop.f32.mrf.mxu1  ;;  %v11580_v12 = vld [vmem:[#allocation14_spill] sm:$0xff]  ;;  %v11581_v54 = vld [vmem:[#allocation15_spill] sm:$0xff] }
 0x385   : > { %v3305_v45 = vadd.f32 %v3304_v15, %v3172_v60  ;;  %v3041_v20 = vadd.f32 %v3040_v26, %v2908_v55  ;;  %v11582_v60 = vld [vmem:[#allocation16_spill] sm:$0xff]  ;;  %v11587_v26 = vld [vmem:[#allocation17_spill] sm:$0xff] }
 0x387   : > { %v4570_v32 = vmul.f32 0.01, %v3305_v45  ;;  %vm4472_vm8 = vcmp.gt.f32.partialorder %v3305_v45, 0.0 }
 0x389   : > { %v9652_v15 = vsel %vm4472_vm8, %v3305_v45, %v4570_v32  ;;  %v11586_v45 = vld [vmem:[#allocation128_spill] sm:$0xff] }
 0x38a   : > { %v3173_v40 = vpop.f32.mrf.mxu2  ;;  %v2910_v11 = vpop.f32.mrf.mxu0  ;;  %11583 = vst [vmem:[#allocation6_spill] sm:$0xff] %v9652_v15 }
 0x38b   : > { %v3174_v24 = vadd.f32 %v3173_v40, %v3041_v20  ;;  %v3306_v42 = vpop.f32.mrf.mxu3  ;;  %v2911_v36 = vadd.f32 %v2910_v11, %v11578_v13  ;;  %v3043_v58 = vpop.f32.mrf.mxu1 }
 0x38d   : > { %v3307_v35 = vadd.f32 %v3306_v42, %v3174_v24  ;;  %v3044_v38 = vadd.f32 %v3043_v58, %v2911_v36  ;;  %3356 = vmatmul.bf16.gmra.mxu0 %v11579_v56  ;;  %v11585_v56 = vld [vmem:[#allocation127_spill] sm:$0xff] }
 0x38e   : > { %3489 = vmatmul.bf16.gmra.mxu1 %v11580_v12 }
 0x38f   : > { %vm4474_vm9 = vcmp.gt.f32.partialorder %v3307_v35, 0.0  ;;  %v4572_v34 = vmul.f32 0.01, %v3307_v35  ;;  %3622 = vmatmul.bf16.gmra.mxu2 %v11581_v54 }
 0x390   : > { %3755 = vmatmul.bf16.gmra.mxu3 %v11582_v60 }
 0x391   : > { %v9654_v41 = vsel %vm4474_vm9, %v3307_v35, %v4572_v34 }
 0x392   : > { %11584 = vst [vmem:[#allocation7_spill] sm:$0xff] %v9654_v41  ;;  %v3176_v55 = vpop.f32.mrf.mxu2  ;;  %v2912_v40 = vpop.f32.mrf.mxu0 }
 0x393   : > { %v3177_v20 = vadd.f32 %v3176_v55, %v3044_v38  ;;  %v3309_v24 = vpop.f32.mrf.mxu3  ;;  %v2913_v11 = vadd.f32 %v2912_v40, %v11585_v56  ;;  %v3045_v42 = vpop.f32.mrf.mxu1  ;;  %v11588_v55 = vld [vmem:[#allocation18_spill] sm:$0xff]  ;;  %v11589_v40 = vld [vmem:[#allocation19_spill] sm:$0xff] }
 0x395   : > { %v3310_v13 = vadd.f32 %v3309_v24, %v3177_v20  ;;  %v3046_v36 = vadd.f32 %v3045_v42, %v2913_v11  ;;  %v11590_v20 = vld [vmem:[#allocation20_spill] sm:$0xff]  ;;  %v11594_v42 = vld [vmem:[#allocation21_spill] sm:$0xff] }
 0x397   : > { %v4574_v34 = vmul.f32 0.01, %v3310_v13  ;;  %vm4476_vm10 = vcmp.gt.f32.partialorder %v3310_v13, 0.0 }
 0x399   : > { %v9664_v24 = vsel %vm4476_vm10, %v3310_v13, %v4574_v34 }
 0x39a   : > { %v3178_v58 = vpop.f32.mrf.mxu2  ;;  %v2915_v54 = vpop.f32.mrf.mxu0  ;;  %11591 = vst [vmem:[#allocation8_spill] sm:$0xff] %v9664_v24 }
 0x39b   : > { %v3179_v12 = vadd.f32 %v3178_v58, %v3046_v36  ;;  %v3311_v60 = vpop.f32.mrf.mxu3  ;;  %v2916_v32 = vadd.f32 %v2915_v54, %v11586_v45  ;;  %v3048_v35 = vpop.f32.mrf.mxu1 }
 0x39d   : > { %v3312_v43 = vadd.f32 %v3311_v60, %v3179_v12  ;;  %v3049_v19 = vadd.f32 %v3048_v35, %v2916_v32  ;;  %3361 = vmatmul.bf16.gmra.mxu0 %v11587_v26  ;;  %v11593_v26 = vld [vmem:[#allocation133_spill] sm:$0xff] }
 0x39e   : > { %3494 = vmatmul.bf16.gmra.mxu1 %v11588_v55 }
 0x39f   : > { %vm4478_vm11 = vcmp.gt.f32.partialorder %v3312_v43, 0.0  ;;  %v4576_v38 = vmul.f32 0.01, %v3312_v43  ;;  %3627 = vmatmul.bf16.gmra.mxu2 %v11589_v40 }
 0x3a0   : > { %3760 = vmatmul.bf16.gmra.mxu3 %v11590_v20 }
 0x3a1   : > { %v9666_v56 = vsel %vm4478_vm11, %v3312_v43, %v4576_v38 }
 0x3a2   : > { %11592 = vst [vmem:[#allocation115_spill] sm:$0xff] %v9666_v56  ;;  %v3181_v11 = vpop.f32.mrf.mxu2  ;;  %v2917_v58 = vpop.f32.mrf.mxu0 }
 0x3a3   : > { %v3182_v36 = vadd.f32 %v3181_v11, %v3049_v19  ;;  %v3314_v12 = vpop.f32.mrf.mxu3  ;;  %v2918_v54 = vadd.f32 %v2917_v58, %v11593_v26  ;;  %v3050_v60 = vpop.f32.mrf.mxu1  ;;  %v11595_v11 = vld [vmem:[#allocation22_spill] sm:$0xff]  ;;  %v11596_v58 = vld [vmem:[#allocation23_spill] sm:$0xff] }
 0x3a5   : > { %v3315_v45 = vadd.f32 %v3314_v12, %v3182_v36  ;;  %v3051_v32 = vadd.f32 %v3050_v60, %v2918_v54  ;;  %v11597_v36 = vld [vmem:[#allocation24_spill] sm:$0xff]  ;;  %v11602_v54 = vld [vmem:[#allocation25_spill] sm:$0xff] }
 0x3a7   : > { %v4578_v34 = vmul.f32 0.01, %v3315_v45  ;;  %vm4480_vm12 = vcmp.gt.f32.partialorder %v3315_v45, 0.0 }
 0x3a9   : > { %v9676_v12 = vsel %vm4480_vm12, %v3315_v45, %v4578_v34  ;;  %v11601_v45 = vld [vmem:[#allocation139_spill] sm:$0xff] }
 0x3aa   : > { %v3183_v35 = vpop.f32.mrf.mxu2  ;;  %v2920_v40 = vpop.f32.mrf.mxu0  ;;  %11598 = vst [vmem:[#allocation116_spill] sm:$0xff] %v9676_v12 }
 0x3ab   : > { %v3184_v55 = vadd.f32 %v3183_v35, %v3051_v32  ;;  %v3316_v20 = vpop.f32.mrf.mxu3  ;;  %v2921_v13 = vadd.f32 %v2920_v40, %v8901_v14  ;;  %v3053_v43 = vpop.f32.mrf.mxu1 }
 0x3ad   : > { %v3317_v38 = vadd.f32 %v3316_v20, %v3184_v55  ;;  %v3054_v15 = vadd.f32 %v3053_v43, %v2921_v13  ;;  %3366 = vmatmul.bf16.gmra.mxu0 %v11594_v42  ;;  %v11600_v42 = vld [vmem:[#allocation138_spill] sm:$0xff] }
 0x3ae   : > { %3499 = vmatmul.bf16.gmra.mxu1 %v11595_v11 }
 0x3af   : > { %vm4482_vm13 = vcmp.gt.f32.partialorder %v3317_v38, 0.0  ;;  %v4580_v19 = vmul.f32 0.01, %v3317_v38  ;;  %3632 = vmatmul.bf16.gmra.mxu2 %v11596_v58 }
 0x3b0   : > { %3765 = vmatmul.bf16.gmra.mxu3 %v11597_v36 }
 0x3b1   : > { %v9678_v26 = vsel %vm4482_vm13, %v3317_v38, %v4580_v19 }
 0x3b2   : > { %11599 = vst [vmem:[#allocation9_spill] sm:$0xff] %v9678_v26  ;;  %v3186_v14 = vpop.f32.mrf.mxu2  ;;  %v2922_v32 = vpop.f32.mrf.mxu0  ;;  %v11621_v26 = vld [vmem:[#allocation41_spill] sm:$0xff] }
 0x3b3   : > { %v3187_v60 = vadd.f32 %v3186_v14, %v3054_v15  ;;  %v3319_v35 = vpop.f32.mrf.mxu3  ;;  %v2923_v55 = vadd.f32 %v2922_v32, %v11600_v42  ;;  %v3055_v40 = vpop.f32.mrf.mxu1  ;;  %v11603_v14 = vld [vmem:[#allocation26_spill] sm:$0xff]  ;;  %v11604_v32 = vld [vmem:[#allocation27_spill] sm:$0xff] }
 0x3b5   : > { %v3320_v20 = vadd.f32 %v3319_v35, %v3187_v60  ;;  %v3056_v13 = vadd.f32 %v3055_v40, %v2923_v55  ;;  %v11605_v60 = vld [vmem:[#allocation28_spill] sm:$0xff] }
 0x3b7   : > { %v4582_v19 = vmul.f32 0.01, %v3320_v20  ;;  %vm4484_vm14 = vcmp.gt.f32.partialorder %v3320_v20, 0.0 }
 0x3b9   : > { %v9688_v35 = vsel %vm4484_vm14, %v3320_v20, %v4582_v19 }
 0x3ba   : > { %v3188_v43 = vpop.f32.mrf.mxu2  ;;  %v2925_v58 = vpop.f32.mrf.mxu0  ;;  %11606 = vst [vmem:[#allocation10_spill] sm:$0xff] %v9688_v35 }
 0x3bb   : > { %v3189_v11 = vadd.f32 %v3188_v43, %v3056_v13  ;;  %v3321_v36 = vpop.f32.mrf.mxu3  ;;  %v2926_v34 = vadd.f32 %v2925_v58, %v11601_v45  ;;  %v3058_v38 = vpop.f32.mrf.mxu1 }
 0x3bd   : > { %v3322_v24 = vadd.f32 %v3321_v36, %v3189_v11  ;;  %v3059_v56 = vadd.f32 %v3058_v38, %v2926_v34  ;;  %3371 = vmatmul.bf16.gmra.mxu0 %v11602_v54  ;;  %v7663_v36 = vld [vmem:[%s11105_s2] sm:$0x3] }
 0x3be   : > { %3504 = vmatmul.bf16.gmra.mxu1 %v11603_v14  ;;  %v9699_v45 = vperm.slane %v7663_v36, 1  ;;  %v11609_v14 = vld [vmem:[#allocation29_spill] sm:$0xff] }
 0x3bf   : > { %vm4486_vm15 = vcmp.gt.f32.partialorder %v3322_v24, 0.0  ;;  %v4584_v15 = vmul.f32 0.01, %v3322_v24  ;;  %3637 = vmatmul.bf16.gmra.mxu2 %v11604_v32  ;;  %v11611_v32 = vld [vmem:[#allocation31_spill] sm:$0xff] }
 0x3c0   : > { %3770 = vmatmul.bf16.gmra.mxu3 %v11605_v60  ;;  %v11612_v60 = vld [vmem:[#allocation32_spill] sm:$0xff] }
 0x3c1   : > { %v9690_v42 = vsel %vm4486_vm15, %v3322_v24, %v4584_v15 }
 0x3c2   : > { %11607 = vst [vmem:[#allocation11_spill] sm:$0xff] %v9690_v42  ;;  %v3191_v55 = vpop.f32.mrf.mxu2  ;;  %v2927_v43 = vpop.f32.mrf.mxu0  ;;  %v11617_v42 = vld [vmem:[#allocation37_spill] sm:$0xff] }
 0x3c3   : > { %v3192_v13 = vadd.f32 %v3191_v55, %v3059_v56  ;;  %v3324_v11 = vpop.f32.mrf.mxu3  ;;  %v3060_v54 = vpop.f32.mrf.mxu1  ;;  %v11610_v56 = vld [vmem:[#allocation30_spill] sm:$0xff] }
 0x3c5   : > { %v9694_v58 = vadd.f32 %v3324_v11, %v3192_v13 }
 0x3c7   : > { %11608 = vst [vmem:[#allocation12_spill] sm:$0xff] %v9694_v58  ;;  %v11613_v58 = vld [vmem:[#allocation33_spill] sm:$0xff] }
 0x3ca   : > { %v3193_v20 = vpop.f32.mrf.mxu2  ;;  %v3337_v24 = vpop.f32.mrf.mxu0 }
 0x3cb   : > { %v3326_v34 = vpop.f32.mrf.mxu3  ;;  %v3338_v38 = vadd.f32 %v3337_v24, %v9699_v45  ;;  %v3470_v19 = vpop.f32.mrf.mxu1 }
 0x3cd   : > { %v3471_v15 = vadd.f32 %v3470_v19, %v3338_v38  ;;  %3376 = vmatmul.bf16.gmra.mxu0 %v11609_v14 }
 0x3ce   : > { %3509 = vmatmul.bf16.gmra.mxu1 %v11610_v56 }
 0x3cf   : > { %3642 = vmatmul.bf16.gmra.mxu2 %v11611_v32 }
 0x3d0   : > { %3775 = vmatmul.bf16.gmra.mxu3 %v11612_v60 }
 0x3d2   : > { %v3603_v55 = vpop.f32.mrf.mxu2  ;;  %v3339_v43 = vpop.f32.mrf.mxu0 }
 0x3d3   : > { %v3604_v13 = vadd.f32 %v3603_v55, %v3471_v15  ;;  %v3736_v11 = vpop.f32.mrf.mxu3  ;;  %v3340_v54 = vadd.f32 %v3339_v43, %v9699_v45  ;;  %v3472_v36 = vpop.f32.mrf.mxu1  ;;  %v11614_v15 = vld [vmem:[#allocation34_spill] sm:$0xff]  ;;  %v11615_v55 = vld [vmem:[#allocation35_spill] sm:$0xff]  ;;  %v11616_v43 = vld [vmem:[#allocation36_spill] sm:$0xff] }
 0x3d5   : > { %v9707_v20 = vadd.f32 %v3736_v11, %v3604_v13  ;;  %v3473_v34 = vadd.f32 %v3472_v36, %v3340_v54 }
 0x3da   : > { %v3605_v24 = vpop.f32.mrf.mxu2  ;;  %v3342_v19 = vpop.f32.mrf.mxu0 }
 0x3db   : > { %v3606_v38 = vadd.f32 %v3605_v24, %v3473_v34  ;;  %v3738_v14 = vpop.f32.mrf.mxu3  ;;  %v3343_v56 = vadd.f32 %v3342_v19, %v9699_v45  ;;  %v3475_v40 = vpop.f32.mrf.mxu1 }
 0x3dd   : > { %v9710_v32 = vadd.f32 %v3738_v14, %v3606_v38  ;;  %v3476_v60 = vadd.f32 %v3475_v40, %v3343_v56  ;;  %3381 = vmatmul.bf16.gmra.mxu0 %v11613_v58 }
 0x3de   : > { %3514 = vmatmul.bf16.gmra.mxu1 %v11614_v15 }
 0x3df   : > { %3647 = vmatmul.bf16.gmra.mxu2 %v11615_v55 }
 0x3e0   : > { %3780 = vmatmul.bf16.gmra.mxu3 %v11616_v43 }
 0x3e2   : > { %v3608_v13 = vpop.f32.mrf.mxu2  ;;  %v3344_v54 = vpop.f32.mrf.mxu0 }
 0x3e3   : > { %v3609_v11 = vadd.f32 %v3608_v13, %v3476_v60  ;;  %v3741_v36 = vpop.f32.mrf.mxu3  ;;  %v3345_v34 = vadd.f32 %v3344_v54, %v9699_v45  ;;  %v3477_v24 = vpop.f32.mrf.mxu1  ;;  %v11618_v60 = vld [vmem:[#allocation38_spill] sm:$0xff]  ;;  %v11619_v13 = vld [vmem:[#allocation39_spill] sm:$0xff]  ;;  %v11620_v54 = vld [vmem:[#allocation40_spill] sm:$0xff] }
 0x3e5   : > { %v9717_v19 = vadd.f32 %v3741_v36, %v3609_v11  ;;  %v3478_v38 = vadd.f32 %v3477_v24, %v3345_v34 }
 0x3ea   : > { %v3610_v14 = vpop.f32.mrf.mxu2  ;;  %v3347_v56 = vpop.f32.mrf.mxu0 }
 0x3eb   : > { %v3611_v40 = vadd.f32 %v3610_v14, %v3478_v38  ;;  %v3743_v58 = vpop.f32.mrf.mxu3  ;;  %v3348_v15 = vadd.f32 %v3347_v56, %v9699_v45  ;;  %v3480_v35 = vpop.f32.mrf.mxu1 }
 0x3ed   : > { %v9720_v55 = vadd.f32 %v3743_v58, %v3611_v40  ;;  %v3481_v43 = vadd.f32 %v3480_v35, %v3348_v15  ;;  %3386 = vmatmul.bf16.gmra.mxu0 %v11617_v42 }
 0x3ee   : > { %3519 = vmatmul.bf16.gmra.mxu1 %v11618_v60 }
 0x3ef   : > { %3652 = vmatmul.bf16.gmra.mxu2 %v11619_v13 }
 0x3f0   : > { %3785 = vmatmul.bf16.gmra.mxu3 %v11620_v54 }
 0x3f2   : > { %v3613_v11 = vpop.f32.mrf.mxu2  ;;  %v3349_v34 = vpop.f32.mrf.mxu0 }
 0x3f3   : > { %v3614_v36 = vadd.f32 %v3613_v11, %v3481_v43  ;;  %v3746_v24 = vpop.f32.mrf.mxu3  ;;  %v3350_v38 = vadd.f32 %v3349_v34, %v9699_v45  ;;  %v3482_v14 = vpop.f32.mrf.mxu1  ;;  %v11622_v43 = vld [vmem:[#allocation42_spill] sm:$0xff]  ;;  %v11623_v11 = vld [vmem:[#allocation43_spill] sm:$0xff]  ;;  %v11624_v34 = vld [vmem:[#allocation44_spill] sm:$0xff] }
 0x3f5   : > { %v9727_v56 = vadd.f32 %v3746_v24, %v3614_v36  ;;  %v3483_v40 = vadd.f32 %v3482_v14, %v3350_v38 }
 0x3fa   : > { %v3615_v58 = vpop.f32.mrf.mxu2  ;;  %v3352_v15 = vpop.f32.mrf.mxu0 }
 0x3fb   : > { %v3616_v35 = vadd.f32 %v3615_v58, %v3483_v40  ;;  %v3748_v42 = vpop.f32.mrf.mxu3  ;;  %v3353_v60 = vadd.f32 %v3352_v15, %v9699_v45  ;;  %v3485_v12 = vpop.f32.mrf.mxu1 }
 0x3fd   : > { %v9730_v13 = vadd.f32 %v3748_v42, %v3616_v35  ;;  %v3486_v54 = vadd.f32 %v3485_v12, %v3353_v60  ;;  %3391 = vmatmul.bf16.gmra.mxu0 %v11621_v26 }
 0x3fe   : > { %3524 = vmatmul.bf16.gmra.mxu1 %v11622_v43 }
 0x3ff   : > { %3657 = vmatmul.bf16.gmra.mxu2 %v11623_v11 }
 0x400   : > { %3790 = vmatmul.bf16.gmra.mxu3 %v11624_v34 }
 0x402   : > { %v3618_v36 = vpop.f32.mrf.mxu2  ;;  %v3354_v38 = vpop.f32.mrf.mxu0 }
 0x403   : > { %v3619_v24 = vadd.f32 %v3618_v36, %v3486_v54  ;;  %v3751_v14 = vpop.f32.mrf.mxu3  ;;  %v3355_v40 = vadd.f32 %v3354_v38, %v9699_v45  ;;  %v3487_v58 = vpop.f32.mrf.mxu1  ;;  %v11626_v54 = vld [vmem:[#allocation46_spill] sm:$0xff]  ;;  %v11627_v36 = vld [vmem:[#allocation47_spill] sm:$0xff]  ;;  %v11628_v38 = vld [vmem:[#allocation48_spill] sm:$0xff] }
 0x405   : > { %v9737_v15 = vadd.f32 %v3751_v14, %v3619_v24  ;;  %v3488_v35 = vadd.f32 %v3487_v58, %v3355_v40 }
 0x40a   : > { %v3620_v42 = vpop.f32.mrf.mxu2  ;;  %v3357_v60 = vpop.f32.mrf.mxu0 }
 0x40b   : > { %v3621_v12 = vadd.f32 %v3620_v42, %v3488_v35  ;;  %v3753_v26 = vpop.f32.mrf.mxu3  ;;  %v3358_v43 = vadd.f32 %v3357_v60, %v9699_v45  ;;  %v3490_v41 = vpop.f32.mrf.mxu1 }
 0x40d   : > { %v9740_v11 = vadd.f32 %v3753_v26, %v3621_v12  ;;  %v3491_v34 = vadd.f32 %v3490_v41, %v3358_v43  ;;  %3396 = vmatmul.bf16.gmra.mxu0 %v11625_v52 }
 0x40e   : > { %3529 = vmatmul.bf16.gmra.mxu1 %v11626_v54 }
 0x40f   : > { %3662 = vmatmul.bf16.gmra.mxu2 %v11627_v36 }
 0x410   : > { %3795 = vmatmul.bf16.gmra.mxu3 %v11628_v38 }
 0x412   : > { %v3623_v24 = vpop.f32.mrf.mxu2  ;;  %v3359_v40 = vpop.f32.mrf.mxu0 }
 0x413   : > { %v3624_v14 = vadd.f32 %v3623_v24, %v3491_v34  ;;  %v3756_v58 = vpop.f32.mrf.mxu3  ;;  %v3360_v35 = vadd.f32 %v3359_v40, %v9699_v45  ;;  %v3492_v42 = vpop.f32.mrf.mxu1  ;;  %v11630_v34 = vld [vmem:[#allocation50_spill] sm:$0xff]  ;;  %v11631_v24 = vld [vmem:[#allocation51_spill] sm:$0xff]  ;;  %v11632_v40 = vld [vmem:[#allocation52_spill] sm:$0xff] }
 0x415   : > { %v9747_v60 = vadd.f32 %v3756_v58, %v3624_v14  ;;  %v3493_v12 = vadd.f32 %v3492_v42, %v3360_v35 }
 0x41a   : > { %v3625_v26 = vpop.f32.mrf.mxu2  ;;  %v3362_v43 = vpop.f32.mrf.mxu0 }
 0x41b   : > { %v3626_v41 = vadd.f32 %v3625_v26, %v3493_v12  ;;  %v3758_v52 = vpop.f32.mrf.mxu3  ;;  %v3363_v54 = vadd.f32 %v3362_v43, %v9699_v45  ;;  %v3495_v28 = vpop.f32.mrf.mxu1 }
 0x41d   : > { %v9750_v36 = vadd.f32 %v3758_v52, %v3626_v41  ;;  %v3496_v38 = vadd.f32 %v3495_v28, %v3363_v54  ;;  %3401 = vmatmul.bf16.gmra.mxu0 %v11629_v37 }
 0x41e   : > { %3534 = vmatmul.bf16.gmra.mxu1 %v11630_v34 }
 0x41f   : > { %3667 = vmatmul.bf16.gmra.mxu2 %v11631_v24 }
 0x420   : > { %3800 = vmatmul.bf16.gmra.mxu3 %v11632_v40 }
 0x422   : > { %v3628_v14 = vpop.f32.mrf.mxu2  ;;  %v3364_v35 = vpop.f32.mrf.mxu0 }
 0x423   : > { %v3629_v58 = vadd.f32 %v3628_v14, %v3496_v38  ;;  %v3761_v42 = vpop.f32.mrf.mxu3  ;;  %v3365_v12 = vadd.f32 %v3364_v35, %v9699_v45  ;;  %v3497_v26 = vpop.f32.mrf.mxu1  ;;  %v11634_v38 = vld [vmem:[#allocation54_spill] sm:$0xff]  ;;  %v11635_v14 = vld [vmem:[#allocation55_spill] sm:$0xff]  ;;  %v11636_v35 = vld [vmem:[#allocation56_spill] sm:$0xff] }
 0x425   : > { %v9757_v43 = vadd.f32 %v3761_v42, %v3629_v58  ;;  %v3498_v41 = vadd.f32 %v3497_v26, %v3365_v12 }
 0x42a   : > { %v3630_v52 = vpop.f32.mrf.mxu2  ;;  %v3367_v54 = vpop.f32.mrf.mxu0 }
 0x42b   : > { %v3631_v28 = vadd.f32 %v3630_v52, %v3498_v41  ;;  %v3763_v37 = vpop.f32.mrf.mxu3  ;;  %v3368_v34 = vadd.f32 %v3367_v54, %v9699_v45  ;;  %v3500_v27 = vpop.f32.mrf.mxu1 }
 0x42d   : > { %v9760_v24 = vadd.f32 %v3763_v37, %v3631_v28  ;;  %v3501_v40 = vadd.f32 %v3500_v27, %v3368_v34  ;;  %3406 = vmatmul.bf16.gmra.mxu0 %v11633_v25 }
 0x42e   : > { %3539 = vmatmul.bf16.gmra.mxu1 %v11634_v38 }
 0x42f   : > { %3672 = vmatmul.bf16.gmra.mxu2 %v11635_v14 }
 0x430   : > { %3805 = vmatmul.bf16.gmra.mxu3 %v11636_v35 }
 0x432   : > { %v3633_v58 = vpop.f32.mrf.mxu2  ;;  %v3369_v12 = vpop.f32.mrf.mxu0 }
 0x433   : > { %v3634_v42 = vadd.f32 %v3633_v58, %v3501_v40  ;;  %v3766_v26 = vpop.f32.mrf.mxu3  ;;  %v3370_v41 = vadd.f32 %v3369_v12, %v9699_v45  ;;  %v3502_v52 = vpop.f32.mrf.mxu1  ;;  %v11638_v40 = vld [vmem:[#allocation58_spill] sm:$0xff]  ;;  %v11639_v58 = vld [vmem:[#allocation59_spill] sm:$0xff]  ;;  %v11640_v12 = vld [vmem:[#allocation60_spill] sm:$0xff] }
 0x435   : > { %v9767_v54 = vadd.f32 %v3766_v26, %v3634_v42  ;;  %v3503_v28 = vadd.f32 %v3502_v52, %v3370_v41 }
 0x43a   : > { %v3635_v37 = vpop.f32.mrf.mxu2  ;;  %v3372_v34 = vpop.f32.mrf.mxu0 }
 0x43b   : > { %v3636_v27 = vadd.f32 %v3635_v37, %v3503_v28  ;;  %v3768_v25 = vpop.f32.mrf.mxu3  ;;  %v3373_v38 = vadd.f32 %v3372_v34, %v9699_v45  ;;  %v3505_v17 = vpop.f32.mrf.mxu1 }
 0x43d   : > { %v9770_v14 = vadd.f32 %v3768_v25, %v3636_v27  ;;  %v3506_v35 = vadd.f32 %v3505_v17, %v3373_v38  ;;  %3411 = vmatmul.bf16.gmra.mxu0 %v11637_v49 }
 0x43e   : > { %3544 = vmatmul.bf16.gmra.mxu1 %v11638_v40 }
 0x43f   : > { %3677 = vmatmul.bf16.gmra.mxu2 %v11639_v58 }
 0x440   : > { %3810 = vmatmul.bf16.gmra.mxu3 %v11640_v12 }
 0x442   : > { %v3638_v42 = vpop.f32.mrf.mxu2  ;;  %v3374_v41 = vpop.f32.mrf.mxu0 }
 0x443   : > { %v3639_v26 = vadd.f32 %v3638_v42, %v3506_v35  ;;  %v3771_v52 = vpop.f32.mrf.mxu3  ;;  %v3375_v28 = vadd.f32 %v3374_v41, %v9699_v45  ;;  %v3507_v37 = vpop.f32.mrf.mxu1  ;;  %v11642_v35 = vld [vmem:[#allocation62_spill] sm:$0xff]  ;;  %v11643_v42 = vld [vmem:[#allocation63_spill] sm:$0xff]  ;;  %v11644_v41 = vld [vmem:[#allocation64_spill] sm:$0xff] }
 0x445   : > { %v9777_v34 = vadd.f32 %v3771_v52, %v3639_v26  ;;  %v3508_v27 = vadd.f32 %v3507_v37, %v3375_v28 }
 0x44a   : > { %v3640_v25 = vpop.f32.mrf.mxu2  ;;  %v3377_v38 = vpop.f32.mrf.mxu0 }
 0x44b   : > { %v3641_v17 = vadd.f32 %v3640_v25, %v3508_v27  ;;  %v3773_v49 = vpop.f32.mrf.mxu3  ;;  %v3378_v40 = vadd.f32 %v3377_v38, %v9699_v45  ;;  %v3510_v30 = vpop.f32.mrf.mxu1 }
 0x44d   : > { %v9780_v58 = vadd.f32 %v3773_v49, %v3641_v17  ;;  %v3511_v12 = vadd.f32 %v3510_v30, %v3378_v40  ;;  %3416 = vmatmul.bf16.gmra.mxu0 %v11641_v44 }
 0x44e   : > { %3549 = vmatmul.bf16.gmra.mxu1 %v11642_v35 }
 0x44f   : > { %3682 = vmatmul.bf16.gmra.mxu2 %v11643_v42 }
 0x450   : > { %3815 = vmatmul.bf16.gmra.mxu3 %v11644_v41 }
 0x452   : > { %v3643_v26 = vpop.f32.mrf.mxu2  ;;  %v3379_v28 = vpop.f32.mrf.mxu0 }
 0x453   : > { %v3644_v52 = vadd.f32 %v3643_v26, %v3511_v12  ;;  %v3776_v37 = vpop.f32.mrf.mxu3  ;;  %v3380_v27 = vadd.f32 %v3379_v28, %v9699_v45  ;;  %v3512_v25 = vpop.f32.mrf.mxu1  ;;  %v11646_v12 = vld [vmem:[#allocation66_spill] sm:$0xff]  ;;  %v11647_v26 = vld [vmem:[#allocation67_spill] sm:$0xff]  ;;  %v11648_v28 = vld [vmem:[#allocation68_spill] sm:$0xff] }
 0x455   : > { %v9787_v38 = vadd.f32 %v3776_v37, %v3644_v52  ;;  %v3513_v17 = vadd.f32 %v3512_v25, %v3380_v27 }
 0x45a   : > { %v3645_v49 = vpop.f32.mrf.mxu2  ;;  %v3382_v40 = vpop.f32.mrf.mxu0 }
 0x45b   : > { %v3646_v30 = vadd.f32 %v3645_v49, %v3513_v17  ;;  %v3778_v44 = vpop.f32.mrf.mxu3  ;;  %v3383_v35 = vadd.f32 %v3382_v40, %v9699_v45  ;;  %v3515_v57 = vpop.f32.mrf.mxu1 }
 0x45d   : > { %v9790_v42 = vadd.f32 %v3778_v44, %v3646_v30  ;;  %v3516_v41 = vadd.f32 %v3515_v57, %v3383_v35  ;;  %3421 = vmatmul.bf16.gmra.mxu0 %v11645_v0  ;;  %v7561_v0 = vld [vmem:[%s11104_s1 + $0x274] sm:$0xf]  ;;  %v6984_v57 = vld [vmem:[%s11104_s1 + $0x278] sm:$0xf0] }
 0x45e   : > { %3554 = vmatmul.bf16.gmra.mxu1 %v11646_v12  ;;  %v6987_v44 = vor.u32 %v7561_v0, %v6984_v57  ;;  %v11649_v0 = vld [vmem:[#allocation69_spill] sm:$0xff]  ;;  %v11651_v57 = vld [vmem:[#allocation71_spill] sm:$0xff] }
 0x45f   : > { %3687 = vmatmul.bf16.gmra.mxu2 %v11647_v26 }
 0x460   : > { %3820 = vmatmul.bf16.gmra.mxu3 %v11648_v28  ;;  %3860 = vmatpush.bf16.msrb.mxu0 %v6987_v44  ;;  %v7577_v28 = vld [vmem:[%s11104_s1 + $0x2f4] sm:$0xf] }
 0x461   : > { %v11652_v44 = vld [vmem:[#allocation72_spill] sm:$0xff] }
 0x462   : > { %v3648_v52 = vpop.f32.mrf.mxu2  ;;  %v3384_v27 = vpop.f32.mrf.mxu0 }
 0x463   : > { %v3649_v37 = vadd.f32 %v3648_v52, %v3516_v41  ;;  %v3781_v25 = vpop.f32.mrf.mxu3  ;;  %v3385_v17 = vadd.f32 %v3384_v27, %v9699_v45  ;;  %v3517_v49 = vpop.f32.mrf.mxu1  ;;  %v7048_v52 = vld [vmem:[%s11104_s1 + $0x2f8] sm:$0xf0] }
 0x465   : > { %v9797_v40 = vadd.f32 %v3781_v25, %v3649_v37  ;;  %v3518_v30 = vadd.f32 %v3517_v49, %v3385_v17  ;;  %v7051_v25 = vor.u32 %v7577_v28, %v7048_v52 }
 0x467   : > { %3993 = vmatpush.bf16.msrb.mxu1 %v7051_v25 }
 0x46a   : > { %v3650_v35 = vpop.f32.mrf.mxu2  ;;  %v3387_v12 = vpop.f32.mrf.mxu0 }
 0x46b   : > { %v3651_v41 = vadd.f32 %v3650_v35, %v3518_v30  ;;  %v3783_v26 = vpop.f32.mrf.mxu3  ;;  %v3388_v37 = vadd.f32 %v3387_v12, %v9699_v45  ;;  %v3520_v27 = vpop.f32.mrf.mxu1  ;;  %v11650_v30 = vld [vmem:[#allocation70_spill] sm:$0xff] }
 0x46d   : > { %v9812_v17 = vadd.f32 %v3783_v26, %v3651_v41  ;;  %v3521_v49 = vadd.f32 %v3520_v27, %v3388_v37  ;;  %3426 = vmatmul.bf16.gmra.mxu0 %v11649_v0 }
 0x46e   : > { %3559 = vmatmul.bf16.gmra.mxu1 %v11650_v30 }
 0x46f   : > { %3692 = vmatmul.bf16.gmra.mxu2 %v11651_v57 }
 0x470   : > { %3825 = vmatmul.bf16.gmra.mxu3 %v11652_v44  ;;  %v11653_v44 = vld [vmem:[#allocation73_spill] sm:$0xff] }
 0x472   : > { %v3653_v35 = vpop.f32.mrf.mxu2  ;;  %v3389_v59 = vpop.f32.mrf.mxu0 }
 0x473   : > { %v3654_v1 = vadd.f32 %v3653_v35, %v3521_v49  ;;  %v3786_v39 = vpop.f32.mrf.mxu3  ;;  %v3390_v12 = vadd.f32 %v3389_v59, %v9699_v45  ;;  %v3522_v9 = vpop.f32.mrf.mxu1  ;;  %v11654_v49 = vld [vmem:[#allocation74_spill] sm:$0xff]  ;;  %v11655_v35 = vld [vmem:[#allocation75_spill] sm:$0xff]  ;;  %v11656_v59 = vld [vmem:[#allocation76_spill] sm:$0xff] }
 0x475   : > { %v9819_v28 = vadd.f32 %v3786_v39, %v3654_v1  ;;  %v3523_v41 = vadd.f32 %v3522_v9, %v3390_v12 }
 0x47a   : > { %v3655_v26 = vpop.f32.mrf.mxu2  ;;  %v3392_v37 = vpop.f32.mrf.mxu0 }
 0x47b   : > { %v3656_v52 = vadd.f32 %v3655_v26, %v3523_v41  ;;  %v3788_v27 = vpop.f32.mrf.mxu3  ;;  %v3393_v25 = vadd.f32 %v3392_v37, %v9699_v45  ;;  %v3525_v0 = vpop.f32.mrf.mxu1 }
 0x47d   : > { %v9822_v30 = vadd.f32 %v3788_v27, %v3656_v52  ;;  %v3526_v57 = vadd.f32 %v3525_v0, %v3393_v25  ;;  %3431 = vmatmul.bf16.gmra.mxu0 %v11653_v44 }
 0x47e   : > { %3564 = vmatmul.bf16.gmra.mxu1 %v11654_v49 }
 0x47f   : > { %3697 = vmatmul.bf16.gmra.mxu2 %v11655_v35 }
 0x480   : > { %3830 = vmatmul.bf16.gmra.mxu3 %v11656_v59 }
 0x482   : > { %v3658_v1 = vpop.f32.mrf.mxu2  ;;  %v3394_v39 = vpop.f32.mrf.mxu0 }
 0x483   : > { %v3659_v9 = vadd.f32 %v3658_v1, %v3526_v57  ;;  %v3791_v12 = vpop.f32.mrf.mxu3  ;;  %v3395_v41 = vadd.f32 %v3394_v39, %v9699_v45  ;;  %v3527_v26 = vpop.f32.mrf.mxu1  ;;  %v11659_v57 = vld [vmem:[#allocation78_spill] sm:$0xff]  ;;  %v11660_v1 = vld [vmem:[#allocation79_spill] sm:$0xff]  ;;  %v11661_v39 = vld [vmem:[#allocation80_spill] sm:$0xff] }
 0x485   : > { %v9829_v37 = vadd.f32 %v3791_v12, %v3659_v9  ;;  %v3528_v52 = vadd.f32 %v3527_v26, %v3395_v41 }
 0x48a   : > { %v3660_v27 = vpop.f32.mrf.mxu2  ;;  %v3397_v0 = vpop.f32.mrf.mxu0 }
 0x48b   : > { %v3661_v25 = vadd.f32 %v3660_v27, %v3528_v52  ;;  %v3793_v44 = vpop.f32.mrf.mxu3  ;;  %v3398_v49 = vadd.f32 %v3397_v0, %v9699_v45  ;;  %v3530_v2 = vpop.f32.mrf.mxu1 }
 0x48d   : > { %v9832_v35 = vadd.f32 %v3793_v44, %v3661_v25  ;;  %v3531_v59 = vadd.f32 %v3530_v2, %v3398_v49  ;;  %3436 = vmatmul.bf16.gmra.mxu0 %v11658_v46 }
 0x48e   : > { %3569 = vmatmul.bf16.gmra.mxu1 %v11659_v57  ;;  %v7559_v57 = vld [vmem:[%s11104_s1 + $0x264] sm:$0xf] }
 0x48f   : > { %11657 = vst [vmem:[#allocation121_spill] sm:$0xff] %v9832_v35  ;;  %3702 = vmatmul.bf16.gmra.mxu2 %v11660_v1 }
 0x490   : > { %3835 = vmatmul.bf16.gmra.mxu3 %v11661_v39 }
 0x492   : > { %v3663_v9 = vpop.f32.mrf.mxu2  ;;  %v3399_v41 = vpop.f32.mrf.mxu0 }
 0x493   : > { %v3664_v12 = vadd.f32 %v3663_v9, %v3531_v59  ;;  %v3796_v26 = vpop.f32.mrf.mxu3  ;;  %v3400_v52 = vadd.f32 %v3399_v41, %v9699_v45  ;;  %v3532_v27 = vpop.f32.mrf.mxu1  ;;  %v6976_v59 = vld [vmem:[%s11104_s1 + $0x268] sm:$0xf0] }
 0x494   : > { %v6979_v9 = vor.u32 %v7559_v57, %v6976_v59  ;;  %v7609_v59 = vld [vmem:[%s11104_s1 + $0x3f4] sm:$0xf] }
 0x495   : > { %v9839_v0 = vadd.f32 %v3796_v26, %v3664_v12  ;;  %v3533_v25 = vadd.f32 %v3532_v27, %v3400_v52  ;;  %v7593_v12 = vld [vmem:[%s11104_s1 + $0x374] sm:$0xf]  ;;  %v7112_v26 = vld [vmem:[%s11104_s1 + $0x378] sm:$0xf0] }
 0x496   : > { %v11664_v27 = vld [vmem:[#allocation81_spill] sm:$0xff]  ;;  %3861 = vmatpush.bf16.msrb.mxu0 %v6979_v9  ;;  %v7607_v9 = vld [vmem:[%s11104_s1 + $0x3e4] sm:$0xf] }
 0x497   : > { %11662 = vst [vmem:[#allocation122_spill] sm:$0xff] %v9839_v0 }
 0x49a   : > { %v3665_v44 = vpop.f32.mrf.mxu2  ;;  %v3402_v49 = vpop.f32.mrf.mxu0 }
 0x49b   : > { %v3666_v2 = vadd.f32 %v3665_v44, %v3533_v25  ;;  %v3798_v46 = vpop.f32.mrf.mxu3  ;;  %v3403_v1 = vadd.f32 %v3402_v49, %v9699_v45  ;;  %v3535_v39 = vpop.f32.mrf.mxu1  ;;  %v7575_v25 = vld [vmem:[%s11104_s1 + $0x2e4] sm:$0xf]  ;;  %v7040_v44 = vld [vmem:[%s11104_s1 + $0x2e8] sm:$0xf0] }
 0x49c   : > { %v11665_v49 = vld [vmem:[#allocation82_spill] sm:$0xff]  ;;  %v7043_v57 = vor.u32 %v7575_v25, %v7040_v44 }
 0x49d   : > { %v9848_v41 = vadd.f32 %v3798_v46, %v3666_v2  ;;  %v3536_v52 = vadd.f32 %v3535_v39, %v3403_v1  ;;  %3441 = vmatmul.bf16.gmra.mxu0 %v11664_v27  ;;  %v7115_v2 = vor.u32 %v7593_v12, %v7112_v26  ;;  %v11666_v46 = vld [vmem:[#allocation83_spill] sm:$0xff]  ;;  %v7176_v1 = vld [vmem:[%s11104_s1 + $0x3f8] sm:$0xf0]  ;;  %v11667_v39 = vld [vmem:[#allocation84_spill] sm:$0xff] }
 0x49e   : > { %3574 = vmatmul.bf16.gmra.mxu1 %v11665_v49  ;;  %v7179_v27 = vor.u32 %v7609_v59, %v7176_v1  ;;  %v7591_v12 = vld [vmem:[%s11104_s1 + $0x364] sm:$0xf]  ;;  %v7104_v26 = vld [vmem:[%s11104_s1 + $0x368] sm:$0xf0] }
 0x49f   : > { %11663 = vst [vmem:[#allocation13_spill] sm:$0xff] %v9848_v41  ;;  %3707 = vmatmul.bf16.gmra.mxu2 %v11666_v46  ;;  %3994 = vmatpush.bf16.msrb.mxu1 %v7043_v57  ;;  %v7107_v44 = vor.u32 %v7591_v12, %v7104_v26  ;;  %v7573_v12 = vld [vmem:[%s11104_s1 + $0x2d4] sm:$0xf] }
 0x4a0   : > { %3840 = vmatmul.bf16.gmra.mxu3 %v11667_v39  ;;  %4126 = vmatpush.bf16.msrb.mxu2 %v7115_v2  ;;  %v7168_v2 = vld [vmem:[%s11104_s1 + $0x3e8] sm:$0xf0] }
 0x4a1   : > { %4259 = vmatpush.bf16.msrb.mxu3 %v7179_v27  ;;  %v7171_v1 = vor.u32 %v7607_v9, %v7168_v2  ;;  %v6968_v27 = vld [vmem:[%s11104_s1 + $0x258] sm:$0xf0]  ;;  %v7605_v2 = vld [vmem:[%s11104_s1 + $0x3d4] sm:$0xf] }
 0x4a2   : > { %v3668_v25 = vpop.f32.mrf.mxu2  ;;  %v3404_v46 = vpop.f32.mrf.mxu0 }
 0x4a3   : > { %v3669_v49 = vadd.f32 %v3668_v25, %v3536_v52  ;;  %v3801_v41 = vpop.f32.mrf.mxu3  ;;  %v3405_v57 = vadd.f32 %v3404_v46, %v9699_v45  ;;  %v3537_v59 = vpop.f32.mrf.mxu1  ;;  %v7557_v52 = vld [vmem:[%s11104_s1 + $0x254] sm:$0xf] }
 0x4a4   : > { %4127 = vmatpush.bf16.msrb.mxu2 %v7107_v44  ;;  %v6971_v25 = vor.u32 %v7557_v52, %v6968_v27  ;;  %v7589_v44 = vld [vmem:[%s11104_s1 + $0x354] sm:$0xf]  ;;  %v6960_v52 = vld [vmem:[%s11104_s1 + $0x248] sm:$0xf0]  ;;  %v7571_v27 = vld [vmem:[%s11104_s1 + $0x2c4] sm:$0xf] }
 0x4a5   : > { %v9885_v39 = vadd.f32 %v3801_v41, %v3669_v49  ;;  %v3538_v26 = vadd.f32 %v3537_v59, %v3405_v57  ;;  %4260 = vmatpush.bf16.msrb.mxu3 %v7171_v1  ;;  %v7032_v41 = vld [vmem:[%s11104_s1 + $0x2d8] sm:$0xf0]  ;;  %v7555_v1 = vld [vmem:[%s11104_s1 + $0x244] sm:$0xf] }
 0x4a6   : > { %v7096_v49 = vld [vmem:[%s11104_s1 + $0x358] sm:$0xf0]  ;;  %v7035_v46 = vor.u32 %v7573_v12, %v7032_v41  ;;  %3862 = vmatpush.bf16.msrb.mxu0 %v6971_v25  ;;  %v6963_v41 = vor.u32 %v7555_v1, %v6960_v52  ;;  %v7024_v25 = vld [vmem:[%s11104_s1 + $0x2c8] sm:$0xf0] }
 0x4a7   : > { %11668 = vst [vmem:[#allocation14_spill] sm:$0xff] %v9885_v39  ;;  %v7099_v9 = vor.u32 %v7589_v44, %v7096_v49  ;;  %v7160_v57 = vld [vmem:[%s11104_s1 + $0x3d8] sm:$0xf0]  ;;  %v7587_v44 = vld [vmem:[%s11104_s1 + $0x344] sm:$0xf] }
 0x4a8   : > { %v7163_v59 = vor.u32 %v7605_v2, %v7160_v57  ;;  %3995 = vmatpush.bf16.msrb.mxu1 %v7035_v46  ;;  %v7088_v49 = vld [vmem:[%s11104_s1 + $0x348] sm:$0xf0]  ;;  %v7027_v57 = vor.u32 %v7571_v27, %v7024_v25  ;;  %v6952_v27 = vld [vmem:[%s11104_s1 + $0x238] sm:$0xf0] }
 0x4a9   : > { %4128 = vmatpush.bf16.msrb.mxu2 %v7099_v9  ;;  %v7091_v39 = vor.u32 %v7587_v44, %v7088_v49  ;;  %v7152_v1 = vld [vmem:[%s11104_s1 + $0x3c8] sm:$0xf0]  ;;  %v11670_v44 = vld [vmem:[#allocation85_spill] sm:$0xff]  ;;  %v7585_v49 = vld [vmem:[%s11104_s1 + $0x334] sm:$0xf] }
 0x4aa   : > { %v3670_v12 = vpop.f32.mrf.mxu2  ;;  %4261 = vmatpush.bf16.msrb.mxu3 %v7163_v59  ;;  %v3407_v9 = vpop.f32.mrf.mxu0  ;;  %v7603_v59 = vld [vmem:[%s11104_s1 + $0x3c4] sm:$0xf]  ;;  %3863 = vmatpush.bf16.msrb.mxu0 %v6963_v41 }
 0x4ab   : > { %v3671_v46 = vadd.f32 %v3670_v12, %v3538_v26  ;;  %v3803_v2 = vpop.f32.mrf.mxu3  ;;  %v3408_v52 = vadd.f32 %v3407_v9, %v9699_v45  ;;  %v3540_v5 = vpop.f32.mrf.mxu1  ;;  %v7155_v0 = vor.u32 %v7603_v59, %v7152_v1  ;;  %v7553_v26 = vld [vmem:[%s11104_s1 + $0x234] sm:$0xf]  ;;  %v11671_v9 = vld [vmem:[#allocation86_spill] sm:$0xff]  ;;  %v7144_v59 = vld [vmem:[%s11104_s1 + $0x3b8] sm:$0xf0] }
 0x4ac   : > { %3996 = vmatpush.bf16.msrb.mxu1 %v7027_v57  ;;  %v7569_v12 = vld [vmem:[%s11104_s1 + $0x2b4] sm:$0xf]  ;;  %v6955_v41 = vor.u32 %v7553_v26, %v6952_v27  ;;  %v7551_v26 = vld [vmem:[%s11104_s1 + $0x224] sm:$0xf]  ;;  %v6944_v27 = vld [vmem:[%s11104_s1 + $0x228] sm:$0xf0] }
 0x4ad   : > { %v9936_v35 = vadd.f32 %v3803_v2, %v3671_v46  ;;  %4129 = vmatpush.bf16.msrb.mxu2 %v7091_v39  ;;  %v3541_v25 = vadd.f32 %v3540_v5, %v3408_v52  ;;  %3446 = vmatmul.bf16.gmra.mxu0 %v11670_v44  ;;  %v7016_v39 = vld [vmem:[%s11104_s1 + $0x2b8] sm:$0xf0]  ;;  %v11672_v2 = vld [vmem:[#allocation87_spill] sm:$0xff]  ;;  %v11673_v1 = vld [vmem:[#allocation88_spill] sm:$0xff] }
 0x4ae   : > { %4262 = vmatpush.bf16.msrb.mxu3 %v7155_v0  ;;  %v7080_v46 = vld [vmem:[%s11104_s1 + $0x338] sm:$0xf0]  ;;  %3579 = vmatmul.bf16.gmra.mxu1 %v11671_v9  ;;  %v7019_v5 = vor.u32 %v7569_v12, %v7016_v39  ;;  %v7601_v0 = vld [vmem:[%s11104_s1 + $0x3b4] sm:$0xf]  ;;  %v7567_v12 = vld [vmem:[%s11104_s1 + $0x2a4] sm:$0xf]  ;;  %v6947_v39 = vor.u32 %v7551_v26, %v6944_v27 }
 0x4af   : > { %11669 = vst [vmem:[#allocation15_spill] sm:$0xff] %v9936_v35  ;;  %3712 = vmatmul.bf16.gmra.mxu2 %v11672_v2  ;;  %v7083_v57 = vor.u32 %v7585_v49, %v7080_v46  ;;  %3864 = vmatpush.bf16.msrb.mxu0 %v6955_v41  ;;  %v7147_v52 = vor.u32 %v7601_v0, %v7144_v59  ;;  %v7008_v41 = vld [vmem:[%s11104_s1 + $0x2a8] sm:$0xf0]  ;;  %v7583_v49 = vld [vmem:[%s11104_s1 + $0x324] sm:$0xf] }
 0x4b0   : > { %3845 = vmatmul.bf16.gmra.mxu3 %v11673_v1  ;;  %3997 = vmatpush.bf16.msrb.mxu1 %v7019_v5  ;;  %v7072_v46 = vld [vmem:[%s11104_s1 + $0x328] sm:$0xf0]  ;;  %v7599_v59 = vld [vmem:[%s11104_s1 + $0x3a4] sm:$0xf] }
 0x4b1   : > { %4130 = vmatpush.bf16.msrb.mxu2 %v7083_v57  ;;  %v7011_v57 = vor.u32 %v7567_v12, %v7008_v41  ;;  %v7075_v0 = vor.u32 %v7583_v49, %v7072_v46  ;;  %v7136_v1 = vld [vmem:[%s11104_s1 + $0x3a8] sm:$0xf0]  ;;  %v6936_v12 = vld [vmem:[%s11104_s1 + $0x218] sm:$0xf0]  ;;  %v7581_v46 = vld [vmem:[%s11104_s1 + $0x314] sm:$0xf] }
 0x4b2   : > { %v3673_v44 = vpop.f32.mrf.mxu2  ;;  %4263 = vmatpush.bf16.msrb.mxu3 %v7147_v52  ;;  %v3409_v2 = vpop.f32.mrf.mxu0  ;;  %v7139_v27 = vor.u32 %v7599_v59, %v7136_v1  ;;  %v7000_v49 = vld [vmem:[%s11104_s1 + $0x298] sm:$0xf0]  ;;  %v7547_v1 = vld [vmem:[%s11104_s1 + $0x204] sm:$0xf] }
 0x4b3   : > { %v3674_v9 = vadd.f32 %v3673_v44, %v3541_v25  ;;  %v3806_v5 = vpop.f32.mrf.mxu3  ;;  %v3410_v52 = vadd.f32 %v3409_v2, %v9699_v45  ;;  %v3542_v26 = vpop.f32.mrf.mxu1  ;;  %3865 = vmatpush.bf16.msrb.mxu0 %v6947_v39  ;;  %v7549_v25 = vld [vmem:[%s11104_s1 + $0x214] sm:$0xf] }
 0x4b4   : > { %3998 = vmatpush.bf16.msrb.mxu1 %v7011_v57  ;;  %v7565_v44 = vld [vmem:[%s11104_s1 + $0x294] sm:$0xf]  ;;  %v6939_v39 = vor.u32 %v7549_v25, %v6936_v12  ;;  %v6992_v12 = vld [vmem:[%s11104_s1 + $0x288] sm:$0xf0] }
 0x4b5   : > { %v9991_v35 = vadd.f32 %v3806_v5, %v3674_v9  ;;  %4131 = vmatpush.bf16.msrb.mxu2 %v7075_v0  ;;  %v3543_v41 = vadd.f32 %v3542_v26, %v3410_v52  ;;  %v7064_v9 = vld [vmem:[%s11104_s1 + $0x318] sm:$0xf0]  ;;  %v7003_v2 = vor.u32 %v7565_v44, %v7000_v49  ;;  %v7597_v57 = vld [vmem:[%s11104_s1 + $0x394] sm:$0xf]  ;;  %v6928_v52 = vld [vmem:[%s11104_s1 + $0x208] sm:$0xf0] }
 0x4b6   : > { %4264 = vmatpush.bf16.msrb.mxu3 %v7139_v27  ;;  %v7067_v5 = vor.u32 %v7581_v46, %v7064_v9  ;;  %v7128_v0 = vld [vmem:[%s11104_s1 + $0x398] sm:$0xf0]  ;;  %v7563_v26 = vld [vmem:[%s11104_s1 + $0x284] sm:$0xf]  ;;  %v6931_v25 = vor.u32 %v7547_v1, %v6928_v52 }
 0x4b7   : > { %11674 = vst [vmem:[#allocation16_spill] sm:$0xff] %v9991_v35  ;;  %3866 = vmatpush.bf16.msrb.mxu0 %v6939_v39  ;;  %v7131_v59 = vor.u32 %v7597_v57, %v7128_v0  ;;  %v7579_v44 = vld [vmem:[%s11104_s1 + $0x304] sm:$0xf]  ;;  %v7056_v39 = vld [vmem:[%s11104_s1 + $0x308] sm:$0xf0] }
 0x4b8   : > { %3999 = vmatpush.bf16.msrb.mxu1 %v7003_v2  ;;  %v6995_v2 = vor.u32 %v7563_v26, %v6992_v12  ;;  %v7595_v57 = vld [vmem:[%s11104_s1 + $0x384] sm:$0xf]  ;;  %v7120_v0 = vld [vmem:[%s11104_s1 + $0x388] sm:$0xf0]  ;;  %v11675_v26 = vld [vmem:[#allocation89_spill] sm:$0xff] }
 0x4b9   : > { %4132 = vmatpush.bf16.msrb.mxu2 %v7067_v5  ;;  %v7059_v5 = vor.u32 %v7579_v44, %v7056_v39  ;;  %v7123_v52 = vor.u32 %v7595_v57, %v7120_v0  ;;  %v11677_v12 = vld [vmem:[#allocation91_spill] sm:$0xff]  ;;  %v11678_v44 = vld [vmem:[#allocation92_spill] sm:$0xff] }
 0x4ba   : > { %v3675_v27 = vpop.f32.mrf.mxu2  ;;  %4265 = vmatpush.bf16.msrb.mxu3 %v7131_v59  ;;  %v3412_v46 = vpop.f32.mrf.mxu0 }
 0x4bb   : > { %v3676_v49 = vadd.f32 %v3675_v27, %v3543_v41  ;;  %v3808_v9 = vpop.f32.mrf.mxu3  ;;  %v3413_v59 = vadd.f32 %v3412_v46, %v9699_v45  ;;  %v3545_v1 = vpop.f32.mrf.mxu1  ;;  %3867 = vmatpush.bf16.msrb.mxu0 %v6931_v25  ;;  %v11676_v27 = vld [vmem:[#allocation90_spill] sm:$0xff] }
 0x4bc   : > { %4000 = vmatpush.bf16.msrb.mxu1 %v6995_v2 }
 0x4bd   : > { %v10042_v35 = vadd.f32 %v3808_v9, %v3676_v49  ;;  %4133 = vmatpush.bf16.msrb.mxu2 %v7059_v5  ;;  %v3546_v41 = vadd.f32 %v3545_v1, %v3413_v59  ;;  %3451 = vmatmul.bf16.gmra.mxu0 %v11675_v26 }
 0x4be   : > { %4266 = vmatpush.bf16.msrb.mxu3 %v7123_v52  ;;  %3584 = vmatmul.bf16.gmra.mxu1 %v11676_v27 }
 0x4bf   : > { %3717 = vmatmul.bf16.gmra.mxu2 %v11677_v12  ;;  %v11680_v12 = vld [vmem:[#allocation93_spill] sm:$0xff] }
 0x4c0   : > { %3850 = vmatmul.bf16.gmra.mxu3 %v11678_v44  ;;  %v11682_v44 = vld [vmem:[#allocation95_spill] sm:$0xff] }
 0x4c2   : > { %v3678_v39 = vpop.f32.mrf.mxu2  ;;  %v3414_v46 = vpop.f32.mrf.mxu0 }
 0x4c3   : > { %v3679_v10 = vadd.f32 %v3678_v39, %v3546_v41  ;;  %v3811_v62 = vpop.f32.mrf.mxu3  ;;  %v3415_v25 = vadd.f32 %v3414_v46, %v9699_v45  ;;  %v3547_v49 = vpop.f32.mrf.mxu1  ;;  %v11681_v41 = vld [vmem:[#allocation94_spill] sm:$0xff]  ;;  %v11683_v39 = vld [vmem:[#allocation96_spill] sm:$0xff] }
 0x4c5   : > { %v10049_v9 = vadd.f32 %v3811_v62, %v3679_v10  ;;  %v3548_v2 = vadd.f32 %v3547_v49, %v3415_v25 }
 0x4ca   : > { %v3680_v5 = vpop.f32.mrf.mxu2  ;;  %v3417_v0 = vpop.f32.mrf.mxu0 }
 0x4cb   : > { %v3681_v57 = vadd.f32 %v3680_v5, %v3548_v2  ;;  %v3813_v59 = vpop.f32.mrf.mxu3  ;;  %v3418_v1 = vadd.f32 %v3417_v0, %v9699_v45  ;;  %v3550_v52 = vpop.f32.mrf.mxu1 }
 0x4cd   : > { %v10052_v26 = vadd.f32 %v3813_v59, %v3681_v57  ;;  %v3551_v27 = vadd.f32 %v3550_v52, %v3418_v1  ;;  %3456 = vmatmul.bf16.gmra.mxu0 %v11680_v12 }
 0x4ce   : > { %3589 = vmatmul.bf16.gmra.mxu1 %v11681_v41 }
 0x4cf   : > { %11679 = vst [vmem:[#allocation127_spill] sm:$0xff] %v10052_v26  ;;  %3722 = vmatmul.bf16.gmra.mxu2 %v11682_v44  ;;  %v11686_v26 = vld [vmem:[#allocation97_spill] sm:$0xff] }
 0x4d0   : > { %3855 = vmatmul.bf16.gmra.mxu3 %v11683_v39 }
 0x4d2   : > { %v3683_v62 = vpop.f32.mrf.mxu2  ;;  %v3419_v46 = vpop.f32.mrf.mxu0 }
 0x4d3   : > { %v3684_v10 = vadd.f32 %v3683_v62, %v3551_v27  ;;  %v3816_v25 = vpop.f32.mrf.mxu3  ;;  %v3420_v49 = vadd.f32 %v3419_v46, %v9699_v45  ;;  %v3552_v2 = vpop.f32.mrf.mxu1  ;;  %v11687_v27 = vld [vmem:[#allocation98_spill] sm:$0xff]  ;;  %v11688_v62 = vld [vmem:[#allocation99_spill] sm:$0xff]  ;;  %v11689_v46 = vld [vmem:[#allocation100_spill] sm:$0xff] }
 0x4d5   : > { %v10059_v5 = vadd.f32 %v3816_v25, %v3684_v10  ;;  %v3553_v57 = vadd.f32 %v3552_v2, %v3420_v49 }
 0x4d7   : > { %11684 = vst [vmem:[#allocation128_spill] sm:$0xff] %v10059_v5  ;;  %v11692_v5 = vld [vmem:[#allocation101_spill] sm:$0xff] }
 0x4da   : > { %v3685_v0 = vpop.f32.mrf.mxu2  ;;  %v3422_v1 = vpop.f32.mrf.mxu0 }
 0x4db   : > { %v3686_v59 = vadd.f32 %v3685_v0, %v3553_v57  ;;  %v3818_v52 = vpop.f32.mrf.mxu3  ;;  %v3423_v12 = vadd.f32 %v3422_v1, %v9699_v45  ;;  %v3555_v41 = vpop.f32.mrf.mxu1 }
 0x4dd   : > { %v10062_v44 = vadd.f32 %v3818_v52, %v3686_v59  ;;  %v3556_v39 = vadd.f32 %v3555_v41, %v3423_v12  ;;  %3868 = vmatmul.bf16.vlgmr.msrb.gmra.mxu0 %v11686_v26 }
 0x4de   : > { %4001 = vmatmul.bf16.vlgmr.msrb.gmra.mxu1 %v11687_v27 }
 0x4df   : > { %11685 = vst [vmem:[#allocation17_spill] sm:$0xff] %v10062_v44  ;;  %4134 = vmatmul.bf16.vlgmr.msrb.gmra.mxu2 %v11688_v62 }
 0x4e0   : > { %4267 = vmatmul.bf16.vlgmr.msrb.gmra.mxu3 %v11689_v46 }
 0x4e2   : > { %v3688_v10 = vpop.f32.mrf.mxu2  ;;  %v3424_v49 = vpop.f32.mrf.mxu0 }
 0x4e3   : > { %v3689_v25 = vadd.f32 %v3688_v10, %v3556_v39  ;;  %v3821_v2 = vpop.f32.mrf.mxu3  ;;  %v3425_v57 = vadd.f32 %v3424_v49, %v9699_v45  ;;  %v3557_v0 = vpop.f32.mrf.mxu1  ;;  %v11693_v39 = vld [vmem:[#allocation102_spill] sm:$0xff]  ;;  %v11694_v10 = vld [vmem:[#allocation103_spill] sm:$0xff]  ;;  %v11695_v49 = vld [vmem:[#allocation104_spill] sm:$0xff] }
 0x4e5   : > { %v10069_v1 = vadd.f32 %v3821_v2, %v3689_v25  ;;  %v3558_v59 = vadd.f32 %v3557_v0, %v3425_v57 }
 0x4e7   : > { %11690 = vst [vmem:[#allocation18_spill] sm:$0xff] %v10069_v1  ;;  %v11698_v1 = vld [vmem:[#allocation105_spill] sm:$0xff] }
 0x4ea   : > { %v3690_v52 = vpop.f32.mrf.mxu2  ;;  %v3427_v41 = vpop.f32.mrf.mxu0 }
 0x4eb   : > { %v3691_v12 = vadd.f32 %v3690_v52, %v3558_v59  ;;  %v3823_v26 = vpop.f32.mrf.mxu3  ;;  %v3428_v27 = vadd.f32 %v3427_v41, %v9699_v45  ;;  %v3560_v44 = vpop.f32.mrf.mxu1 }
 0x4ed   : > { %v10072_v62 = vadd.f32 %v3823_v26, %v3691_v12  ;;  %v3561_v46 = vadd.f32 %v3560_v44, %v3428_v27  ;;  %3873 = vmatmul.bf16.gmra.mxu0 %v11692_v5 }
 0x4ee   : > { %4006 = vmatmul.bf16.gmra.mxu1 %v11693_v39 }
 0x4ef   : > { %11691 = vst [vmem:[#allocation19_spill] sm:$0xff] %v10072_v62  ;;  %4139 = vmatmul.bf16.gmra.mxu2 %v11694_v10 }
 0x4f0   : > { %4272 = vmatmul.bf16.gmra.mxu3 %v11695_v49 }
 0x4f2   : > { %v3693_v25 = vpop.f32.mrf.mxu2  ;;  %v3429_v57 = vpop.f32.mrf.mxu0 }
 0x4f3   : > { %v3694_v2 = vadd.f32 %v3693_v25, %v3561_v46  ;;  %v3826_v0 = vpop.f32.mrf.mxu3  ;;  %v3430_v59 = vadd.f32 %v3429_v57, %v9699_v45  ;;  %v3562_v52 = vpop.f32.mrf.mxu1  ;;  %v11699_v46 = vld [vmem:[#allocation106_spill] sm:$0xff]  ;;  %v11700_v25 = vld [vmem:[#allocation107_spill] sm:$0xff]  ;;  %v11701_v57 = vld [vmem:[#allocation108_spill] sm:$0xff] }
 0x4f5   : > { %v10079_v41 = vadd.f32 %v3826_v0, %v3694_v2  ;;  %v3563_v12 = vadd.f32 %v3562_v52, %v3430_v59 }
 0x4f7   : > { %11696 = vst [vmem:[#allocation20_spill] sm:$0xff] %v10079_v41  ;;  %v11704_v41 = vld [vmem:[#allocation111_spill] sm:$0xff] }
 0x4fa   : > { %v3695_v26 = vpop.f32.mrf.mxu2  ;;  %v3432_v27 = vpop.f32.mrf.mxu0 }
 0x4fb   : > { %v3696_v44 = vadd.f32 %v3695_v26, %v3563_v12  ;;  %v3828_v5 = vpop.f32.mrf.mxu3  ;;  %v3433_v39 = vadd.f32 %v3432_v27, %v9699_v45  ;;  %v3565_v62 = vpop.f32.mrf.mxu1 }
 0x4fd   : > { %v10082_v10 = vadd.f32 %v3828_v5, %v3696_v44  ;;  %v3566_v49 = vadd.f32 %v3565_v62, %v3433_v39  ;;  %3878 = vmatmul.bf16.gmra.mxu0 %v11698_v1 }
 0x4fe   : > { %4011 = vmatmul.bf16.gmra.mxu1 %v11699_v46 }
 0x4ff   : > { %11697 = vst [vmem:[#allocation133_spill] sm:$0xff] %v10082_v10  ;;  %4144 = vmatmul.bf16.gmra.mxu2 %v11700_v25 }
 0x500   : > { %4277 = vmatmul.bf16.gmra.mxu3 %v11701_v57 }
 0x502   : > { %v3698_v2 = vpop.f32.mrf.mxu2  ;;  %v3434_v59 = vpop.f32.mrf.mxu0 }
 0x503   : > { %v3699_v0 = vadd.f32 %v3698_v2, %v3566_v49  ;;  %v3831_v52 = vpop.f32.mrf.mxu3  ;;  %v3435_v12 = vadd.f32 %v3434_v59, %v9699_v45  ;;  %v3567_v26 = vpop.f32.mrf.mxu1  ;;  %v11705_v49 = vld [vmem:[#allocation112_spill] sm:$0xff]  ;;  %v11706_v2 = vld [vmem:[#allocation113_spill] sm:$0xff]  ;;  %v11707_v59 = vld [vmem:[#allocation114_spill] sm:$0xff] }
 0x505   : > { %v10089_v27 = vadd.f32 %v3831_v52, %v3699_v0  ;;  %v3568_v44 = vadd.f32 %v3567_v26, %v3435_v12 }
 0x507   : > { %11702 = vst [vmem:[#allocation21_spill] sm:$0xff] %v10089_v27  ;;  %v11710_v27 = vld [vmem:[#allocation117_spill] sm:$0xff] }
 0x50a   : > { %v3700_v5 = vpop.f32.mrf.mxu2  ;;  %v3437_v39 = vpop.f32.mrf.mxu0 }
 0x50b   : > { %v3701_v62 = vadd.f32 %v3700_v5, %v3568_v44  ;;  %v3833_v1 = vpop.f32.mrf.mxu3  ;;  %v3438_v46 = vadd.f32 %v3437_v39, %v9699_v45  ;;  %v3570_v10 = vpop.f32.mrf.mxu1 }
 0x50d   : > { %v10092_v25 = vadd.f32 %v3833_v1, %v3701_v62  ;;  %v3571_v57 = vadd.f32 %v3570_v10, %v3438_v46  ;;  %3883 = vmatmul.bf16.gmra.mxu0 %v11704_v41 }
 0x50e   : > { %4016 = vmatmul.bf16.gmra.mxu1 %v11705_v49 }
 0x50f   : > { %11703 = vst [vmem:[#allocation22_spill] sm:$0xff] %v10092_v25  ;;  %4149 = vmatmul.bf16.gmra.mxu2 %v11706_v2 }
 0x510   : > { %4282 = vmatmul.bf16.gmra.mxu3 %v11707_v59 }
 0x512   : > { %v3703_v0 = vpop.f32.mrf.mxu2  ;;  %v3439_v12 = vpop.f32.mrf.mxu0 }
 0x513   : > { %v3704_v52 = vadd.f32 %v3703_v0, %v3571_v57  ;;  %v3836_v26 = vpop.f32.mrf.mxu3  ;;  %v3440_v44 = vadd.f32 %v3439_v12, %v9699_v45  ;;  %v3572_v5 = vpop.f32.mrf.mxu1  ;;  %v11711_v57 = vld [vmem:[#allocation118_spill] sm:$0xff]  ;;  %v11712_v0 = vld [vmem:[#allocation119_spill] sm:$0xff]  ;;  %v11713_v12 = vld [vmem:[#allocation120_spill] sm:$0xff] }
 0x515   : > { %v10099_v39 = vadd.f32 %v3836_v26, %v3704_v52  ;;  %v3573_v62 = vadd.f32 %v3572_v5, %v3440_v44 }
 0x517   : > { %11708 = vst [vmem:[#allocation23_spill] sm:$0xff] %v10099_v39  ;;  %v11716_v39 = vld [vmem:[#allocation123_spill] sm:$0xff] }
 0x51a   : > { %v3705_v1 = vpop.f32.mrf.mxu2  ;;  %v3442_v46 = vpop.f32.mrf.mxu0 }
 0x51b   : > { %v3706_v10 = vadd.f32 %v3705_v1, %v3573_v62  ;;  %v3838_v41 = vpop.f32.mrf.mxu3  ;;  %v3443_v49 = vadd.f32 %v3442_v46, %v9699_v45  ;;  %v3575_v25 = vpop.f32.mrf.mxu1 }
 0x51d   : > { %v10102_v2 = vadd.f32 %v3838_v41, %v3706_v10  ;;  %v3576_v59 = vadd.f32 %v3575_v25, %v3443_v49  ;;  %3888 = vmatmul.bf16.gmra.mxu0 %v11710_v27 }
 0x51e   : > { %4021 = vmatmul.bf16.gmra.mxu1 %v11711_v57 }
 0x51f   : > { %11709 = vst [vmem:[#allocation24_spill] sm:$0xff] %v10102_v2  ;;  %4154 = vmatmul.bf16.gmra.mxu2 %v11712_v0 }
 0x520   : > { %4287 = vmatmul.bf16.gmra.mxu3 %v11713_v12 }
 0x522   : > { %v3708_v52 = vpop.f32.mrf.mxu2  ;;  %v3444_v44 = vpop.f32.mrf.mxu0 }
 0x523   : > { %v3709_v26 = vadd.f32 %v3708_v52, %v3576_v59  ;;  %v3841_v5 = vpop.f32.mrf.mxu3  ;;  %v3445_v62 = vadd.f32 %v3444_v44, %v9699_v45  ;;  %v3577_v1 = vpop.f32.mrf.mxu1  ;;  %v11717_v59 = vld [vmem:[#allocation124_spill] sm:$0xff]  ;;  %v11718_v52 = vld [vmem:[#allocation125_spill] sm:$0xff]  ;;  %v11719_v44 = vld [vmem:[#allocation126_spill] sm:$0xff] }
 0x525   : > { %v10109_v46 = vadd.f32 %v3841_v5, %v3709_v26  ;;  %v3578_v10 = vadd.f32 %v3577_v1, %v3445_v62 }
 0x527   : > { %11714 = vst [vmem:[#allocation138_spill] sm:$0xff] %v10109_v46  ;;  %v11722_v46 = vld [vmem:[#allocation129_spill] sm:$0xff] }
 0x52a   : > { %v3710_v41 = vpop.f32.mrf.mxu2  ;;  %v3447_v49 = vpop.f32.mrf.mxu0 }
 0x52b   : > { %v3711_v25 = vadd.f32 %v3710_v41, %v3578_v10  ;;  %v3843_v27 = vpop.f32.mrf.mxu3  ;;  %v3448_v57 = vadd.f32 %v3447_v49, %v9699_v45  ;;  %v3580_v2 = vpop.f32.mrf.mxu1 }
 0x52d   : > { %v10112_v0 = vadd.f32 %v3843_v27, %v3711_v25  ;;  %v3581_v12 = vadd.f32 %v3580_v2, %v3448_v57  ;;  %3893 = vmatmul.bf16.gmra.mxu0 %v11716_v39 }
 0x52e   : > { %4026 = vmatmul.bf16.gmra.mxu1 %v11717_v59 }
 0x52f   : > { %11715 = vst [vmem:[#allocation139_spill] sm:$0xff] %v10112_v0  ;;  %4159 = vmatmul.bf16.gmra.mxu2 %v11718_v52 }
 0x530   : > { %4292 = vmatmul.bf16.gmra.mxu3 %v11719_v44 }
 0x532   : > { %v3713_v26 = vpop.f32.mrf.mxu2  ;;  %v3449_v62 = vpop.f32.mrf.mxu0 }
 0x533   : > { %v3714_v5 = vadd.f32 %v3713_v26, %v3581_v12  ;;  %v3846_v1 = vpop.f32.mrf.mxu3  ;;  %v3450_v10 = vadd.f32 %v3449_v62, %v9699_v45  ;;  %v3582_v41 = vpop.f32.mrf.mxu1  ;;  %v11723_v12 = vld [vmem:[#allocation130_spill] sm:$0xff]  ;;  %v11724_v26 = vld [vmem:[#allocation131_spill] sm:$0xff]  ;;  %v11725_v62 = vld [vmem:[#allocation132_spill] sm:$0xff] }
 0x535   : > { %v10119_v49 = vadd.f32 %v3846_v1, %v3714_v5  ;;  %v3583_v25 = vadd.f32 %v3582_v41, %v3450_v10 }
 0x537   : > { %11720 = vst [vmem:[#allocation25_spill] sm:$0xff] %v10119_v49  ;;  %v11726_v49 = vld [vmem:[#allocation134_spill] sm:$0xff] }
 0x53a   : > { %v3715_v27 = vpop.f32.mrf.mxu2  ;;  %v3452_v57 = vpop.f32.mrf.mxu0 }
 0x53b   : > { %v3716_v2 = vadd.f32 %v3715_v27, %v3583_v25  ;;  %v3848_v39 = vpop.f32.mrf.mxu3  ;;  %v3453_v59 = vadd.f32 %v3452_v57, %v9699_v45  ;;  %v3585_v0 = vpop.f32.mrf.mxu1 }
 0x53d   : > { %v10122_v52 = vadd.f32 %v3848_v39, %v3716_v2  ;;  %v3586_v44 = vadd.f32 %v3585_v0, %v3453_v59  ;;  %3898 = vmatmul.bf16.gmra.mxu0 %v11722_v46 }
 0x53e   : > { %4031 = vmatmul.bf16.gmra.mxu1 %v11723_v12 }
 0x53f   : > { %11721 = vst [vmem:[#allocation26_spill] sm:$0xff] %v10122_v52  ;;  %4164 = vmatmul.bf16.gmra.mxu2 %v11724_v26 }
 0x540   : > { %4297 = vmatmul.bf16.gmra.mxu3 %v11725_v62 }
 0x542   : > { %v3718_v5 = vpop.f32.mrf.mxu2  ;;  %v3454_v10 = vpop.f32.mrf.mxu0 }
 0x543   : > { %v3719_v1 = vadd.f32 %v3718_v5, %v3586_v44  ;;  %v3851_v41 = vpop.f32.mrf.mxu3  ;;  %v3455_v25 = vadd.f32 %v3454_v10, %v9699_v45  ;;  %v3587_v27 = vpop.f32.mrf.mxu1  ;;  %v11727_v44 = vld [vmem:[#allocation135_spill] sm:$0xff]  ;;  %v11728_v5 = vld [vmem:[#allocation136_spill] sm:$0xff]  ;;  %v11729_v10 = vld [vmem:[#allocation137_spill] sm:$0xff] }
 0x545   : > { %v10129_v57 = vadd.f32 %v3851_v41, %v3719_v1  ;;  %v3588_v2 = vadd.f32 %v3587_v27, %v3455_v25 }
 0x54a   : > { %v3720_v39 = vpop.f32.mrf.mxu2  ;;  %v3457_v59 = vpop.f32.mrf.mxu0 }
 0x54b   : > { %v3721_v0 = vadd.f32 %v3720_v39, %v3588_v2  ;;  %v3853_v46 = vpop.f32.mrf.mxu3  ;;  %v3458_v12 = vadd.f32 %v3457_v59, %v9699_v45  ;;  %v3590_v52 = vpop.f32.mrf.mxu1 }
 0x54d   : > { %v10132_v26 = vadd.f32 %v3853_v46, %v3721_v0  ;;  %v3591_v62 = vadd.f32 %v3590_v52, %v3458_v12  ;;  %3903 = vmatmul.bf16.gmra.mxu0 %v11726_v49  ;;  %v11731_v12 = vld [vmem:[#allocation140_spill] sm:$0xff] }
 0x54e   : > { %4036 = vmatmul.bf16.gmra.mxu1 %v11727_v44  ;;  %v11732_v44 = vld [vmem:[#allocation141_spill] sm:$0xff] }
 0x54f   : > { %4169 = vmatmul.bf16.gmra.mxu2 %v11728_v5  ;;  %v11733_v5 = vld [vmem:[#allocation142_spill] sm:$0xff] }
 0x550   : > { %4302 = vmatmul.bf16.gmra.mxu3 %v11729_v10  ;;  %v11734_v10 = vld [vmem:[#allocation143_spill] sm:$0xff] }
 0x552   : > { %v3723_v1 = vpop.f32.mrf.mxu2  ;;  %v3459_v25 = vpop.f32.mrf.mxu0 }
 0x553   : > { %v3724_v41 = vadd.f32 %v3723_v1, %v3591_v62  ;;  %v3856_v27 = vpop.f32.mrf.mxu3  ;;  %v3592_v2 = vpop.f32.mrf.mxu1 }
 0x555   : > { %v10138_v39 = vadd.f32 %v3856_v27, %v3724_v41 }
 0x557   : > { %11730 = vst [vmem:[#allocation27_spill] sm:$0xff] %v10138_v39 }
 0x55a   : > { %v3725_v45 = vpop.f32.mrf.mxu2  ;;  %v3869_v0 = vpop.f32.mrf.mxu0 }
 0x55b   : > { %v3858_v59 = vpop.f32.mrf.mxu3  ;;  %v3870_v52 = vadd.f32 %v3869_v0, %v9707_v20  ;;  %v4002_v46 = vpop.f32.mrf.mxu1 }
 0x55d   : > { %v4003_v49 = vadd.f32 %v4002_v46, %v3870_v52  ;;  %3908 = vmatmul.bf16.gmra.mxu0 %v11731_v12 }
 0x55e   : > { %4041 = vmatmul.bf16.gmra.mxu1 %v11732_v44 }
 0x55f   : > { %4174 = vmatmul.bf16.gmra.mxu2 %v11733_v5 }
 0x560   : > { %4307 = vmatmul.bf16.gmra.mxu3 %v11734_v10 }
 0x562   : > { %v4135_v62 = vpop.f32.mrf.mxu2  ;;  %v3871_v25 = vpop.f32.mrf.mxu0 }
 0x563   : > { %v4136_v1 = vadd.f32 %v4135_v62, %v4003_v49  ;;  %v4268_v41 = vpop.f32.mrf.mxu3  ;;  %v3872_v27 = vadd.f32 %v3871_v25, %v9710_v32  ;;  %v4004_v2 = vpop.f32.mrf.mxu1  ;;  %v11735_v32 = vld [vmem:[#allocation144_spill] sm:$0xff]  ;;  %v11736_v62 = vld [vmem:[#allocation145_spill] sm:$0xff] }
 0x565   : > { %v4269_v45 = vadd.f32 %v4268_v41, %v4136_v1  ;;  %v4005_v59 = vadd.f32 %v4004_v2, %v3872_v27 }
 0x567   : > { %v4491_v39 = vmul.f32 0.01, %v4269_v45  ;;  %vm4393_vm0 = vcmp.gt.f32.partialorder %v4269_v45, 0.0 }
 0x569   : > { %v10151_v1 = vsel %vm4393_vm0, %v4269_v45, %v4491_v39 }
 0x56a   : > { %v4137_v20 = vpop.f32.mrf.mxu2  ;;  %v3874_v52 = vpop.f32.mrf.mxu0 }
 0x56b   : > { %v4138_v0 = vadd.f32 %v4137_v20, %v4005_v59  ;;  %v4270_v46 = vpop.f32.mrf.mxu3  ;;  %v3875_v12 = vadd.f32 %v3874_v52, %v9717_v19  ;;  %v4007_v44 = vpop.f32.mrf.mxu1 }
 0x56d   : > { %v4271_v5 = vadd.f32 %v4270_v46, %v4138_v0  ;;  %v4008_v10 = vadd.f32 %v4007_v44, %v3875_v12  ;;  %3913 = vmatmul.bf16.gmra.mxu0 %v8958_v53 }
 0x56e   : > { %4046 = vmatmul.bf16.gmra.mxu1 %v8960_v33 }
 0x56f   : > { %vm4395_vm1 = vcmp.gt.f32.partialorder %v4271_v5, 0.0  ;;  %v4493_v49 = vmul.f32 0.01, %v4271_v5  ;;  %4179 = vmatmul.bf16.gmra.mxu2 %v11735_v32 }
 0x570   : > { %4312 = vmatmul.bf16.gmra.mxu3 %v11736_v62  ;;  %v11738_v62 = vld [vmem:[#allocation149_spill] sm:$0xff] }
 0x571   : > { %v10153_v25 = vsel %vm4395_vm1, %v4271_v5, %v4493_v49 }
 0x572   : > { %v4687_v19 = vpack.c.bf16 %v10153_v25, %v10151_v1  ;;  %v4140_v41 = vpop.f32.mrf.mxu2  ;;  %v3876_v2 = vpop.f32.mrf.mxu0 }
 0x573   : > { %v4141_v27 = vadd.f32 %v4140_v41, %v4008_v10  ;;  %v4273_v59 = vpop.f32.mrf.mxu3  ;;  %v3877_v53 = vadd.f32 %v3876_v2, %v9720_v55  ;;  %v4009_v20 = vpop.f32.mrf.mxu1  ;;  %v11737_v55 = vld [vmem:[#allocation148_spill] sm:$0xff] }
 0x575   : > { %v4274_v0 = vadd.f32 %v4273_v59, %v4141_v27  ;;  %v4010_v33 = vadd.f32 %v4009_v20, %v3877_v53 }
 0x577   : > { %v4495_v5 = vmul.f32 0.01, %v4274_v0  ;;  %vm4397_vm2 = vcmp.gt.f32.partialorder %v4274_v0, 0.0 }
 0x579   : > { %v10163_v41 = vsel %vm4397_vm2, %v4274_v0, %v4495_v5 }
 0x57a   : > { %v4142_v52 = vpop.f32.mrf.mxu2  ;;  %v3879_v12 = vpop.f32.mrf.mxu0 }
 0x57b   : > { %v4143_v46 = vadd.f32 %v4142_v52, %v4010_v33  ;;  %v4275_v44 = vpop.f32.mrf.mxu3  ;;  %v3880_v39 = vadd.f32 %v3879_v12, %v9727_v56  ;;  %v4012_v45 = vpop.f32.mrf.mxu1 }
 0x57d   : > { %v4276_v49 = vadd.f32 %v4275_v44, %v4143_v46  ;;  %v4013_v32 = vadd.f32 %v4012_v45, %v3880_v39  ;;  %3918 = vmatmul.bf16.gmra.mxu0 %v8986_v3 }
 0x57e   : > { %4051 = vmatmul.bf16.gmra.mxu1 %v8988_v63 }
 0x57f   : > { %vm4399_vm3 = vcmp.gt.f32.partialorder %v4276_v49, 0.0  ;;  %v4497_v10 = vmul.f32 0.01, %v4276_v49  ;;  %4184 = vmatmul.bf16.gmra.mxu2 %v11737_v55  ;;  %v11740_v55 = vld [vmem:[#allocation153_spill] sm:$0xff] }
 0x580   : > { %4317 = vmatmul.bf16.gmra.mxu3 %v11738_v62 }
 0x581   : > { %v10165_v27 = vsel %vm4399_vm3, %v4276_v49, %v4497_v10 }
 0x582   : > { %v4145_v56 = vpop.f32.mrf.mxu2  ;;  %v4689_v2 = vpack.c.bf16 %v10165_v27, %v10163_v41  ;;  %v3881_v53 = vpop.f32.mrf.mxu0  ;;  %v7634_v41 = vld [vmem:[%s11108_s5 + $0x38] sm:$0xff] }
 0x583   : > { %v4146_v59 = vadd.f32 %v4145_v56, %v4013_v32  ;;  %v4278_v20 = vpop.f32.mrf.mxu3  ;;  %v3882_v3 = vadd.f32 %v3881_v53, %v9730_v13  ;;  %v4014_v33 = vpop.f32.mrf.mxu1  ;;  %v11739_v13 = vld [vmem:[#allocation152_spill] sm:$0xff]  ;;  %5374 = vmatpush.bf16.msra.mxu2 %v7634_v41 }
 0x585   : > { %v4279_v52 = vadd.f32 %v4278_v20, %v4146_v59  ;;  %v4015_v63 = vadd.f32 %v4014_v33, %v3882_v3 }
 0x587   : > { %v4499_v5 = vmul.f32 0.01, %v4279_v52  ;;  %vm4401_vm4 = vcmp.gt.f32.partialorder %v4279_v52, 0.0 }
 0x589   : > { %v10175_v62 = vsel %vm4401_vm4, %v4279_v52, %v4499_v5 }
 0x58a   : > { %v4147_v46 = vpop.f32.mrf.mxu2  ;;  %v3884_v44 = vpop.f32.mrf.mxu0 }
 0x58b   : > { %v4148_v12 = vadd.f32 %v4147_v46, %v4015_v63  ;;  %v4280_v39 = vpop.f32.mrf.mxu3  ;;  %v3885_v0 = vadd.f32 %v3884_v44, %v9737_v15  ;;  %v4017_v45 = vpop.f32.mrf.mxu1 }
 0x58d   : > { %v4281_v49 = vadd.f32 %v4280_v39, %v4148_v12  ;;  %v4018_v10 = vadd.f32 %v4017_v45, %v3885_v0  ;;  %3923 = vmatmul.bf16.gmra.mxu0 %v9014_v61 }
 0x58e   : > { %4056 = vmatmul.bf16.gmra.mxu1 %v9016_v18 }
 0x58f   : > { %vm4403_vm5 = vcmp.gt.f32.partialorder %v4281_v49, 0.0  ;;  %v4501_v32 = vmul.f32 0.01, %v4281_v49  ;;  %4189 = vmatmul.bf16.gmra.mxu2 %v11739_v13 }
 0x590   : > { %4322 = vmatmul.bf16.gmra.mxu3 %v11740_v55 }
 0x591   : > { %v10177_v56 = vsel %vm4403_vm5, %v4281_v49, %v4501_v32  ;;  %v11742_v32 = vld [vmem:[#allocation157_spill] sm:$0xff] }
 0x592   : > { %v4150_v15 = vpop.f32.mrf.mxu2  ;;  %v4691_v59 = vpack.c.bf16 %v10177_v56, %v10175_v62  ;;  %v3886_v20 = vpop.f32.mrf.mxu0 }
 0x593   : > { %v4151_v53 = vadd.f32 %v4150_v15, %v4018_v10  ;;  %v4283_v3 = vpop.f32.mrf.mxu3  ;;  %v3887_v61 = vadd.f32 %v3886_v20, %v9740_v11  ;;  %v4019_v33 = vpop.f32.mrf.mxu1  ;;  %v11741_v11 = vld [vmem:[#allocation156_spill] sm:$0xff] }
 0x595   : > { %v4284_v63 = vadd.f32 %v4283_v3, %v4151_v53  ;;  %v4020_v18 = vadd.f32 %v4019_v33, %v3887_v61 }
 0x597   : > { %v4503_v45 = vmul.f32 0.01, %v4284_v63  ;;  %vm4405_vm6 = vcmp.gt.f32.partialorder %v4284_v63, 0.0 }
 0x599   : > { %v10187_v13 = vsel %vm4405_vm6, %v4284_v63, %v4503_v45 }
 0x59a   : > { %v4152_v46 = vpop.f32.mrf.mxu2  ;;  %v3889_v44 = vpop.f32.mrf.mxu0 }
 0x59b   : > { %v4153_v12 = vadd.f32 %v4152_v46, %v4020_v18  ;;  %v4285_v39 = vpop.f32.mrf.mxu3  ;;  %v3890_v52 = vadd.f32 %v3889_v44, %v9747_v60  ;;  %v4022_v0 = vpop.f32.mrf.mxu1 }
 0x59d   : > { %v4286_v5 = vadd.f32 %v4285_v39, %v4153_v12  ;;  %v4023_v49 = vadd.f32 %v4022_v0, %v3890_v52  ;;  %3928 = vmatmul.bf16.gmra.mxu0 %v9042_v16 }
 0x59e   : > { %4061 = vmatmul.bf16.gmra.mxu1 %v9044_v31 }
 0x59f   : > { %vm4407_vm7 = vcmp.gt.f32.partialorder %v4286_v5, 0.0  ;;  %v4505_v10 = vmul.f32 0.01, %v4286_v5  ;;  %4194 = vmatmul.bf16.gmra.mxu2 %v11741_v11 }
 0x5a0   : > { %4327 = vmatmul.bf16.gmra.mxu3 %v11742_v32 }
 0x5a1   : > { %v10189_v55 = vsel %vm4407_vm7, %v4286_v5, %v4505_v10 }
 0x5a2   : > { %v4155_v60 = vpop.f32.mrf.mxu2  ;;  %v4693_v15 = vpack.c.bf16 %v10189_v55, %v10187_v13  ;;  %v3891_v20 = vpop.f32.mrf.mxu0 }
 0x5a3   : > { %v4156_v53 = vadd.f32 %v4155_v60, %v4023_v49  ;;  %v4288_v3 = vpop.f32.mrf.mxu3  ;;  %v3892_v16 = vadd.f32 %v3891_v20, %v9750_v36  ;;  %v4024_v61 = vpop.f32.mrf.mxu1  ;;  %v11743_v36 = vld [vmem:[#allocation160_spill] sm:$0xff]  ;;  %v11744_v49 = vld [vmem:[#allocation161_spill] sm:$0xff] }
 0x5a5   : > { %v4289_v33 = vadd.f32 %v4288_v3, %v4156_v53  ;;  %v4025_v31 = vadd.f32 %v4024_v61, %v3892_v16 }
 0x5a7   : > { %v4507_v52 = vmul.f32 0.01, %v4289_v33  ;;  %vm4409_vm8 = vcmp.gt.f32.partialorder %v4289_v33, 0.0 }
 0x5a9   : > { %v10199_v10 = vsel %vm4409_vm8, %v4289_v33, %v4507_v52 }
 0x5aa   : > { %v4157_v18 = vpop.f32.mrf.mxu2  ;;  %v3894_v12 = vpop.f32.mrf.mxu0 }
 0x5ab   : > { %v4158_v46 = vadd.f32 %v4157_v18, %v4025_v31  ;;  %v4290_v44 = vpop.f32.mrf.mxu3  ;;  %v3895_v63 = vadd.f32 %v3894_v12, %v9757_v43  ;;  %v4027_v39 = vpop.f32.mrf.mxu1 }
 0x5ad   : > { %v4291_v0 = vadd.f32 %v4290_v44, %v4158_v46  ;;  %v4028_v45 = vadd.f32 %v4027_v39, %v3895_v63  ;;  %3933 = vmatmul.bf16.gmra.mxu0 %v9070_v22 }
 0x5ae   : > { %4066 = vmatmul.bf16.gmra.mxu1 %v9072_v50 }
 0x5af   : > { %vm4411_vm9 = vcmp.gt.f32.partialorder %v4291_v0, 0.0  ;;  %v4509_v5 = vmul.f32 0.01, %v4291_v0  ;;  %4199 = vmatmul.bf16.gmra.mxu2 %v11743_v36 }
 0x5b0   : > { %4332 = vmatmul.bf16.gmra.mxu3 %v11744_v49 }
 0x5b1   : > { %v10201_v11 = vsel %vm4411_vm9, %v4291_v0, %v4509_v5  ;;  %v11746_v0 = vld [vmem:[#allocation165_spill] sm:$0xff] }
 0x5b2   : > { %v4160_v43 = vpop.f32.mrf.mxu2  ;;  %v4695_v32 = vpack.c.bf16 %v10201_v11, %v10199_v10  ;;  %v3896_v53 = vpop.f32.mrf.mxu0  ;;  %v7633_v10 = vld [vmem:[%s11108_s5 + $0x30] sm:$0xff] }
 0x5b3   : > { %v4161_v60 = vadd.f32 %v4160_v43, %v4028_v45  ;;  %v4293_v20 = vpop.f32.mrf.mxu3  ;;  %v3897_v22 = vadd.f32 %v3896_v53, %v9760_v24  ;;  %v4029_v3 = vpop.f32.mrf.mxu1  ;;  %v11745_v24 = vld [vmem:[#allocation164_spill] sm:$0xff]  ;;  %5375 = vmatpush.bf16.msra.mxu2 %v7633_v10 }
 0x5b5   : > { %v4294_v16 = vadd.f32 %v4293_v20, %v4161_v60  ;;  %v4030_v50 = vadd.f32 %v4029_v3, %v3897_v22 }
 0x5b7   : > { %v4511_v44 = vmul.f32 0.01, %v4294_v16  ;;  %vm4413_vm10 = vcmp.gt.f32.partialorder %v4294_v16, 0.0 }
 0x5b9   : > { %v10211_v45 = vsel %vm4413_vm10, %v4294_v16, %v4511_v44  ;;  %v11748_v44 = vld [vmem:[#allocation169_spill] sm:$0xff] }
 0x5ba   : > { %v4162_v61 = vpop.f32.mrf.mxu2  ;;  %v3899_v18 = vpop.f32.mrf.mxu0 }
 0x5bb   : > { %v4163_v31 = vadd.f32 %v4162_v61, %v4030_v50  ;;  %v4295_v46 = vpop.f32.mrf.mxu3  ;;  %v3900_v33 = vadd.f32 %v3899_v18, %v9767_v54  ;;  %v4032_v12 = vpop.f32.mrf.mxu1 }
 0x5bd   : > { %v4296_v63 = vadd.f32 %v4295_v46, %v4163_v31  ;;  %v4033_v39 = vadd.f32 %v4032_v12, %v3900_v33  ;;  %3938 = vmatmul.bf16.gmra.mxu0 %v9098_v48 }
 0x5be   : > { %4071 = vmatmul.bf16.gmra.mxu1 %v9100_v6 }
 0x5bf   : > { %vm4415_vm11 = vcmp.gt.f32.partialorder %v4296_v63, 0.0  ;;  %v4513_v52 = vmul.f32 0.01, %v4296_v63  ;;  %4204 = vmatmul.bf16.gmra.mxu2 %v11745_v24 }
 0x5c0   : > { %4337 = vmatmul.bf16.gmra.mxu3 %v11746_v0 }
 0x5c1   : > { %v10213_v5 = vsel %vm4415_vm11, %v4296_v63, %v4513_v52 }
 0x5c2   : > { %v4165_v54 = vpop.f32.mrf.mxu2  ;;  %v4697_v36 = vpack.c.bf16 %v10213_v5, %v10211_v45  ;;  %v3901_v43 = vpop.f32.mrf.mxu0  ;;  %v7631_v5 = vld [vmem:[%s11108_s5 + $0x20] sm:$0xff] }
 0x5c3   : > { %v4166_v49 = vadd.f32 %v4165_v54, %v4033_v39  ;;  %v4298_v60 = vpop.f32.mrf.mxu3  ;;  %v3902_v48 = vadd.f32 %v3901_v43, %v9770_v14  ;;  %v4034_v53 = vpop.f32.mrf.mxu1  ;;  %v11747_v14 = vld [vmem:[#allocation168_spill] sm:$0xff] }
 0x5c5   : > { %v4299_v20 = vadd.f32 %v4298_v60, %v4166_v49  ;;  %v4035_v6 = vadd.f32 %v4034_v53, %v3902_v48 }
 0x5c7   : > { %v4515_v18 = vmul.f32 0.01, %v4299_v20  ;;  %vm4417_vm12 = vcmp.gt.f32.partialorder %v4299_v20, 0.0 }
 0x5c9   : > { %v10223_v63 = vsel %vm4417_vm12, %v4299_v20, %v4515_v18 }
 0x5ca   : > { %v4167_v22 = vpop.f32.mrf.mxu2  ;;  %v3904_v50 = vpop.f32.mrf.mxu0 }
 0x5cb   : > { %v4168_v3 = vadd.f32 %v4167_v22, %v4035_v6  ;;  %v4300_v61 = vpop.f32.mrf.mxu3  ;;  %v3905_v16 = vadd.f32 %v3904_v50, %v9777_v34  ;;  %v4037_v31 = vpop.f32.mrf.mxu1 }
 0x5cd   : > { %v4301_v46 = vadd.f32 %v4300_v61, %v4168_v3  ;;  %v4038_v33 = vadd.f32 %v4037_v31, %v3905_v16  ;;  %3943 = vmatmul.bf16.gmra.mxu0 %v9126_v4  ;;  %v11750_v31 = vld [vmem:[#allocation173_spill] sm:$0xff] }
 0x5ce   : > { %4076 = vmatmul.bf16.gmra.mxu1 %v9128_v23 }
 0x5cf   : > { %vm4419_vm13 = vcmp.gt.f32.partialorder %v4301_v46, 0.0  ;;  %v4517_v12 = vmul.f32 0.01, %v4301_v46  ;;  %4209 = vmatmul.bf16.gmra.mxu2 %v11747_v14 }
 0x5d0   : > { %4342 = vmatmul.bf16.gmra.mxu3 %v11748_v44 }
 0x5d1   : > { %v10225_v39 = vsel %vm4419_vm13, %v4301_v46, %v4517_v12 }
 0x5d2   : > { %v4170_v34 = vpop.f32.mrf.mxu2  ;;  %v4699_v52 = vpack.c.bf16 %v10225_v39, %v10223_v63  ;;  %v3906_v0 = vpop.f32.mrf.mxu0 }
 0x5d3   : > { %v4171_v24 = vadd.f32 %v4170_v34, %v4038_v33  ;;  %v4303_v54 = vpop.f32.mrf.mxu3  ;;  %v3907_v4 = vadd.f32 %v3906_v0, %v9780_v58  ;;  %v4039_v49 = vpop.f32.mrf.mxu1  ;;  %v11749_v58 = vld [vmem:[#allocation172_spill] sm:$0xff] }
 0x5d5   : > { %v4304_v43 = vadd.f32 %v4303_v54, %v4171_v24  ;;  %v4040_v23 = vadd.f32 %v4039_v49, %v3907_v4 }
 0x5d7   : > { %v4519_v3 = vmul.f32 0.01, %v4304_v43  ;;  %vm4421_vm14 = vcmp.gt.f32.partialorder %v4304_v43, 0.0 }
 0x5d9   : > { %v10235_v18 = vsel %vm4421_vm14, %v4304_v43, %v4519_v3 }
 0x5da   : > { %v4172_v60 = vpop.f32.mrf.mxu2  ;;  %v3909_v53 = vpop.f32.mrf.mxu0 }
 0x5db   : > { %v4173_v48 = vadd.f32 %v4172_v60, %v4040_v23  ;;  %v4305_v6 = vpop.f32.mrf.mxu3  ;;  %v3910_v20 = vadd.f32 %v3909_v53, %v9787_v38  ;;  %v4042_v22 = vpop.f32.mrf.mxu1 }
 0x5dd   : > { %v4306_v50 = vadd.f32 %v4305_v6, %v4173_v48  ;;  %v4043_v61 = vadd.f32 %v4042_v22, %v3910_v20  ;;  %3948 = vmatmul.bf16.gmra.mxu0 %v9154_v51 }
 0x5de   : > { %4081 = vmatmul.bf16.gmra.mxu1 %v9156_v47 }
 0x5df   : > { %vm4423_vm15 = vcmp.gt.f32.partialorder %v4306_v50, 0.0  ;;  %v4521_v16 = vmul.f32 0.01, %v4306_v50  ;;  %4214 = vmatmul.bf16.gmra.mxu2 %v11749_v58 }
 0x5e0   : > { %4347 = vmatmul.bf16.gmra.mxu3 %v11750_v31 }
 0x5e1   : > { %v10237_v46 = vsel %vm4423_vm15, %v4306_v50, %v4521_v16 }
 0x5e2   : > { %v4175_v38 = vpop.f32.mrf.mxu2  ;;  %v4701_v33 = vpack.c.bf16 %v10237_v46, %v10235_v18  ;;  %v3911_v14 = vpop.f32.mrf.mxu0 }
 0x5e3   : > { %v4176_v12 = vadd.f32 %v4175_v38, %v4043_v61  ;;  %v4308_v44 = vpop.f32.mrf.mxu3  ;;  %v3912_v51 = vadd.f32 %v3911_v14, %v9790_v42  ;;  %v4044_v34 = vpop.f32.mrf.mxu1  ;;  %v11751_v42 = vld [vmem:[#allocation176_spill] sm:$0xff] }
 0x5e5   : > { %v4309_v24 = vadd.f32 %v4308_v44, %v4176_v12  ;;  %v4045_v47 = vadd.f32 %v4044_v34, %v3912_v51  ;;  %v7626_v51 = vld [vmem:[%s11106_s3 + $0x78] sm:$0xff] }
 0x5e6   : > { %5001 = vmatpush.bf16.msra.mxu1 %v7626_v51 }
 0x5e7   : > { %v4523_v60 = vmul.f32 0.01, %v4309_v24  ;;  %vm4425_vm0 = vcmp.gt.f32.partialorder %v4309_v24, 0.0 }
 0x5e9   : > { %v10247_v20 = vsel %vm4425_vm0, %v4309_v24, %v4523_v60 }
 0x5ea   : > { %v4177_v0 = vpop.f32.mrf.mxu2  ;;  %v3914_v4 = vpop.f32.mrf.mxu0 }
 0x5eb   : > { %v4178_v54 = vadd.f32 %v4177_v0, %v4045_v47  ;;  %v4310_v49 = vpop.f32.mrf.mxu3  ;;  %v3915_v43 = vadd.f32 %v3914_v4, %v9797_v40  ;;  %v4047_v23 = vpop.f32.mrf.mxu1  ;;  %v11752_v4 = vld [vmem:[#allocation179_spill] sm:$0xff] }
 0x5ed   : > { %v4311_v48 = vadd.f32 %v4310_v49, %v4178_v54  ;;  %v4048_v53 = vadd.f32 %v4047_v23, %v3915_v43  ;;  %3953 = vmatmul.bf16.gmra.mxu0 %v9182_v7  ;;  %v11753_v49 = vld [vmem:[#allocation180_spill] sm:$0xff]  ;;  %v11754_v43 = vld [vmem:[#allocation181_spill] sm:$0xff] }
 0x5ee   : > { %4086 = vmatmul.bf16.gmra.mxu1 %v9184_v29 }
 0x5ef   : > { %vm4427_vm1 = vcmp.gt.f32.partialorder %v4311_v48, 0.0  ;;  %v4525_v6 = vmul.f32 0.01, %v4311_v48  ;;  %4219 = vmatmul.bf16.gmra.mxu2 %v9186_v21  ;;  %v7618_v21 = vld [vmem:[%s11106_s3 + $0x38] sm:$0xff] }
 0x5f0   : > { %4352 = vmatmul.bf16.gmra.mxu3 %v11751_v42  ;;  %4868 = vmatpush.bf16.msra.mxu0 %v7618_v21 }
 0x5f1   : > { %v10249_v22 = vsel %vm4427_vm1, %v4311_v48, %v4525_v6 }
 0x5f2   : > { %v4180_v40 = vpop.f32.mrf.mxu2  ;;  %v4703_v3 = vpack.c.bf16 %v10249_v22, %v10247_v20  ;;  %v3916_v61 = vpop.f32.mrf.mxu0  ;;  %v11828_v20 = vld [vmem:[#allocation183_spill] sm:$0xff]  ;;  %v11829_v22 = vld [vmem:[#allocation182_spill] sm:$0xff] }
 0x5f3   : > { %v4181_v50 = vadd.f32 %v4180_v40, %v4048_v53  ;;  %v4313_v16 = vpop.f32.mrf.mxu3  ;;  %v3917_v7 = vadd.f32 %v3916_v61, %v9812_v17  ;;  %v4049_v58 = vpop.f32.mrf.mxu1 }
 0x5f5   : > { %v4314_v31 = vadd.f32 %v4313_v16, %v4181_v50  ;;  %v4050_v29 = vadd.f32 %v4049_v58, %v3917_v7 }
 0x5f7   : > { %v4527_v17 = vmul.f32 0.01, %v4314_v31  ;;  %vm4429_vm2 = vcmp.gt.f32.partialorder %v4314_v31, 0.0 }
 0x5f9   : > { %v10265_v23 = vsel %vm4429_vm2, %v4314_v31, %v4527_v17 }
 0x5fa   : > { %v4182_v38 = vpop.f32.mrf.mxu2  ;;  %v3919_v14 = vpop.f32.mrf.mxu0 }
 0x5fb   : > { %v4183_v12 = vadd.f32 %v4182_v38, %v4050_v29  ;;  %v4315_v44 = vpop.f32.mrf.mxu3  ;;  %v3920_v34 = vadd.f32 %v3919_v14, %v9819_v28  ;;  %v4052_v24 = vpop.f32.mrf.mxu1 }
 0x5fd   : > { %v4316_v47 = vadd.f32 %v4315_v44, %v4183_v12  ;;  %v4053_v0 = vadd.f32 %v4052_v24, %v3920_v34  ;;  %3958 = vmatmul.bf16.gmra.mxu0 %v9216_v8  ;;  %v11755_v44 = vld [vmem:[#allocation184_spill] sm:$0xff]  ;;  %v11756_v34 = vld [vmem:[#allocation185_spill] sm:$0xff]  ;;  %v11758_v24 = vld [vmem:[#allocation187_spill] sm:$0xff] }
 0x5fe   : > { %4091 = vmatmul.bf16.gmra.mxu1 %v11752_v4 }
 0x5ff   : > { %vm4431_vm3 = vcmp.gt.f32.partialorder %v4316_v47, 0.0  ;;  %v4529_v54 = vmul.f32 0.01, %v4316_v47  ;;  %4224 = vmatmul.bf16.gmra.mxu2 %v11753_v49 }
 0x600   : > { %4357 = vmatmul.bf16.gmra.mxu3 %v11754_v43  ;;  %v11759_v43 = vld [vmem:[#allocation121_spill] sm:$0xff] }
 0x601   : > { %v10267_v60 = vsel %vm4431_vm3, %v4316_v47, %v4529_v54 }
 0x602   : > { %v4185_v28 = vpop.f32.mrf.mxu2  ;;  %v3921_v6 = vpop.f32.mrf.mxu0 }
 0x603   : > { %v4186_v53 = vadd.f32 %v4185_v28, %v4053_v0  ;;  %v4318_v42 = vpop.f32.mrf.mxu3  ;;  %v3922_v8 = vadd.f32 %v3921_v6, %v9822_v30  ;;  %v4054_v40 = vpop.f32.mrf.mxu1  ;;  %v11757_v30 = vld [vmem:[#allocation186_spill] sm:$0xff] }
 0x605   : > { %v4319_v50 = vadd.f32 %v4318_v42, %v4186_v53  ;;  %v4055_v61 = vadd.f32 %v4054_v40, %v3922_v8 }
 0x607   : > { %v4531_v38 = vmul.f32 0.01, %v4319_v50  ;;  %vm4433_vm4 = vcmp.gt.f32.partialorder %v4319_v50, 0.0 }
 0x609   : > { %v10277_v17 = vsel %vm4433_vm4, %v4319_v50, %v4531_v38  ;;  %v11760_v50 = vld [vmem:[#allocation122_spill] sm:$0xff] }
 0x60a   : > { %v4187_v16 = vpop.f32.mrf.mxu2  ;;  %v3924_v58 = vpop.f32.mrf.mxu0  ;;  %v11761_v38 = vld [vmem:[#allocation190_spill] sm:$0xff] }
 0x60b   : > { %v4188_v7 = vadd.f32 %v4187_v16, %v4055_v61  ;;  %v4320_v29 = vpop.f32.mrf.mxu3  ;;  %v3925_v31 = vadd.f32 %v3924_v58, %v9829_v37  ;;  %v4057_v21 = vpop.f32.mrf.mxu1 }
 0x60d   : > { %v4321_v12 = vadd.f32 %v4320_v29, %v4188_v7  ;;  %v4058_v14 = vadd.f32 %v4057_v21, %v3925_v31  ;;  %3963 = vmatmul.bf16.gmra.mxu0 %v11755_v44  ;;  %v11763_v44 = vld [vmem:[#allocation192_spill] sm:$0xff] }
 0x60e   : > { %4096 = vmatmul.bf16.gmra.mxu1 %v11756_v34 }
 0x60f   : > { %vm4435_vm5 = vcmp.gt.f32.partialorder %v4321_v12, 0.0  ;;  %v4533_v51 = vmul.f32 0.01, %v4321_v12  ;;  %4229 = vmatmul.bf16.gmra.mxu2 %v11757_v30 }
 0x610   : > { %4362 = vmatmul.bf16.gmra.mxu3 %v11758_v24 }
 0x611   : > { %v10279_v47 = vsel %vm4435_vm5, %v4321_v12, %v4533_v51  ;;  %v11764_v51 = vld [vmem:[#allocation193_spill] sm:$0xff] }
 0x612   : > { %v4190_v37 = vpop.f32.mrf.mxu2  ;;  %v3926_v4 = vpop.f32.mrf.mxu0 }
 0x613   : > { %v4191_v54 = vadd.f32 %v4190_v37, %v4058_v14  ;;  %v4323_v49 = vpop.f32.mrf.mxu3  ;;  %v3927_v28 = vadd.f32 %v3926_v4, %v11759_v43  ;;  %v4059_v53 = vpop.f32.mrf.mxu1  ;;  %v11762_v14 = vld [vmem:[#allocation191_spill] sm:$0xff]  ;;  %v11765_v43 = vld [vmem:[#allocation13_spill] sm:$0xff] }
 0x615   : > { %v4324_v6 = vadd.f32 %v4323_v49, %v4191_v54  ;;  %v4060_v42 = vadd.f32 %v4059_v53, %v3927_v28 }
 0x617   : > { %v4535_v29 = vmul.f32 0.01, %v4324_v6  ;;  %vm4437_vm6 = vcmp.gt.f32.partialorder %v4324_v6, 0.0 }
 0x619   : > { %v10289_v34 = vsel %vm4437_vm6, %v4324_v6, %v4535_v29  ;;  %v7617_v6 = vld [vmem:[%s11106_s3 + $0x30] sm:$0xff] }
 0x61a   : > { %v4192_v8 = vpop.f32.mrf.mxu2  ;;  %v3929_v61 = vpop.f32.mrf.mxu0  ;;  %4869 = vmatpush.bf16.msra.mxu0 %v7617_v6 }
 0x61b   : > { %v4193_v40 = vadd.f32 %v4192_v8, %v4060_v42  ;;  %v4325_v16 = vpop.f32.mrf.mxu3  ;;  %v3930_v7 = vadd.f32 %v3929_v61, %v11760_v50  ;;  %v4062_v58 = vpop.f32.mrf.mxu1 }
 0x61d   : > { %v4326_v31 = vadd.f32 %v4325_v16, %v4193_v40  ;;  %v4063_v21 = vadd.f32 %v4062_v58, %v3930_v7  ;;  %3968 = vmatmul.bf16.gmra.mxu0 %v11761_v38  ;;  %v11766_v7 = vld [vmem:[#allocation14_spill] sm:$0xff] }
 0x61e   : > { %4101 = vmatmul.bf16.gmra.mxu1 %v11762_v14 }
 0x61f   : > { %vm4439_vm7 = vcmp.gt.f32.partialorder %v4326_v31, 0.0  ;;  %v4537_v12 = vmul.f32 0.01, %v4326_v31  ;;  %4234 = vmatmul.bf16.gmra.mxu2 %v11763_v44  ;;  %v11768_v44 = vld [vmem:[#allocation197_spill] sm:$0xff] }
 0x620   : > { %4367 = vmatmul.bf16.gmra.mxu3 %v11764_v51  ;;  %v11769_v51 = vld [vmem:[#allocation198_spill] sm:$0xff] }
 0x621   : > { %v10291_v30 = vsel %vm4439_vm7, %v4326_v31, %v4537_v12  ;;  %v11767_v12 = vld [vmem:[#allocation196_spill] sm:$0xff] }
 0x622   : > { %v4195_v24 = vpop.f32.mrf.mxu2  ;;  %v3931_v4 = vpop.f32.mrf.mxu0 }
 0x623   : > { %v4196_v54 = vadd.f32 %v4195_v24, %v4063_v21  ;;  %v4328_v49 = vpop.f32.mrf.mxu3  ;;  %v3932_v28 = vadd.f32 %v3931_v4, %v11765_v43  ;;  %v4064_v53 = vpop.f32.mrf.mxu1  ;;  %v7625_v24 = vld [vmem:[%s11106_s3 + $0x70] sm:$0xff] }
 0x624   : > { %5002 = vmatpush.bf16.msra.mxu1 %v7625_v24 }
 0x625   : > { %v4329_v42 = vadd.f32 %v4328_v49, %v4196_v54  ;;  %v4065_v8 = vadd.f32 %v4064_v53, %v3932_v28  ;;  %v11770_v54 = vld [vmem:[#allocation199_spill] sm:$0xff] }
 0x627   : > { %v4539_v31 = vmul.f32 0.01, %v4329_v42  ;;  %vm4441_vm8 = vcmp.gt.f32.partialorder %v4329_v42, 0.0 }
 0x629   : > { %v10307_v4 = vsel %vm4441_vm8, %v4329_v42, %v4539_v31  ;;  %v7624_v42 = vld [vmem:[%s11106_s3 + $0x68] sm:$0xff]  ;;  %v7615_v31 = vld [vmem:[%s11106_s3 + $0x20] sm:$0xff] }
 0x62a   : > { %v4197_v40 = vpop.f32.mrf.mxu2  ;;  %v3934_v16 = vpop.f32.mrf.mxu0  ;;  %5003 = vmatpush.bf16.msra.mxu1 %v7624_v42 }
 0x62b   : > { %v4198_v61 = vadd.f32 %v4197_v40, %v4065_v8  ;;  %v4330_v50 = vpop.f32.mrf.mxu3  ;;  %v3935_v58 = vadd.f32 %v3934_v16, %v11766_v7  ;;  %v4067_v29 = vpop.f32.mrf.mxu1  ;;  %v7616_v7 = vld [vmem:[%s11106_s3 + $0x28] sm:$0xff] }
 0x62c   : > { %4870 = vmatpush.bf16.msra.mxu0 %v7616_v7  ;;  %v11776_v7 = vld [vmem:[#allocation205_spill] sm:$0xff] }
 0x62d   : > { %v4331_v21 = vadd.f32 %v4330_v50, %v4198_v61  ;;  %v4068_v38 = vadd.f32 %v4067_v29, %v3935_v58  ;;  %3973 = vmatmul.bf16.gmra.mxu0 %v11767_v12  ;;  %v11771_v61 = vld [vmem:[#allocation15_spill] sm:$0xff] }
 0x62e   : > { %4106 = vmatmul.bf16.gmra.mxu1 %v11768_v44  ;;  %v11772_v44 = vld [vmem:[#allocation16_spill] sm:$0xff] }
 0x62f   : > { %vm4443_vm9 = vcmp.gt.f32.partialorder %v4331_v21, 0.0  ;;  %v4541_v14 = vmul.f32 0.01, %v4331_v21  ;;  %4239 = vmatmul.bf16.gmra.mxu2 %v11769_v51 }
 0x630   : > { %4372 = vmatmul.bf16.gmra.mxu3 %v11770_v54  ;;  %4871 = vmatpush.bf16.msra.mxu0 %v7615_v31 }
 0x631   : > { %v10309_v49 = vsel %vm4443_vm9, %v4331_v21, %v4541_v14  ;;  %v7623_v21 = vld [vmem:[%s11106_s3 + $0x60] sm:$0xff] }
 0x632   : > { %v4200_v43 = vpop.f32.mrf.mxu2  ;;  %v3936_v8 = vpop.f32.mrf.mxu0  ;;  %5004 = vmatpush.bf16.msra.mxu1 %v7623_v21  ;;  %v7613_v21 = vld [vmem:[%s11106_s3 + $0x10] sm:$0xff] }
 0x633   : > { %v4201_v53 = vadd.f32 %v4200_v43, %v4068_v38  ;;  %v4333_v40 = vpop.f32.mrf.mxu3  ;;  %v3937_v16 = vadd.f32 %v3936_v8, %v11771_v61  ;;  %v4069_v50 = vpop.f32.mrf.mxu1  ;;  %v11773_v8 = vld [vmem:[#allocation202_spill] sm:$0xff]  ;;  %v7622_v61 = vld [vmem:[%s11106_s3 + $0x58] sm:$0xff] }
 0x635   : > { %v4070_v6 = vadd.f32 %v4069_v50, %v3937_v16  ;;  %v4334_v58 = vadd.f32 %v4333_v40, %v4201_v53  ;;  %v7614_v40 = vld [vmem:[%s11106_s3 + $0x18] sm:$0xff]  ;;  %v11774_v50 = vld [vmem:[#allocation203_spill] sm:$0xff] }
 0x636   : > { %4872 = vmatpush.bf16.msra.mxu0 %v7614_v40  ;;  %5005 = vmatpush.bf16.msra.mxu1 %v7622_v61  ;;  %v7619_v61 = vld [vmem:[%s11106_s3 + $0x40] sm:$0xff] }
 0x637   : > { %v4543_v54 = vmul.f32 0.01, %v4334_v58  ;;  %vm4445_vm10 = vcmp.gt.f32.partialorder %v4334_v58, 0.0 }
 0x639   : > { %v10337_v42 = vsel %vm4445_vm10, %v4334_v58, %v4543_v54 }
 0x63a   : > { %v4202_v29 = vpop.f32.mrf.mxu2  ;;  %v3939_v12 = vpop.f32.mrf.mxu0  ;;  %4873 = vmatpush.bf16.msra.mxu0 %v7613_v21 }
 0x63b   : > { %v4203_v38 = vadd.f32 %v4202_v29, %v4070_v6  ;;  %v4335_v14 = vpop.f32.mrf.mxu3  ;;  %v3940_v51 = vadd.f32 %v3939_v12, %v11772_v44  ;;  %v4072_v24 = vpop.f32.mrf.mxu1  ;;  %v11775_v6 = vld [vmem:[#allocation204_spill] sm:$0xff] }
 0x63d   : > { %v4336_v43 = vadd.f32 %v4335_v14, %v4203_v38  ;;  %v4073_v53 = vadd.f32 %v4072_v24, %v3940_v51  ;;  %3978 = vmatmul.bf16.gmra.mxu0 %v11773_v8  ;;  %v7621_v38 = vld [vmem:[%s11106_s3 + $0x50] sm:$0xff]  ;;  %v7620_v8 = vld [vmem:[%s11106_s3 + $0x48] sm:$0xff] }
 0x63e   : > { %4111 = vmatmul.bf16.gmra.mxu1 %v11774_v50 }
 0x63f   : > { %vm4447_vm11 = vcmp.gt.f32.partialorder %v4336_v43, 0.0  ;;  %v4545_v16 = vmul.f32 0.01, %v4336_v43  ;;  %4244 = vmatmul.bf16.gmra.mxu2 %v11775_v6  ;;  %5006 = vmatpush.bf16.msra.mxu1 %v7621_v38 }
 0x640   : > { %4377 = vmatmul.bf16.gmra.mxu3 %v11776_v7 }
 0x641   : > { %v10339_v29 = vsel %vm4447_vm11, %v4336_v43, %v4545_v16  ;;  %v7612_v43 = vld [vmem:[%s11106_s3 + $0x8] sm:$0xff] }
 0x642   : > { %v4205_v31 = vpop.f32.mrf.mxu2  ;;  %v3941_v44 = vpop.f32.mrf.mxu0  ;;  %4874 = vmatpush.bf16.msra.mxu0 %v7612_v43 }
 0x643   : > { %v4206_v14 = vadd.f32 %v4205_v31, %v4073_v53  ;;  %v4338_v51 = vpop.f32.mrf.mxu3  ;;  %v3942_v58 = vadd.f32 %v3941_v44, %v10042_v35  ;;  %v4074_v24 = vpop.f32.mrf.mxu1  ;;  %5007 = vmatpush.bf16.msra.mxu1 %v7620_v8  ;;  %v7611_v35 = vld [vmem:[%s11106_s3] sm:$0xff]  ;;  %v11777_v44 = vld [vmem:[#allocation208_spill] sm:$0xff] }
 0x645   : > { %v4075_v54 = vadd.f32 %v4074_v24, %v3942_v58  ;;  %v4339_v40 = vadd.f32 %v4338_v51, %v4206_v14  ;;  %v11778_v58 = vld [vmem:[#allocation209_spill] sm:$0xff]  ;;  %v11779_v24 = vld [vmem:[#allocation210_spill] sm:$0xff] }
 0x646   : > { %4875 = vmatpush.bf16.msra.mxu0 %v7611_v35 }
 0x647   : > { %v4547_v21 = vmul.f32 0.01, %v4339_v40  ;;  %5008 = vmatpush.bf16.msra.mxu1 %v7619_v61  ;;  %vm4449_vm12 = vcmp.gt.f32.partialorder %v4339_v40, 0.0 }
 0x649   : > { %v10367_v43 = vsel %vm4449_vm12, %v4339_v40, %v4547_v21  ;;  %v11782_v40 = vld [vmem:[#allocation128_spill] sm:$0xff] }
 0x64a   : > { %v4207_v53 = vpop.f32.mrf.mxu2  ;;  %v3944_v50 = vpop.f32.mrf.mxu0 }
 0x64b   : > { %v4208_v16 = vadd.f32 %v4207_v53, %v4075_v54  ;;  %v4340_v6 = vpop.f32.mrf.mxu3  ;;  %v3945_v7 = vadd.f32 %v3944_v50, %v10049_v9  ;;  %v4077_v31 = vpop.f32.mrf.mxu1  ;;  %v11780_v54 = vld [vmem:[#allocation211_spill] sm:$0xff]  ;;  %v11783_v53 = vld [vmem:[#allocation214_spill] sm:$0xff] }
 0x64c   : > { %v11781_v50 = vld [vmem:[#allocation127_spill] sm:$0xff] }
 0x64d   : > { %v4341_v38 = vadd.f32 %v4340_v6, %v4208_v16  ;;  %v4078_v14 = vadd.f32 %v4077_v31, %v3945_v7  ;;  %3983 = vmatmul.bf16.gmra.mxu0 %v11777_v44 }
 0x64e   : > { %4116 = vmatmul.bf16.gmra.mxu1 %v11778_v58 }
 0x64f   : > { %vm4451_vm13 = vcmp.gt.f32.partialorder %v4341_v38, 0.0  ;;  %v4549_v51 = vmul.f32 0.01, %v4341_v38  ;;  %4249 = vmatmul.bf16.gmra.mxu2 %v11779_v24 }
 0x650   : > { %4382 = vmatmul.bf16.gmra.mxu3 %v11780_v54 }
 0x651   : > { %v10369_v9 = vsel %vm4451_vm13, %v4341_v38, %v4549_v51 }
 0x652   : > { %v4210_v8 = vpop.f32.mrf.mxu2  ;;  %v3946_v61 = vpop.f32.mrf.mxu0 }
 0x653   : > { %v4211_v35 = vadd.f32 %v4210_v8, %v4078_v14  ;;  %v4343_v16 = vpop.f32.mrf.mxu3  ;;  %v3947_v6 = vadd.f32 %v3946_v61, %v11781_v50  ;;  %v4079_v7 = vpop.f32.mrf.mxu1  ;;  %v11784_v8 = vld [vmem:[#allocation215_spill] sm:$0xff]  ;;  %v11785_v61 = vld [vmem:[#allocation216_spill] sm:$0xff] }
 0x655   : > { %v4080_v31 = vadd.f32 %v4079_v7, %v3947_v6  ;;  %v4344_v44 = vadd.f32 %v4343_v16, %v4211_v35  ;;  %v11786_v35 = vld [vmem:[#allocation217_spill] sm:$0xff]  ;;  %v11789_v6 = vld [vmem:[#allocation147_spill] sm:$0xff] }
 0x657   : > { %v4551_v51 = vmul.f32 0.01, %v4344_v44  ;;  %vm4453_vm14 = vcmp.gt.f32.partialorder %v4344_v44, 0.0 }
 0x659   : > { %v10379_v16 = vsel %vm4453_vm14, %v4344_v44, %v4551_v51  ;;  %v11788_v44 = vld [vmem:[#allocation18_spill] sm:$0xff] }
 0x65a   : > { %v4212_v58 = vpop.f32.mrf.mxu2  ;;  %v3949_v12 = vpop.f32.mrf.mxu0 }
 0x65b   : > { %v4213_v24 = vadd.f32 %v4212_v58, %v4080_v31  ;;  %v4345_v54 = vpop.f32.mrf.mxu3  ;;  %v3950_v21 = vadd.f32 %v3949_v12, %v11782_v40  ;;  %v4082_v38 = vpop.f32.mrf.mxu1 }
 0x65d   : > { %v4346_v28 = vadd.f32 %v4345_v54, %v4213_v24  ;;  %v4083_v37 = vadd.f32 %v4082_v38, %v3950_v21  ;;  %3988 = vmatmul.bf16.gmra.mxu0 %v11783_v53  ;;  %v11787_v53 = vld [vmem:[#allocation17_spill] sm:$0xff] }
 0x65e   : > { %4121 = vmatmul.bf16.gmra.mxu1 %v11784_v8 }
 0x65f   : > { %vm4455_vm15 = vcmp.gt.f32.partialorder %v4346_v28, 0.0  ;;  %v4553_v14 = vmul.f32 0.01, %v4346_v28  ;;  %4254 = vmatmul.bf16.gmra.mxu2 %v11785_v61 }
 0x660   : > { %4387 = vmatmul.bf16.gmra.mxu3 %v11786_v35 }
 0x661   : > { %v10381_v50 = vsel %vm4455_vm15, %v4346_v28, %v4553_v14 }
 0x662   : > { %v4215_v12 = vpop.f32.mrf.mxu2  ;;  %v3951_v31 = vpop.f32.mrf.mxu0 }
 0x663   : > { %v4216_v7 = vadd.f32 %v4215_v12, %v4083_v37  ;;  %v4348_v58 = vpop.f32.mrf.mxu3  ;;  %v3952_v24 = vadd.f32 %v3951_v31, %v11787_v53  ;;  %v4084_v54 = vpop.f32.mrf.mxu1  ;;  %v11790_v37 = vld [vmem:[#allocation146_spill] sm:$0xff] }
 0x664   : > { %v11791_v12 = vpack.c.bf16 %v11789_v6, %v11790_v37 }
 0x665   : > { %v4085_v40 = vadd.f32 %v4084_v54, %v3952_v24  ;;  %v4349_v21 = vadd.f32 %v4348_v58, %v4216_v7 }
 0x667   : > { %v4555_v14 = vmul.f32 0.01, %v4349_v21  ;;  %vm4457_vm0 = vcmp.gt.f32.partialorder %v4349_v21, 0.0 }
 0x669   : > { %v10393_v7 = vsel %vm4457_vm0, %v4349_v21, %v4555_v14 }
 0x66a   : > { %v4217_v38 = vpop.f32.mrf.mxu2  ;;  %v3954_v61 = vpop.f32.mrf.mxu0 }
 0x66b   : > { %v4218_v8 = vadd.f32 %v4217_v38, %v4085_v40  ;;  %v4350_v35 = vpop.f32.mrf.mxu3  ;;  %v3955_v51 = vadd.f32 %v3954_v61, %v11788_v44  ;;  %v4087_v28 = vpop.f32.mrf.mxu1 }
 0x66d   : > { %v4351_v0 = vadd.f32 %v4350_v35, %v4218_v8  ;;  %v4088_v48 = vadd.f32 %v4087_v28, %v3955_v51  ;;  %4876 = vmatmul.bf16.vlgmr.msra.gmra.mxu0 %v11791_v12  ;;  %v11792_v8 = vld [vmem:[#allocation19_spill] sm:$0xff] }
 0x66e   : > { %5009 = vmatmul.bf16.vlgmr.msra.gmra.mxu1 %v4687_v19  ;;  %v11793_v19 = vld [vmem:[#allocation20_spill] sm:$0xff] }
 0x66f   : > { %vm4459_vm1 = vcmp.gt.f32.partialorder %v4351_v0, 0.0  ;;  %v4557_v31 = vmul.f32 0.01, %v4351_v0 }
 0x671   : > { %v10395_v58 = vsel %vm4459_vm1, %v4351_v0, %v4557_v31  ;;  %v11794_v31 = vld [vmem:[#allocation151_spill] sm:$0xff] }
 0x672   : > { %v4220_v53 = vpop.f32.mrf.mxu2  ;;  %v4719_v24 = vpack.c.bf16 %v10395_v58, %v10393_v7  ;;  %v3956_v40 = vpop.f32.mrf.mxu0  ;;  %v11859_v7 = vld [vmem:[#allocation3_spill] sm:$0xff]  ;;  %v11860_v58 = vld [vmem:[#allocation2_spill] sm:$0xff] }
 0x673   : > { %v4221_v54 = vadd.f32 %v4220_v53, %v4088_v48  ;;  %v4353_v38 = vpop.f32.mrf.mxu3  ;;  %v3957_v6 = vadd.f32 %v3956_v40, %v11792_v8  ;;  %v4089_v61 = vpop.f32.mrf.mxu1  ;;  %v11795_v48 = vld [vmem:[#allocation150_spill] sm:$0xff] }
 0x674   : > { %v11796_v53 = vpack.c.bf16 %v11794_v31, %v11795_v48 }
 0x675   : > { %v4090_v35 = vadd.f32 %v4089_v61, %v3957_v6  ;;  %v4354_v44 = vadd.f32 %v4353_v38, %v4221_v54 }
 0x677   : > { %v4559_v14 = vmul.f32 0.01, %v4354_v44  ;;  %vm4461_vm2 = vcmp.gt.f32.partialorder %v4354_v44, 0.0 }
 0x679   : > { %v10407_v54 = vsel %vm4461_vm2, %v4354_v44, %v4559_v14  ;;  %v11798_v14 = vld [vmem:[#allocation21_spill] sm:$0xff] }
 0x67a   : > { %v4222_v51 = vpop.f32.mrf.mxu2  ;;  %v3959_v1 = vpop.f32.mrf.mxu0 }
 0x67b   : > { %v4223_v28 = vadd.f32 %v4222_v51, %v4090_v35  ;;  %v4355_v25 = vpop.f32.mrf.mxu3  ;;  %v3960_v21 = vadd.f32 %v3959_v1, %v11793_v19  ;;  %v4092_v0 = vpop.f32.mrf.mxu1 }
 0x67d   : > { %v4356_v37 = vadd.f32 %v4355_v25, %v4223_v28  ;;  %v4093_v12 = vadd.f32 %v4092_v0, %v3960_v21  ;;  %4881 = vmatmul.bf16.gmra.mxu0 %v11796_v53  ;;  %v11797_v28 = vld [vmem:[#allocation133_spill] sm:$0xff] }
 0x67e   : > { %5014 = vmatmul.bf16.gmra.mxu1 %v4689_v2 }
 0x67f   : > { %vm4463_vm3 = vcmp.gt.f32.partialorder %v4356_v37, 0.0  ;;  %v4561_v40 = vmul.f32 0.01, %v4356_v37 }
 0x681   : > { %v10409_v38 = vsel %vm4463_vm3, %v4356_v37, %v4561_v40  ;;  %v11799_v40 = vld [vmem:[#allocation155_spill] sm:$0xff] }
 0x682   : > { %v4225_v8 = vpop.f32.mrf.mxu2  ;;  %v4721_v6 = vpack.c.bf16 %v10409_v38, %v10407_v54  ;;  %v3961_v35 = vpop.f32.mrf.mxu0 }
 0x683   : > { %v4226_v61 = vadd.f32 %v4225_v8, %v4093_v12  ;;  %v4358_v51 = vpop.f32.mrf.mxu3  ;;  %v3962_v1 = vadd.f32 %v3961_v35, %v11797_v28  ;;  %v4094_v25 = vpop.f32.mrf.mxu1  ;;  %v11800_v8 = vld [vmem:[#allocation154_spill] sm:$0xff] }
 0x684   : > { %v11801_v35 = vpack.c.bf16 %v11799_v40, %v11800_v8 }
 0x685   : > { %v4095_v19 = vadd.f32 %v4094_v25, %v3962_v1  ;;  %v4359_v27 = vadd.f32 %v4358_v51, %v4226_v61 }
 0x687   : > { %v4563_v12 = vmul.f32 0.01, %v4359_v27  ;;  %vm4465_vm4 = vcmp.gt.f32.partialorder %v4359_v27, 0.0 }
 0x689   : > { %v10424_v61 = vsel %vm4465_vm4, %v4359_v27, %v4563_v12 }
 0x68a   : > { %v4227_v2 = vpop.f32.mrf.mxu2  ;;  %v3964_v21 = vpop.f32.mrf.mxu0 }
 0x68b   : > { %v4228_v44 = vadd.f32 %v4227_v2, %v4095_v19  ;;  %v4360_v0 = vpop.f32.mrf.mxu3  ;;  %v3965_v37 = vadd.f32 %v3964_v21, %v11798_v14  ;;  %v4097_v31 = vpop.f32.mrf.mxu1 }
 0x68d   : > { %v4361_v48 = vadd.f32 %v4360_v0, %v4228_v44  ;;  %v4098_v53 = vadd.f32 %v4097_v31, %v3965_v37  ;;  %4886 = vmatmul.bf16.gmra.mxu0 %v11801_v35  ;;  %v11802_v44 = vld [vmem:[#allocation22_spill] sm:$0xff] }
 0x68e   : > { %5019 = vmatmul.bf16.gmra.mxu1 %v4691_v59  ;;  %v11803_v59 = vld [vmem:[#allocation23_spill] sm:$0xff] }
 0x68f   : > { %vm4467_vm5 = vcmp.gt.f32.partialorder %v4361_v48, 0.0  ;;  %v4565_v28 = vmul.f32 0.01, %v4361_v48 }
 0x691   : > { %v10426_v51 = vsel %vm4467_vm5, %v4361_v48, %v4565_v28  ;;  %v11804_v28 = vld [vmem:[#allocation159_spill] sm:$0xff] }
 0x692   : > { %v4230_v1 = vpop.f32.mrf.mxu2  ;;  %v4723_v25 = vpack.c.bf16 %v10426_v51, %v10424_v61  ;;  %v3966_v41 = vpop.f32.mrf.mxu0 }
 0x693   : > { %v4231_v19 = vadd.f32 %v4230_v1, %v4098_v53  ;;  %v4363_v2 = vpop.f32.mrf.mxu3  ;;  %v3967_v21 = vadd.f32 %v3966_v41, %v11802_v44  ;;  %v4099_v0 = vpop.f32.mrf.mxu1  ;;  %v11805_v53 = vld [vmem:[#allocation158_spill] sm:$0xff] }
 0x694   : > { %v11806_v1 = vpack.c.bf16 %v11804_v28, %v11805_v53 }
 0x695   : > { %v4100_v14 = vadd.f32 %v4099_v0, %v3967_v21  ;;  %v4364_v37 = vadd.f32 %v4363_v2, %v4231_v19 }
 0x697   : > { %v4567_v48 = vmul.f32 0.01, %v4364_v37  ;;  %vm4469_vm6 = vcmp.gt.f32.partialorder %v4364_v37, 0.0 }
 0x699   : > { %v10438_v19 = vsel %vm4469_vm6, %v4364_v37, %v4567_v48 }
 0x69a   : > { %v4232_v31 = vpop.f32.mrf.mxu2  ;;  %v3969_v62 = vpop.f32.mrf.mxu0 }
 0x69b   : > { %v4233_v40 = vadd.f32 %v4232_v31, %v4100_v14  ;;  %v4365_v56 = vpop.f32.mrf.mxu3  ;;  %v3970_v27 = vadd.f32 %v3969_v62, %v11803_v59  ;;  %v4102_v12 = vpop.f32.mrf.mxu1 }
 0x69d   : > { %v4366_v8 = vadd.f32 %v4365_v56, %v4233_v40  ;;  %v4103_v35 = vadd.f32 %v4102_v12, %v3970_v27  ;;  %4891 = vmatmul.bf16.gmra.mxu0 %v11806_v1  ;;  %v11807_v40 = vld [vmem:[#allocation24_spill] sm:$0xff] }
 0x69e   : > { %5024 = vmatmul.bf16.gmra.mxu1 %v4693_v15  ;;  %v11808_v15 = vld [vmem:[#allocation138_spill] sm:$0xff] }
 0x69f   : > { %vm4471_vm7 = vcmp.gt.f32.partialorder %v4366_v8, 0.0  ;;  %v4569_v41 = vmul.f32 0.01, %v4366_v8 }
 0x6a1   : > { %v10440_v2 = vsel %vm4471_vm7, %v4366_v8, %v4569_v41  ;;  %v11809_v41 = vld [vmem:[#allocation163_spill] sm:$0xff] }
 0x6a2   : > { %v4235_v44 = vpop.f32.mrf.mxu2  ;;  %v4725_v21 = vpack.c.bf16 %v10440_v2, %v10438_v19  ;;  %v3971_v14 = vpop.f32.mrf.mxu0 }
 0x6a3   : > { %v4236_v0 = vadd.f32 %v4235_v44, %v4103_v35  ;;  %v4368_v31 = vpop.f32.mrf.mxu3  ;;  %v3972_v62 = vadd.f32 %v3971_v14, %v11807_v40  ;;  %v4104_v56 = vpop.f32.mrf.mxu1  ;;  %v11810_v35 = vld [vmem:[#allocation162_spill] sm:$0xff] }
 0x6a4   : > { %v11811_v44 = vpack.c.bf16 %v11809_v41, %v11810_v35 }
 0x6a5   : > { %v4105_v59 = vadd.f32 %v4104_v56, %v3972_v62  ;;  %v4369_v27 = vadd.f32 %v4368_v31, %v4236_v0 }
 0x6a7   : > { %v4571_v8 = vmul.f32 0.01, %v4369_v27  ;;  %vm4473_vm8 = vcmp.gt.f32.partialorder %v4369_v27, 0.0 }
 0x6a9   : > { %v10452_v0 = vsel %vm4473_vm8, %v4369_v27, %v4571_v8  ;;  %v11813_v8 = vld [vmem:[#allocation25_spill] sm:$0xff] }
 0x6aa   : > { %v4237_v12 = vpop.f32.mrf.mxu2  ;;  %v3974_v13 = vpop.f32.mrf.mxu0 }
 0x6ab   : > { %v4238_v28 = vadd.f32 %v4237_v12, %v4105_v59  ;;  %v4370_v55 = vpop.f32.mrf.mxu3  ;;  %v3975_v37 = vadd.f32 %v3974_v13, %v11808_v15  ;;  %v4107_v48 = vpop.f32.mrf.mxu1 }
 0x6ad   : > { %v4371_v53 = vadd.f32 %v4370_v55, %v4238_v28  ;;  %v4108_v1 = vadd.f32 %v4107_v48, %v3975_v37  ;;  %4896 = vmatmul.bf16.gmra.mxu0 %v11811_v44  ;;  %v11812_v28 = vld [vmem:[#allocation139_spill] sm:$0xff] }
 0x6ae   : > { %5029 = vmatmul.bf16.gmra.mxu1 %v4695_v32 }
 0x6af   : > { %vm4475_vm9 = vcmp.gt.f32.partialorder %v4371_v53, 0.0  ;;  %v4573_v14 = vmul.f32 0.01, %v4371_v53 }
 0x6b1   : > { %v10454_v31 = vsel %vm4475_vm9, %v4371_v53, %v4573_v14  ;;  %v11814_v14 = vld [vmem:[#allocation167_spill] sm:$0xff] }
 0x6b2   : > { %v4240_v40 = vpop.f32.mrf.mxu2  ;;  %v4727_v62 = vpack.c.bf16 %v10454_v31, %v10452_v0  ;;  %v3976_v59 = vpop.f32.mrf.mxu0 }
 0x6b3   : > { %v4241_v56 = vadd.f32 %v4240_v40, %v4108_v1  ;;  %v4373_v12 = vpop.f32.mrf.mxu3  ;;  %v3977_v13 = vadd.f32 %v3976_v59, %v11812_v28  ;;  %v4109_v55 = vpop.f32.mrf.mxu1  ;;  %v11815_v40 = vld [vmem:[#allocation166_spill] sm:$0xff] }
 0x6b4   : > { %v11816_v59 = vpack.c.bf16 %v11814_v14, %v11815_v40 }
 0x6b5   : > { %v4110_v15 = vadd.f32 %v4109_v55, %v3977_v13  ;;  %v4374_v11 = vadd.f32 %v4373_v12, %v4241_v56 }
 0x6b7   : > { %v4575_v1 = vmul.f32 0.01, %v4374_v11  ;;  %vm4477_vm10 = vcmp.gt.f32.partialorder %v4374_v11, 0.0 }
 0x6b9   : > { %v10469_v56 = vsel %vm4477_vm10, %v4374_v11, %v4575_v1 }
 0x6ba   : > { %v4242_v32 = vpop.f32.mrf.mxu2  ;;  %v3979_v37 = vpop.f32.mrf.mxu0 }
 0x6bb   : > { %v4243_v27 = vadd.f32 %v4242_v32, %v4110_v15  ;;  %v4375_v48 = vpop.f32.mrf.mxu3  ;;  %v3980_v53 = vadd.f32 %v3979_v37, %v11813_v8  ;;  %v4112_v41 = vpop.f32.mrf.mxu1  ;;  %v7632_v8 = vld [vmem:[%s11108_s5 + $0x28] sm:$0xff] }
 0x6bc   : > { %5376 = vmatpush.bf16.msra.mxu2 %v7632_v8 }
 0x6bd   : > { %v4376_v35 = vadd.f32 %v4375_v48, %v4243_v27  ;;  %v4113_v44 = vadd.f32 %v4112_v41, %v3980_v53  ;;  %4901 = vmatmul.bf16.gmra.mxu0 %v11816_v59  ;;  %v11817_v27 = vld [vmem:[#allocation26_spill] sm:$0xff]  ;;  %v7630_v59 = vld [vmem:[%s11108_s5 + $0x18] sm:$0xff] }
 0x6be   : > { %5034 = vmatmul.bf16.gmra.mxu1 %v4697_v36 }
 0x6bf   : > { %vm4479_vm11 = vcmp.gt.f32.partialorder %v4376_v35, 0.0  ;;  %v4577_v28 = vmul.f32 0.01, %v4376_v35 }
 0x6c0   : > { %5377 = vmatpush.bf16.msra.mxu2 %v7631_v5 }
 0x6c1   : > { %v10471_v12 = vsel %vm4479_vm11, %v4376_v35, %v4577_v28 }
 0x6c2   : > { %v4245_v13 = vpop.f32.mrf.mxu2  ;;  %v4729_v55 = vpack.c.bf16 %v10471_v12, %v10469_v56  ;;  %v3981_v10 = vpop.f32.mrf.mxu0 }
 0x6c3   : > { %v4246_v15 = vadd.f32 %v4245_v13, %v4113_v44  ;;  %v4378_v32 = vpop.f32.mrf.mxu3  ;;  %v3982_v37 = vadd.f32 %v3981_v10, %v11817_v27  ;;  %v4114_v48 = vpop.f32.mrf.mxu1  ;;  %v11818_v13 = vld [vmem:[#allocation171_spill] sm:$0xff]  ;;  %v11819_v10 = vld [vmem:[#allocation170_spill] sm:$0xff] }
 0x6c4   : > { %v11820_v27 = vpack.c.bf16 %v11818_v13, %v11819_v10  ;;  %5378 = vmatpush.bf16.msra.mxu2 %v7630_v59 }
 0x6c5   : > { %v4115_v45 = vadd.f32 %v4114_v48, %v3982_v37  ;;  %v4379_v36 = vadd.f32 %v4378_v32, %v4246_v15 }
 0x6c7   : > { %v4579_v14 = vmul.f32 0.01, %v4379_v36  ;;  %vm4481_vm12 = vcmp.gt.f32.partialorder %v4379_v36, 0.0 }
 0x6c9   : > { %v10495_v32 = vsel %vm4481_vm12, %v4379_v36, %v4579_v14 }
 0x6ca   : > { %v4247_v11 = vpop.f32.mrf.mxu2  ;;  %v3984_v41 = vpop.f32.mrf.mxu0 }
 0x6cb   : > { %v4248_v53 = vadd.f32 %v4247_v11, %v4115_v45  ;;  %v4380_v1 = vpop.f32.mrf.mxu3  ;;  %v3985_v35 = vadd.f32 %v3984_v41, %v10129_v57  ;;  %v4117_v44 = vpop.f32.mrf.mxu1  ;;  %v7629_v57 = vld [vmem:[%s11108_s5 + $0x10] sm:$0xff]  ;;  %v7627_v41 = vld [vmem:[%s11108_s5] sm:$0xff] }
 0x6cc   : > { %5379 = vmatpush.bf16.msra.mxu2 %v7629_v57 }
 0x6cd   : > { %v4381_v40 = vadd.f32 %v4380_v1, %v4248_v53  ;;  %v4118_v28 = vadd.f32 %v4117_v44, %v3985_v35  ;;  %4906 = vmatmul.bf16.gmra.mxu0 %v11820_v27  ;;  %v11822_v27 = vld [vmem:[#allocation175_spill] sm:$0xff] }
 0x6ce   : > { %5039 = vmatmul.bf16.gmra.mxu1 %v4699_v52  ;;  %v7628_v52 = vld [vmem:[%s11108_s5 + $0x8] sm:$0xff] }
 0x6cf   : > { %vm4483_vm13 = vcmp.gt.f32.partialorder %v4381_v40, 0.0  ;;  %v4581_v15 = vmul.f32 0.01, %v4381_v40 }
 0x6d0   : > { %5380 = vmatpush.bf16.msra.mxu2 %v7628_v52 }
 0x6d1   : > { %v10497_v37 = vsel %vm4483_vm13, %v4381_v40, %v4581_v15  ;;  %v11821_v40 = vld [vmem:[#allocation27_spill] sm:$0xff]  ;;  %v11823_v15 = vld [vmem:[#allocation174_spill] sm:$0xff] }
 0x6d2   : > { %v4250_v48 = vpop.f32.mrf.mxu2  ;;  %v4731_v8 = vpack.c.bf16 %v10497_v37, %v10495_v32  ;;  %v3986_v5 = vpop.f32.mrf.mxu0  ;;  %v11824_v57 = vpack.c.bf16 %v11822_v27, %v11823_v15 }
 0x6d3   : > { %v4251_v45 = vadd.f32 %v4250_v48, %v4118_v28  ;;  %v4383_v11 = vpop.f32.mrf.mxu3  ;;  %v3987_v63 = vadd.f32 %v3986_v5, %v10132_v26  ;;  %v4119_v39 = vpop.f32.mrf.mxu1 }
 0x6d4   : > { %5381 = vmatpush.bf16.msra.mxu2 %v7627_v41 }
 0x6d5   : > { %v4120_v53 = vadd.f32 %v4119_v39, %v3987_v63  ;;  %v4384_v36 = vadd.f32 %v4383_v11, %v4251_v45 }
 0x6d7   : > { %v4583_v28 = vmul.f32 0.01, %v4384_v36  ;;  %vm4485_vm14 = vcmp.gt.f32.partialorder %v4384_v36, 0.0 }
 0x6d9   : > { %v10515_v45 = vsel %vm4485_vm14, %v4384_v36, %v4583_v28 }
 0x6da   : > { %v4252_v1 = vpop.f32.mrf.mxu2  ;;  %v3989_v44 = vpop.f32.mrf.mxu0 }
 0x6db   : > { %v4253_v35 = vadd.f32 %v4252_v1, %v4120_v53  ;;  %v4385_v14 = vpop.f32.mrf.mxu3  ;;  %v3990_v59 = vadd.f32 %v3989_v44, %v11821_v40  ;;  %v4122_v26 = vpop.f32.mrf.mxu1  ;;  %v10528_v1 = vld [vmem:[%s11107_s4] ss:$0 sm:$0xff] }
 0x6dc   : > { %v11825_v44 = vld [vmem:[#allocation178_spill] sm:$0xff] }
 0x6dd   : > { %v4386_v13 = vadd.f32 %v4385_v14, %v4253_v35  ;;  %v4123_v10 = vadd.f32 %v4122_v26, %v3990_v59  ;;  %4911 = vmatmul.bf16.gmra.mxu0 %v11824_v57  ;;  %v11826_v14 = vld [vmem:[#allocation177_spill] sm:$0xff] }
 0x6de   : > { %5044 = vmatmul.bf16.gmra.mxu1 %v4701_v33  ;;  %v11827_v40 = vpack.c.bf16 %v11825_v44, %v11826_v14 }
 0x6df   : > { %vm4487_vm15 = vcmp.gt.f32.partialorder %v4386_v13, 0.0  ;;  %v4585_v48 = vmul.f32 0.01, %v4386_v13 }
 0x6e1   : > { %v10517_v5 = vsel %vm4487_vm15, %v4386_v13, %v4585_v48 }
 0x6e2   : > { %v4255_v11 = vpop.f32.mrf.mxu2  ;;  %v4733_v63 = vpack.c.bf16 %v10517_v5, %v10515_v45  ;;  %v3991_v52 = vpop.f32.mrf.mxu0 }
 0x6e3   : > { %v10521_v39 = vadd.f32 %v4255_v11, %v4123_v10  ;;  %v10523_v53 = vpop.f32.mrf.mxu3  ;;  %v4124_v41 = vpop.f32.mrf.mxu1 }
 0x6ea   : > { %v4257_v18 = vpop.f32.mrf.mxu2  ;;  %v4877_v46 = vpop.f32.mrf.mxu0 }
 0x6eb   : > { %v4390_v33 = vpop.f32.mrf.mxu3  ;;  %v5010_v36 = vpop.f32.mrf.mxu1  ;;  %v4878_v35 = vadd.f32 %v10528_v1, %v4877_v46  ;;  %v11831_v46 = vpack.c.bf16 %v10267_v60, %v10265_v23  ;;  %v11832_v23 = vld [vmem:[#allocation189_spill] sm:$0xff]  ;;  %v11833_v60 = vld [vmem:[#allocation188_spill] sm:$0xff] }
 0x6ed   : > { %4916 = vmatmul.bf16.gmra.mxu0 %v11827_v40  ;;  %v5011_v59 = vadd.f32 %v5010_v36, %v4878_v35 }
 0x6ee   : > { %5049 = vmatmul.bf16.gmra.mxu1 %v4703_v3  ;;  %v11830_v3 = vpack.c.bf16 %v11828_v20, %v11829_v22 }
 0x6ef   : > { %v5183_v10 = vmul.f32 0.01, %v5011_v59  ;;  %vm5134_vm0 = vcmp.gt.f32.partialorder %v5011_v59, 0.0 }
 0x6f1   : > { %v5232_v57 = vsel %vm5134_vm0, %v5011_v59, %v5183_v10 }
 0x6f2   : > { %v4879_v26 = vpop.f32.mrf.mxu0 }
 0x6f3   : > { %v4880_v28 = vadd.f32 %v10528_v1, %v4879_v26  ;;  %v5012_v13 = vpop.f32.mrf.mxu1 }
 0x6f5   : > { %v5013_v27 = vadd.f32 %v5012_v13, %v4880_v28 }
 0x6f7   : > { %vm5135_vm1 = vcmp.gt.f32.partialorder %v5013_v27, 0.0  ;;  %v5184_v15 = vmul.f32 0.01, %v5013_v27 }
 0x6f9   : > { %v5233_v48 = vsel %vm5135_vm1, %v5013_v27, %v5184_v15 }
 0x6fa   : > { %v5281_v11 = vpack.c.bf16 %v5233_v48, %v5232_v57  ;;  %v4882_v52 = vpop.f32.mrf.mxu0  ;;  %v11834_v57 = vpack.c.bf16 %v11832_v23, %v11833_v60  ;;  %v11835_v48 = vpack.c.bf16 %v10279_v47, %v10277_v17  ;;  %v11836_v17 = vld [vmem:[#allocation195_spill] sm:$0xff]  ;;  %v11837_v47 = vld [vmem:[#allocation194_spill] sm:$0xff] }
 0x6fb   : > { %v5015_v41 = vpop.f32.mrf.mxu1  ;;  %v4883_v18 = vadd.f32 %v10528_v1, %v4882_v52 }
 0x6fc   : > { %5382 = vmatmul.bf16.vlgmr.msra.gmra.mxu2 %v5281_v11 }
 0x6fd   : > { %4921 = vmatmul.bf16.gmra.mxu0 %v11830_v3  ;;  %v5016_v33 = vadd.f32 %v5015_v41, %v4883_v18 }
 0x6fe   : > { %5054 = vmatmul.bf16.gmra.mxu1 %v11831_v46 }
 0x6ff   : > { %v5185_v14 = vmul.f32 0.01, %v5016_v33  ;;  %vm5136_vm2 = vcmp.gt.f32.partialorder %v5016_v33, 0.0 }
 0x701   : > { %v5234_v26 = vsel %vm5136_vm2, %v5016_v33, %v5185_v14 }
 0x702   : > { %v4884_v36 = vpop.f32.mrf.mxu0 }
 0x703   : > { %v4885_v35 = vadd.f32 %v10528_v1, %v4884_v36  ;;  %v5017_v44 = vpop.f32.mrf.mxu1 }
 0x705   : > { %v5018_v40 = vadd.f32 %v5017_v44, %v4885_v35 }
 0x707   : > { %vm5137_vm3 = vcmp.gt.f32.partialorder %v5018_v40, 0.0  ;;  %v5186_v59 = vmul.f32 0.01, %v5018_v40 }
 0x709   : > { %v5235_v28 = vsel %vm5137_vm3, %v5018_v40, %v5186_v59  ;;  %v11838_v40 = vpack.c.bf16 %v11836_v17, %v11837_v47  ;;  %v11839_v59 = vpack.c.bf16 %v10291_v30, %v10289_v34  ;;  %v11840_v34 = vld [vmem:[#allocation201_spill] sm:$0xff]  ;;  %v11841_v30 = vld [vmem:[#allocation200_spill] sm:$0xff] }
 0x70a   : > { %v4887_v13 = vpop.f32.mrf.mxu0  ;;  %v5282_v10 = vpack.c.bf16 %v5235_v28, %v5234_v26 }
 0x70b   : > { %v5020_v27 = vpop.f32.mrf.mxu1  ;;  %v4888_v15 = vadd.f32 %v10528_v1, %v4887_v13 }
 0x70c   : > { %5387 = vmatmul.bf16.gmra.mxu2 %v5282_v10 }
 0x70d   : > { %4926 = vmatmul.bf16.gmra.mxu0 %v11834_v57  ;;  %v5021_v11 = vadd.f32 %v5020_v27, %v4888_v15 }
 0x70e   : > { %5059 = vmatmul.bf16.gmra.mxu1 %v11835_v48 }
 0x70f   : > { %v5187_v20 = vmul.f32 0.01, %v5021_v11  ;;  %vm5138_vm4 = vcmp.gt.f32.partialorder %v5021_v11, 0.0 }
 0x711   : > { %v5236_v46 = vsel %vm5138_vm4, %v5021_v11, %v5187_v20  ;;  %v11843_v20 = vpack.c.bf16 %v10309_v49, %v10307_v4  ;;  %v11844_v4 = vld [vmem:[#allocation207_spill] sm:$0xff]  ;;  %v11845_v49 = vld [vmem:[#allocation206_spill] sm:$0xff] }
 0x712   : > { %v4889_v52 = vpop.f32.mrf.mxu0 }
 0x713   : > { %v4890_v41 = vadd.f32 %v10528_v1, %v4889_v52  ;;  %v5022_v18 = vpop.f32.mrf.mxu1 }
 0x715   : > { %v5023_v22 = vadd.f32 %v5022_v18, %v4890_v41  ;;  %v11842_v18 = vpack.c.bf16 %v11840_v34, %v11841_v30 }
 0x717   : > { %vm5139_vm5 = vcmp.gt.f32.partialorder %v5023_v22, 0.0  ;;  %v5188_v3 = vmul.f32 0.01, %v5023_v22 }
 0x719   : > { %v5237_v33 = vsel %vm5139_vm5, %v5023_v22, %v5188_v3 }
 0x71a   : > { %v4892_v36 = vpop.f32.mrf.mxu0  ;;  %v5283_v35 = vpack.c.bf16 %v5237_v33, %v5236_v46 }
 0x71b   : > { %v5025_v44 = vpop.f32.mrf.mxu1  ;;  %v4893_v14 = vadd.f32 %v10528_v1, %v4892_v36 }
 0x71c   : > { %5392 = vmatmul.bf16.gmra.mxu2 %v5283_v35 }
 0x71d   : > { %4931 = vmatmul.bf16.gmra.mxu0 %v11838_v40  ;;  %v5026_v26 = vadd.f32 %v5025_v44, %v4893_v14 }
 0x71e   : > { %5064 = vmatmul.bf16.gmra.mxu1 %v11839_v59 }
 0x71f   : > { %v5189_v27 = vmul.f32 0.01, %v5026_v26  ;;  %vm5140_vm6 = vcmp.gt.f32.partialorder %v5026_v26, 0.0 }
 0x721   : > { %v5238_v60 = vsel %vm5140_vm6, %v5026_v26, %v5189_v27 }
 0x722   : > { %v4894_v28 = vpop.f32.mrf.mxu0 }
 0x723   : > { %v4895_v13 = vadd.f32 %v10528_v1, %v4894_v28  ;;  %v5027_v10 = vpop.f32.mrf.mxu1  ;;  %v11846_v28 = vpack.c.bf16 %v11844_v4, %v11845_v49 }
 0x725   : > { %v5028_v15 = vadd.f32 %v5027_v10, %v4895_v13  ;;  %v11847_v13 = vpack.c.bf16 %v10339_v29, %v10337_v42  ;;  %v11848_v42 = vld [vmem:[#allocation213_spill] sm:$0xff]  ;;  %v11849_v29 = vld [vmem:[#allocation212_spill] sm:$0xff] }
 0x727   : > { %vm5141_vm7 = vcmp.gt.f32.partialorder %v5028_v15, 0.0  ;;  %v5190_v23 = vmul.f32 0.01, %v5028_v15 }
 0x729   : > { %v5239_v57 = vsel %vm5141_vm7, %v5028_v15, %v5190_v23 }
 0x72a   : > { %v4897_v48 = vpop.f32.mrf.mxu0  ;;  %v5284_v11 = vpack.c.bf16 %v5239_v57, %v5238_v60 }
 0x72b   : > { %v5030_v52 = vpop.f32.mrf.mxu1  ;;  %v4898_v41 = vadd.f32 %v10528_v1, %v4897_v48 }
 0x72c   : > { %5397 = vmatmul.bf16.gmra.mxu2 %v5284_v11 }
 0x72d   : > { %4936 = vmatmul.bf16.gmra.mxu0 %v11842_v18  ;;  %v5031_v22 = vadd.f32 %v5030_v52, %v4898_v41 }
 0x72e   : > { %5069 = vmatmul.bf16.gmra.mxu1 %v11843_v20  ;;  %v11850_v20 = vpack.c.bf16 %v11848_v42, %v11849_v29 }
 0x72f   : > { %v5191_v36 = vmul.f32 0.01, %v5031_v22  ;;  %vm5142_vm8 = vcmp.gt.f32.partialorder %v5031_v22, 0.0 }
 0x731   : > { %v5240_v14 = vsel %vm5142_vm8, %v5031_v22, %v5191_v36  ;;  %v11851_v22 = vpack.c.bf16 %v10369_v9, %v10367_v43  ;;  %v11852_v43 = vld [vmem:[#allocation219_spill] sm:$0xff]  ;;  %v11853_v9 = vld [vmem:[#allocation218_spill] sm:$0xff] }
 0x732   : > { %v4899_v3 = vpop.f32.mrf.mxu0  ;;  %v11854_v49 = vpack.c.bf16 %v11852_v43, %v11853_v9 }
 0x733   : > { %v4900_v46 = vadd.f32 %v10528_v1, %v4899_v3  ;;  %v5032_v33 = vpop.f32.mrf.mxu1 }
 0x735   : > { %v5033_v35 = vadd.f32 %v5032_v33, %v4900_v46 }
 0x737   : > { %vm5143_vm9 = vcmp.gt.f32.partialorder %v5033_v35, 0.0  ;;  %v5192_v44 = vmul.f32 0.01, %v5033_v35 }
 0x739   : > { %v5241_v17 = vsel %vm5143_vm9, %v5033_v35, %v5192_v44 }
 0x73a   : > { %v4902_v47 = vpop.f32.mrf.mxu0  ;;  %v5285_v40 = vpack.c.bf16 %v5241_v17, %v5240_v14 }
 0x73b   : > { %v5035_v59 = vpop.f32.mrf.mxu1  ;;  %v4903_v26 = vadd.f32 %v10528_v1, %v4902_v47 }
 0x73c   : > { %5402 = vmatmul.bf16.gmra.mxu2 %v5285_v40 }
 0x73d   : > { %4941 = vmatmul.bf16.gmra.mxu0 %v11846_v28  ;;  %v5036_v10 = vadd.f32 %v5035_v59, %v4903_v26  ;;  %v11855_v28 = vpack.c.bf16 %v10381_v50, %v10379_v16  ;;  %v11856_v16 = vld [vmem:[#allocation221_spill] sm:$0xff]  ;;  %v11857_v50 = vld [vmem:[#allocation220_spill] sm:$0xff] }
 0x73e   : > { %5074 = vmatmul.bf16.gmra.mxu1 %v11847_v13 }
 0x73f   : > { %v5193_v60 = vmul.f32 0.01, %v5036_v10  ;;  %vm5144_vm10 = vcmp.gt.f32.partialorder %v5036_v10, 0.0 }
 0x741   : > { %v5242_v11 = vsel %vm5144_vm10, %v5036_v10, %v5193_v60 }
 0x742   : > { %v4904_v27 = vpop.f32.mrf.mxu0 }
 0x743   : > { %v4905_v15 = vadd.f32 %v10528_v1, %v4904_v27  ;;  %v5037_v23 = vpop.f32.mrf.mxu1 }
 0x745   : > { %v5038_v57 = vadd.f32 %v5037_v23, %v4905_v15 }
 0x747   : > { %vm5145_vm11 = vcmp.gt.f32.partialorder %v5038_v57, 0.0  ;;  %v5194_v48 = vmul.f32 0.01, %v5038_v57 }
 0x749   : > { %v5243_v52 = vsel %vm5145_vm11, %v5038_v57, %v5194_v48 }
 0x74a   : > { %v4907_v41 = vpop.f32.mrf.mxu0  ;;  %v5286_v34 = vpack.c.bf16 %v5243_v52, %v5242_v11 }
 0x74b   : > { %v5040_v30 = vpop.f32.mrf.mxu1  ;;  %v4908_v18 = vadd.f32 %v10528_v1, %v4907_v41 }
 0x74c   : > { %5407 = vmatmul.bf16.gmra.mxu2 %v5286_v34 }
 0x74d   : > { %4946 = vmatmul.bf16.gmra.mxu0 %v11850_v20  ;;  %v5041_v3 = vadd.f32 %v5040_v30, %v4908_v18  ;;  %v11858_v18 = vpack.c.bf16 %v11856_v16, %v11857_v50 }
 0x74e   : > { %5079 = vmatmul.bf16.gmra.mxu1 %v11851_v22 }
 0x74f   : > { %v5195_v35 = vmul.f32 0.01, %v5041_v3  ;;  %vm5146_vm12 = vcmp.gt.f32.partialorder %v5041_v3, 0.0 }
 0x751   : > { %v5244_v17 = vsel %vm5146_vm12, %v5041_v3, %v5195_v35 }
 0x752   : > { %v4909_v46 = vpop.f32.mrf.mxu0 }
 0x753   : > { %v4910_v33 = vadd.f32 %v10528_v1, %v4909_v46  ;;  %v5042_v36 = vpop.f32.mrf.mxu1 }
 0x755   : > { %v5043_v44 = vadd.f32 %v5042_v36, %v4910_v33 }
 0x757   : > { %vm5147_vm13 = vcmp.gt.f32.partialorder %v5043_v44, 0.0  ;;  %v5196_v14 = vmul.f32 0.01, %v5043_v44 }
 0x759   : > { %v5245_v47 = vsel %vm5147_vm13, %v5043_v44, %v5196_v14 }
 0x75a   : > { %v4912_v40 = vpop.f32.mrf.mxu0  ;;  %v5287_v59 = vpack.c.bf16 %v5245_v47, %v5244_v17 }
 0x75b   : > { %v5045_v26 = vpop.f32.mrf.mxu1  ;;  %v4913_v4 = vadd.f32 %v10528_v1, %v4912_v40 }
 0x75c   : > { %5412 = vmatmul.bf16.gmra.mxu2 %v5287_v59 }
 0x75d   : > { %4951 = vmatmul.bf16.gmra.mxu0 %v11854_v49  ;;  %v5046_v13 = vadd.f32 %v5045_v26, %v4913_v4 }
 0x75e   : > { %5084 = vmatmul.bf16.gmra.mxu1 %v11855_v28 }
 0x75f   : > { %v5197_v23 = vmul.f32 0.01, %v5046_v13  ;;  %vm5148_vm14 = vcmp.gt.f32.partialorder %v5046_v13, 0.0 }
 0x761   : > { %v5246_v48 = vsel %vm5148_vm14, %v5046_v13, %v5197_v23 }
 0x762   : > { %v4914_v10 = vpop.f32.mrf.mxu0 }
 0x763   : > { %v4915_v27 = vadd.f32 %v10528_v1, %v4914_v10  ;;  %v5047_v15 = vpop.f32.mrf.mxu1 }
 0x765   : > { %v5048_v60 = vadd.f32 %v5047_v15, %v4915_v27 }
 0x767   : > { %vm5149_vm15 = vcmp.gt.f32.partialorder %v5048_v60, 0.0  ;;  %v5198_v57 = vmul.f32 0.01, %v5048_v60 }
 0x769   : > { %v5247_v11 = vsel %vm5149_vm15, %v5048_v60, %v5198_v57  ;;  %v11863_v60 = vld [vmem:[#allocation4_spill] sm:$0xff] }
 0x76a   : > { %v4917_v52 = vpop.f32.mrf.mxu0  ;;  %v5288_v41 = vpack.c.bf16 %v5247_v11, %v5246_v48 }
 0x76b   : > { %v5050_v34 = vpop.f32.mrf.mxu1  ;;  %v4918_v30 = vadd.f32 %v10528_v1, %v4917_v52 }
 0x76c   : > { %5417 = vmatmul.bf16.gmra.mxu2 %v5288_v41 }
 0x76d   : > { %4956 = vmatmul.bf16.gmra.mxu0 %v11858_v18  ;;  %v5051_v42 = vadd.f32 %v5050_v34, %v4918_v30 }
 0x76e   : > { %5089 = vmatmul.bf16.gmra.mxu1 %v4719_v24  ;;  %v11861_v24 = vpack.c.bf16 %v11859_v7, %v11860_v58 }
 0x76f   : > { %v5199_v3 = vmul.f32 0.01, %v5051_v42  ;;  %vm5150_vm0 = vcmp.gt.f32.partialorder %v5051_v42, 0.0 }
 0x771   : > { %v5248_v36 = vsel %vm5150_vm0, %v5051_v42, %v5199_v3  ;;  %v11866_v3 = vld [vmem:[#allocation110_spill] sm:$0xff] }
 0x772   : > { %v4919_v29 = vpop.f32.mrf.mxu0 }
 0x773   : > { %v4920_v20 = vadd.f32 %v10528_v1, %v4919_v29  ;;  %v5052_v22 = vpop.f32.mrf.mxu1 }
 0x775   : > { %v5053_v46 = vadd.f32 %v5052_v22, %v4920_v20 }
 0x777   : > { %vm5151_vm1 = vcmp.gt.f32.partialorder %v5053_v46, 0.0  ;;  %v5200_v33 = vmul.f32 0.01, %v5053_v46 }
 0x779   : > { %v5249_v35 = vsel %vm5151_vm1, %v5053_v46, %v5200_v33 }
 0x77a   : > { %v4922_v44 = vpop.f32.mrf.mxu0  ;;  %v5289_v14 = vpack.c.bf16 %v5249_v35, %v5248_v36 }
 0x77b   : > { %v5055_v17 = vpop.f32.mrf.mxu1  ;;  %v4923_v47 = vadd.f32 %v10528_v1, %v4922_v44 }
 0x77c   : > { %5422 = vmatmul.bf16.gmra.mxu2 %v5289_v14 }
 0x77d   : > { %4961 = vmatmul.bf16.gmra.mxu0 %v11861_v24  ;;  %v5056_v59 = vadd.f32 %v5055_v17, %v4923_v47 }
 0x77e   : > { %5094 = vmatmul.bf16.gmra.mxu1 %v4721_v6  ;;  %v11862_v6 = vld [vmem:[#allocation109_spill] sm:$0xff] }
 0x77f   : > { %v10609_v40 = vpop.f32.mrf.mxu2  ;;  %v5201_v9 = vmul.f32 0.01, %v5056_v59  ;;  %vm5152_vm2 = vcmp.gt.f32.partialorder %v5056_v59, 0.0  ;;  %v11864_v57 = vpack.c.bf16 %v11862_v6, %v11863_v60 }
 0x781   : > { %v5250_v10 = vsel %vm5152_vm2, %v5056_v59, %v5201_v9 }
 0x782   : > { %v4924_v26 = vpop.f32.mrf.mxu0 }
 0x783   : > { %v4925_v4 = vadd.f32 %v10528_v1, %v4924_v26  ;;  %v5057_v43 = vpop.f32.mrf.mxu1 }
 0x785   : > { %v5058_v49 = vadd.f32 %v5057_v43, %v4925_v4  ;;  %v11869_v43 = vld [vmem:[#allocation6_spill] sm:$0xff] }
 0x787   : > { %vm5153_vm3 = vcmp.gt.f32.partialorder %v5058_v49, 0.0  ;;  %v5202_v28 = vmul.f32 0.01, %v5058_v49  ;;  %v10612_v13 = vpop.f32.mrf.mxu2 }
 0x789   : > { %v5251_v27 = vsel %vm5153_vm3, %v5058_v49, %v5202_v28 }
 0x78a   : > { %v4927_v15 = vpop.f32.mrf.mxu0  ;;  %v5290_v23 = vpack.c.bf16 %v5251_v27, %v5250_v10 }
 0x78b   : > { %v5060_v54 = vpop.f32.mrf.mxu1  ;;  %v4928_v38 = vadd.f32 %v10528_v1, %v4927_v15 }
 0x78c   : > { %5427 = vmatmul.bf16.gmra.mxu2 %v5290_v23 }
 0x78d   : > { %4966 = vmatmul.bf16.gmra.mxu0 %v11864_v57  ;;  %v5061_v11 = vadd.f32 %v5060_v54, %v4928_v38 }
 0x78e   : > { %5099 = vmatmul.bf16.gmra.mxu1 %v4723_v25  ;;  %v11865_v25 = vld [vmem:[#allocation5_spill] sm:$0xff] }
 0x78f   : > { %v10621_v48 = vpop.f32.mrf.mxu2  ;;  %v5203_v30 = vmul.f32 0.01, %v5061_v11  ;;  %vm5154_vm4 = vcmp.gt.f32.partialorder %v5061_v11, 0.0  ;;  %v11867_v46 = vpack.c.bf16 %v11865_v25, %v11866_v3 }
 0x791   : > { %v5252_v42 = vsel %vm5154_vm4, %v5061_v11, %v5203_v30 }
 0x792   : > { %v4929_v52 = vpop.f32.mrf.mxu0 }
 0x793   : > { %v4930_v41 = vadd.f32 %v10528_v1, %v4929_v52  ;;  %v5062_v34 = vpop.f32.mrf.mxu1 }
 0x795   : > { %v5063_v16 = vadd.f32 %v5062_v34, %v4930_v41  ;;  %v11872_v41 = vld [vmem:[#allocation8_spill] sm:$0xff] }
 0x797   : > { %vm5155_vm5 = vcmp.gt.f32.partialorder %v5063_v16, 0.0  ;;  %v5204_v50 = vmul.f32 0.01, %v5063_v16  ;;  %v10624_v18 = vpop.f32.mrf.mxu2 }
 0x799   : > { %v5253_v29 = vsel %vm5155_vm5, %v5063_v16, %v5204_v50 }
 0x79a   : > { %v4932_v20 = vpop.f32.mrf.mxu0  ;;  %v5291_v22 = vpack.c.bf16 %v5253_v29, %v5252_v42 }
 0x79b   : > { %v5065_v61 = vpop.f32.mrf.mxu1  ;;  %v4933_v51 = vadd.f32 %v10528_v1, %v4932_v20 }
 0x79c   : > { %5432 = vmatmul.bf16.gmra.mxu2 %v5291_v22 }
 0x79d   : > { %4971 = vmatmul.bf16.gmra.mxu0 %v11867_v46  ;;  %v5066_v36 = vadd.f32 %v5065_v61, %v4933_v51 }
 0x79e   : > { %5104 = vmatmul.bf16.gmra.mxu1 %v4725_v21  ;;  %v11868_v21 = vld [vmem:[#allocation7_spill] sm:$0xff] }
 0x79f   : > { %v10633_v33 = vpop.f32.mrf.mxu2  ;;  %v5205_v17 = vmul.f32 0.01, %v5066_v36  ;;  %vm5156_vm6 = vcmp.gt.f32.partialorder %v5066_v36, 0.0  ;;  %v11870_v9 = vpack.c.bf16 %v11868_v21, %v11869_v43 }
 0x7a1   : > { %v5254_v24 = vsel %vm5156_vm6, %v5066_v36, %v5205_v17 }
 0x7a2   : > { %v4934_v35 = vpop.f32.mrf.mxu0 }
 0x7a3   : > { %v4935_v44 = vadd.f32 %v10528_v1, %v4934_v35  ;;  %v5067_v14 = vpop.f32.mrf.mxu1  ;;  %v11875_v35 = vld [vmem:[#allocation116_spill] sm:$0xff] }
 0x7a5   : > { %v5068_v47 = vadd.f32 %v5067_v14, %v4935_v44 }
 0x7a7   : > { %vm5157_vm7 = vcmp.gt.f32.partialorder %v5068_v47, 0.0  ;;  %v5206_v7 = vmul.f32 0.01, %v5068_v47  ;;  %v10636_v58 = vpop.f32.mrf.mxu2 }
 0x7a9   : > { %v5255_v59 = vsel %vm5157_vm7, %v5068_v47, %v5206_v7 }
 0x7aa   : > { %v4937_v26 = vpop.f32.mrf.mxu0  ;;  %v5292_v4 = vpack.c.bf16 %v5255_v59, %v5254_v24 }
 0x7ab   : > { %v5070_v19 = vpop.f32.mrf.mxu1  ;;  %v4938_v2 = vadd.f32 %v10528_v1, %v4937_v26 }
 0x7ac   : > { %5437 = vmatmul.bf16.gmra.mxu2 %v5292_v4 }
 0x7ad   : > { %4976 = vmatmul.bf16.gmra.mxu0 %v11870_v9  ;;  %v5071_v28 = vadd.f32 %v5070_v19, %v4938_v2 }
 0x7ae   : > { %5109 = vmatmul.bf16.gmra.mxu1 %v4727_v62  ;;  %v11871_v62 = vld [vmem:[#allocation115_spill] sm:$0xff] }
 0x7af   : > { %v10645_v49 = vpop.f32.mrf.mxu2  ;;  %v5207_v23 = vmul.f32 0.01, %v5071_v28  ;;  %vm5158_vm8 = vcmp.gt.f32.partialorder %v5071_v28, 0.0  ;;  %v11873_v34 = vpack.c.bf16 %v11871_v62, %v11872_v41 }
 0x7b1   : > { %v5256_v60 = vsel %vm5158_vm8, %v5071_v28, %v5207_v23  ;;  %v11878_v28 = vld [vmem:[#allocation10_spill] sm:$0xff] }
 0x7b2   : > { %v4939_v10 = vpop.f32.mrf.mxu0 }
 0x7b3   : > { %v4940_v27 = vadd.f32 %v10528_v1, %v4939_v10  ;;  %v5072_v15 = vpop.f32.mrf.mxu1 }
 0x7b5   : > { %v5073_v54 = vadd.f32 %v5072_v15, %v4940_v27  ;;  %v4389_v15 = vadd.f32 %v10523_v53, %v10521_v39 }
 0x7b7   : > { %vm5159_vm9 = vcmp.gt.f32.partialorder %v5073_v54, 0.0  ;;  %v5208_v38 = vmul.f32 0.01, %v5073_v54  ;;  %v10648_v6 = vpop.f32.mrf.mxu2  ;;  %vm4489_vm15 = vcmp.gt.f32.partialorder %v4389_v15, 0.0 }
 0x7b9   : > { %v5257_v57 = vsel %vm5159_vm9, %v5073_v54, %v5208_v38 }
 0x7ba   : > { %v4942_v11 = vpop.f32.mrf.mxu0  ;;  %v5293_v52 = vpack.c.bf16 %v5257_v57, %v5256_v60  ;;  %v11880_v57 = vld [vmem:[#allocation12_spill] sm:$0xff] }
 0x7bb   : > { %v5075_v0 = vpop.f32.mrf.mxu1  ;;  %v4943_v31 = vadd.f32 %v10528_v1, %v4942_v11  ;;  %v4586_v11 = vmul.f32 0.01, %v11880_v57  ;;  %vm4488_vm14 = vcmp.gt.f32.partialorder %v11880_v57, 0.0 }
 0x7bc   : > { %5442 = vmatmul.bf16.gmra.mxu2 %v5293_v52  ;;  %v4587_v52 = vmul.f32 0.01, %v4389_v15 }
 0x7bd   : > { %4981 = vmatmul.bf16.gmra.mxu0 %v11873_v34  ;;  %v5076_v16 = vadd.f32 %v5075_v0, %v4943_v31 }
 0x7be   : > { %5114 = vmatmul.bf16.gmra.mxu1 %v4729_v55  ;;  %v11874_v55 = vld [vmem:[#allocation9_spill] sm:$0xff]  ;;  %v4685_v62 = vsel %vm4489_vm15, %v4389_v15, %v4587_v52 }
 0x7bf   : > { %v10657_v30 = vpop.f32.mrf.mxu2  ;;  %v5209_v20 = vmul.f32 0.01, %v5076_v16  ;;  %vm5160_vm10 = vcmp.gt.f32.partialorder %v5076_v16, 0.0  ;;  %v11876_v44 = vpack.c.bf16 %v11874_v55, %v11875_v35 }
 0x7c1   : > { %v5258_v25 = vsel %vm5160_vm10, %v5076_v16, %v5209_v20 }
 0x7c2   : > { %v4944_v50 = vpop.f32.mrf.mxu0 }
 0x7c3   : > { %v4945_v42 = vadd.f32 %v10528_v1, %v4944_v50  ;;  %v5077_v29 = vpop.f32.mrf.mxu1 }
 0x7c5   : > { %v5078_v22 = vadd.f32 %v5077_v29, %v4945_v42  ;;  %v4735_v42 = vpack.c.bf16 %v4685_v62, %v4685_v62 }
 0x7c7   : > { %vm5161_vm11 = vcmp.gt.f32.partialorder %v5078_v22, 0.0  ;;  %v5210_v61 = vmul.f32 0.01, %v5078_v22  ;;  %v10660_v51 = vpop.f32.mrf.mxu2 }
 0x7c9   : > { %v5259_v3 = vsel %vm5161_vm11, %v5078_v22, %v5210_v61 }
 0x7ca   : > { %v4947_v46 = vpop.f32.mrf.mxu0  ;;  %v5294_v36 = vpack.c.bf16 %v5259_v3, %v5258_v25 }
 0x7cb   : > { %v5080_v56 = vpop.f32.mrf.mxu1  ;;  %v4948_v12 = vadd.f32 %v10528_v1, %v4947_v46 }
 0x7cc   : > { %5447 = vmatmul.bf16.gmra.mxu2 %v5294_v36 }
 0x7cd   : > { %4986 = vmatmul.bf16.gmra.mxu0 %v11876_v44  ;;  %v5081_v17 = vadd.f32 %v5080_v56, %v4948_v12  ;;  %v10692_v56 = vld [vmem:[%s11109_s6] ss:$0 sm:$0xff] }
 0x7ce   : > { %5119 = vmatmul.bf16.gmra.mxu1 %v4731_v8  ;;  %v11877_v8 = vld [vmem:[#allocation11_spill] sm:$0xff]  ;;  %v5396_v52 = vadd.f32 %v10692_v56, %v10636_v58  ;;  %v5389_v58 = vadd.f32 %v10692_v56, %v10621_v48 }
 0x7cf   : > { %v10669_v14 = vpop.f32.mrf.mxu2  ;;  %v5211_v59 = vmul.f32 0.01, %v5081_v17  ;;  %vm5162_vm12 = vcmp.gt.f32.partialorder %v5081_v17, 0.0  ;;  %v11879_v10 = vpack.c.bf16 %v11877_v8, %v11878_v28 }
 0x7d1   : > { %v5260_v2 = vsel %vm5162_vm12, %v5081_v17, %v5211_v59 }
 0x7d2   : > { %v4949_v47 = vpop.f32.mrf.mxu0 }
 0x7d3   : > { %v4950_v7 = vadd.f32 %v10528_v1, %v4949_v47  ;;  %v5082_v24 = vpop.f32.mrf.mxu1 }
 0x7d5   : > { %v5083_v26 = vadd.f32 %v5082_v24, %v4950_v7 }
 0x7d7   : > { %vm5163_vm13 = vcmp.gt.f32.partialorder %v5083_v26, 0.0  ;;  %v5212_v4 = vmul.f32 0.01, %v5083_v26  ;;  %v10672_v19 = vpop.f32.mrf.mxu2 }
 0x7d9   : > { %v5261_v21 = vsel %vm5163_vm13, %v5083_v26, %v5212_v4 }
 0x7da   : > { %v4952_v43 = vpop.f32.mrf.mxu0  ;;  %v5295_v9 = vpack.c.bf16 %v5261_v21, %v5260_v2 }
 0x7db   : > { %v5085_v32 = vpop.f32.mrf.mxu1  ;;  %v4953_v37 = vadd.f32 %v10528_v1, %v4952_v43  ;;  %v5411_v43 = vadd.f32 %v10692_v56, %v10672_v19  ;;  %v5404_v19 = vadd.f32 %v10692_v56, %v10657_v30 }
 0x7dc   : > { %5452 = vmatmul.bf16.gmra.mxu2 %v5295_v9 }
 0x7dd   : > { %4991 = vmatmul.bf16.gmra.mxu0 %v11879_v10  ;;  %v5086_v23 = vadd.f32 %v5085_v32, %v4953_v37  ;;  %v5409_v32 = vadd.f32 %v10692_v56, %v10669_v14  ;;  %v5406_v10 = vadd.f32 %v10692_v56, %v10660_v51 }
 0x7de   : > { %5124 = vmatmul.bf16.gmra.mxu1 %v4733_v63  ;;  %v4684_v63 = vsel %vm4488_vm14, %v11880_v57, %v4586_v11 }
 0x7df   : > { %v5413_v27 = vpop.f32.mrf.mxu2  ;;  %v5213_v0 = vmul.f32 0.01, %v5086_v23  ;;  %vm5164_vm0 = vcmp.gt.f32.partialorder %v5086_v23, 0.0  ;;  %v4734_v50 = vpack.c.bf16 %v4684_v63, %v4684_v63 }
 0x7e0   : > { %v5414_v2 = vadd.f32 %v10692_v56, %v5413_v27 }
 0x7e1   : > { %v5262_v39 = vsel %vm5164_vm0, %v5086_v23, %v5213_v0 }
 0x7e2   : > { %v4954_v54 = vpop.f32.mrf.mxu0 }
 0x7e3   : > { %v4955_v38 = vadd.f32 %v10528_v1, %v4954_v54  ;;  %v5087_v60 = vpop.f32.mrf.mxu1  ;;  %v5401_v54 = vadd.f32 %v10692_v56, %v10648_v6  ;;  %v5394_v6 = vadd.f32 %v10692_v56, %v10633_v33  ;;  %v5386_v33 = vadd.f32 %v10692_v56, %v10612_v13  ;;  %v5511_v13 = vld [vmem:[%s11110_s7 + $0x20] sm:$0xff] }
 0x7e5   : > { %v5088_v31 = vadd.f32 %v5087_v60, %v4955_v38  ;;  %v5399_v60 = vadd.f32 %v10692_v56, %v10645_v49  ;;  %v5391_v49 = vadd.f32 %v10692_v56, %v10624_v18  ;;  %v5384_v18 = vadd.f32 %v10692_v56, %v10609_v40 }
 0x7e7   : > { %vm5165_vm1 = vcmp.gt.f32.partialorder %v5088_v31, 0.0  ;;  %v5214_v45 = vmul.f32 0.01, %v5088_v31  ;;  %v5415_v5 = vpop.f32.mrf.mxu2 }
 0x7e8   : > { %v5416_v26 = vadd.f32 %v10692_v56, %v5415_v5 }
 0x7e9   : > { %v5263_v53 = vsel %vm5165_vm1, %v5088_v31, %v5214_v45 }
 0x7ea   : > { %v4957_v41 = vpop.f32.mrf.mxu0  ;;  %v5296_v34 = vpack.c.bf16 %v5263_v53, %v5262_v39 }
 0x7eb   : > { %v5090_v16 = vpop.f32.mrf.mxu1  ;;  %v4958_v29 = vadd.f32 %v10528_v1, %v4957_v41 }
 0x7ec   : > { %5457 = vmatmul.bf16.gmra.mxu2 %v5296_v34 }
 0x7ed   : > { %4996 = vmatmul.bf16.gmra.mxu0 %v4734_v50  ;;  %v5091_v22 = vadd.f32 %v5090_v16, %v4958_v29 }
 0x7ee   : > { %5129 = vmatmul.bf16.gmra.mxu1 %v4735_v42 }
 0x7ef   : > { %v5418_v20 = vpop.f32.mrf.mxu2  ;;  %v5215_v46 = vmul.f32 0.01, %v5091_v22  ;;  %vm5166_vm2 = vcmp.gt.f32.partialorder %v5091_v22, 0.0 }
 0x7f0   : > { %v5419_v47 = vadd.f32 %v10692_v56, %v5418_v20 }
 0x7f1   : > { %v5264_v44 = vsel %vm5166_vm2, %v5091_v22, %v5215_v46 }
 0x7f2   : > { %v4959_v61 = vpop.f32.mrf.mxu0 }
 0x7f3   : > { %v4960_v25 = vadd.f32 %v10528_v1, %v4959_v61  ;;  %v5092_v3 = vpop.f32.mrf.mxu1  ;;  %v5515_v61 = vld [vmem:[%s11110_s7 + $0x40] sm:$0xff] }
 0x7f5   : > { %v5093_v36 = vadd.f32 %v5092_v3, %v4960_v25 }
 0x7f7   : > { %vm5167_vm3 = vcmp.gt.f32.partialorder %v5093_v36, 0.0  ;;  %v5216_v12 = vmul.f32 0.01, %v5093_v36  ;;  %v5420_v55 = vpop.f32.mrf.mxu2 }
 0x7f8   : > { %v5421_v35 = vadd.f32 %v10692_v56, %v5420_v55 }
 0x7f9   : > { %v5265_v17 = vsel %vm5167_vm3, %v5093_v36, %v5216_v12  ;;  %vm5559_vm3 = vcmask 64512  }
 0x7fa   : > { %v4962_v7 = vpop.f32.mrf.mxu0  ;;  %5599 = vmatpush.msrb.mxu0 %v5421_v35  ;;  %7635 = vmatpush.msra.mxu3 %v5421_v35  ;;  %v5297_v24 = vpack.c.bf16 %v5265_v17, %v5264_v44 }
 0x7fb   : > { %v5095_v59 = vpop.f32.mrf.mxu1  ;;  %v4963_v4 = vadd.f32 %v10528_v1, %v4962_v7 }
 0x7fc   : > { %5462 = vmatmul.bf16.gmra.mxu2 %v5297_v24  ;;  %5600 = vmatpush.msrb.mxu0 %v5419_v47 }
 0x7fd   : > { %7636 = vmatpush.msra.mxu3 %v5419_v47  ;;  %v5096_v9 = vadd.f32 %v5095_v59, %v4963_v4  ;;  %v5519_v47 = vld [vmem:[%s11110_s7 + $0x60] sm:$0xff] }
 0x7fe   : > { %5601 = vmatpush.msrb.mxu0 %v5416_v26 }
 0x7ff   : > { %7637 = vmatpush.msra.mxu3 %v5416_v26  ;;  %v10699_v21 = vpop.f32.mrf.mxu2  ;;  %v5217_v27 = vmul.f32 0.01, %v5096_v9  ;;  %vm5168_vm4 = vcmp.gt.f32.partialorder %v5096_v9, 0.0 }
 0x800   : > { %5602 = vmatpush.msrb.mxu0 %v5414_v2 }
 0x801   : > { %7638 = vmatpush.msra.mxu3 %v5414_v2  ;;  %v5266_v51 = vsel %vm5168_vm4, %v5096_v9, %v5217_v27  ;;  %vm5823_vm4 = vcmask 80896  }
 0x802   : > { %v4964_v37 = vpop.f32.mrf.mxu0  ;;  %5603 = vmatpush.msrb.mxu0 %v5411_v43 }
 0x803   : > { %v4965_v8 = vadd.f32 %v10528_v1, %v4964_v37  ;;  %v5097_v28 = vpop.f32.mrf.mxu1  ;;  %7639 = vmatpush.msra.mxu3 %v5411_v43  ;;  %v5523_v43 = vld [vmem:[%s11110_s7 + $0x80] sm:$0xff] }
 0x804   : > { %5604 = vmatpush.msrb.mxu0 %v5409_v32 }
 0x805   : > { %v5098_v15 = vadd.f32 %v5097_v28, %v4965_v8  ;;  %7640 = vmatpush.msra.mxu3 %v5409_v32 }
 0x806   : > { %5605 = vmatpush.msrb.mxu0 %v5406_v10 }
 0x807   : > { %vm5169_vm5 = vcmp.gt.f32.partialorder %v5098_v15, 0.0  ;;  %v5218_v14 = vmul.f32 0.01, %v5098_v15  ;;  %7641 = vmatpush.msra.mxu3 %v5406_v10  ;;  %v10710_v23 = vpop.f32.mrf.mxu2 }
 0x808   : > { %5606 = vmatpush.msrb.mxu0 %v5404_v19 }
 0x809   : > { %7642 = vmatpush.msra.mxu3 %v5404_v19  ;;  %v5267_v38 = vsel %vm5169_vm5, %v5098_v15, %v5218_v14  ;;  %v5527_v14 = vld [vmem:[%s11110_s7 + $0xa0] sm:$0xff]  ;;  %vm5836_vm5 = vcmask 74752  }
 0x80a   : > { %v4967_v57 = vpop.f32.mrf.mxu0  ;;  %5607 = vmatpush.msrb.mxu0 %v5401_v54  ;;  %v5298_v30 = vpack.c.bf16 %v5267_v38, %v5266_v51 }
 0x80b   : > { %v5100_v11 = vpop.f32.mrf.mxu1  ;;  %7643 = vmatpush.msra.mxu3 %v5401_v54  ;;  %v4968_v0 = vadd.f32 %v10528_v1, %v4967_v57 }
 0x80c   : > { %5467 = vmatmul.bf16.gmra.mxu2 %v5298_v30  ;;  %5608 = vmatpush.msrb.mxu0 %v5399_v60 }
 0x80d   : > { %7644 = vmatpush.msra.mxu3 %v5399_v60  ;;  %v5101_v45 = vadd.f32 %v5100_v11, %v4968_v0  ;;  %v5531_v11 = vld [vmem:[%s11110_s7 + $0xc0] sm:$0xff] }
 0x80e   : > { %5609 = vmatpush.msrb.mxu0 %v5396_v52 }
 0x80f   : > { %7645 = vmatpush.msra.mxu3 %v5396_v52  ;;  %v10721_v31 = vpop.f32.mrf.mxu2  ;;  %v5219_v53 = vmul.f32 0.01, %v5101_v45  ;;  %vm5170_vm6 = vcmp.gt.f32.partialorder %v5101_v45, 0.0 }
 0x810   : > { %5610 = vmatpush.msrb.mxu0 %v5394_v6 }
 0x811   : > { %7646 = vmatpush.msra.mxu3 %v5394_v6  ;;  %v5268_v34 = vsel %vm5170_vm6, %v5101_v45, %v5219_v53 }
 0x812   : > { %v4969_v5 = vpop.f32.mrf.mxu0  ;;  %5611 = vmatpush.msrb.mxu0 %v5391_v49 }
 0x813   : > { %v4970_v63 = vadd.f32 %v10528_v1, %v4969_v5  ;;  %v5102_v39 = vpop.f32.mrf.mxu1  ;;  %7647 = vmatpush.msra.mxu3 %v5391_v49 }
 0x814   : > { %5612 = vmatpush.msrb.mxu0 %v5389_v58 }
 0x815   : > { %v5103_v62 = vadd.f32 %v5102_v39, %v4970_v63  ;;  %7648 = vmatpush.msra.mxu3 %v5389_v58 }
 0x816   : > { %5613 = vmatpush.msrb.mxu0 %v5386_v33 }
 0x817   : > { %vm5171_vm7 = vcmp.gt.f32.partialorder %v5103_v62, 0.0  ;;  %v5220_v48 = vmul.f32 0.01, %v5103_v62  ;;  %7649 = vmatpush.msra.mxu3 %v5386_v33  ;;  %v10732_v41 = vpop.f32.mrf.mxu2  ;;  %v5535_v33 = vld [vmem:[%s11110_s7 + $0xe0] sm:$0xff] }
 0x818   : > { %5614 = vmatpush.msrb.mxu0 %v5384_v18 }
 0x819   : > { %7650 = vmatpush.msra.mxu3 %v5384_v18  ;;  %v5269_v16 = vsel %vm5171_vm7, %v5103_v62, %v5220_v48 }
 0x81a   : > { %v4972_v50 = vpop.f32.mrf.mxu0  ;;  %v5299_v42 = vpack.c.bf16 %v5269_v16, %v5268_v34  ;;  %5618 = vmatmul.f32.vlgmr.msra.gmra.mxu3 %v5511_v13  ;;  %v5539_v13 = vld [vmem:[%s11110_s7 + $0x100] sm:$0xff] }
 0x81b   : > { %v5105_v29 = vpop.f32.mrf.mxu1  ;;  %v4973_v40 = vadd.f32 %v10528_v1, %v4972_v50 }
 0x81c   : > { %5472 = vmatmul.bf16.gmra.mxu2 %v5299_v42 }
 0x81d   : > { %v5106_v22 = vadd.f32 %v5105_v29, %v4973_v40 }
 0x81f   : > { %v10738_v20 = vpop.f32.mrf.mxu2  ;;  %v5221_v36 = vmul.f32 0.01, %v5106_v22  ;;  %vm5172_vm8 = vcmp.gt.f32.partialorder %v5106_v22, 0.0 }
 0x821   : > { %v5270_v44 = vsel %vm5172_vm8, %v5106_v22, %v5221_v36  ;;  %v5543_v36 = vld [vmem:[%s11110_s7 + $0x120] sm:$0xff] }
 0x822   : > { %v4974_v25 = vpop.f32.mrf.mxu0  ;;  %5621 = vmatmul.f32.gmra.mxu3 %v5515_v61 }
 0x823   : > { %v4975_v3 = vadd.f32 %v10528_v1, %v4974_v25  ;;  %v5107_v46 = vpop.f32.mrf.mxu1 }
 0x825   : > { %v5108_v12 = vadd.f32 %v5107_v46, %v4975_v3 }
 0x827   : > { %vm5173_vm9 = vcmp.gt.f32.partialorder %v5108_v12, 0.0  ;;  %v5222_v55 = vmul.f32 0.01, %v5108_v12  ;;  %v10744_v35 = vpop.f32.mrf.mxu2 }
 0x829   : > { %v5271_v17 = vsel %vm5173_vm9, %v5108_v12, %v5222_v55 }
 0x82a   : > { %v4977_v7 = vpop.f32.mrf.mxu0  ;;  %v5300_v24 = vpack.c.bf16 %v5271_v17, %v5270_v44  ;;  %5624 = vmatmul.f32.gmra.mxu3 %v5519_v47 }
 0x82b   : > { %v5110_v59 = vpop.f32.mrf.mxu1  ;;  %v4978_v26 = vadd.f32 %v10528_v1, %v4977_v7 }
 0x82c   : > { %5477 = vmatmul.bf16.gmra.mxu2 %v5300_v24  ;;  %v5547_v24 = vld [vmem:[%s11110_s7 + $0x140] sm:$0xff] }
 0x82d   : > { %v5111_v2 = vadd.f32 %v5110_v59, %v4978_v26  ;;  %v7664_v26 = vld [vmem:[%s11107_s4] ss:$0 sm:$0xff] }
 0x82f   : > { %v10750_v4 = vpop.f32.mrf.mxu2  ;;  %v5223_v8 = vmul.f32 0.01, %v5111_v2  ;;  %vm5174_vm10 = vcmp.gt.f32.partialorder %v5111_v2, 0.0 }
 0x831   : > { %v5272_v15 = vsel %vm5174_vm10, %v5111_v2, %v5223_v8 }
 0x832   : > { %v4979_v9 = vpop.f32.mrf.mxu0  ;;  %5627 = vmatmul.f32.gmra.mxu3 %v5523_v43 }
 0x833   : > { %v4980_v32 = vadd.f32 %v10528_v1, %v4979_v9  ;;  %v5112_v37 = vpop.f32.mrf.mxu1 }
 0x835   : > { %v5113_v28 = vadd.f32 %v5112_v37, %v4980_v32 }
 0x837   : > { %vm5175_vm11 = vcmp.gt.f32.partialorder %v5113_v28, 0.0  ;;  %v5224_v10 = vmul.f32 0.01, %v5113_v28  ;;  %v10756_v27 = vpop.f32.mrf.mxu2 }
 0x839   : > { %v5273_v19 = vsel %vm5175_vm11, %v5113_v28, %v5224_v10  ;;  %v5551_v10 = vld [vmem:[%s11110_s7 + $0x160] sm:$0xff] }
 0x83a   : > { %v4982_v54 = vpop.f32.mrf.mxu0  ;;  %v5301_v51 = vpack.c.bf16 %v5273_v19, %v5272_v15  ;;  %5630 = vmatmul.f32.gmra.mxu3 %v5527_v14 }
 0x83b   : > { %v5115_v38 = vpop.f32.mrf.mxu1  ;;  %v4983_v60 = vadd.f32 %v10528_v1, %v4982_v54 }
 0x83c   : > { %5482 = vmatmul.bf16.gmra.mxu2 %v5301_v51 }
 0x83d   : > { %v5116_v30 = vadd.f32 %v5115_v38, %v4983_v60  ;;  %v5555_v60 = vld [vmem:[%s11110_s7 + $0x180] sm:$0x3] }
 0x83f   : > { %v10762_v57 = vpop.f32.mrf.mxu2  ;;  %v5225_v49 = vmul.f32 0.01, %v5116_v30  ;;  %vm5176_vm12 = vcmp.gt.f32.partialorder %v5116_v30, 0.0 }
 0x841   : > { %v5274_v63 = vsel %vm5176_vm12, %v5116_v30, %v5225_v49 }
 0x842   : > { %v4984_v52 = vpop.f32.mrf.mxu0  ;;  %5633 = vmatmul.f32.gmra.mxu3 %v5531_v11 }
 0x843   : > { %v4985_v0 = vadd.f32 %v10528_v1, %v4984_v52  ;;  %v5117_v6 = vpop.f32.mrf.mxu1 }
 0x845   : > { %v5118_v45 = vadd.f32 %v5117_v6, %v4985_v0 }
 0x847   : > { %vm5177_vm13 = vcmp.gt.f32.partialorder %v5118_v45, 0.0  ;;  %v5226_v58 = vmul.f32 0.01, %v5118_v45  ;;  %v10768_v5 = vpop.f32.mrf.mxu2 }
 0x849   : > { %v5275_v39 = vsel %vm5177_vm13, %v5118_v45, %v5226_v58 }
 0x84a   : > { %v4987_v53 = vpop.f32.mrf.mxu0  ;;  %v5302_v62 = vpack.c.bf16 %v5275_v39, %v5274_v63  ;;  %5636 = vmatmul.f32.gmra.mxu3 %v5535_v33 }
 0x84b   : > { %v5120_v18 = vpop.f32.mrf.mxu1  ;;  %v4988_v48 = vadd.f32 %v10528_v1, %v4987_v53 }
 0x84c   : > { %5487 = vmatmul.bf16.gmra.mxu2 %v5302_v62 }
 0x84d   : > { %v5121_v16 = vadd.f32 %v5120_v18, %v4988_v48  ;;  %v5446_v18 = vadd.f32 %v10692_v56, %v10768_v5  ;;  %v5444_v48 = vadd.f32 %v10692_v56, %v10762_v57  ;;  %v5434_v5 = vadd.f32 %v10692_v56, %v10738_v20  ;;  %v5508_v20 = vld [vmem:[%s11110_s7 + $0x8] sm:$0xff] }
 0x84f   : > { %v10774_v34 = vpop.f32.mrf.mxu2  ;;  %v5227_v40 = vmul.f32 0.01, %v5121_v16  ;;  %vm5178_vm14 = vcmp.gt.f32.partialorder %v5121_v16, 0.0 }
 0x850   : > { %v5449_v62 = vadd.f32 %v10692_v56, %v10774_v34  ;;  %v5436_v34 = vadd.f32 %v10692_v56, %v10744_v35  ;;  %v5424_v35 = vadd.f32 %v10692_v56, %v10699_v21 }
 0x851   : > { %v5276_v3 = vsel %vm5178_vm14, %v5121_v16, %v5227_v40  ;;  %v5516_v40 = vld [vmem:[%s11110_s7 + $0x48] sm:$0xff] }
 0x852   : > { %v4989_v50 = vpop.f32.mrf.mxu0  ;;  %5639 = vmatmul.f32.gmra.mxu3 %v5539_v13  ;;  %v5441_v13 = vadd.f32 %v10692_v56, %v10756_v27  ;;  %v5429_v27 = vadd.f32 %v10692_v56, %v10721_v31 }
 0x853   : > { %v4990_v42 = vadd.f32 %v10528_v1, %v4989_v50  ;;  %v5122_v29 = vpop.f32.mrf.mxu1  ;;  %v5439_v50 = vadd.f32 %v10692_v56, %v10750_v4  ;;  %v5426_v4 = vadd.f32 %v10692_v56, %v10710_v23  ;;  %v5512_v23 = vld [vmem:[%s11110_s7 + $0x28] sm:$0xff] }
 0x855   : > { %v5123_v22 = vadd.f32 %v5122_v29, %v4990_v42  ;;  %v5431_v42 = vadd.f32 %v10692_v56, %v10732_v41  ;;  %v5507_v41 = vld [vmem:[%s11110_s7] sm:$0xff] }
 0x856   : > { %5615 = vmatmul.f32.vlgmr.msrb.gmra.mxu0 %v5507_v41 }
 0x857   : > { %vm5179_vm15 = vcmp.gt.f32.partialorder %v5123_v22, 0.0  ;;  %v5228_v61 = vmul.f32 0.01, %v5123_v22  ;;  %v5450_v25 = vpop.f32.mrf.mxu2 }
 0x858   : > { %v5451_v53 = vadd.f32 %v10692_v56, %v5450_v25 }
 0x859   : > { %v5277_v46 = vsel %vm5179_vm15, %v5123_v22, %v5228_v61  ;;  %v5520_v61 = vld [vmem:[%s11110_s7 + $0x68] sm:$0xff] }
 0x85a   : > { %v4992_v12 = vpop.f32.mrf.mxu0  ;;  %v5303_v55 = vpack.c.bf16 %v5277_v46, %v5276_v3  ;;  %5642 = vmatmul.f32.gmra.mxu3 %v5543_v36  ;;  %v5524_v46 = vld [vmem:[%s11110_s7 + $0x88] sm:$0xff] }
 0x85b   : > { %v5125_v44 = vpop.f32.mrf.mxu1  ;;  %v4993_v17 = vadd.f32 %v10528_v1, %v4992_v12 }
 0x85c   : > { %5492 = vmatmul.bf16.gmra.mxu2 %v5303_v55  ;;  %v5528_v55 = vld [vmem:[%s11110_s7 + $0xa8] sm:$0xff] }
 0x85d   : > { %v5126_v7 = vadd.f32 %v5125_v44, %v4993_v17 }
 0x85f   : > { %v5453_v47 = vpop.f32.mrf.mxu2  ;;  %v5229_v9 = vmul.f32 0.01, %v5126_v7  ;;  %vm5180_vm0 = vcmp.gt.f32.partialorder %v5126_v7, 0.0 }
 0x860   : > { %v5454_v39 = vadd.f32 %v10692_v56, %v5453_v47  ;;  %v5532_v47 = vld [vmem:[%s11110_s7 + $0xc8] sm:$0xff] }
 0x861   : > { %v5278_v8 = vsel %vm5180_vm0, %v5126_v7, %v5229_v9 }
 0x862   : > { %v4994_v59 = vpop.f32.mrf.mxu0  ;;  %5645 = vmatmul.f32.gmra.mxu3 %v5547_v24 }
 0x863   : > { %v4995_v2 = vadd.f32 %v7664_v26, %v4994_v59  ;;  %v5127_v43 = vpop.f32.mrf.mxu1  ;;  %v5536_v59 = vld [vmem:[%s11110_s7 + $0xe8] sm:$0xff] }
 0x865   : > { %v5128_v32 = vadd.f32 %v5127_v43, %v4995_v2  ;;  %v5540_v2 = vld [vmem:[%s11110_s7 + $0x108] sm:$0xff] }
 0x867   : > { %vm5181_vm1 = vcmp.gt.f32.partialorder %v5128_v32, 0.0  ;;  %v5230_v37 = vmul.f32 0.01, %v5128_v32  ;;  %v5455_v1 = vpop.f32.mrf.mxu2 }
 0x868   : > { %v5456_v63 = vadd.f32 %v10692_v56, %v5455_v1 }
 0x869   : > { %v5279_v28 = vsel %vm5181_vm1, %v5128_v32, %v5230_v37  ;;  %v5544_v32 = vld [vmem:[%s11110_s7 + $0x128] sm:$0xff] }
 0x86a   : > { %v4997_v15 = vpop.f32.mrf.mxu0  ;;  %v5304_v19 = vpack.c.bf16 %v5279_v28, %v5278_v8  ;;  %5648 = vmatmul.f32.gmra.mxu3 %v5551_v10  ;;  %v5548_v8 = vld [vmem:[%s11110_s7 + $0x148] sm:$0xff] }
 0x86b   : > { %v4998_v14 = vadd.f32 %v7664_v26, %v4997_v15  ;;  %v5130_v54 = vpop.f32.mrf.mxu1  ;;  %v5552_v15 = vld [vmem:[%s11110_s7 + $0x168] sm:$0xff] }
 0x86c   : > { %5497 = vmatmul.bf16.gmra.mxu2 %v5304_v19 }
 0x86d   : > { %v5131_v51 = vadd.f32 %v5130_v54, %v4998_v14  ;;  %v5556_v54 = vld [vmem:[%s11110_s7 + $0x188] sm:$0x3] }
 0x86f   : > { %v5458_v38 = vpop.f32.mrf.mxu2  ;;  %v5231_v11 = vmul.f32 0.01, %v5131_v51  ;;  %vm5182_vm2 = vcmp.gt.f32.partialorder %v5131_v51, 0.0 }
 0x870   : > { %v5459_v45 = vadd.f32 %v10692_v56, %v5458_v38 }
 0x871   : > { %v5280_v6 = vsel %vm5182_vm2, %v5131_v51, %v5231_v11 }
 0x872   : > { %v4999_v30 = vpop.f32.mrf.mxu0  ;;  %5651 = vmatmul.f32.gmra.mxu3 %v5555_v60  ;;  %v5305_v58 = vpack.c.bf16 %v5280_v6, %v5280_v6 }
 0x873   : > { %v5132_v52 = vpop.f32.mrf.mxu1 }
 0x877   : > { %v5460_v0 = vpop.f32.mrf.mxu2 }
 0x878   : > { %v5461_v49 = vadd.f32 %v10692_v56, %v5460_v0 }
 0x87a   : > { %5655 = vmatpush.msrb.mxu3 %v5461_v49 }
 0x87c   : > { %5502 = vmatmul.bf16.gmra.mxu2 %v5305_v58  ;;  %5656 = vmatpush.msrb.mxu3 %v5459_v45 }
 0x87e   : > { %5657 = vmatpush.msrb.mxu3 %v5456_v63 }
 0x87f   : > { %v10800_v33 = vpop.f32.mrf.mxu2 }
 0x880   : > { %5658 = vmatpush.msrb.mxu3 %v5454_v39 }
 0x882   : > { %5659 = vmatpush.msrb.mxu3 %v5451_v53 }
 0x884   : > { %5660 = vmatpush.msrb.mxu3 %v5449_v62 }
 0x886   : > { %5661 = vmatpush.msrb.mxu3 %v5446_v18 }
 0x887   : > { %v10809_v16 = vpop.f32.mrf.mxu2 }
 0x888   : > { %5662 = vmatpush.msrb.mxu3 %v5444_v48 }
 0x88a   : > { %5663 = vmatpush.msrb.mxu3 %v5441_v13 }
 0x88c   : > { %5664 = vmatpush.msrb.mxu3 %v5439_v50 }
 0x88e   : > { %5665 = vmatpush.msrb.mxu3 %v5436_v34 }
 0x88f   : > { %v10819_v57 = vpop.f32.mrf.mxu2 }
 0x890   : > { %5666 = vmatpush.msrb.mxu3 %v5434_v5  ;;  %v5469_v50 = vadd.f32 %v10692_v56, %v10819_v57  ;;  %v5466_v5 = vadd.f32 %v10692_v56, %v10809_v16  ;;  %v5513_v16 = vld [vmem:[%s11110_s7 + $0x30] sm:$0xff] }
 0x892   : > { %5667 = vmatpush.msrb.mxu3 %v5431_v42  ;;  %v5464_v42 = vadd.f32 %v10692_v56, %v10800_v33  ;;  %v5517_v33 = vld [vmem:[%s11110_s7 + $0x50] sm:$0xff] }
 0x894   : > { %5668 = vmatpush.msrb.mxu3 %v5429_v27 }
 0x896   : > { %5669 = vmatpush.msrb.mxu3 %v5426_v4  ;;  %v5509_v4 = vld [vmem:[%s11110_s7 + $0x10] sm:$0xff] }
 0x897   : > { %v10832_v29 = vpop.f32.mrf.mxu2 }
 0x898   : > { %5670 = vmatpush.msrb.mxu3 %v5424_v35  ;;  %v5471_v13 = vadd.f32 %v10692_v56, %v10832_v29  ;;  %v5525_v29 = vld [vmem:[%s11110_s7 + $0x90] sm:$0xff] }
 0x899   : > { %5671 = vmatmul.f32.vlgmr.msrb.gmra.mxu3 %v5508_v20 }
 0x89d   : > { %v10842_v21 = vpop.f32.mrf.mxu3 }
 0x89f   : > { %v10840_v31 = vpop.f32.mrf.mxu2 }
 0x8a0   : > { %v5474_v48 = vadd.f32 %v10692_v56, %v10840_v31 }
 0x8a1   : > { %5674 = vmatmul.f32.gmra.mxu3 %v5512_v23  ;;  %v5529_v23 = vld [vmem:[%s11110_s7 + $0xb0] sm:$0xff] }
 0x8a5   : > { %v10852_v3 = vpop.f32.mrf.mxu3 }
 0x8a7   : > { %v10847_v22 = vpop.f32.mrf.mxu2 }
 0x8a8   : > { %v5476_v18 = vadd.f32 %v10692_v56, %v10847_v22  ;;  %v5537_v22 = vld [vmem:[%s11110_s7 + $0xf0] sm:$0xff] }
 0x8a9   : > { %5677 = vmatmul.f32.gmra.mxu3 %v5516_v40  ;;  %v5533_v40 = vld [vmem:[%s11110_s7 + $0xd0] sm:$0xff] }
 0x8ad   : > { %v10857_v12 = vpop.f32.mrf.mxu3 }
 0x8af   : > { %v5478_v25 = vpop.f32.mrf.mxu2 }
 0x8b0   : > { %v5479_v62 = vadd.f32 %v10692_v56, %v5478_v25  ;;  %v5541_v25 = vld [vmem:[%s11110_s7 + $0x110] sm:$0xff] }
 0x8b1   : > { %5680 = vmatmul.f32.gmra.mxu3 %v5520_v61 }
 0x8b5   : > { %v10862_v17 = vpop.f32.mrf.mxu3 }
 0x8b7   : > { %v5480_v36 = vpop.f32.mrf.mxu2 }
 0x8b8   : > { %v5481_v39 = vadd.f32 %v10692_v56, %v5480_v36  ;;  %v5545_v36 = vld [vmem:[%s11110_s7 + $0x130] sm:$0xff] }
 0x8b9   : > { %5683 = vmatmul.f32.gmra.mxu3 %v5524_v46 }
 0x8bd   : > { %v10867_v24 = vpop.f32.mrf.mxu3 }
 0x8bf   : > { %v5483_v44 = vpop.f32.mrf.mxu2 }
 0x8c0   : > { %v5484_v58 = vadd.f32 %v10692_v56, %v5483_v44  ;;  %v5549_v44 = vld [vmem:[%s11110_s7 + $0x150] sm:$0xff] }
 0x8c1   : > { %5686 = vmatmul.f32.gmra.mxu3 %v5528_v55 }
 0x8c5   : > { %v10875_v9 = vpop.f32.mrf.mxu3 }
 0x8c7   : > { %v5485_v7 = vpop.f32.mrf.mxu2 }
 0x8c8   : > { %v5486_v45 = vadd.f32 %v10692_v56, %v5485_v7  ;;  %v5553_v7 = vld [vmem:[%s11110_s7 + $0x170] sm:$0xff] }
 0x8c9   : > { %5689 = vmatmul.f32.gmra.mxu3 %v5532_v47 }
 0x8cd   : > { %v10880_v1 = vpop.f32.mrf.mxu3 }
 0x8cf   : > { %v5488_v26 = vpop.f32.mrf.mxu2 }
 0x8d0   : > { %v5489_v49 = vadd.f32 %v10692_v56, %v5488_v26 }
 0x8d1   : > { %5692 = vmatmul.f32.gmra.mxu3 %v5536_v59  ;;  %v5557_v59 = vld [vmem:[%s11110_s7 + $0x190] sm:$0x3] }
 0x8d5   : > { %v10885_v10 = vpop.f32.mrf.mxu3 }
 0x8d7   : > { %v5490_v43 = vpop.f32.mrf.mxu2 }
 0x8d8   : > { %v5491_v6 = vadd.f32 %v10692_v56, %v5490_v43 }
 0x8d9   : > { %5695 = vmatmul.f32.gmra.mxu3 %v5540_v2  ;;  %v5510_v2 = vld [vmem:[%s11110_s7 + $0x18] sm:$0xff] }
 0x8dd   : > { %v10890_v14 = vpop.f32.mrf.mxu3 }
 0x8df   : > { %v5493_v37 = vpop.f32.mrf.mxu2 }
 0x8e0   : > { %v5494_v11 = vadd.f32 %v10692_v56, %v5493_v37 }
 0x8e1   : > { %5698 = vmatmul.f32.gmra.mxu3 %v5544_v32  ;;  %v5514_v32 = vld [vmem:[%s11110_s7 + $0x38] sm:$0xff] }
 0x8e5   : > { %v10899_v0 = vpop.f32.mrf.mxu3 }
 0x8e7   : > { %v5495_v28 = vpop.f32.mrf.mxu2 }
 0x8e8   : > { %v5496_v30 = vadd.f32 %v10692_v56, %v5495_v28 }
 0x8e9   : > { %5701 = vmatmul.f32.gmra.mxu3 %v5548_v8  ;;  %v5518_v8 = vld [vmem:[%s11110_s7 + $0x58] sm:$0xff] }
 0x8ed   : > { %v10906_v53 = vpop.f32.mrf.mxu3 }
 0x8ef   : > { %v5498_v19 = vpop.f32.mrf.mxu2 }
 0x8f0   : > { %v5499_v60 = vadd.f32 %v10692_v56, %v5498_v19 }
 0x8f1   : > { %5704 = vmatmul.f32.gmra.mxu3 %v5552_v15  ;;  %v5522_v15 = vld [vmem:[%s11110_s7 + $0x78] sm:$0xff] }
 0x8f5   : > { %v10917_v34 = vpop.f32.mrf.mxu3 }
 0x8f7   : > { %v5500_v51 = vpop.f32.mrf.mxu2 }
 0x8f8   : > { %v5501_v38 = vadd.f32 %v10692_v56, %v5500_v51 }
 0x8f9   : > { %5707 = vmatmul.f32.gmra.mxu3 %v5556_v54  ;;  %v5526_v54 = vld [vmem:[%s11110_s7 + $0x98] sm:$0xff] }
 0x8fa   : > { %5711 = vmatpush.msra.mxu3 %v5501_v38  ;;  %v5530_v38 = vld [vmem:[%s11110_s7 + $0xb8] sm:$0xff] }
 0x8fc   : > { %5712 = vmatpush.msra.mxu3 %v5499_v60 }
 0x8fe   : > { %5713 = vmatpush.msra.mxu3 %v5496_v30  ;;  %v5534_v30 = vld [vmem:[%s11110_s7 + $0xd8] sm:$0xff] }
 0x8ff   : > { %v5503_v52 = vpop.f32.mrf.mxu2 }
 0x900   : > { %5714 = vmatpush.msra.mxu3 %v5494_v11  ;;  %v5504_v27 = vadd.f32 %v10692_v56, %v5503_v52  ;;  %v5521_v56 = vld [vmem:[%s11110_s7 + $0x70] sm:$0xff]  ;;  %v5538_v52 = vld [vmem:[%s11110_s7 + $0xf8] sm:$0xff] }
 0x902   : > { %5715 = vmatpush.msra.mxu3 %v5491_v6 }
 0x904   : > { %5716 = vmatpush.msra.mxu3 %v5489_v49  ;;  %v5542_v49 = vld [vmem:[%s11110_s7 + $0x118] sm:$0xff] }
 0x906   : > { %5717 = vmatpush.msra.mxu3 %v5486_v45 }
 0x907   : > { %v5505_v63 = vpop.f32.mrf.mxu2 }
 0x908   : > { %5718 = vmatpush.msra.mxu3 %v5484_v58  ;;  %v5546_v58 = vld [vmem:[%s11110_s7 + $0x138] sm:$0xff] }
 0x90a   : > { %5719 = vmatpush.msra.mxu3 %v5481_v39  ;;  %v5550_v39 = vld [vmem:[%s11110_s7 + $0x158] sm:$0xff] }
 0x90c   : > { %5720 = vmatpush.msra.mxu3 %v5479_v62 }
 0x90e   : > { %5721 = vmatpush.msra.mxu3 %v5476_v18  ;;  %v5554_v18 = vld [vmem:[%s11110_s7 + $0x178] sm:$0xff] }
 0x910   : > { %5722 = vmatpush.msra.mxu3 %v5474_v48 }
 0x912   : > { %5723 = vmatpush.msra.mxu3 %v5471_v13  ;;  %v5558_v13 = vld [vmem:[%s11110_s7 + $0x198] sm:$0x3] }
 0x914   : > { %5724 = vmatpush.msra.mxu3 %v5469_v50 }
 0x916   : > { %5725 = vmatpush.msra.mxu3 %v5466_v5 }
 0x918   : > { %5726 = vmatpush.msra.mxu3 %v5464_v42 }
 0x919   : > { %5727 = vmatmul.f32.vlgmr.msra.gmra.mxu3 %v5509_v4  ;;  %v5616_v4 = vpop.f32.mrf.mxu0 }
 0x91a   : > { %5782 = vmatpush.msrb.mxu3 %v5504_v27 }
 0x91c   : > { %v10927_v57 = vpop.f32.mrf.mxu3 }
 0x921   : > { %5730 = vmatmul.f32.gmra.mxu3 %v5513_v16  ;;  %v5673_v16 = vadd.f32 %v10927_v57, %v5616_v4 }
 0x924   : > { %v10935_v35 = vpop.f32.mrf.mxu3 }
 0x929   : > { %5733 = vmatmul.f32.gmra.mxu3 %v5517_v33 }
 0x92c   : > { %v10940_v20 = vpop.f32.mrf.mxu3 }
 0x931   : > { %5736 = vmatmul.f32.gmra.mxu3 %v5521_v56 }
 0x934   : > { %v10945_v41 = vpop.f32.mrf.mxu3 }
 0x939   : > { %5739 = vmatmul.f32.gmra.mxu3 %v5525_v29 }
 0x93c   : > { %v10950_v31 = vpop.f32.mrf.mxu3 }
 0x941   : > { %5742 = vmatmul.f32.gmra.mxu3 %v5529_v23  ;;  %v5676_v23 = vadd.f32 %v10935_v35, %v10842_v21 }
 0x944   : > { %v10958_v61 = vpop.f32.mrf.mxu3 }
 0x949   : > { %5745 = vmatmul.f32.gmra.mxu3 %v5533_v40 }
 0x94c   : > { %v10963_v46 = vpop.f32.mrf.mxu3 }
 0x951   : > { %5748 = vmatmul.f32.gmra.mxu3 %v5537_v22 }
 0x954   : > { %v10968_v55 = vpop.f32.mrf.mxu3 }
 0x959   : > { %5751 = vmatmul.f32.gmra.mxu3 %v5541_v25  ;;  %v5679_v25 = vadd.f32 %v10940_v20, %v10852_v3 }
 0x95c   : > { %v10973_v47 = vpop.f32.mrf.mxu3 }
 0x961   : > { %5754 = vmatmul.f32.gmra.mxu3 %v5545_v36 }
 0x964   : > { %v10981_v26 = vpop.f32.mrf.mxu3 }
 0x969   : > { %5757 = vmatmul.f32.gmra.mxu3 %v5549_v44 }
 0x96c   : > { %v10986_v43 = vpop.f32.mrf.mxu3 }
 0x971   : > { %5760 = vmatmul.f32.gmra.mxu3 %v5553_v7 }
 0x974   : > { %v10993_v37 = vpop.f32.mrf.mxu3 }
 0x979   : > { %5763 = vmatmul.f32.gmra.mxu3 %v5557_v59  ;;  %v5682_v59 = vadd.f32 %v10945_v41, %v10857_v12 }
 0x97c   : > { %v10999_v28 = vpop.f32.mrf.mxu3 }
 0x981   : > { %7276 = vmatmul.msk.f32.vlgmr.msrb.gmra.mxu3 %vm5559_vm3, %v5510_v2 }
 0x989   : > { %7277 = vmatmul.msk.f32.gmra.mxu3 %vm5559_vm3, %v5514_v32  ;;  %v5685_v32 = vadd.f32 %v10950_v31, %v10862_v17 }
 0x991   : > { %7278 = vmatmul.msk.f32.gmra.mxu3 %vm5559_vm3, %v5518_v8 }
 0x999   : > { %7279 = vmatmul.msk.f32.gmra.mxu3 %vm5559_vm3, %v5522_v15  ;;  %v5688_v15 = vadd.f32 %v10958_v61, %v10867_v24 }
 0x99c   : > { %v5728_v19 = vpop.f32.mrf.mxu3 }
 0x99d   : > { %v5729_v33 = vadd.f32 %v5728_v19, %v5673_v16 }
 0x9a1   : > { %7280 = vmatmul.msk.f32.gmra.mxu3 %vm5559_vm3, %v5526_v54  ;;  %v5691_v54 = vadd.f32 %v10963_v46, %v10875_v9 }
 0x9a4   : > { %v5731_v51 = vpop.f32.mrf.mxu3 }
 0x9a5   : > { %v5732_v40 = vadd.f32 %v5731_v51, %v5676_v23 }
 0x9a9   : > { %7281 = vmatmul.msk.f32.gmra.mxu3 %vm5559_vm3, %v5530_v38  ;;  %v5694_v38 = vadd.f32 %v10968_v55, %v10880_v1 }
 0x9ac   : > { %v5734_v60 = vpop.f32.mrf.mxu3 }
 0x9ad   : > { %v5735_v36 = vadd.f32 %v5734_v60, %v5679_v25 }
 0x9b1   : > { %7282 = vmatmul.msk.f32.gmra.mxu3 %vm5559_vm3, %v5534_v30  ;;  %v5697_v30 = vadd.f32 %v10973_v47, %v10885_v10 }
 0x9b4   : > { %v5737_v11 = vpop.f32.mrf.mxu3 }
 0x9b5   : > { %v5738_v2 = vadd.f32 %v5737_v11, %v5682_v59 }
 0x9b9   : > { %7283 = vmatmul.msk.f32.gmra.mxu3 %vm5559_vm3, %v5538_v52  ;;  %v5700_v52 = vadd.f32 %v10981_v26, %v10890_v14  ;;  %v5709_v26 = vadd.f32 %v10999_v28, %v10917_v34 }
 0x9bc   : > { %v5740_v6 = vpop.f32.mrf.mxu3 }
 0x9bd   : > { %v5741_v8 = vadd.f32 %v5740_v6, %v5685_v32 }
 0x9c1   : > { %7284 = vmatmul.msk.f32.gmra.mxu3 %vm5559_vm3, %v5542_v49  ;;  %v5703_v49 = vadd.f32 %v10986_v43, %v10899_v0 }
 0x9c4   : > { %v5743_v45 = vpop.f32.mrf.mxu3 }
 0x9c5   : > { %v5744_v19 = vadd.f32 %v5743_v45, %v5688_v15 }
 0x9c9   : > { %7285 = vmatmul.msk.f32.gmra.mxu3 %vm5559_vm3, %v5546_v58  ;;  %v5706_v58 = vadd.f32 %v10993_v37, %v10906_v53 }
 0x9cc   : > { %v5746_v63 = vpop.f32.mrf.mxu3 }
 0x9cd   : > { %v5747_v51 = vadd.f32 %v5746_v63, %v5691_v54 }
 0x9d1   : > { %7286 = vmatmul.msk.f32.gmra.mxu3 %vm5559_vm3, %v5550_v39 }
 0x9d4   : > { %v5749_v62 = vpop.f32.mrf.mxu3 }
 0x9d5   : > { %v5750_v60 = vadd.f32 %v5749_v62, %v5694_v38 }
 0x9d9   : > { %7287 = vmatmul.msk.f32.gmra.mxu3 %vm5559_vm3, %v5554_v18 }
 0x9dc   : > { %v5752_v48 = vpop.f32.mrf.mxu3 }
 0x9dd   : > { %v5753_v11 = vadd.f32 %v5752_v48, %v5697_v30 }
 0x9e1   : > { %7288 = vmatmul.msk.f32.gmra.mxu3 %vm5559_vm3, %v5558_v13 }
 0x9e4   : > { %v5755_v50 = vpop.f32.mrf.mxu3 }
 0x9e5   : > { %v5756_v6 = vadd.f32 %v5755_v50, %v5700_v52 }
 0x9ec   : > { %v5758_v5 = vpop.f32.mrf.mxu3 }
 0x9ed   : > { %v5759_v45 = vadd.f32 %v5758_v5, %v5703_v49 }
 0x9f4   : > { %v5761_v42 = vpop.f32.mrf.mxu3 }
 0x9f5   : > { %v5762_v63 = vadd.f32 %v5761_v42, %v5706_v58 }
 0x9fc   : > { %v11041_v27 = vpop.f32.mrf.mxu3 }
 0x9fd   : > { %v5765_v62 = vadd.f32 %v11041_v27, %v5709_v26 }
 0xa04   : > { %v5784_v56 = vpop.f32.mrf.mxu3 }
 0xa05   : > { %v5785_v29 = vadd.f32 %v5784_v56, %v5729_v33 }
 0xa07   : > { %5824 = vst.msk [vmem:[%s11048_s21] sm:$0xff] %vm5823_vm4, %v5785_v29 }
 0xa0c   : > { %v5787_v57 = vpop.f32.mrf.mxu3 }
 0xa0d   : > { %v5788_v22 = vadd.f32 %v5787_v57, %v5732_v40 }
 0xa0f   : > { %5825 = vst.msk [vmem:[%s11048_s21 + $0x8] sm:$0xff] %vm5823_vm4, %v5788_v22 }
 0xa14   : > { %v5790_v44 = vpop.f32.mrf.mxu3 }
 0xa15   : > { %v5791_v7 = vadd.f32 %v5790_v44, %v5735_v36 }
 0xa17   : > { %5826 = vst.msk [vmem:[%s11048_s21 + $0x10] sm:$0xff] %vm5823_vm4, %v5791_v7 }
 0xa1c   : > { %v5793_v21 = vpop.f32.mrf.mxu3 }
 0xa1d   : > { %v5794_v35 = vadd.f32 %v5793_v21, %v5738_v2 }
 0xa1f   : > { %5827 = vst.msk [vmem:[%s11048_s21 + $0x18] sm:$0xff] %vm5823_vm4, %v5794_v35 }
 0xa24   : > { %v5796_v3 = vpop.f32.mrf.mxu3 }
 0xa25   : > { %v5797_v20 = vadd.f32 %v5796_v3, %v5741_v8 }
 0xa27   : > { %5828 = vst.msk [vmem:[%s11048_s21 + $0x20] sm:$0xff] %vm5823_vm4, %v5797_v20 }
 0xa2c   : > { %v5799_v12 = vpop.f32.mrf.mxu3 }
 0xa2d   : > { %v5800_v41 = vadd.f32 %v5799_v12, %v5744_v19 }
 0xa2f   : > { %5829 = vst.msk [vmem:[%s11048_s21 + $0x28] sm:$0xff] %vm5823_vm4, %v5800_v41 }
 0xa34   : > { %v5802_v17 = vpop.f32.mrf.mxu3 }
 0xa35   : > { %v5803_v31 = vadd.f32 %v5802_v17, %v5747_v51 }
 0xa37   : > { %5830 = vst.msk [vmem:[%s11048_s21 + $0x30] sm:$0xff] %vm5823_vm4, %v5803_v31 }
 0xa3c   : > { %v5805_v24 = vpop.f32.mrf.mxu3 }
 0xa3d   : > { %v5806_v61 = vadd.f32 %v5805_v24, %v5750_v60 }
 0xa3f   : > { %5831 = vst.msk [vmem:[%s11048_s21 + $0x38] sm:$0xff] %vm5823_vm4, %v5806_v61 }
 0xa44   : > { %v5808_v9 = vpop.f32.mrf.mxu3 }
 0xa45   : > { %v5809_v46 = vadd.f32 %v5808_v9, %v5753_v11 }
 0xa47   : > { %5832 = vst.msk [vmem:[%s11048_s21 + $0x40] sm:$0xff] %vm5823_vm4, %v5809_v46 }
 0xa4c   : > { %v5811_v1 = vpop.f32.mrf.mxu3 }
 0xa4d   : > { %v5812_v55 = vadd.f32 %v5811_v1, %v5756_v6 }
 0xa4f   : > { %5833 = vst.msk [vmem:[%s11048_s21 + $0x48] sm:$0xff] %vm5823_vm4, %v5812_v55 }
 0xa54   : > { %v5814_v10 = vpop.f32.mrf.mxu3 }
 0xa55   : > { %v5815_v47 = vadd.f32 %v5814_v10, %v5759_v45 }
 0xa57   : > { %5834 = vst.msk [vmem:[%s11048_s21 + $0x50] sm:$0xff] %vm5823_vm4, %v5815_v47 }
 0xa5c   : > { %v5817_v39 = vpop.f32.mrf.mxu3 }
 0xa5d   : > { %v5818_v14 = vadd.f32 %v5817_v39, %v5762_v63 }
 0xa5f   : > { %5835 = vst.msk [vmem:[%s11048_s21 + $0x58] sm:$0xff] %vm5823_vm4, %v5818_v14 }
 0xa64   : > { %v5820_v18 = vpop.f32.mrf.mxu3 }
 0xa65   : > { %v5821_v0 = vadd.f32 %v5820_v18, %v5765_v62 }
 0xa67   : > { %5837 = vst.msk [vmem:[%s11048_s21 + $0x60] sm:$0x3] %vm5836_vm5, %v5821_v0 }
 0xa68 PF: > { %s18_s27 = sadd.s32 1, %s7671_s27  }
 0xa69   : > { %p15_p4 = scmp.ge.s32.totalorder %s18_s27, 4  }
 0xa6b   :  { %17 = sbr.rel (!%p15_p4) target bundleno = 1 (0x1), region = 82 }

</bundles_post_ra>
